<compile_context>
chip_gen: v7x
topology: tpu7x:2x2x1
jax: 0.10.0
libtpu: 0.0.40
codegen_flags: <defaults>
</compile_context>

<pallas_src>
import functools

import jax
import jax.numpy as jnp
from jax.experimental import pallas as pl
from jax.experimental.pallas import tpu as pltpu


# ----------------------- encoder kernel -----------------------

def _encoder_kernel(x_ref, w_ref, b_ref, o_ref):
    # out = x @ W + b  (tiny matmul, one block per timestep)
    o_ref[...] = (
        jnp.dot(x_ref[...], w_ref[...], preferred_element_type=jnp.float32)
        + b_ref[...]
    )


def encoder(xs, w, b):
    T, N, D = xs.shape
    H = w.shape[1]
    x2 = xs.reshape(T * N, D)
    out = pl.pallas_call(
        _encoder_kernel,
        out_shape=jax.ShapeDtypeStruct((T * N, H), jnp.float32),
        grid=(T,),
        in_specs=[
            pl.BlockSpec((N, D), lambda t: (t, 0)),
            pl.BlockSpec((D, H), lambda t: (0, 0)),
            pl.BlockSpec((1, H), lambda t: (0, 0)),
        ],
        out_specs=pl.BlockSpec((N, H), lambda t: (t, 0)),
        compiler_params=pltpu.CompilerParams(dimension_semantics=("parallel",)),
    )(x2, w, b)
    return out.reshape(T, N, H)


# ----------------------- fused multi-head GAT layer kernel -----------------------

def _make_gat_layer_kernel(N, H, num_heads, tq, apply_elu, apply_residual):
    Fh = H // num_heads
    A = H + 2 * num_heads  # W_aug columns: [h_all | f_src | f_dst]

    def kernel(x_ref, wa_ref, adj_ref, o_ref, haug_sc, fdst_sc):
        qi = pl.program_id(1)

        # Once per timestep: h for all heads + per-head src/dst scores, kept in VMEM.
        @pl.when(qi == 0)
        def _():
            haug = jnp.dot(x_ref[...], wa_ref[...],
                           preferred_element_type=jnp.float32)          # (N, A) f32
            haug_sc[...] = haug
            f_dst = haug[:, H + num_heads:]                              # (N, nh)
            for hd in range(num_heads):
                # hoisted relayout: one (N,1)->(1,N) transpose per head per timestep
                fdst_sc[hd:hd + 1, :] = f_dst[:, hd:hd + 1].T

        row0 = pl.multiple_of(qi * tq, tq)
        adj = adj_ref[...]                                               # (tq, N) f32
        edge = adj != 0.0                                                # structure mask (no 2nd stream)

        haug_all = haug_sc[...]                                          # (N, A)
        haug_rows = haug_sc[pl.ds(row0, tq), :]                          # (tq, A)
        h_all = haug_all[:, :H].astype(jnp.bfloat16)                     # keys for aggregation (bf16 MXU)
        f_src = haug_rows[:, H:H + num_heads]                            # (tq, nh)
        f_dst_rows = fdst_sc[...]                                        # (nh, N) lane-oriented

        heads = []
        for hd in range(num_heads):
            # score[i, j] = adj[i, j] * (a_src . h_i + a_dst . h_j)
            s = adj * (f_src[:, hd:hd + 1] + f_dst_rows[hd:hd + 1, :])   # (tq, N)
            s = jnp.where(s > 0, s, 0.2 * s)                             # LeakyReLU(0.2)
            # masked softmax with max shift (== exp(s)/rowsum of the reference)
            m = jnp.max(jnp.where(edge, s, -1e30), axis=1, keepdims=True)
            e = jnp.where(edge, jnp.exp(s - m), 0.0)
            rowsum = jnp.sum(e, axis=1, keepdims=True)
            hp = jnp.dot(e.astype(jnp.bfloat16),
                         h_all[:, hd * Fh:(hd + 1) * Fh],
                         preferred_element_type=jnp.float32)             # (tq, Fh)
            heads.append(hp * pl.reciprocal(rowsum, approx=True))
        out = jnp.concatenate(heads, axis=1)                             # (tq, H) head concat

        # fused epilogue (kept on the VPU, hidden under the MXU work)
        if apply_elu:
            out = jnp.where(out > 0, out, jnp.exp(out) - 1.0)            # ELU; feat_drop eval==identity
        if apply_residual:
            out = out + x_ref[pl.ds(row0, tq), :]
        o_ref[...] = out

    return kernel


def gat_layer(x, adjv, w_aug, *, num_heads, apply_elu, apply_residual, tq=128):
    T, N, H = x.shape
    A = w_aug.shape[1]
    tq = min(tq, N)
    assert N % tq == 0, "N must be a multiple of the query-row tile"
    Q = N // tq
    kernel = _make_gat_layer_kernel(N, H, num_heads, tq, apply_elu, apply_residual)
    return pl.pallas_call(
        kernel,
        out_shape=jax.ShapeDtypeStruct((T, N, H), jnp.float32),
        grid=(T, Q),
        in_specs=[
            pl.BlockSpec((None, N, H), lambda t, qi: (t, 0, 0)),   # x: resident across row tiles
            pl.BlockSpec((H, A), lambda t, qi: (0, 0)),            # W_aug: resident
            pl.BlockSpec((None, tq, N), lambda t, qi: (t, qi, 0)),  # adjacency row tile
        ],
        out_specs=pl.BlockSpec((None, tq, H), lambda t, qi: (t, qi, 0)),
        scratch_shapes=[
            pltpu.VMEM((N, A), jnp.float32),          # [h_all | f_src | f_dst], per timestep
            pltpu.VMEM((num_heads, N), jnp.float32),  # lane-oriented f_dst
        ],
        compiler_params=pltpu.CompilerParams(
            dimension_semantics=("parallel", "arbitrary")),
    )(x, w_aug, adjv)


# ----------------------- parameter init -----------------------

def _glorot(key, shape):
    fan_in, fan_out = shape[0], shape[1]
    limit = (6.0 / (fan_in + fan_out)) ** 0.5
    return jax.random.uniform(key, shape, jnp.float32, -limit, limit)


def init_params(key, num_features, num_hiddens, num_layers, num_heads):
    """Returns (raw_params for the pure-JAX reference, fused params for the kernels)."""
    Fh = num_hiddens // num_heads
    n_keys = 2 + num_layers * num_heads * 2
    keys = list(jax.random.split(key, n_keys))
    ki = iter(range(n_keys))

    enc_w = _glorot(keys[next(ki)], (num_features, num_hiddens))
    bound = 1.0 / (num_features ** 0.5)
    enc_b = jax.random.uniform(keys[next(ki)], (1, num_hiddens), jnp.float32, -bound, bound)

    raw_layers, w_aug = [], []
    for _ in range(num_layers):
        heads, Ws, Wsrc, Wdst = [], [], [], []
        for _ in range(num_heads):
            w = _glorot(keys[next(ki)], (num_hiddens, Fh))        # W_list[head]
            a = _glorot(keys[next(ki)], (1, 2 * Fh))              # a_list[head]
            heads.append({"w": w, "a": a})
            Ws.append(w)
            Wsrc.append(w @ a[:, :Fh].T)                          # (H, 1) -> f_src column
            Wdst.append(w @ a[:, Fh:].T)                          # (H, 1) -> f_dst column
        raw_layers.append(heads)
        w_aug.append(jnp.concatenate(Ws + Wsrc + Wdst, axis=1))   # (H, H + 2*nh)

    raw = {"enc_w": enc_w, "enc_b": enc_b, "layers": raw_layers}
    params = {"enc_w": enc_w, "enc_b": enc_b, "w_aug": w_aug}
    return raw, params


# ----------------------- GAT forward (glue, jit'ed) -----------------------

def gat_forward(params, xs, adjvs, *, num_layers, num_heads, use_residual):
    # xs: (T, N, D_in); adjvs: (T, N, N) dense edge values (0 == no edge)
    x = encoder(xs, params["enc_w"], params["enc_b"])             # (T, N, H)
    for ell in range(num_layers):
        x = gat_layer(
            x, adjvs, params["w_aug"][ell],
            num_heads=num_heads,
            apply_elu=(ell != num_layers - 1),
            apply_residual=(ell > 0 and use_residual),
        )
    # all snapshots share the same node count here -> zero padding is a no-op
    # TODO(synk): nn.GRU temporal path (use_rnn=True) not implemented; configured use_rnn=False.
    return jnp.transpose(x, (1, 0, 2))                            # (N, T, H)


# ----------------------- pure-JAX reference (f32, for correctness check) -----------------------

def gat_reference(raw, xs, adjvs, *, num_layers, num_heads, use_residual):
    T, N, _ = xs.shape
    outs = []
    for t in range(T):
        x = xs[t] @ raw["enc_w"] + raw["enc_b"]
        adj = adjvs[t]
        mask = (adj != 0).astype(jnp.float32)
        for ell in range(num_layers):
            heads = []
            for hd in range(num_heads):
                W = raw["layers"][ell][hd]["w"]
                a = raw["layers"][ell][hd]["a"]
                Fh = W.shape[1]
                h = x @ W
                f_src = h @ a[:, :Fh].T
                f_dst = h @ a[:, Fh:].T
                s = adj * (f_src + f_dst.T)
                s = jnp.where(s > 0, s, 0.2 * s)
                e = mask * jnp.exp(s)
                rowsum = e.sum(1, keepdims=True)
                heads.append((e @ h) / rowsum)
            out = jnp.concatenate(heads, axis=1)
            if ell != num_layers - 1:
                out = jnp.where(out > 0, out, jnp.exp(out) - 1.0)
            if ell > 0 and use_residual:
                x = out + x
            else:
                x = out
        outs.append(x)
    return jnp.transpose(jnp.stack(outs, 0), (1, 0, 2))


# ----------------------- main -----------------------

if __name__ == "__main__":
    T, N = 3, 128
    num_features, num_hiddens, num_layers, num_heads = 16, 32, 2, 4
    use_residual = True

    key = jax.random.PRNGKey(0)
    kx, kadj, kval, kp = jax.random.split(key, 4)

    xs = jax.random.normal(kx, (T, N, num_features), jnp.float32)

    # random sparse-ish adjacency, densified; self-loops guarantee nonzero rowsum
    mask = (jax.random.uniform(kadj, (T, N, N)) < 0.2).astype(jnp.float32)
    mask = jnp.maximum(mask, jnp.eye(N, dtype=jnp.float32)[None])
    vals = jax.random.uniform(kval, (T, N, N), jnp.float32, 0.5, 1.5) * mask

    raw, params = init_params(kp, num_features, num_hiddens, num_layers, num_heads)

    fwd = jax.jit(functools.partial(
        gat_forward, num_layers=num_layers, num_heads=num_heads,
        use_residual=use_residual))
    out = jax.block_until_ready(fwd(params, xs, vals))

    assert out.shape == (N, T, num_hiddens), out.shape
    assert bool(jnp.all(jnp.isfinite(out)))

    # loose sanity check against a pure-f32 reference (kernel uses bf16 aggregation
    # + approximate reciprocal, so allow a few percent relative L2 error)
    with jax.default_matmul_precision("highest"):
        ref = gat_reference(raw, xs, vals, num_layers=num_layers,
                            num_heads=num_heads, use_residual=use_residual)
    rel = float(jnp.linalg.norm(out - ref) / jnp.linalg.norm(ref))
    assert rel < 0.08, f"relative L2 error too large: {rel}"

    print("KERNEL_OK")
</pallas_src>

<mosaic_0001>
module attributes {stable_mosaic.version = 11 : i64} {
  func.func @_encoder_kernel(%arg0: i32, %arg1: memref<128x16xf32, #tpu.memory_space<vmem>>, %arg2: memref<16x32xf32, #tpu.memory_space<vmem>>, %arg3: memref<1x32xf32, #tpu.memory_space<vmem>>, %arg4: memref<128x32xf32, #tpu.memory_space<vmem>>) attributes {dimension_semantics = [#tpu.dimension_semantics<parallel>], iteration_bounds = array<i64: 3>, scalar_prefetch = 0 : i64, scratch_operands = 0 : i64, tpu.core_type = #tpu.core_type<tc>, window_params = [{transform_indices = @transform_0, window_bounds = array<i64: 128, 16>}, {pipeline_mode = #tpu.pipeline_mode<synchronous>, transform_indices = @transform_1, window_bounds = array<i64: 16, 32>}, {pipeline_mode = #tpu.pipeline_mode<synchronous>, transform_indices = @transform_2, window_bounds = array<i64: 1, 32>}, {transform_indices = @transform_3, window_bounds = array<i64: 128, 32>}]} {
    %c0 = arith.constant 0 : index
    %c0_0 = arith.constant 0 : index
    %0 = vector.load %arg1[%c0, %c0_0] : memref<128x16xf32, #tpu.memory_space<vmem>>, vector<128x16xf32>
    %c0_1 = arith.constant 0 : index
    %c0_2 = arith.constant 0 : index
    %1 = vector.load %arg2[%c0_1, %c0_2] : memref<16x32xf32, #tpu.memory_space<vmem>>, vector<16x32xf32>
    %cst = arith.constant dense<0.000000e+00> : vector<128x32xf32>
    %2 = tpu.matmul %0, %1, %cst {dimension_numbers = #tpu.dot_dimension_numbers<[1], [0], [0], [1], [0, 0, 1, 1], [], []>} : vector<128x16xf32>, vector<16x32xf32>, vector<128x32xf32> -> vector<128x32xf32>
    %c0_3 = arith.constant 0 : index
    %c0_4 = arith.constant 0 : index
    %3 = vector.load %arg3[%c0_3, %c0_4] : memref<1x32xf32, #tpu.memory_space<vmem>>, vector<1x32xf32>
    %4 = vector.broadcast %3 : vector<1x32xf32> to vector<128x32xf32>
    %5 = arith.addf %2, %4 : vector<128x32xf32>
    %c0_5 = arith.constant 0 : index
    %c0_6 = arith.constant 0 : index
    %6 = vector.load %arg4[%c0_5, %c0_6] : memref<128x32xf32, #tpu.memory_space<vmem>>, vector<128x32xf32>
    tpu.vector_store %arg4[%c0_5, %c0_6], %5 {strides = array<i32>} : memref<128x32xf32, #tpu.memory_space<vmem>>, vector<128x32xf32>,
    return
  }
  func.func @transform_0(%arg0: i32) -> (i32, i32) {
    %c0_i32 = arith.constant 0 : i32
    %c0_i32_0 = arith.constant 0 : i32
    return %arg0, %c0_i32 : i32, i32
  }
  func.func @transform_1(%arg0: i32) -> (i32, i32) {
    %c0_i32 = arith.constant 0 : i32
    %c0_i32_0 = arith.constant 0 : i32
    %c0_i32_1 = arith.constant 0 : i32
    return %c0_i32, %c0_i32_0 : i32, i32
  }
  func.func @transform_2(%arg0: i32) -> (i32, i32) {
    %c0_i32 = arith.constant 0 : i32
    %c0_i32_0 = arith.constant 0 : i32
    %c0_i32_1 = arith.constant 0 : i32
    return %c0_i32, %c0_i32_0 : i32, i32
  }
  func.func @transform_3(%arg0: i32) -> (i32, i32) {
    %c0_i32 = arith.constant 0 : i32
    %c0_i32_0 = arith.constant 0 : i32
    return %arg0, %c0_i32 : i32, i32
  }
}

module attributes {stable_mosaic.version = 11 : i64} {
  func.func @kernel(%arg0: i32, %arg1: i32, %arg2: memref<1x128x32xf32, #tpu.memory_space<vmem>>, %arg3: memref<32x40xf32, #tpu.memory_space<vmem>>, %arg4: memref<1x128x128xf32, #tpu.memory_space<vmem>>, %arg5: memref<1x128x32xf32, #tpu.memory_space<vmem>>, %arg6: memref<128x40xf32, #tpu.memory_space<vmem>>, %arg7: memref<4x128xf32, #tpu.memory_space<vmem>>) attributes {dimension_semantics = [#tpu.dimension_semantics<parallel>, #tpu.dimension_semantics<arbitrary>], iteration_bounds = array<i64: 3, 1>, scalar_prefetch = 0 : i64, scratch_operands = 2 : i64, tpu.core_type = #tpu.core_type<tc>, window_params = [{transform_indices = @transform_0, window_bounds = array<i64: 1, 128, 32>}, {pipeline_mode = #tpu.pipeline_mode<synchronous>, transform_indices = @transform_1, window_bounds = array<i64: 32, 40>}, {transform_indices = @transform_2, window_bounds = array<i64: 1, 128, 128>}, {transform_indices = @transform_3, window_bounds = array<i64: 1, 128, 32>}]} {
    %c0_i32 = arith.constant 0 : i32
    %0 = arith.cmpi eq, %arg1, %c0_i32 : i32
    %1 = arith.extui %0 : i1 to i32
    %c0_i32_0 = arith.constant 0 : i32
    %2 = arith.cmpi ne, %1, %c0_i32_0 : i32
    scf.if %2 {
      %c0_41 = arith.constant 0 : index
      %c0_42 = arith.constant 0 : index
      %c0_43 = arith.constant 0 : index
      %138 = vector.load %arg2[%c0_41, %c0_42, %c0_43] : memref<1x128x32xf32, #tpu.memory_space<vmem>>, vector<1x128x32xf32>
      %139 = vector.shape_cast %138 : vector<1x128x32xf32> to vector<128x32xf32>
      %c0_44 = arith.constant 0 : index
      %c0_45 = arith.constant 0 : index
      %140 = vector.load %arg3[%c0_44, %c0_45] : memref<32x40xf32, #tpu.memory_space<vmem>>, vector<32x40xf32>
      %cst_46 = arith.constant dense<0.000000e+00> : vector<128x40xf32>
      %141 = tpu.matmul %139, %140, %cst_46 {dimension_numbers = #tpu.dot_dimension_numbers<[1], [0], [0], [1], [0, 0, 1, 1], [], []>} : vector<128x32xf32>, vector<32x40xf32>, vector<128x40xf32> -> vector<128x40xf32>
      %c0_47 = arith.constant 0 : index
      %c0_48 = arith.constant 0 : index
      %142 = vector.load %arg6[%c0_47, %c0_48] : memref<128x40xf32, #tpu.memory_space<vmem>>, vector<128x40xf32>
      tpu.vector_store %arg6[%c0_47, %c0_48], %141 {strides = array<i32>} : memref<128x40xf32, #tpu.memory_space<vmem>>, vector<128x40xf32>,
      %143 = vector.extract_strided_slice %141 {offsets = [0, 36], sizes = [128, 4], strides = [1, 1]} : vector<128x40xf32> to vector<128x4xf32>
      %144 = vector.extract_strided_slice %143 {offsets = [0, 0], sizes = [128, 1], strides = [1, 1]} : vector<128x4xf32> to vector<128x1xf32>
      %145 = tpu.transpose %144, [1, 0] : vector<128x1xf32> -> vector<1x128xf32>
      %c0_49 = arith.constant 0 : index
      %c0_50 = arith.constant 0 : index
      %146 = vector.load %arg7[%c0_49, %c0_50] : memref<4x128xf32, #tpu.memory_space<vmem>>, vector<1x128xf32>
      tpu.vector_store %arg7[%c0_49, %c0_50], %145 {strides = array<i32>} : memref<4x128xf32, #tpu.memory_space<vmem>>, vector<1x128xf32>,
      %147 = vector.extract_strided_slice %143 {offsets = [0, 1], sizes = [128, 1], strides = [1, 1]} : vector<128x4xf32> to vector<128x1xf32>
      %148 = tpu.transpose %147, [1, 0] : vector<128x1xf32> -> vector<1x128xf32>
      %c1 = arith.constant 1 : index
      %c0_51 = arith.constant 0 : index
      %149 = vector.load %arg7[%c1, %c0_51] : memref<4x128xf32, #tpu.memory_space<vmem>>, vector<1x128xf32>
      tpu.vector_store %arg7[%c1, %c0_51], %148 {strides = array<i32>} : memref<4x128xf32, #tpu.memory_space<vmem>>, vector<1x128xf32>,
      %150 = vector.extract_strided_slice %143 {offsets = [0, 2], sizes = [128, 1], strides = [1, 1]} : vector<128x4xf32> to vector<128x1xf32>
      %151 = tpu.transpose %150, [1, 0] : vector<128x1xf32> -> vector<1x128xf32>
      %c2 = arith.constant 2 : index
      %c0_52 = arith.constant 0 : index
      %152 = vector.load %arg7[%c2, %c0_52] : memref<4x128xf32, #tpu.memory_space<vmem>>, vector<1x128xf32>
      tpu.vector_store %arg7[%c2, %c0_52], %151 {strides = array<i32>} : memref<4x128xf32, #tpu.memory_space<vmem>>, vector<1x128xf32>,
      %153 = vector.extract_strided_slice %143 {offsets = [0, 3], sizes = [128, 1], strides = [1, 1]} : vector<128x4xf32> to vector<128x1xf32>
      %154 = tpu.transpose %153, [1, 0] : vector<128x1xf32> -> vector<1x128xf32>
      %c3 = arith.constant 3 : index
      %c0_53 = arith.constant 0 : index
      %155 = vector.load %arg7[%c3, %c0_53] : memref<4x128xf32, #tpu.memory_space<vmem>>, vector<1x128xf32>
      tpu.vector_store %arg7[%c3, %c0_53], %154 {strides = array<i32>} : memref<4x128xf32, #tpu.memory_space<vmem>>, vector<1x128xf32>,
    } else {
    }
    %c128_i32 = arith.constant 128 : i32
    %3 = arith.muli %arg1, %c128_i32 : i32
    %4 = tpu.assume_multiple %3, 128 : i32
    %c0 = arith.constant 0 : index
    %c0_1 = arith.constant 0 : index
    %c0_2 = arith.constant 0 : index
    %5 = vector.load %arg4[%c0, %c0_1, %c0_2] : memref<1x128x128xf32, #tpu.memory_space<vmem>>, vector<1x128x128xf32>
    %6 = vector.shape_cast %5 : vector<1x128x128xf32> to vector<128x128xf32>
    %cst = arith.constant 0.000000e+00 : f32
    %7 = vector.broadcast %cst : f32 to vector<128x128xf32>
    %8 = arith.cmpf one, %6, %7 : vector<128x128xf32>
    %c0_3 = arith.constant 0 : index
    %c0_4 = arith.constant 0 : index
    %9 = vector.load %arg6[%c0_3, %c0_4] : memref<128x40xf32, #tpu.memory_space<vmem>>, vector<128x40xf32>
    %10 = arith.index_cast %4 : i32 to index
    %c0_5 = arith.constant 0 : index
    %11 = vector.load %arg6[%10, %c0_5] : memref<128x40xf32, #tpu.memory_space<vmem>>, vector<128x40xf32>
    %12 = vector.extract_strided_slice %9 {offsets = [0, 0], sizes = [128, 32], strides = [1, 1]} : vector<128x40xf32> to vector<128x32xf32>
    %13 = arith.truncf %12 : vector<128x32xf32> to vector<128x32xbf16>
    %14 = vector.extract_strided_slice %11 {offsets = [0, 32], sizes = [128, 4], strides = [1, 1]} : vector<128x40xf32> to vector<128x4xf32>
    %c0_6 = arith.constant 0 : index
    %c0_7 = arith.constant 0 : index
    %15 = vector.load %arg7[%c0_6, %c0_7] : memref<4x128xf32, #tpu.memory_space<vmem>>, vector<4x128xf32>
    %16 = vector.extract_strided_slice %14 {offsets = [0, 0], sizes = [128, 1], strides = [1, 1]} : vector<128x4xf32> to vector<128x1xf32>
    %17 = vector.extract_strided_slice %15 {offsets = [0, 0], sizes = [1, 128], strides = [1, 1]} : vector<4x128xf32> to vector<1x128xf32>
    %18 = vector.broadcast %16 : vector<128x1xf32> to vector<128x128xf32>
    %19 = vector.broadcast %17 : vector<1x128xf32> to vector<128x128xf32>
    %20 = arith.addf %18, %19 : vector<128x128xf32>
    %21 = arith.mulf %6, %20 : vector<128x128xf32>
    %cst_8 = arith.constant 0.000000e+00 : f32
    %22 = vector.broadcast %cst_8 : f32 to vector<128x128xf32>
    %23 = arith.cmpf ogt, %21, %22 : vector<128x128xf32>
    %cst_9 = arith.constant 2.000000e-01 : f32
    %24 = vector.broadcast %cst_9 : f32 to vector<128x128xf32>
    %25 = arith.mulf %24, %21 : vector<128x128xf32>
    %26 = arith.select %23, %21, %25 : vector<128x128xi1>, vector<128x128xf32>
    %cst_10 = arith.constant -1.000000e+30 : f32
    %27 = vector.broadcast %cst_10 : f32 to vector<128x128xf32>
    %28 = arith.select %8, %26, %27 : vector<128x128xi1>, vector<128x128xf32>
    %cst_11 = arith.constant dense<0xFF800000> : vector<128xf32>
    %29 = vector.multi_reduction <maximumf>, %28, %cst_11 [1] : vector<128x128xf32> to vector<128xf32>
    %30 = vector.shape_cast %29 : vector<128xf32> to vector<128x1xf32>
    %31 = vector.broadcast %30 : vector<128x1xf32> to vector<128x128xf32>
    %32 = arith.subf %26, %31 : vector<128x128xf32>
    %33 = math.exp %32 : vector<128x128xf32>
    %cst_12 = arith.constant 0.000000e+00 : f32
    %34 = vector.broadcast %cst_12 : f32 to vector<128x128xf32>
    %35 = arith.select %8, %33, %34 : vector<128x128xi1>, vector<128x128xf32>
    %cst_13 = arith.constant dense<0.000000e+00> : vector<128xf32>
    %36 = vector.multi_reduction <add>, %35, %cst_13 [1] : vector<128x128xf32> to vector<128xf32>
    %37 = vector.shape_cast %36 : vector<128xf32> to vector<128x1xf32>
    %38 = arith.truncf %35 : vector<128x128xf32> to vector<128x128xbf16>
    %39 = vector.extract_strided_slice %13 {offsets = [0, 0], sizes = [128, 8], strides = [1, 1]} : vector<128x32xbf16> to vector<128x8xbf16>
    %cst_14 = arith.constant dense<0.000000e+00> : vector<128x8xf32>
    %40 = tpu.matmul %38, %39, %cst_14 {dimension_numbers = #tpu.dot_dimension_numbers<[1], [0], [0], [1], [0, 0, 1, 1], [], []>} : vector<128x128xbf16>, vector<128x8xbf16>, vector<128x8xf32> -> vector<128x8xf32>
    %41 = tpu.reciprocal %37 {approx = true} : vector<128x1xf32> -> vector<128x1xf32>
    %42 = vector.broadcast %41 : vector<128x1xf32> to vector<128x8xf32>
    %43 = arith.mulf %40, %42 : vector<128x8xf32>
    %44 = vector.extract_strided_slice %14 {offsets = [0, 1], sizes = [128, 1], strides = [1, 1]} : vector<128x4xf32> to vector<128x1xf32>
    %45 = vector.extract_strided_slice %15 {offsets = [1, 0], sizes = [1, 128], strides = [1, 1]} : vector<4x128xf32> to vector<1x128xf32>
    %46 = vector.broadcast %44 : vector<128x1xf32> to vector<128x128xf32>
    %47 = vector.broadcast %45 : vector<1x128xf32> to vector<128x128xf32>
    %48 = arith.addf %46, %47 : vector<128x128xf32>
    %49 = arith.mulf %6, %48 : vector<128x128xf32>
    %cst_15 = arith.constant 0.000000e+00 : f32
    %50 = vector.broadcast %cst_15 : f32 to vector<128x128xf32>
    %51 = arith.cmpf ogt, %49, %50 : vector<128x128xf32>
    %cst_16 = arith.constant 2.000000e-01 : f32
    %52 = vector.broadcast %cst_16 : f32 to vector<128x128xf32>
    %53 = arith.mulf %52, %49 : vector<128x128xf32>
    %54 = arith.select %51, %49, %53 : vector<128x128xi1>, vector<128x128xf32>
    %cst_17 = arith.constant -1.000000e+30 : f32
    %55 = vector.broadcast %cst_17 : f32 to vector<128x128xf32>
    %56 = arith.select %8, %54, %55 : vector<128x128xi1>, vector<128x128xf32>
    %cst_18 = arith.constant dense<0xFF800000> : vector<128xf32>
    %57 = vector.multi_reduction <maximumf>, %56, %cst_18 [1] : vector<128x128xf32> to vector<128xf32>
    %58 = vector.shape_cast %57 : vector<128xf32> to vector<128x1xf32>
    %59 = vector.broadcast %58 : vector<128x1xf32> to vector<128x128xf32>
    %60 = arith.subf %54, %59 : vector<128x128xf32>
    %61 = math.exp %60 : vector<128x128xf32>
    %cst_19 = arith.constant 0.000000e+00 : f32
    %62 = vector.broadcast %cst_19 : f32 to vector<128x128xf32>
    %63 = arith.select %8, %61, %62 : vector<128x128xi1>, vector<128x128xf32>
    %cst_20 = arith.constant dense<0.000000e+00> : vector<128xf32>
    %64 = vector.multi_reduction <add>, %63, %cst_20 [1] : vector<128x128xf32> to vector<128xf32>
    %65 = vector.shape_cast %64 : vector<128xf32> to vector<128x1xf32>
    %66 = arith.truncf %63 : vector<128x128xf32> to vector<128x128xbf16>
    %67 = vector.extract_strided_slice %13 {offsets = [0, 8], sizes = [128, 8], strides = [1, 1]} : vector<128x32xbf16> to vector<128x8xbf16>
    %cst_21 = arith.constant dense<0.000000e+00> : vector<128x8xf32>
    %68 = tpu.matmul %66, %67, %cst_21 {dimension_numbers = #tpu.dot_dimension_numbers<[1], [0], [0], [1], [0, 0, 1, 1], [], []>} : vector<128x128xbf16>, vector<128x8xbf16>, vector<128x8xf32> -> vector<128x8xf32>
    %69 = tpu.reciprocal %65 {approx = true} : vector<128x1xf32> -> vector<128x1xf32>
    %70 = vector.broadcast %69 : vector<128x1xf32> to vector<128x8xf32>
    %71 = arith.mulf %68, %70 : vector<128x8xf32>
    %72 = vector.extract_strided_slice %14 {offsets = [0, 2], sizes = [128, 1], strides = [1, 1]} : vector<128x4xf32> to vector<128x1xf32>
    %73 = vector.extract_strided_slice %15 {offsets = [2, 0], sizes = [1, 128], strides = [1, 1]} : vector<4x128xf32> to vector<1x128xf32>
    %74 = vector.broadcast %72 : vector<128x1xf32> to vector<128x128xf32>
    %75 = vector.broadcast %73 : vector<1x128xf32> to vector<128x128xf32>
    %76 = arith.addf %74, %75 : vector<128x128xf32>
    %77 = arith.mulf %6, %76 : vector<128x128xf32>
    %cst_22 = arith.constant 0.000000e+00 : f32
    %78 = vector.broadcast %cst_22 : f32 to vector<128x128xf32>
    %79 = arith.cmpf ogt, %77, %78 : vector<128x128xf32>
    %cst_23 = arith.constant 2.000000e-01 : f32
    %80 = vector.broadcast %cst_23 : f32 to vector<128x128xf32>
    %81 = arith.mulf %80, %77 : vector<128x128xf32>
    %82 = arith.select %79, %77, %81 : vector<128x128xi1>, vector<128x128xf32>
    %cst_24 = arith.constant -1.000000e+30 : f32
    %83 = vector.broadcast %cst_24 : f32 to vector<128x128xf32>
    %84 = arith.select %8, %82, %83 : vector<128x128xi1>, vector<128x128xf32>
    %cst_25 = arith.constant dense<0xFF800000> : vector<128xf32>
    %85 = vector.multi_reduction <maximumf>, %84, %cst_25 [1] : vector<128x128xf32> to vector<128xf32>
    %86 = vector.shape_cast %85 : vector<128xf32> to vector<128x1xf32>
    %87 = vector.broadcast %86 : vector<128x1xf32> to vector<128x128xf32>
    %88 = arith.subf %82, %87 : vector<128x128xf32>
    %89 = math.exp %88 : vector<128x128xf32>
    %cst_26 = arith.constant 0.000000e+00 : f32
    %90 = vector.broadcast %cst_26 : f32 to vector<128x128xf32>
    %91 = arith.select %8, %89, %90 : vector<128x128xi1>, vector<128x128xf32>
    %cst_27 = arith.constant dense<0.000000e+00> : vector<128xf32>
    %92 = vector.multi_reduction <add>, %91, %cst_27 [1] : vector<128x128xf32> to vector<128xf32>
    %93 = vector.shape_cast %92 : vector<128xf32> to vector<128x1xf32>
    %94 = arith.truncf %91 : vector<128x128xf32> to vector<128x128xbf16>
    %95 = vector.extract_strided_slice %13 {offsets = [0, 16], sizes = [128, 8], strides = [1, 1]} : vector<128x32xbf16> to vector<128x8xbf16>
    %cst_28 = arith.constant dense<0.000000e+00> : vector<128x8xf32>
    %96 = tpu.matmul %94, %95, %cst_28 {dimension_numbers = #tpu.dot_dimension_numbers<[1], [0], [0], [1], [0, 0, 1, 1], [], []>} : vector<128x128xbf16>, vector<128x8xbf16>, vector<128x8xf32> -> vector<128x8xf32>
    %97 = tpu.reciprocal %93 {approx = true} : vector<128x1xf32> -> vector<128x1xf32>
    %98 = vector.broadcast %97 : vector<128x1xf32> to vector<128x8xf32>
    %99 = arith.mulf %96, %98 : vector<128x8xf32>
    %100 = vector.extract_strided_slice %14 {offsets = [0, 3], sizes = [128, 1], strides = [1, 1]} : vector<128x4xf32> to vector<128x1xf32>
    %101 = vector.extract_strided_slice %15 {offsets = [3, 0], sizes = [1, 128], strides = [1, 1]} : vector<4x128xf32> to vector<1x128xf32>
    %102 = vector.broadcast %100 : vector<128x1xf32> to vector<128x128xf32>
    %103 = vector.broadcast %101 : vector<1x128xf32> to vector<128x128xf32>
    %104 = arith.addf %102, %103 : vector<128x128xf32>
    %105 = arith.mulf %6, %104 : vector<128x128xf32>
    %cst_29 = arith.constant 0.000000e+00 : f32
    %106 = vector.broadcast %cst_29 : f32 to vector<128x128xf32>
    %107 = arith.cmpf ogt, %105, %106 : vector<128x128xf32>
    %cst_30 = arith.constant 2.000000e-01 : f32
    %108 = vector.broadcast %cst_30 : f32 to vector<128x128xf32>
    %109 = arith.mulf %108, %105 : vector<128x128xf32>
    %110 = arith.select %107, %105, %109 : vector<128x128xi1>, vector<128x128xf32>
    %cst_31 = arith.constant -1.000000e+30 : f32
    %111 = vector.broadcast %cst_31 : f32 to vector<128x128xf32>
    %112 = arith.select %8, %110, %111 : vector<128x128xi1>, vector<128x128xf32>
    %cst_32 = arith.constant dense<0xFF800000> : vector<128xf32>
    %113 = vector.multi_reduction <maximumf>, %112, %cst_32 [1] : vector<128x128xf32> to vector<128xf32>
    %114 = vector.shape_cast %113 : vector<128xf32> to vector<128x1xf32>
    %115 = vector.broadcast %114 : vector<128x1xf32> to vector<128x128xf32>
    %116 = arith.subf %110, %115 : vector<128x128xf32>
    %117 = math.exp %116 : vector<128x128xf32>
    %cst_33 = arith.constant 0.000000e+00 : f32
    %118 = vector.broadcast %cst_33 : f32 to vector<128x128xf32>
    %119 = arith.select %8, %117, %118 : vector<128x128xi1>, vector<128x128xf32>
    %cst_34 = arith.constant dense<0.000000e+00> : vector<128xf32>
    %120 = vector.multi_reduction <add>, %119, %cst_34 [1] : vector<128x128xf32> to vector<128xf32>
    %121 = vector.shape_cast %120 : vector<128xf32> to vector<128x1xf32>
    %122 = arith.truncf %119 : vector<128x128xf32> to vector<128x128xbf16>
    %123 = vector.extract_strided_slice %13 {offsets = [0, 24], sizes = [128, 8], strides = [1, 1]} : vector<128x32xbf16> to vector<128x8xbf16>
    %cst_35 = arith.constant dense<0.000000e+00> : vector<128x8xf32>
    %124 = tpu.matmul %122, %123, %cst_35 {dimension_numbers = #tpu.dot_dimension_numbers<[1], [0], [0], [1], [0, 0, 1, 1], [], []>} : vector<128x128xbf16>, vector<128x8xbf16>, vector<128x8xf32> -> vector<128x8xf32>
    %125 = tpu.reciprocal %121 {approx = true} : vector<128x1xf32> -> vector<128x1xf32>
    %126 = vector.broadcast %125 : vector<128x1xf32> to vector<128x8xf32>
    %127 = arith.mulf %124, %126 : vector<128x8xf32>
    %128 = tpu.concatenate %43, %71, %99, %127 in 1 : vector<128x8xf32>, vector<128x8xf32>, vector<128x8xf32>, vector<128x8xf32> -> vector<128x32xf32>
    %cst_36 = arith.constant 0.000000e+00 : f32
    %129 = vector.broadcast %cst_36 : f32 to vector<128x32xf32>
    %130 = arith.cmpf ogt, %128, %129 : vector<128x32xf32>
    %131 = math.exp %128 : vector<128x32xf32>
    %cst_37 = arith.constant 1.000000e+00 : f32
    %132 = vector.broadcast %cst_37 : f32 to vector<128x32xf32>
    %133 = arith.subf %131, %132 : vector<128x32xf32>
    %134 = arith.select %130, %128, %133 : vector<128x32xi1>, vector<128x32xf32>
    %c0_38 = arith.constant 0 : index
    %c0_39 = arith.constant 0 : index
    %c0_40 = arith.constant 0 : index
    %135 = vector.load %arg5[%c0_38, %c0_39, %c0_40] : memref<1x128x32xf32, #tpu.memory_space<vmem>>, vector<1x128x32xf32>
    %136 = vector.shape_cast %135 : vector<1x128x32xf32> to vector<128x32xf32>
    %137 = vector.shape_cast %134 : vector<128x32xf32> to vector<1x128x32xf32>
    tpu.vector_store %arg5[%c0_38, %c0_39, %c0_40], %137 {strides = array<i32>} : memref<1x128x32xf32, #tpu.memory_space<vmem>>, vector<1x128x32xf32>,
    return
  }
  func.func @transform_0(%arg0: i32, %arg1: i32) -> (i32, i32, i32) {
    %c0_i32 = arith.constant 0 : i32
    %c0_i32_0 = arith.constant 0 : i32
    %c0_i32_1 = arith.constant 0 : i32
    return %arg0, %c0_i32, %c0_i32_0 : i32, i32, i32
  }
  func.func @transform_1(%arg0: i32, %arg1: i32) -> (i32, i32) {
    %c0_i32 = arith.constant 0 : i32
    %c0_i32_0 = arith.constant 0 : i32
    %c0_i32_1 = arith.constant 0 : i32
    return %c0_i32, %c0_i32_0 : i32, i32
  }
  func.func @transform_2(%arg0: i32, %arg1: i32) -> (i32, i32, i32) {
    %c0_i32 = arith.constant 0 : i32
    %c0_i32_0 = arith.constant 0 : i32
    return %arg0, %arg1, %c0_i32 : i32, i32, i32
  }
  func.func @transform_3(%arg0: i32, %arg1: i32) -> (i32, i32, i32) {
    %c0_i32 = arith.constant 0 : i32
    %c0_i32_0 = arith.constant 0 : i32
    return %arg0, %arg1, %c0_i32 : i32, i32, i32
  }
}

module attributes {stable_mosaic.version = 11 : i64} {
  func.func @kernel(%arg0: i32, %arg1: i32, %arg2: memref<1x128x32xf32, #tpu.memory_space<vmem>>, %arg3: memref<32x40xf32, #tpu.memory_space<vmem>>, %arg4: memref<1x128x128xf32, #tpu.memory_space<vmem>>, %arg5: memref<1x128x32xf32, #tpu.memory_space<vmem>>, %arg6: memref<128x40xf32, #tpu.memory_space<vmem>>, %arg7: memref<4x128xf32, #tpu.memory_space<vmem>>) attributes {dimension_semantics = [#tpu.dimension_semantics<parallel>, #tpu.dimension_semantics<arbitrary>], iteration_bounds = array<i64: 3, 1>, scalar_prefetch = 0 : i64, scratch_operands = 2 : i64, tpu.core_type = #tpu.core_type<tc>, window_params = [{transform_indices = @transform_0, window_bounds = array<i64: 1, 128, 32>}, {pipeline_mode = #tpu.pipeline_mode<synchronous>, transform_indices = @transform_1, window_bounds = array<i64: 32, 40>}, {transform_indices = @transform_2, window_bounds = array<i64: 1, 128, 128>}, {transform_indices = @transform_3, window_bounds = array<i64: 1, 128, 32>}]} {
    %c0_i32 = arith.constant 0 : i32
    %0 = arith.cmpi eq, %arg1, %c0_i32 : i32
    %1 = arith.extui %0 : i1 to i32
    %c0_i32_0 = arith.constant 0 : i32
    %2 = arith.cmpi ne, %1, %c0_i32_0 : i32
    scf.if %2 {
      %c0_41 = arith.constant 0 : index
      %c0_42 = arith.constant 0 : index
      %c0_43 = arith.constant 0 : index
      %136 = vector.load %arg2[%c0_41, %c0_42, %c0_43] : memref<1x128x32xf32, #tpu.memory_space<vmem>>, vector<1x128x32xf32>
      %137 = vector.shape_cast %136 : vector<1x128x32xf32> to vector<128x32xf32>
      %c0_44 = arith.constant 0 : index
      %c0_45 = arith.constant 0 : index
      %138 = vector.load %arg3[%c0_44, %c0_45] : memref<32x40xf32, #tpu.memory_space<vmem>>, vector<32x40xf32>
      %cst_46 = arith.constant dense<0.000000e+00> : vector<128x40xf32>
      %139 = tpu.matmul %137, %138, %cst_46 {dimension_numbers = #tpu.dot_dimension_numbers<[1], [0], [0], [1], [0, 0, 1, 1], [], []>} : vector<128x32xf32>, vector<32x40xf32>, vector<128x40xf32> -> vector<128x40xf32>
      %c0_47 = arith.constant 0 : index
      %c0_48 = arith.constant 0 : index
      %140 = vector.load %arg6[%c0_47, %c0_48] : memref<128x40xf32, #tpu.memory_space<vmem>>, vector<128x40xf32>
      tpu.vector_store %arg6[%c0_47, %c0_48], %139 {strides = array<i32>} : memref<128x40xf32, #tpu.memory_space<vmem>>, vector<128x40xf32>,
      %141 = vector.extract_strided_slice %139 {offsets = [0, 36], sizes = [128, 4], strides = [1, 1]} : vector<128x40xf32> to vector<128x4xf32>
      %142 = vector.extract_strided_slice %141 {offsets = [0, 0], sizes = [128, 1], strides = [1, 1]} : vector<128x4xf32> to vector<128x1xf32>
      %143 = tpu.transpose %142, [1, 0] : vector<128x1xf32> -> vector<1x128xf32>
      %c0_49 = arith.constant 0 : index
      %c0_50 = arith.constant 0 : index
      %144 = vector.load %arg7[%c0_49, %c0_50] : memref<4x128xf32, #tpu.memory_space<vmem>>, vector<1x128xf32>
      tpu.vector_store %arg7[%c0_49, %c0_50], %143 {strides = array<i32>} : memref<4x128xf32, #tpu.memory_space<vmem>>, vector<1x128xf32>,
      %145 = vector.extract_strided_slice %141 {offsets = [0, 1], sizes = [128, 1], strides = [1, 1]} : vector<128x4xf32> to vector<128x1xf32>
      %146 = tpu.transpose %145, [1, 0] : vector<128x1xf32> -> vector<1x128xf32>
      %c1 = arith.constant 1 : index
      %c0_51 = arith.constant 0 : index
      %147 = vector.load %arg7[%c1, %c0_51] : memref<4x128xf32, #tpu.memory_space<vmem>>, vector<1x128xf32>
      tpu.vector_store %arg7[%c1, %c0_51], %146 {strides = array<i32>} : memref<4x128xf32, #tpu.memory_space<vmem>>, vector<1x128xf32>,
      %148 = vector.extract_strided_slice %141 {offsets = [0, 2], sizes = [128, 1], strides = [1, 1]} : vector<128x4xf32> to vector<128x1xf32>
      %149 = tpu.transpose %148, [1, 0] : vector<128x1xf32> -> vector<1x128xf32>
      %c2 = arith.constant 2 : index
      %c0_52 = arith.constant 0 : index
      %150 = vector.load %arg7[%c2, %c0_52] : memref<4x128xf32, #tpu.memory_space<vmem>>, vector<1x128xf32>
      tpu.vector_store %arg7[%c2, %c0_52], %149 {strides = array<i32>} : memref<4x128xf32, #tpu.memory_space<vmem>>, vector<1x128xf32>,
      %151 = vector.extract_strided_slice %141 {offsets = [0, 3], sizes = [128, 1], strides = [1, 1]} : vector<128x4xf32> to vector<128x1xf32>
      %152 = tpu.transpose %151, [1, 0] : vector<128x1xf32> -> vector<1x128xf32>
      %c3 = arith.constant 3 : index
      %c0_53 = arith.constant 0 : index
      %153 = vector.load %arg7[%c3, %c0_53] : memref<4x128xf32, #tpu.memory_space<vmem>>, vector<1x128xf32>
      tpu.vector_store %arg7[%c3, %c0_53], %152 {strides = array<i32>} : memref<4x128xf32, #tpu.memory_space<vmem>>, vector<1x128xf32>,
    } else {
    }
    %c128_i32 = arith.constant 128 : i32
    %3 = arith.muli %arg1, %c128_i32 : i32
    %4 = tpu.assume_multiple %3, 128 : i32
    %c0 = arith.constant 0 : index
    %c0_1 = arith.constant 0 : index
    %c0_2 = arith.constant 0 : index
    %5 = vector.load %arg4[%c0, %c0_1, %c0_2] : memref<1x128x128xf32, #tpu.memory_space<vmem>>, vector<1x128x128xf32>
    %6 = vector.shape_cast %5 : vector<1x128x128xf32> to vector<128x128xf32>
    %cst = arith.constant 0.000000e+00 : f32
    %7 = vector.broadcast %cst : f32 to vector<128x128xf32>
    %8 = arith.cmpf one, %6, %7 : vector<128x128xf32>
    %c0_3 = arith.constant 0 : index
    %c0_4 = arith.constant 0 : index
    %9 = vector.load %arg6[%c0_3, %c0_4] : memref<128x40xf32, #tpu.memory_space<vmem>>, vector<128x40xf32>
    %10 = arith.index_cast %4 : i32 to index
    %c0_5 = arith.constant 0 : index
    %11 = vector.load %arg6[%10, %c0_5] : memref<128x40xf32, #tpu.memory_space<vmem>>, vector<128x40xf32>
    %12 = vector.extract_strided_slice %9 {offsets = [0, 0], sizes = [128, 32], strides = [1, 1]} : vector<128x40xf32> to vector<128x32xf32>
    %13 = arith.truncf %12 : vector<128x32xf32> to vector<128x32xbf16>
    %14 = vector.extract_strided_slice %11 {offsets = [0, 32], sizes = [128, 4], strides = [1, 1]} : vector<128x40xf32> to vector<128x4xf32>
    %c0_6 = arith.constant 0 : index
    %c0_7 = arith.constant 0 : index
    %15 = vector.load %arg7[%c0_6, %c0_7] : memref<4x128xf32, #tpu.memory_space<vmem>>, vector<4x128xf32>
    %16 = vector.extract_strided_slice %14 {offsets = [0, 0], sizes = [128, 1], strides = [1, 1]} : vector<128x4xf32> to vector<128x1xf32>
    %17 = vector.extract_strided_slice %15 {offsets = [0, 0], sizes = [1, 128], strides = [1, 1]} : vector<4x128xf32> to vector<1x128xf32>
    %18 = vector.broadcast %16 : vector<128x1xf32> to vector<128x128xf32>
    %19 = vector.broadcast %17 : vector<1x128xf32> to vector<128x128xf32>
    %20 = arith.addf %18, %19 : vector<128x128xf32>
    %21 = arith.mulf %6, %20 : vector<128x128xf32>
    %cst_8 = arith.constant 0.000000e+00 : f32
    %22 = vector.broadcast %cst_8 : f32 to vector<128x128xf32>
    %23 = arith.cmpf ogt, %21, %22 : vector<128x128xf32>
    %cst_9 = arith.constant 2.000000e-01 : f32
    %24 = vector.broadcast %cst_9 : f32 to vector<128x128xf32>
    %25 = arith.mulf %24, %21 : vector<128x128xf32>
    %26 = arith.select %23, %21, %25 : vector<128x128xi1>, vector<128x128xf32>
    %cst_10 = arith.constant -1.000000e+30 : f32
    %27 = vector.broadcast %cst_10 : f32 to vector<128x128xf32>
    %28 = arith.select %8, %26, %27 : vector<128x128xi1>, vector<128x128xf32>
    %cst_11 = arith.constant dense<0xFF800000> : vector<128xf32>
    %29 = vector.multi_reduction <maximumf>, %28, %cst_11 [1] : vector<128x128xf32> to vector<128xf32>
    %30 = vector.shape_cast %29 : vector<128xf32> to vector<128x1xf32>
    %31 = vector.broadcast %30 : vector<128x1xf32> to vector<128x128xf32>
    %32 = arith.subf %26, %31 : vector<128x128xf32>
    %33 = math.exp %32 : vector<128x128xf32>
    %cst_12 = arith.constant 0.000000e+00 : f32
    %34 = vector.broadcast %cst_12 : f32 to vector<128x128xf32>
    %35 = arith.select %8, %33, %34 : vector<128x128xi1>, vector<128x128xf32>
    %cst_13 = arith.constant dense<0.000000e+00> : vector<128xf32>
    %36 = vector.multi_reduction <add>, %35, %cst_13 [1] : vector<128x128xf32> to vector<128xf32>
    %37 = vector.shape_cast %36 : vector<128xf32> to vector<128x1xf32>
    %38 = arith.truncf %35 : vector<128x128xf32> to vector<128x128xbf16>
    %39 = vector.extract_strided_slice %13 {offsets = [0, 0], sizes = [128, 8], strides = [1, 1]} : vector<128x32xbf16> to vector<128x8xbf16>
    %cst_14 = arith.constant dense<0.000000e+00> : vector<128x8xf32>
    %40 = tpu.matmul %38, %39, %cst_14 {dimension_numbers = #tpu.dot_dimension_numbers<[1], [0], [0], [1], [0, 0, 1, 1], [], []>} : vector<128x128xbf16>, vector<128x8xbf16>, vector<128x8xf32> -> vector<128x8xf32>
    %41 = tpu.reciprocal %37 {approx = true} : vector<128x1xf32> -> vector<128x1xf32>
    %42 = vector.broadcast %41 : vector<128x1xf32> to vector<128x8xf32>
    %43 = arith.mulf %40, %42 : vector<128x8xf32>
    %44 = vector.extract_strided_slice %14 {offsets = [0, 1], sizes = [128, 1], strides = [1, 1]} : vector<128x4xf32> to vector<128x1xf32>
    %45 = vector.extract_strided_slice %15 {offsets = [1, 0], sizes = [1, 128], strides = [1, 1]} : vector<4x128xf32> to vector<1x128xf32>
    %46 = vector.broadcast %44 : vector<128x1xf32> to vector<128x128xf32>
    %47 = vector.broadcast %45 : vector<1x128xf32> to vector<128x128xf32>
    %48 = arith.addf %46, %47 : vector<128x128xf32>
    %49 = arith.mulf %6, %48 : vector<128x128xf32>
    %cst_15 = arith.constant 0.000000e+00 : f32
    %50 = vector.broadcast %cst_15 : f32 to vector<128x128xf32>
    %51 = arith.cmpf ogt, %49, %50 : vector<128x128xf32>
    %cst_16 = arith.constant 2.000000e-01 : f32
    %52 = vector.broadcast %cst_16 : f32 to vector<128x128xf32>
    %53 = arith.mulf %52, %49 : vector<128x128xf32>
    %54 = arith.select %51, %49, %53 : vector<128x128xi1>, vector<128x128xf32>
    %cst_17 = arith.constant -1.000000e+30 : f32
    %55 = vector.broadcast %cst_17 : f32 to vector<128x128xf32>
    %56 = arith.select %8, %54, %55 : vector<128x128xi1>, vector<128x128xf32>
    %cst_18 = arith.constant dense<0xFF800000> : vector<128xf32>
    %57 = vector.multi_reduction <maximumf>, %56, %cst_18 [1] : vector<128x128xf32> to vector<128xf32>
    %58 = vector.shape_cast %57 : vector<128xf32> to vector<128x1xf32>
    %59 = vector.broadcast %58 : vector<128x1xf32> to vector<128x128xf32>
    %60 = arith.subf %54, %59 : vector<128x128xf32>
    %61 = math.exp %60 : vector<128x128xf32>
    %cst_19 = arith.constant 0.000000e+00 : f32
    %62 = vector.broadcast %cst_19 : f32 to vector<128x128xf32>
    %63 = arith.select %8, %61, %62 : vector<128x128xi1>, vector<128x128xf32>
    %cst_20 = arith.constant dense<0.000000e+00> : vector<128xf32>
    %64 = vector.multi_reduction <add>, %63, %cst_20 [1] : vector<128x128xf32> to vector<128xf32>
    %65 = vector.shape_cast %64 : vector<128xf32> to vector<128x1xf32>
    %66 = arith.truncf %63 : vector<128x128xf32> to vector<128x128xbf16>
    %67 = vector.extract_strided_slice %13 {offsets = [0, 8], sizes = [128, 8], strides = [1, 1]} : vector<128x32xbf16> to vector<128x8xbf16>
    %cst_21 = arith.constant dense<0.000000e+00> : vector<128x8xf32>
    %68 = tpu.matmul %66, %67, %cst_21 {dimension_numbers = #tpu.dot_dimension_numbers<[1], [0], [0], [1], [0, 0, 1, 1], [], []>} : vector<128x128xbf16>, vector<128x8xbf16>, vector<128x8xf32> -> vector<128x8xf32>
    %69 = tpu.reciprocal %65 {approx = true} : vector<128x1xf32> -> vector<128x1xf32>
    %70 = vector.broadcast %69 : vector<128x1xf32> to vector<128x8xf32>
    %71 = arith.mulf %68, %70 : vector<128x8xf32>
    %72 = vector.extract_strided_slice %14 {offsets = [0, 2], sizes = [128, 1], strides = [1, 1]} : vector<128x4xf32> to vector<128x1xf32>
    %73 = vector.extract_strided_slice %15 {offsets = [2, 0], sizes = [1, 128], strides = [1, 1]} : vector<4x128xf32> to vector<1x128xf32>
    %74 = vector.broadcast %72 : vector<128x1xf32> to vector<128x128xf32>
    %75 = vector.broadcast %73 : vector<1x128xf32> to vector<128x128xf32>
    %76 = arith.addf %74, %75 : vector<128x128xf32>
    %77 = arith.mulf %6, %76 : vector<128x128xf32>
    %cst_22 = arith.constant 0.000000e+00 : f32
    %78 = vector.broadcast %cst_22 : f32 to vector<128x128xf32>
    %79 = arith.cmpf ogt, %77, %78 : vector<128x128xf32>
    %cst_23 = arith.constant 2.000000e-01 : f32
    %80 = vector.broadcast %cst_23 : f32 to vector<128x128xf32>
    %81 = arith.mulf %80, %77 : vector<128x128xf32>
    %82 = arith.select %79, %77, %81 : vector<128x128xi1>, vector<128x128xf32>
    %cst_24 = arith.constant -1.000000e+30 : f32
    %83 = vector.broadcast %cst_24 : f32 to vector<128x128xf32>
    %84 = arith.select %8, %82, %83 : vector<128x128xi1>, vector<128x128xf32>
    %cst_25 = arith.constant dense<0xFF800000> : vector<128xf32>
    %85 = vector.multi_reduction <maximumf>, %84, %cst_25 [1] : vector<128x128xf32> to vector<128xf32>
    %86 = vector.shape_cast %85 : vector<128xf32> to vector<128x1xf32>
    %87 = vector.broadcast %86 : vector<128x1xf32> to vector<128x128xf32>
    %88 = arith.subf %82, %87 : vector<128x128xf32>
    %89 = math.exp %88 : vector<128x128xf32>
    %cst_26 = arith.constant 0.000000e+00 : f32
    %90 = vector.broadcast %cst_26 : f32 to vector<128x128xf32>
    %91 = arith.select %8, %89, %90 : vector<128x128xi1>, vector<128x128xf32>
    %cst_27 = arith.constant dense<0.000000e+00> : vector<128xf32>
    %92 = vector.multi_reduction <add>, %91, %cst_27 [1] : vector<128x128xf32> to vector<128xf32>
    %93 = vector.shape_cast %92 : vector<128xf32> to vector<128x1xf32>
    %94 = arith.truncf %91 : vector<128x128xf32> to vector<128x128xbf16>
    %95 = vector.extract_strided_slice %13 {offsets = [0, 16], sizes = [128, 8], strides = [1, 1]} : vector<128x32xbf16> to vector<128x8xbf16>
    %cst_28 = arith.constant dense<0.000000e+00> : vector<128x8xf32>
    %96 = tpu.matmul %94, %95, %cst_28 {dimension_numbers = #tpu.dot_dimension_numbers<[1], [0], [0], [1], [0, 0, 1, 1], [], []>} : vector<128x128xbf16>, vector<128x8xbf16>, vector<128x8xf32> -> vector<128x8xf32>
    %97 = tpu.reciprocal %93 {approx = true} : vector<128x1xf32> -> vector<128x1xf32>
    %98 = vector.broadcast %97 : vector<128x1xf32> to vector<128x8xf32>
    %99 = arith.mulf %96, %98 : vector<128x8xf32>
    %100 = vector.extract_strided_slice %14 {offsets = [0, 3], sizes = [128, 1], strides = [1, 1]} : vector<128x4xf32> to vector<128x1xf32>
    %101 = vector.extract_strided_slice %15 {offsets = [3, 0], sizes = [1, 128], strides = [1, 1]} : vector<4x128xf32> to vector<1x128xf32>
    %102 = vector.broadcast %100 : vector<128x1xf32> to vector<128x128xf32>
    %103 = vector.broadcast %101 : vector<1x128xf32> to vector<128x128xf32>
    %104 = arith.addf %102, %103 : vector<128x128xf32>
    %105 = arith.mulf %6, %104 : vector<128x128xf32>
    %cst_29 = arith.constant 0.000000e+00 : f32
    %106 = vector.broadcast %cst_29 : f32 to vector<128x128xf32>
    %107 = arith.cmpf ogt, %105, %106 : vector<128x128xf32>
    %cst_30 = arith.constant 2.000000e-01 : f32
    %108 = vector.broadcast %cst_30 : f32 to vector<128x128xf32>
    %109 = arith.mulf %108, %105 : vector<128x128xf32>
    %110 = arith.select %107, %105, %109 : vector<128x128xi1>, vector<128x128xf32>
    %cst_31 = arith.constant -1.000000e+30 : f32
    %111 = vector.broadcast %cst_31 : f32 to vector<128x128xf32>
    %112 = arith.select %8, %110, %111 : vector<128x128xi1>, vector<128x128xf32>
    %cst_32 = arith.constant dense<0xFF800000> : vector<128xf32>
    %113 = vector.multi_reduction <maximumf>, %112, %cst_32 [1] : vector<128x128xf32> to vector<128xf32>
    %114 = vector.shape_cast %113 : vector<128xf32> to vector<128x1xf32>
    %115 = vector.broadcast %114 : vector<128x1xf32> to vector<128x128xf32>
    %116 = arith.subf %110, %115 : vector<128x128xf32>
    %117 = math.exp %116 : vector<128x128xf32>
    %cst_33 = arith.constant 0.000000e+00 : f32
    %118 = vector.broadcast %cst_33 : f32 to vector<128x128xf32>
    %119 = arith.select %8, %117, %118 : vector<128x128xi1>, vector<128x128xf32>
    %cst_34 = arith.constant dense<0.000000e+00> : vector<128xf32>
    %120 = vector.multi_reduction <add>, %119, %cst_34 [1] : vector<128x128xf32> to vector<128xf32>
    %121 = vector.shape_cast %120 : vector<128xf32> to vector<128x1xf32>
    %122 = arith.truncf %119 : vector<128x128xf32> to vector<128x128xbf16>
    %123 = vector.extract_strided_slice %13 {offsets = [0, 24], sizes = [128, 8], strides = [1, 1]} : vector<128x32xbf16> to vector<128x8xbf16>
    %cst_35 = arith.constant dense<0.000000e+00> : vector<128x8xf32>
    %124 = tpu.matmul %122, %123, %cst_35 {dimension_numbers = #tpu.dot_dimension_numbers<[1], [0], [0], [1], [0, 0, 1, 1], [], []>} : vector<128x128xbf16>, vector<128x8xbf16>, vector<128x8xf32> -> vector<128x8xf32>
    %125 = tpu.reciprocal %121 {approx = true} : vector<128x1xf32> -> vector<128x1xf32>
    %126 = vector.broadcast %125 : vector<128x1xf32> to vector<128x8xf32>
    %127 = arith.mulf %124, %126 : vector<128x8xf32>
    %128 = tpu.concatenate %43, %71, %99, %127 in 1 : vector<128x8xf32>, vector<128x8xf32>, vector<128x8xf32>, vector<128x8xf32> -> vector<128x32xf32>
    %c0_36 = arith.constant 0 : index
    %129 = arith.index_cast %4 : i32 to index
    %c0_37 = arith.constant 0 : index
    %130 = vector.load %arg2[%c0_36, %129, %c0_37] : memref<1x128x32xf32, #tpu.memory_space<vmem>>, vector<1x128x32xf32>
    %131 = vector.shape_cast %130 : vector<1x128x32xf32> to vector<128x32xf32>
    %132 = arith.addf %128, %131 : vector<128x32xf32>
    %c0_38 = arith.constant 0 : index
    %c0_39 = arith.constant 0 : index
    %c0_40 = arith.constant 0 : index
    %133 = vector.load %arg5[%c0_38, %c0_39, %c0_40] : memref<1x128x32xf32, #tpu.memory_space<vmem>>, vector<1x128x32xf32>
    %134 = vector.shape_cast %133 : vector<1x128x32xf32> to vector<128x32xf32>
    %135 = vector.shape_cast %132 : vector<128x32xf32> to vector<1x128x32xf32>
    tpu.vector_store %arg5[%c0_38, %c0_39, %c0_40], %135 {strides = array<i32>} : memref<1x128x32xf32, #tpu.memory_space<vmem>>, vector<1x128x32xf32>,
    return
  }
  func.func @transform_0(%arg0: i32, %arg1: i32) -> (i32, i32, i32) {
    %c0_i32 = arith.constant 0 : i32
    %c0_i32_0 = arith.constant 0 : i32
    %c0_i32_1 = arith.constant 0 : i32
    return %arg0, %c0_i32, %c0_i32_0 : i32, i32, i32
  }
  func.func @transform_1(%arg0: i32, %arg1: i32) -> (i32, i32) {
    %c0_i32 = arith.constant 0 : i32
    %c0_i32_0 = arith.constant 0 : i32
    %c0_i32_1 = arith.constant 0 : i32
    return %c0_i32, %c0_i32_0 : i32, i32
  }
  func.func @transform_2(%arg0: i32, %arg1: i32) -> (i32, i32, i32) {
    %c0_i32 = arith.constant 0 : i32
    %c0_i32_0 = arith.constant 0 : i32
    return %arg0, %arg1, %c0_i32 : i32, i32, i32
  }
  func.func @transform_3(%arg0: i32, %arg1: i32) -> (i32, i32, i32) {
    %c0_i32 = arith.constant 0 : i32
    %c0_i32_0 = arith.constant 0 : i32
    return %arg0, %arg1, %c0_i32 : i32, i32, i32
  }
}

</mosaic_0001>

<bundles_post_ra>
// kernel: gat_forward.3
= control target key start
LH: loop header
LB: loop body
LE: loop exit
PB: predicated region body
PF: predicated region fallthrough
CT: control target
= control target key end

     0   :  { %s582_s12 = smov 0   ;;  %s665_s0 = inlined_call_operand.vmem [shape: f32[384,16], index: 0, kind: input, shape index: {}]   ;;  %s666_s1 = inlined_call_operand.vmem [shape: f32[16,32], index: 1, kind: input, shape index: {}]   ;;  %s667_s2 = inlined_call_operand.vmem [shape: f32[1,32], index: 2, kind: input, shape index: {}]   ;;  %s668_s3 = inlined_call_operand.vmem [shape: f32[384,32], index: 3, kind: output, shape index: {}]  }
   0x1 LB: > { %s466_s13 = sadd.s32 4294967295, %s560_s12   ;;  %p470_p0 = scmp.ge.s32.totalorder %s560_s12, 1  ;;  %s560_s12 = sphi %s582_s12, %s13_s12  }
   0x2   : > { %p138_p1 = scmp.lt.s32.totalorder %s560_s12, 4 }
   0x4   : > { %p139_p2 = pnand %p470_p0, %p138_p1 }
   0x5   : > { %v190_v0 = vld [vmem:[%s666_s1] sm:$0xff] (!%p139_p2)  ;;  %v191_v1 = vld [vmem:[%s666_s1 + $0x8] sm:$0xff] (!%p139_p2)  ;;  %s471_s18 = sshll.u32 (!%p139_p2), %s466_s13, 4  ;;  %vm199_vm0 = vcmask (!%p139_p2), 130048   ;;  %vm393_vm1 = vcmask (!%p139_p2), 261120  }
   0x6   : > { %142 = sbr.rel (%p139_p2) target bundleno = 247 (0xf7), region = 32  ;;  %v540_v2 = vpack.c.bf16 (!%p139_p2), %v191_v1, %v190_v0  ;;  %p163_p3 = scmp.lt.s32.totalorder (!%p139_p2), %s471_s18, 47  ;;  %v475_v19 = vld [vmem:[%s667_s2] ss:$0 sm:$0xff] (!%p139_p2) }
   0x8   : > { %541 = vmatprep.subr.bf16.mxu0 (!%p139_p2), %v540_v2  ;;  %544 = vmatprep.subr.bf16.mxu1 (!%p139_p2), %v540_v2 }
   0x9   : > { %543 = vmatpush3.bf16.msra.mxu0 (!%p139_p2), %v540_v2  ;;  %545 = vmatpush3.bf16.msra.mxu1 (!%p139_p2), %v540_v2 }
   0xd   : > { %s670_s18 = smov (!%p163_p3, %s471_s18), 47 }
   0xe   : > { %s472_s19 = sshll.u32 %s670_s18, 3 }
   0xf   : > { %s166_s22 = scalar_lea.vmem %s665_s0, %s472_s19  ;;  %s628_s27 = scalar_lea.vmem %s668_s3, %s472_s19 }
  0x10   : > { %v174_v3 = vld [vmem:[%s166_s22] sm:$0xff]  ;;  %v175_v5 = vld [vmem:[%s166_s22 + $0x8] sm:$0xff]  ;;  %v176_v7 = vld [vmem:[%s166_s22 + $0x10] sm:$0xff] }
  0x11   : > { %v182_v4 = vld [vmem:[%s166_s22 + $0x40] sm:$0xff]  ;;  %516 = vmatprep.mubr.msk.f32.mxu0 %vm199_vm0, %v174_v3  ;;  %v183_v6 = vld [vmem:[%s166_s22 + $0x48] sm:$0xff]  ;;  %v184_v8 = vld [vmem:[%s166_s22 + $0x50] sm:$0xff] }
  0x12   : > { %528 = vmatprep.mubr.msk.f32.mxu1 %vm199_vm0, %v182_v4  ;;  %517 = vmatmul.mubr.msk.f32.vlgmr.msra.gmra.mrb[0].mxu0 %vm199_vm0, %v175_v5  ;;  %v177_v9 = vld [vmem:[%s166_s22 + $0x18] sm:$0xff]  ;;  %v178_v11 = vld [vmem:[%s166_s22 + $0x20] sm:$0xff]  ;;  %v179_v13 = vld [vmem:[%s166_s22 + $0x28] sm:$0xff] }
  0x13   : > { %529 = vmatmul.mubr.msk.f32.vlgmr.msra.gmra.mrb[0].mxu1 %vm199_vm0, %v183_v6  ;;  %519 = vmatprep.mubr.msk.f32.mxu0 %vm199_vm0, %v176_v7  ;;  %v185_v10 = vld [vmem:[%s166_s22 + $0x58] sm:$0xff]  ;;  %v186_v12 = vld [vmem:[%s166_s22 + $0x60] sm:$0xff]  ;;  %v187_v14 = vld [vmem:[%s166_s22 + $0x68] sm:$0xff] }
  0x14   : > { %531 = vmatprep.mubr.msk.f32.mxu1 %vm199_vm0, %v184_v8  ;;  %v180_v15 = vld [vmem:[%s166_s22 + $0x30] sm:$0xff]  ;;  %v181_v17 = vld [vmem:[%s166_s22 + $0x38] sm:$0xff] }
  0x15   : > { %v188_v16 = vld [vmem:[%s166_s22 + $0x70] sm:$0xff]  ;;  %v189_v18 = vld [vmem:[%s166_s22 + $0x78] sm:$0xff] }
  0x16   : > { %520 = vmatmul.mubr.msk.f32.gmra.mrb[2].mxu0 %vm199_vm0, %v177_v9 }
  0x17   : > { %532 = vmatmul.mubr.msk.f32.gmra.mrb[2].mxu1 %vm199_vm0, %v185_v10  ;;  %522 = vmatprep.mubr.msk.f32.mxu0 %vm199_vm0, %v178_v11 }
  0x18   : > { %534 = vmatprep.mubr.msk.f32.mxu1 %vm199_vm0, %v186_v12 }
  0x1a   : > { %523 = vmatmul.mubr.msk.f32.gmra.mrb[4].mxu0 %vm199_vm0, %v179_v13 }
  0x1b   : > { %535 = vmatmul.mubr.msk.f32.gmra.mrb[4].mxu1 %vm199_vm0, %v187_v14  ;;  %525 = vmatprep.mubr.msk.f32.mxu0 %vm199_vm0, %v180_v15 }
  0x1c   : > { %537 = vmatprep.mubr.msk.f32.mxu1 %vm199_vm0, %v188_v16 }
  0x1e   : > { %526 = vmatmul.mubr.msk.f32.gmra.mrb[6].mxu0 %vm199_vm0, %v181_v17 }
  0x1f   : > { %538 = vmatmul.mubr.msk.f32.gmra.mrb[6].mxu1 %vm199_vm0, %v189_v18 }
  0xe5   : > { %v518_v20 = vpop.f32.mrb[0].mxu0 }
  0xe6   : > { %v530_v21 = vpop.f32.mrb[0].mxu1  ;;  %v320_v22 = vadd.f32 %v518_v20, %v475_v19  ;;  %v314_v24 = vpop.f32.mrb[1].mxu0 }
  0xe7   : > { %v360_v23 = vadd.f32 %v530_v21, %v475_v19  ;;  %v354_v25 = vpop.f32.mrb[1].mxu1  ;;  %v315_v26 = vadd.f32 %v475_v19, %v314_v24 }
  0xe8   : > { %v355_v27 = vadd.f32 %v475_v19, %v354_v25  ;;  %395 = vst.msk [vmem:[%s628_s27 + $0x8] sm:$0xff] %vm393_vm1, %v320_v22 }
  0xe9   : > { %403 = vst.msk [vmem:[%s628_s27 + $0x48] sm:$0xff] %vm393_vm1, %v360_v23  ;;  %394 = vst.msk [vmem:[%s628_s27] sm:$0xff] %vm393_vm1, %v315_v26  ;;  %v521_v28 = vpop.f32.mrb[2].mxu0 }
  0xea   : > { %402 = vst.msk [vmem:[%s628_s27 + $0x40] sm:$0xff] %vm393_vm1, %v355_v27  ;;  %v533_v29 = vpop.f32.mrb[2].mxu1  ;;  %v330_v30 = vadd.f32 %v521_v28, %v475_v19  ;;  %v324_v32 = vpop.f32.mrb[3].mxu0 }
  0xeb   : > { %v370_v31 = vadd.f32 %v533_v29, %v475_v19  ;;  %v364_v33 = vpop.f32.mrb[3].mxu1  ;;  %v325_v34 = vadd.f32 %v475_v19, %v324_v32 }
  0xec   : > { %v365_v35 = vadd.f32 %v475_v19, %v364_v33  ;;  %397 = vst.msk [vmem:[%s628_s27 + $0x18] sm:$0xff] %vm393_vm1, %v330_v30 }
  0xed   : > { %405 = vst.msk [vmem:[%s628_s27 + $0x58] sm:$0xff] %vm393_vm1, %v370_v31  ;;  %396 = vst.msk [vmem:[%s628_s27 + $0x10] sm:$0xff] %vm393_vm1, %v325_v34  ;;  %v524_v36 = vpop.f32.mrb[4].mxu0 }
  0xee   : > { %404 = vst.msk [vmem:[%s628_s27 + $0x50] sm:$0xff] %vm393_vm1, %v365_v35  ;;  %v536_v37 = vpop.f32.mrb[4].mxu1  ;;  %v340_v38 = vadd.f32 %v524_v36, %v475_v19  ;;  %v334_v40 = vpop.f32.mrb[5].mxu0 }
  0xef   : > { %v380_v39 = vadd.f32 %v536_v37, %v475_v19  ;;  %v374_v41 = vpop.f32.mrb[5].mxu1  ;;  %v335_v42 = vadd.f32 %v475_v19, %v334_v40 }
  0xf0   : > { %v375_v43 = vadd.f32 %v475_v19, %v374_v41  ;;  %399 = vst.msk [vmem:[%s628_s27 + $0x28] sm:$0xff] %vm393_vm1, %v340_v38 }
  0xf1   : > { %407 = vst.msk [vmem:[%s628_s27 + $0x68] sm:$0xff] %vm393_vm1, %v380_v39  ;;  %398 = vst.msk [vmem:[%s628_s27 + $0x20] sm:$0xff] %vm393_vm1, %v335_v42  ;;  %v527_v44 = vpop.f32.mrb[6].mxu0 }
  0xf2   : > { %406 = vst.msk [vmem:[%s628_s27 + $0x60] sm:$0xff] %vm393_vm1, %v375_v43  ;;  %v539_v45 = vpop.f32.mrb[6].mxu1  ;;  %v350_v46 = vadd.f32 %v527_v44, %v475_v19  ;;  %v344_v48 = vpop.f32.mrb[7].mxu0 }
  0xf3   : > { %v390_v47 = vadd.f32 %v539_v45, %v475_v19  ;;  %v384_v49 = vpop.f32.mrb[7].mxu1  ;;  %v345_v50 = vadd.f32 %v475_v19, %v344_v48 }
  0xf4   : > { %v385_v51 = vadd.f32 %v475_v19, %v384_v49  ;;  %401 = vst.msk [vmem:[%s628_s27 + $0x38] sm:$0xff] %vm393_vm1, %v350_v46 }
  0xf5   : > { %409 = vst.msk [vmem:[%s628_s27 + $0x78] sm:$0xff] %vm393_vm1, %v390_v47  ;;  %400 = vst.msk [vmem:[%s628_s27 + $0x30] sm:$0xff] %vm393_vm1, %v345_v50 }
  0xf6   : > { %408 = vst.msk [vmem:[%s628_s27 + $0x70] sm:$0xff] %vm393_vm1, %v385_v51 }
  0xf7 PF: > { %s13_s12 = sadd.s32 1, %s560_s12  }
  0xf8   : > { %p10_p4 = scmp.ge.s32.totalorder %s13_s12, 5  }
  0xfa   :  { %12 = sbr.rel (!%p10_p4) target bundleno = 1 (0x1), region = 62 }

// kernel: gat_forward.5
= control target key start
LH: loop header
LB: loop body
LE: loop exit
PB: predicated region body
PF: predicated region fallthrough
CT: control target
= control target key end

     0   :  { %s3867_s12 = smov 0   ;;  %s3869_s13 = smov 0   ;;  %s6048_s0 = inlined_call_operand.vmem [shape: f32[3,128,32], index: 0, kind: input, shape index: {}]   ;;  %s6049_s1 = inlined_call_operand.vmem [shape: f32[32,40], index: 1, kind: input, shape index: {}]   ;;  %s6050_s2 = inlined_call_operand.vmem [shape: f32[3,128,128], index: 2, kind: input, shape index: {}]   ;;  %s6051_s3 = inlined_call_operand.vmem [shape: f32[3,128,32], index: 3, kind: output, shape index: {}]  }
   0x1   :  { %s3871_s14 = smov 0  }
   0x2 LB: > { %s25_s15 = sadd.s32 1, %s3827_s13  ;;  %p3093_p0 = scmp.ge.s32.totalorder %s3831_s14, 1  ;;  %s3831_s14 = sphi %s3871_s14, %s13_s14   ;;  %s3827_s13 = sphi %s3869_s13, %s6461_s13   ;;  %s3823_s12 = sphi %s3867_s12, %s6460_s12  }
   0x3   : > { %p27_p1 = scmp.ge.s32.totalorder %s25_s15, 3  ;;  %p168_p2 = scmp.lt.s32.totalorder %s3831_s14, 4 }
   0x5   : > { %s6463_s15 = smov (%p27_p1, %s25_s15), 0  ;;  %p169_p3 = pnand %p3093_p0, %p168_p2 }
   0x7   : > { %172 = sbr.rel (%p169_p3) target bundleno = 2138 (0x85a), region = 32 }
   0xe   : > { %v251_v0 = vld [vmem:[%s6049_s1] sm:$0xff]  ;;  %v252_v1 = vld [vmem:[%s6049_s1 + $0x8] sm:$0xff]  ;;  %v253_v2 = vld [vmem:[%s6049_s1 + $0x10] sm:$0xff]  ;;  %p205_p4 = scmp.lt.s32.totalorder %s3823_s12, 2  ;;  %vm6069_vm0 = vcmask 261120   ;;  %v6052_v22 = vmov 32  }
   0xf   : > { %v3461_v3 = vpack.c.bf16 %v252_v1, %v251_v0  ;;  %v254_v4 = vld [vmem:[%s6049_s1 + $0x18] sm:$0xff]  ;;  %3507 = vset.pattern.permute.xlu0 %v6052_v22  ;;  %vm449_vm1 = vcmask 326656   ;;  %s3834_s28 = smov 91   ;;  %s3835_s29 = smov 92  }
  0x10   : > { %v3465_v5 = vpack.c.bf16 %v254_v4, %v253_v2  ;;  %s6465_s12 = smov (!%p205_p4, %s3823_s12), 2  ;;  %s3836_s30 = smov 89  }
  0x11   : > { %3462 = vmatprep.subr.bf16.mxu0 %v3461_v3  ;;  %s3897_s24 = sshll.u32 %s6465_s12, 7  ;;  %s3837_s4 = smov 90  }
  0x12   : > { %3464 = vmatpush3.bf16.msra.mxu0 %v3461_v3  ;;  %s3903_s27 = scalar_lea.vmem %s6048_s0, %s3897_s24  ;;  %s4301_s7 = scalar_lea.vmem %s6050_s2, %s3897_s24 }
  0x13   : > { %3466 = vmatprep.subr.bf16.mxu0 %v3465_v5  ;;  %v235_v6 = vld [vmem:[%s3903_s27] sm:$0xff]  ;;  %v236_v7 = vld [vmem:[%s3903_s27 + $0x8] sm:$0xff]  ;;  %v237_v8 = vld [vmem:[%s3903_s27 + $0x10] sm:$0xff]  ;;  %s3841_s8 = smov 120   ;;  %s3842_s9 = smov 112  }
  0x14   : > { %3309 = vmatprep.mubr.msk.f32.mxu0 %vm6069_vm0, %v235_v6  ;;  %v238_v9 = vld [vmem:[%s3903_s27 + $0x18] sm:$0xff]  ;;  %v239_v10 = vld [vmem:[%s3903_s27 + $0x20] sm:$0xff]  ;;  %v240_v11 = vld [vmem:[%s3903_s27 + $0x28] sm:$0xff]  ;;  %s3843_s10 = smov 104   ;;  %s3844_s11 = smov 8  }
  0x15   : > { %v241_v12 = vld [vmem:[%s3903_s27 + $0x30] sm:$0xff]  ;;  %v242_v13 = vld [vmem:[%s3903_s27 + $0x38] sm:$0xff]  ;;  %v243_v14 = vld [vmem:[%s3903_s27 + $0x40] sm:$0xff]  ;;  %s3845_s12 = smov 16   ;;  %s3846_s16 = smov 24  }
  0x16   : > { %3468 = vmatpush3.bf16.msra.mxu0 %v3465_v5  ;;  %v244_v15 = vld [vmem:[%s3903_s27 + $0x48] sm:$0xff]  ;;  %v245_v16 = vld [vmem:[%s3903_s27 + $0x50] sm:$0xff]  ;;  %v246_v17 = vld [vmem:[%s3903_s27 + $0x58] sm:$0xff]  ;;  %s5900_s19 = scalar_lea.vmem %s6051_s3, %s3897_s24 }
  0x17   : > { %v247_v18 = vld [vmem:[%s3903_s27 + $0x60] sm:$0xff]  ;;  %v248_v19 = vld [vmem:[%s3903_s27 + $0x68] sm:$0xff]  ;;  %v249_v20 = vld [vmem:[%s3903_s27 + $0x70] sm:$0xff] }
  0x18   : > { %v250_v21 = vld [vmem:[%s3903_s27 + $0x78] sm:$0xff] }
  0x19   : > { %3310 = vmatmul.mubr.msk.f32.vlgmr.msra.gmra.mrb[0].mxu0 %vm6069_vm0, %v236_v7 }
  0x1a   : > { %3312 = vmatprep.mubr.msk.f32.mxu0 %vm6069_vm0, %v237_v8 }
  0x1d   : > { %3313 = vmatmul.mubr.msk.f32.gmra.mrb[2].mxu0 %vm6069_vm0, %v238_v9 }
  0x1e   : > { %3315 = vmatprep.mubr.msk.f32.mxu0 %vm6069_vm0, %v239_v10 }
  0x21   : > { %3316 = vmatmul.mubr.msk.f32.gmra.mrb[4].mxu0 %vm6069_vm0, %v240_v11 }
  0x22   : > { %3318 = vmatprep.mubr.msk.f32.mxu0 %vm6069_vm0, %v241_v12 }
  0x25   : > { %3319 = vmatmul.mubr.msk.f32.gmra.mrb[6].mxu0 %vm6069_vm0, %v242_v13 }
  0x26   : > { %3321 = vmatprep.mubr.msk.f32.mxu0 %vm6069_vm0, %v243_v14 }
  0x29   : > { %3322 = vmatmul.mubr.msk.f32.gmra.mrb[8].mxu0 %vm6069_vm0, %v244_v15 }
  0x2a   : > { %3324 = vmatprep.mubr.msk.f32.mxu0 %vm6069_vm0, %v245_v16 }
  0x2d   : > { %3325 = vmatmul.mubr.msk.f32.gmra.mrb[10].mxu0 %vm6069_vm0, %v246_v17 }
  0x2e   : > { %3327 = vmatprep.mubr.msk.f32.mxu0 %vm6069_vm0, %v247_v18 }
  0x31   : > { %3328 = vmatmul.mubr.msk.f32.gmra.mrb[12].mxu0 %vm6069_vm0, %v248_v19 }
  0x32   : > { %3330 = vmatprep.mubr.msk.f32.mxu0 %vm6069_vm0, %v249_v20 }
  0x35   : > { %3331 = vmatmul.mubr.msk.f32.gmra.mrb[14].mxu0 %vm6069_vm0, %v250_v21 }
  0xec   : > { %v3311_v23 = vpop.f32.mrb[0].mxu0 }
  0xed   : > { %451 = vst.msk [vmem:[#allocation2 + $0x8] sm:$0xff] %vm449_vm1, %v3311_v23  ;;  %565 = vrot.lane.b32.xlu1 %v3311_v23, %s3834_s28  ;;  %484 = vrot.lane.b32.xlu0 %v3311_v23, %s3835_s29  ;;  %v370_v24 = vpop.f32.mrb[1].mxu0 }
  0xee   : > { %450 = vst.msk [vmem:[#allocation2] sm:$0xff] %vm449_vm1, %v370_v24 }
  0xf0   : > { %v3314_v25 = vpop.f32.mrb[2].mxu0 }
  0xf1   : > { %727 = vrot.lane.b32.xlu1 %v3311_v23, %s3836_s30  ;;  %646 = vrot.lane.b32.xlu0 %v3311_v23, %s3837_s4  ;;  %453 = vst.msk [vmem:[#allocation2 + $0x18] sm:$0xff] %vm449_vm1, %v3314_v25  ;;  %v3945_v26 = vpop.f32.mrb[3].mxu0 }
  0xf2   : > { %452 = vst.msk [vmem:[#allocation2 + $0x10] sm:$0xff] %vm449_vm1, %v3945_v26 }
  0xf4   : > { %v3949_v27 = vld [vmem:[#allocation2 + $0x8] sm:$0xff]  ;;  %v3951_v28 = vpop.f32.mrb[4].mxu0 }
  0xf5   : > { %563 = vrot.lane.b32.xlu1 %v370_v24, %s3834_s28  ;;  %482 = vrot.lane.b32.xlu0 %v370_v24, %s3835_s29  ;;  %v3955_v29 = vld [vmem:[#allocation2] sm:$0xff]  ;;  %455 = vst.msk [vmem:[#allocation2 + $0x28] sm:$0xff] %vm449_vm1, %v3951_v28  ;;  %v3959_v30 = vpop.f32.mrb[5].mxu0 }
  0xf6   : > { %v3963_v31 = vpack.c.bf16 %v3949_v27, %v3955_v29  ;;  %454 = vst.msk [vmem:[#allocation2 + $0x20] sm:$0xff] %vm449_vm1, %v3959_v30 }
  0xf8   : > { %6125 = vst [vmem:[#allocation4_spill] sm:$0xff] %v3963_v31  ;;  %3333 = vmatprep.subr.bf16.mxu1 %v3963_v31  ;;  %v3968_v32 = vld [vmem:[#allocation2 + $0x18] sm:$0xff]  ;;  %v3970_v33 = vpop.f32.mrb[6].mxu0 }
  0xf9   : > { %725 = vrot.lane.b32.xlu1 %v370_v24, %s3836_s30  ;;  %644 = vrot.lane.b32.xlu0 %v370_v24, %s3837_s4  ;;  %v3974_v34 = vld [vmem:[#allocation2 + $0x10] sm:$0xff]  ;;  %457 = vst.msk [vmem:[#allocation2 + $0x38] sm:$0xff] %vm449_vm1, %v3970_v33  ;;  %v3978_v35 = vpop.f32.mrb[7].mxu0 }
  0xfa   : > { %3334 = vmatpush3.bf16.msra.mxu1 %v3963_v31  ;;  %v3983_v36 = vpack.c.bf16 %v3968_v32, %v3974_v34  ;;  %456 = vst.msk [vmem:[#allocation2 + $0x30] sm:$0xff] %vm449_vm1, %v3978_v35 }
  0xfc   : > { %6126 = vst [vmem:[#allocation5_spill] sm:$0xff] %v3983_v36  ;;  %3335 = vmatprep.subr.bf16.mxu1 %v3983_v36  ;;  %v3988_v37 = vld [vmem:[#allocation2 + $0x28] sm:$0xff]  ;;  %v3990_v38 = vpop.f32.mrb[8].mxu0 }
  0xfd   : > { %650 = vrot.lane.b32.xlu0 %v3314_v25, %s3837_s4  ;;  %488 = vrot.lane.b32.xlu1 %v3314_v25, %s3835_s29  ;;  %v3994_v39 = vld [vmem:[#allocation2 + $0x20] sm:$0xff]  ;;  %459 = vst.msk [vmem:[#allocation2 + $0x48] sm:$0xff] %vm449_vm1, %v3990_v38  ;;  %v3998_v40 = vpop.f32.mrb[9].mxu0 }
  0xfe   : > { %3336 = vmatpush3.bf16.msra.mxu1 %v3983_v36  ;;  %v4003_v41 = vpack.c.bf16 %v3988_v37, %v3994_v39  ;;  %458 = vst.msk [vmem:[#allocation2 + $0x40] sm:$0xff] %vm449_vm1, %v3998_v40 }
 0x100   : > { %6127 = vst [vmem:[#allocation6_spill] sm:$0xff] %v4003_v41  ;;  %3337 = vmatprep.subr.bf16.mxu1 %v4003_v41  ;;  %v4008_v42 = vld [vmem:[#allocation2 + $0x38] sm:$0xff]  ;;  %v4010_v43 = vpop.f32.mrb[10].mxu0 }
 0x101   : > { %569 = vrot.lane.b32.xlu1 %v3314_v25, %s3834_s28  ;;  %648 = vrot.lane.b32.xlu0 %v3945_v26, %s3837_s4  ;;  %v4015_v44 = vld [vmem:[#allocation2 + $0x30] sm:$0xff]  ;;  %461 = vst.msk [vmem:[#allocation2 + $0x58] sm:$0xff] %vm449_vm1, %v4010_v43  ;;  %v4019_v45 = vpop.f32.mrb[11].mxu0 }
 0x102   : > { %3338 = vmatpush3.bf16.msra.mxu1 %v4003_v41  ;;  %v4024_v46 = vpack.c.bf16 %v4008_v42, %v4015_v44  ;;  %460 = vst.msk [vmem:[#allocation2 + $0x50] sm:$0xff] %vm449_vm1, %v4019_v45 }
 0x104   : > { %6128 = vst [vmem:[#allocation7_spill] sm:$0xff] %v4024_v46  ;;  %3339 = vmatprep.subr.bf16.mxu1 %v4024_v46  ;;  %v4029_v47 = vld [vmem:[#allocation2 + $0x48] sm:$0xff]  ;;  %v4031_v48 = vpop.f32.mrb[12].mxu0 }
 0x105   : > { %731 = vrot.lane.b32.xlu1 %v3314_v25, %s3836_s30  ;;  %654 = vrot.lane.b32.xlu0 %v3951_v28, %s3837_s4  ;;  %v4036_v49 = vld [vmem:[#allocation2 + $0x40] sm:$0xff]  ;;  %463 = vst.msk [vmem:[#allocation2 + $0x68] sm:$0xff] %vm449_vm1, %v4031_v48  ;;  %v4040_v50 = vpop.f32.mrb[13].mxu0 }
 0x106   : > { %3340 = vmatpush3.bf16.msra.mxu1 %v4024_v46  ;;  %v4045_v51 = vpack.c.bf16 %v4029_v47, %v4036_v49  ;;  %462 = vst.msk [vmem:[#allocation2 + $0x60] sm:$0xff] %vm449_vm1, %v4040_v50 }
 0x108   : > { %6129 = vst [vmem:[#allocation8_spill] sm:$0xff] %v4045_v51  ;;  %3341 = vmatprep.subr.bf16.mxu1 %v4045_v51  ;;  %v4050_v52 = vld [vmem:[#allocation2 + $0x58] sm:$0xff]  ;;  %v4052_v53 = vpop.f32.mrb[14].mxu0 }
 0x109   : > { %486 = vrot.lane.b32.xlu1 %v3945_v26, %s3835_s29  ;;  %888 = vperm.xlu0 %3507, %v3949_v27   ;;  %v4057_v54 = vld [vmem:[#allocation2 + $0x50] sm:$0xff]  ;;  %465 = vst.msk [vmem:[#allocation2 + $0x78] sm:$0xff] %vm449_vm1, %v4052_v53  ;;  %v4061_v55 = vpop.f32.mrb[15].mxu0 }
 0x10a   : > { %3342 = vmatpush3.bf16.msra.mxu1 %v4045_v51  ;;  %v4066_v56 = vpack.c.bf16 %v4050_v52, %v4057_v54  ;;  %464 = vst.msk [vmem:[#allocation2 + $0x70] sm:$0xff] %vm449_vm1, %v4061_v55 }
 0x10c   : > { %6130 = vst [vmem:[#allocation9_spill] sm:$0xff] %v4066_v56  ;;  %3343 = vmatprep.subr.bf16.mxu1 %v4066_v56  ;;  %v4071_v57 = vld [vmem:[#allocation2 + $0x68] sm:$0xff] }
 0x10d   : > { %567 = vrot.lane.b32.xlu1 %v3945_v26, %s3834_s28  ;;  %490 = vrot.lane.b32.xlu0 %v3959_v30, %s3835_s29  ;;  %v4077_v58 = vld [vmem:[#allocation2 + $0x60] sm:$0xff] }
 0x10e   : > { %3344 = vmatpush3.bf16.msra.mxu1 %v4066_v56  ;;  %v4082_v59 = vpack.c.bf16 %v4071_v57, %v4077_v58 }
 0x110   : > { %6131 = vst [vmem:[#allocation10_spill] sm:$0xff] %v4082_v59  ;;  %3345 = vmatprep.subr.bf16.mxu1 %v4082_v59  ;;  %v4085_v60 = vld [vmem:[#allocation2 + $0x78] sm:$0xff] }
 0x111   : > { %729 = vrot.lane.b32.xlu1 %v3945_v26, %s3836_s30  ;;  %652 = vrot.lane.b32.xlu0 %v3959_v30, %s3837_s4  ;;  %v4091_v61 = vld [vmem:[#allocation2 + $0x70] sm:$0xff] }
 0x112   : > { %3346 = vmatpush3.bf16.msra.mxu1 %v4082_v59  ;;  %v4096_v62 = vpack.c.bf16 %v4085_v60, %v4091_v61 }
 0x114   : > { %6132 = vst [vmem:[#allocation11_spill] sm:$0xff] %v4096_v62  ;;  %3347 = vmatprep.subr.bf16.mxu1 %v4096_v62 }
 0x115   : > { %492 = vrot.lane.b32.xlu1 %v3951_v28, %s3835_s29  ;;  %883 = vperm.xlu0 %3507, %v3955_v29  }
 0x116   : > { %3348 = vmatpush3.bf16.msra.mxu1 %v4096_v62 }
 0x119   : > { %573 = vrot.lane.b32.xlu1 %v3951_v28, %s3834_s28  ;;  %658 = vrot.lane.b32.xlu0 %v3970_v33, %s3837_s4 }
 0x11d   : > { %735 = vrot.lane.b32.xlu1 %v3951_v28, %s3836_s30  ;;  %898 = vperm.xlu0 %3507, %v3968_v32  }
 0x121   : > { %571 = vrot.lane.b32.xlu1 %v3959_v30, %s3834_s28  ;;  %494 = vrot.lane.b32.xlu0 %v3978_v35, %s3835_s29 }
 0x125   : > { %733 = vrot.lane.b32.xlu1 %v3959_v30, %s3836_s30  ;;  %656 = vrot.lane.b32.xlu0 %v3978_v35, %s3837_s4 }
 0x129   : > { %496 = vrot.lane.b32.xlu1 %v3970_v33, %s3835_s29  ;;  %893 = vperm.xlu0 %3507, %v3974_v34  }
 0x12d   : > { %577 = vrot.lane.b32.xlu1 %v3970_v33, %s3834_s28  ;;  %662 = vrot.lane.b32.xlu0 %v3990_v38, %s3837_s4 }
 0x131   : > { %739 = vrot.lane.b32.xlu1 %v3970_v33, %s3836_s30  ;;  %908 = vperm.xlu0 %3507, %v3988_v37  }
 0x135   : > { %575 = vrot.lane.b32.xlu1 %v3978_v35, %s3834_s28  ;;  %498 = vrot.lane.b32.xlu0 %v3998_v40, %s3835_s29 }
 0x139   : > { %737 = vrot.lane.b32.xlu1 %v3978_v35, %s3836_s30  ;;  %660 = vrot.lane.b32.xlu0 %v3998_v40, %s3837_s4 }
 0x13d   : > { %500 = vrot.lane.b32.xlu1 %v3990_v38, %s3835_s29  ;;  %903 = vperm.xlu0 %3507, %v3994_v39  }
 0x141   : > { %581 = vrot.lane.b32.xlu1 %v3990_v38, %s3834_s28  ;;  %666 = vrot.lane.b32.xlu0 %v4010_v43, %s3837_s4 }
 0x145   : > { %743 = vrot.lane.b32.xlu1 %v3990_v38, %s3836_s30  ;;  %918 = vperm.xlu0 %3507, %v4008_v42  }
 0x149   : > { %579 = vrot.lane.b32.xlu1 %v3998_v40, %s3834_s28  ;;  %502 = vrot.lane.b32.xlu0 %v4019_v45, %s3835_s29 }
 0x14d   : > { %741 = vrot.lane.b32.xlu1 %v3998_v40, %s3836_s30  ;;  %913 = vperm.xlu0 %3507, %v4015_v44  }
 0x151   : > { %504 = vrot.lane.b32.xlu1 %v4010_v43, %s3835_s29  ;;  %670 = vrot.lane.b32.xlu0 %v4031_v48, %s3837_s4 }
 0x155   : > { %585 = vrot.lane.b32.xlu1 %v4010_v43, %s3834_s28  ;;  %928 = vperm.xlu0 %3507, %v4029_v47  }
 0x159   : > { %747 = vrot.lane.b32.xlu1 %v4010_v43, %s3836_s30  ;;  %506 = vrot.lane.b32.xlu0 %v4040_v50, %s3835_s29 }
 0x15d   : > { %583 = vrot.lane.b32.xlu1 %v4019_v45, %s3834_s28  ;;  %668 = vrot.lane.b32.xlu0 %v4040_v50, %s3837_s4 }
 0x15f   : > { %v4168_v63 = vpop.permute.xlu1 %565  ;;  %v485_v0 = vpop.permute.xlu0 %484 }
 0x161   : > { %664 = vrot.lane.b32.xlu1 %v4019_v45, %s3837_s4  ;;  %923 = vperm.xlu0 %3507, %v4036_v49  }
 0x163   : > { %v4173_v1 = vpop.permute.xlu1 %727  ;;  %v4179_v3 = vpop.permute.xlu0 %646 }
 0x165   : > { %745 = vrot.lane.b32.xlu1 %v4019_v45, %s3836_s30  ;;  %674 = vrot.lane.b32.xlu0 %v4052_v53, %s3837_s4 }
 0x167   : > { %v564_v2 = vpop.permute.xlu1 %563  ;;  %v483_v5 = vpop.permute.xlu0 %482 }
 0x169   : > { %508 = vrot.lane.b32.xlu1 %v4031_v48, %s3835_s29  ;;  %938 = vperm.xlu0 %3507, %v4050_v52  }
 0x16b   : > { %v4184_v4 = vpop.permute.xlu1 %725  ;;  %v4194_v8 = vpop.permute.xlu0 %644 }
 0x16d   : > { %589 = vrot.lane.b32.xlu1 %v4031_v48, %s3834_s28  ;;  %510 = vrot.lane.b32.xlu0 %v4061_v55, %s3835_s29 }
 0x16f   : > { %v489_v6 = vpop.permute.xlu1 %488  ;;  %v4203_v10 = vpop.permute.xlu0 %650 }
 0x171   : > { %751 = vrot.lane.b32.xlu1 %v4031_v48, %s3836_s30  ;;  %672 = vrot.lane.b32.xlu0 %v4061_v55, %s3837_s4 }
 0x173   : > { %v570_v7 = vpop.permute.xlu1 %569  ;;  %v4207_v13 = vpop.permute.xlu0 %648 }
 0x175   : > { %587 = vrot.lane.b32.xlu1 %v4040_v50, %s3834_s28  ;;  %933 = vperm.xlu0 %3507, %v4057_v54  }
 0x177   : > { %v4199_v9 = vpop.permute.xlu1 %731  ;;  %v4213_v15 = vpop.permute.xlu0 %654 }
 0x179   : > { %749 = vrot.lane.b32.xlu1 %v4040_v50, %s3836_s30 }
 0x17b   : > { %v487_v11 = vpop.permute.xlu1 %486 }
 0x17d   : > { %512 = vrot.lane.b32.xlu1 %v4052_v53, %s3835_s29 }
 0x17f   : > { %v568_v12 = vpop.permute.xlu1 %567 }
 0x181   : > { %593 = vrot.lane.b32.xlu1 %v4052_v53, %s3834_s28 }
 0x183   : > { %v4211_v14 = vpop.permute.xlu1 %729 }
 0x185   : > { %755 = vrot.lane.b32.xlu1 %v4052_v53, %s3836_s30 }
 0x187   : > { %v493_v16 = vpop.permute.xlu1 %492 }
 0x188   : > { %v4217_v17 = vpop.permute.xlu0 %888 }
 0x189   : > { %591 = vrot.lane.b32.xlu1 %v4061_v55, %s3834_s28 }
 0x18b   : > { %v574_v18 = vpop.permute.xlu1 %573 }
 0x18c   : > { %v491_v19 = vpop.permute.xlu0 %490 }
 0x18d   : > { %753 = vrot.lane.b32.xlu1 %v4061_v55, %s3836_s30 }
 0x18f   : > { %v4223_v20 = vpop.permute.xlu1 %735 }
 0x190   : > { %v4225_v21 = vpop.permute.xlu0 %652 }
 0x193   : > { %v572_v23 = vpop.permute.xlu1 %571  ;;  %530 = vxpose.xlu0.b32.start [1/16] (narrow) %v483_v5, 8 }
 0x194   : > { %v4227_v24 = vpop.permute.xlu0 %883 }
 0x197   : > { %v4229_v25 = vpop.permute.xlu1 %733  ;;  %531 = vxpose.xlu0.b32.cont [2/16] (narrow) %v485_v0, 8 }
 0x198   : > { %v4231_v26 = vpop.permute.xlu0 %658 }
 0x19b   : > { %v497_v28 = vpop.permute.xlu1 %496  ;;  %532 = vxpose.xlu0.b32.cont [3/16] (narrow) %v487_v11, 8 }
 0x19c   : > { %v4233_v30 = vpop.permute.xlu0 %898 }
 0x19f   : > { %v578_v33 = vpop.permute.xlu1 %577  ;;  %533 = vxpose.xlu0.b32.cont [4/16] (narrow) %v489_v6, 8 }
 0x1a0   : > { %v495_v35 = vpop.permute.xlu0 %494 }
 0x1a3   : > { %v4235_v38 = vpop.permute.xlu1 %739  ;;  %534 = vxpose.xlu0.b32.cont [5/16] (narrow) %v491_v19, 8 }
 0x1a4   : > { %v4237_v40 = vpop.permute.xlu0 %656 }
 0x1a7   : > { %v576_v43 = vpop.permute.xlu1 %575  ;;  %535 = vxpose.xlu0.b32.cont [6/16] (narrow) %v493_v16, 8 }
 0x1a8   : > { %v4239_v45 = vpop.permute.xlu0 %893 }
 0x1ab   : > { %v4241_v48 = vpop.permute.xlu1 %737  ;;  %536 = vxpose.xlu0.b32.cont [7/16] (narrow) %v495_v35, 8 }
 0x1ac   : > { %v4243_v50 = vpop.permute.xlu0 %662 }
 0x1af   : > { %v501_v53 = vpop.permute.xlu1 %500  ;;  %537 = vxpose.xlu0.b32.cont [8/16] (narrow) %v497_v28, 8 }
 0x1b0   : > { %v4245_v55 = vpop.permute.xlu0 %908 }
 0x1b3   : > { %v582_v0 = vpop.permute.xlu1 %581 }
 0x1b4   : > { %v499_v5 = vpop.permute.xlu0 %498 }
 0x1b5   : > { %538 = vxpose.xlu0.b32.cont [9/16] (narrow) %v499_v5, 8 }
 0x1b6   : > { %611 = vxpose.xlu1.b32.start [1/16] (narrow) %v564_v2, 8 }
 0x1b7   : > { %v4247_v6 = vpop.permute.xlu1 %743 }
 0x1b8   : > { %v4249_v11 = vpop.permute.xlu0 %660 }
 0x1b9   : > { %539 = vxpose.xlu0.b32.cont [10/16] (narrow) %v501_v53, 8 }
 0x1ba   : > { %612 = vxpose.xlu1.b32.cont [2/16] (narrow) %v4168_v63, 8 }
 0x1bb   : > { %v580_v16 = vpop.permute.xlu1 %579 }
 0x1bc   : > { %v4252_v19 = vpop.permute.xlu0 %903 }
 0x1be   : > { %613 = vxpose.xlu1.b32.cont [3/16] (narrow) %v568_v12, 8 }
 0x1bf   : > { %v4254_v35 = vpop.permute.xlu1 %741 }
 0x1c0   : > { %v4256_v28 = vpop.permute.xlu0 %666 }
 0x1c2   : > { %614 = vxpose.xlu1.b32.cont [4/16] (narrow) %v570_v7, 8 }
 0x1c3   : > { %v505_v22 = vpop.permute.xlu1 %504 }
 0x1c4   : > { %v4258_v59 = vpop.permute.xlu0 %918 }
 0x1c6   : > { %615 = vxpose.xlu1.b32.cont [5/16] (narrow) %v572_v23, 8 }
 0x1c7   : > { %v586_v2 = vpop.permute.xlu1 %585 }
 0x1c8   : > { %v503_v5 = vpop.permute.xlu0 %502 }
 0x1c9   : > { %540 = vxpose.xlu0.b32.cont [11/16] (narrow) %v503_v5, 8 }
 0x1ca   : > { %616 = vxpose.xlu1.b32.cont [6/16] (narrow) %v574_v18, 8 }
 0x1cb   : > { %v4260_v53 = vpop.permute.xlu1 %747 }
 0x1cc   : > { %v4262_v63 = vpop.permute.xlu0 %913 }
 0x1cd   : > { %541 = vxpose.xlu0.b32.cont [12/16] (narrow) %v505_v22, 8 }
 0x1ce   : > { %617 = vxpose.xlu1.b32.cont [7/16] (narrow) %v576_v43, 8 }
 0x1cf   : > { %v584_v12 = vpop.permute.xlu1 %583 }
 0x1d0   : > { %v671_v51 = vpop.permute.xlu0 %670 }
 0x1d2   : > { %618 = vxpose.xlu1.b32.cont [8/16] (narrow) %v578_v33, 8 }
 0x1d3   : > { %v665_v41 = vpop.permute.xlu1 %664 }
 0x1d4   : > { %v4264_v31 = vpop.permute.xlu0 %928 }
 0x1d6   : > { %619 = vxpose.xlu1.b32.cont [9/16] (narrow) %v580_v16, 8 }
 0x1d7   : > { %v746_v7 = vpop.permute.xlu1 %745 }
 0x1d8   : > { %v507_v62 = vpop.permute.xlu0 %506 }
 0x1d9   : > { %542 = vxpose.xlu0.b32.cont [13/16] (narrow) %v507_v62, 8 }
 0x1da   : > { %620 = vxpose.xlu1.b32.cont [10/16] (narrow) %v582_v0, 8 }
 0x1db   : > { %v509_v23 = vpop.permute.xlu1 %508 }
 0x1dc   : > { %v669_v5 = vpop.permute.xlu0 %668 }
 0x1dd   : > { %543 = vxpose.xlu0.b32.cont [14/16] (narrow) %v509_v23, 8 }
 0x1de   : > { %621 = vxpose.xlu1.b32.cont [11/16] (narrow) %v584_v12, 8 }
 0x1df   : > { %v590_v18 = vpop.permute.xlu1 %589 }
 0x1e0   : > { %v4266_v56 = vpop.permute.xlu0 %923 }
 0x1e2   : > { %622 = vxpose.xlu1.b32.cont [12/16] (narrow) %v586_v2, 8 }
 0x1e3   : > { %v752_v22 = vpop.permute.xlu1 %751 }
 0x1e4   : > { %v675_v43 = vpop.permute.xlu0 %674 }
 0x1e7   : > { %v588_v46 = vpop.permute.xlu1 %587 }
 0x1e8   : > { %v4268_v33 = vpop.permute.xlu0 %938  ;;  %623 = vxpose.xlu1.b32.cont [13/16] (narrow) %v588_v46, 8 }
 0x1eb   : > { %v750_v36 = vpop.permute.xlu1 %749 }
 0x1ec   : > { %624 = vxpose.xlu1.b32.cont [14/16] (narrow) %v590_v18, 8  ;;  %v511_v16 = vpop.permute.xlu0 %510  ;;  %v4335_v18 = vld [vmem:[%s4301_s7 + $0x18] sm:$0xff] }
 0x1ed   : > { %544 = vxpose.xlu0.b32.cont [15/16] (narrow) %v511_v16, 8  ;;  %6138 = vst [vmem:[#allocation16_spill] sm:$0xff] %v4335_v18  ;;  %vm6077_vm13 = vcmp.ne.f32.partialorder %v4335_v18, 0.0 }
 0x1ef   : > { %v513_v62 = vpop.permute.xlu1 %512 }
 0x1f0   : > { %v673_v46 = vpop.permute.xlu0 %672 }
 0x1f1   : > { %545 = vxpose.xlu0.b32.end [16/16] (narrow) %v513_v62, 8 }
 0x1f3   : > { %v594_v0 = vpop.permute.xlu1 %593 }
 0x1f5   : > { %692 = vxpose.xlu0.b32.start [1/16] (narrow) %v4194_v8, 8  ;;  %v6133_v8 = vmov 32  }
 0x1f7   : > { %v756_v12 = vpop.permute.xlu1 %755 }
 0x1f9   : > { %693 = vxpose.xlu0.b32.cont [2/16] (narrow) %v4179_v3, 8 }
 0x1fb   : > { %v592_v23 = vpop.permute.xlu1 %591 }
 0x1fc   : > { %625 = vxpose.xlu1.b32.cont [15/16] (narrow) %v592_v23, 8 }
 0x1fd   : > { %694 = vxpose.xlu0.b32.cont [3/16] (narrow) %v4207_v13, 8 }
 0x200   : > { %626 = vxpose.xlu1.b32.end [16/16] (narrow) %v594_v0, 8  ;;  %v4349_v0 = vld [vmem:[%s4301_s7 + $0x20] sm:$0xff] }
 0x201   : > { %695 = vxpose.xlu0.b32.cont [4/16] (narrow) %v4203_v10, 8  ;;  %vm6074_vm15 = vcmp.ne.f32.partialorder %v4349_v0, 0.0 }
 0x204   : > { %773 = vxpose.xlu1.b32.start [1/16] (narrow) %v4184_v4, 8 }
 0x205   : > { %696 = vxpose.xlu0.b32.cont [5/16] (narrow) %v4225_v21, 8 }
 0x208   : > { %774 = vxpose.xlu1.b32.cont [2/16] (narrow) %v4173_v1, 8  ;;  %v934_v1 = vpop.permute.xlu0 %933 }
 0x209   : > { %697 = vxpose.xlu0.b32.cont [6/16] (narrow) %v4213_v15, 8 }
 0x20c   : > { %775 = vxpose.xlu1.b32.cont [3/16] (narrow) %v4211_v14, 8 }
 0x20d   : > { %698 = vxpose.xlu0.b32.cont [7/16] (narrow) %v4237_v40, 8 }
 0x210   : > { %776 = vxpose.xlu1.b32.cont [4/16] (narrow) %v4199_v9, 8  ;;  %v961_v9 = vlaneseq }
 0x211   : > { %699 = vxpose.xlu0.b32.cont [8/16] (narrow) %v4231_v26, 8 }
 0x212   : > { %v962_v13 = vshrl.u32 %v961_v9, 7 }
 0x214   : > { %777 = vxpose.xlu1.b32.cont [5/16] (narrow) %v4229_v25, 8  ;;  %v963_v14 = vsub.s32 0, %v962_v13  ;;  %v1392_v15 = vsub.s32 1, %v962_v13  ;;  %v2306_v21 = vsub.s32 3, %v962_v13 }
 0x215   : > { %700 = vxpose.xlu0.b32.cont [9/16] (narrow) %v4249_v11, 8  ;;  %v4318_v11 = vld [vmem:[%s4301_s7 + $0x40] sm:$0xff] }
 0x216   : > { %vm6079_vm8 = vcmp.ne.f32.partialorder %v4318_v11, 0.0 }
 0x218   : > { %778 = vxpose.xlu1.b32.cont [6/16] (narrow) %v4223_v20, 8  ;;  %v1853_v20 = vsub.s32 2, %v962_v13  ;;  %v4373_v13 = vld [vmem:[%s4301_s7 + $0x28] sm:$0xff] }
 0x219   : > { %701 = vxpose.xlu0.b32.cont [10/16] (narrow) %v4243_v50, 8  ;;  %v4312_v50 = vld [vmem:[%s4301_s7 + $0x8] sm:$0xff] }
 0x21a   : > { %6134 = vst [vmem:[#allocation12_spill] sm:$0xff] %v4312_v50  ;;  %vm6081_vm2 = vcmp.ne.f32.partialorder %v4312_v50, 0.0 }
 0x21c   : > { %779 = vxpose.xlu1.b32.cont [7/16] (narrow) %v4241_v48, 8 }
 0x21d   : > { %702 = vxpose.xlu0.b32.cont [11/16] (narrow) %v665_v41, 8  ;;  %v754_v41 = vpop.permute.xlu1 %753 }
 0x220   : > { %780 = vxpose.xlu1.b32.cont [8/16] (narrow) %v4235_v38, 8 }
 0x221   : > { %703 = vxpose.xlu0.b32.cont [12/16] (narrow) %v4256_v28, 8 }
 0x224   : > { %781 = vxpose.xlu1.b32.cont [9/16] (narrow) %v4254_v35, 8  ;;  %v4321_v35 = vld [vmem:[%s4301_s7 + $0x10] sm:$0xff] }
 0x225   : > { %704 = vxpose.xlu0.b32.cont [13/16] (narrow) %v669_v5, 8  ;;  %6136 = vst [vmem:[#allocation14_spill] sm:$0xff] %v4321_v35  ;;  %v4332_v5 = vld [vmem:[%s4301_s7 + $0x50] sm:$0xff]  ;;  %vm6080_vm9 = vcmp.ne.f32.partialorder %v4321_v35, 0.0 }
 0x226   : > { %6137 = vst [vmem:[#allocation15_spill] sm:$0xff] %v4332_v5  ;;  %vm6072_vm12 = vcmp.ne.f32.partialorder %v4332_v5, 0.0 }
 0x228   : > { %782 = vxpose.xlu1.b32.cont [10/16] (narrow) %v4247_v6, 8  ;;  %v4315_v6 = vld [vmem:[%s4301_s7] sm:$0xff] }
 0x229   : > { %705 = vxpose.xlu0.b32.cont [14/16] (narrow) %v671_v51, 8  ;;  %6135 = vst [vmem:[#allocation13_spill] sm:$0xff] %v4315_v6  ;;  %vm6088_vm3 = vcmp.ne.f32.partialorder %v4315_v6, 0.0 }
 0x22c   : > { %783 = vxpose.xlu1.b32.cont [11/16] (narrow) %v746_v7, 8 }
 0x22d   : > { %706 = vxpose.xlu0.b32.cont [15/16] (narrow) %v673_v46, 8 }
 0x230   : > { %784 = vxpose.xlu1.b32.cont [12/16] (narrow) %v4260_v53, 8 }
 0x231   : > { %707 = vxpose.xlu0.b32.end [16/16] (narrow) %v675_v43, 8 }
 0x234   : > { %785 = vxpose.xlu1.b32.cont [13/16] (narrow) %v750_v36, 8  ;;  %v3838_v36 = vmov 33  }
 0x235   : > { %v546_v3 = vpop.trf.xlu0 }
 0x236   : > { %562 = vst [vmem:[#allocation3] sm:$0x1] %v546_v3 }
 0x238   : > { %786 = vxpose.xlu1.b32.cont [14/16] (narrow) %v752_v22, 8 }
 0x23c   : > { %787 = vxpose.xlu1.b32.cont [15/16] (narrow) %v754_v41, 8 }
 0x240   : > { %788 = vxpose.xlu1.b32.end [16/16] (narrow) %v756_v12, 8 }
 0x244   : > { %v627_v4 = vpop.trf.xlu1 }
 0x245   : > { %643 = vst [vmem:[#allocation3 + $0x1] sm:$0x1] %v627_v4 }
 0x25a   : > { %948 = vperm.xlu0 %3507, %v4071_v57  }
 0x25e   : > { %3508 = vset.pattern.permute.xlu1 %v6133_v8  ;;  %953 = vperm.xlu0 %3507, %v4091_v61  }
 0x25f   : > { %943 = vperm.xlu1 %3508, %v4077_v58  }
 0x262   : > { %958 = vperm.xlu0 %3507, %v4085_v60  }
 0x263   : > { %3509 = vset.pattern.permute.xlu1 %v3838_v36 }
 0x266   : > { %3510 = vset.pattern.permute.xlu0 %v3838_v36 }
 0x275   : > { %v708_v51 = vpop.trf.xlu0 }
 0x276   : > { %724 = vst [vmem:[#allocation3 + $0x2] sm:$0x1] %v708_v51 }
 0x284   : > { %v789_v10 = vpop.trf.xlu1 }
 0x285   : > { %805 = vst [vmem:[#allocation3 + $0x3] sm:$0x1] %v789_v10 }
 0x28c   : > { %v880_v25 = vld [vmem:[#allocation3] sm:$0xf] }
 0x28d   : > { %v4303_v26 = vrot.slane %v880_v25, %v963_v14  ;;  %v4305_v38 = vrot.slane %v880_v25, %v1392_v15  ;;  %v4307_v40 = vrot.slane %v880_v25, %v1853_v20  ;;  %v4309_v48 = vrot.slane %v880_v25, %v2306_v21 }
 0x28f   : > { %v966_v28 = vadd.f32 %v4303_v26, %v4217_v17  ;;  %v965_v2 = vadd.f32 %v4303_v26, %v4227_v24  ;;  %v973_v53 = vadd.f32 %v4303_v26, %v4266_v56  ;;  %v967_v7 = vadd.f32 %v4303_v26, %v4239_v45 }
 0x290   : > { %v975_v22 = vadd.f32 %v4303_v26, %v934_v1  ;;  %v968_v17 = vadd.f32 %v4303_v26, %v4233_v30  ;;  %v969_v12 = vadd.f32 %v4303_v26, %v4252_v19  ;;  %v970_v8 = vadd.f32 %v4303_v26, %v4245_v55 }
 0x291   : > { %v982_v43 = vmul.f32 %v966_v28, %v4312_v50  ;;  %v981_v24 = vmul.f32 %v965_v2, %v4315_v6  ;;  %v989_v56 = vmul.f32 %v973_v53, %v4318_v11  ;;  %v983_v16 = vmul.f32 %v967_v7, %v4321_v35  ;;  %v4391_v53 = vld [vmem:[%s4301_s7 + $0x30] sm:$0xff] }
 0x292   : > { %v991_v45 = vmul.f32 %v975_v22, %v4332_v5  ;;  %v984_v62 = vmul.f32 %v968_v17, %v4335_v18  ;;  %v985_v10 = vmul.f32 %v969_v12, %v4349_v0  ;;  %v986_v20 = vmul.f32 %v970_v8, %v4373_v13 }
 0x293   : > { %vm998_vm4 = vcmp.gt.f32.partialorder %v982_v43, 0.0  ;;  %v1014_v30 = vmul.f32 0.2, %v982_v43  ;;  %vm997_vm5 = vcmp.gt.f32.partialorder %v981_v24, 0.0  ;;  %v1013_v23 = vmul.f32 0.2, %v981_v24 }
 0x294   : > { %vm1005_vm6 = vcmp.gt.f32.partialorder %v989_v56, 0.0  ;;  %v1021_v46 = vmul.f32 0.2, %v989_v56  ;;  %vm999_vm7 = vcmp.gt.f32.partialorder %v983_v16, 0.0  ;;  %v1015_v1 = vmul.f32 0.2, %v983_v16 }
 0x295   : > { %v4353_v3 = vsel %vm998_vm4, %v982_v43, %v1014_v30  ;;  %v4355_v41 = vsel %vm997_vm5, %v981_v24, %v1013_v23  ;;  %v1023_v9 = vmul.f32 0.2, %v991_v45  ;;  %vm1007_vm10 = vcmp.gt.f32.partialorder %v991_v45, 0.0 }
 0x296   : > { %v1046_v4 = vsel %vm6081_vm2, %v4353_v3, -1e+30  ;;  %v1045_v19 = vsel %vm6088_vm3, %v4355_v41, -1e+30  ;;  %v4367_v36 = vsel %vm1005_vm6, %v989_v56, %v1021_v46  ;;  %v4369_v51 = vsel %vm999_vm7, %v983_v16, %v1015_v1  ;;  %v4406_v56 = vld [vmem:[%s4301_s7 + $0x38] sm:$0xff] }
 0x297   : > { %1063 = vmax.xlane.f32.xlu1 %v1046_v4  ;;  %1061 = vmax.xlane.f32.xlu0 %v1045_v19  ;;  %vm1000_vm11 = vcmp.gt.f32.partialorder %v984_v62, 0.0  ;;  %v1016_v14 = vmul.f32 0.2, %v984_v62  ;;  %v1053_v55 = vsel %vm6079_vm8, %v4367_v36, -1e+30  ;;  %v4384_v21 = vsel %vm1007_vm10, %v991_v45, %v1023_v9 }
 0x298   : > { %v1047_v15 = vsel %vm6080_vm9, %v4369_v51, -1e+30  ;;  %v1017_v28 = vmul.f32 0.2, %v985_v10  ;;  %v971_v2 = vadd.f32 %v4303_v26, %v4262_v63  ;;  %vm1001_vm14 = vcmp.gt.f32.partialorder %v985_v10, 0.0 }
 0x299   : > { %v4386_v25 = vsel %vm1000_vm11, %v984_v62, %v1016_v14  ;;  %v1055_v7 = vsel %vm6072_vm12, %v4384_v21, -1e+30  ;;  %v1018_v43 = vmul.f32 0.2, %v986_v20  ;;  %v972_v24 = vadd.f32 %v4303_v26, %v4258_v59  ;;  %v4418_v59 = vld [vmem:[%s4301_s7 + $0x48] sm:$0xff] }
 0x29a   : > { %v1048_v22 = vsel %vm6077_vm13, %v4386_v25, -1e+30  ;;  %v4400_v17 = vsel %vm1001_vm14, %v985_v10, %v1017_v28  ;;  %v987_v63 = vmul.f32 %v971_v2, %v4391_v53  ;;  %vm1002_vm1 = vcmp.gt.f32.partialorder %v986_v20, 0.0  ;;  %6139 = vst [vmem:[#allocation17_spill] sm:$0xff] %v4418_v59 }
 0x29b   : > { %1077 = vmax.xlane.f32.xlu1 %v1053_v55  ;;  %1065 = vmax.xlane.f32.xlu0 %v1047_v15  ;;  %v1049_v16 = vsel %vm6074_vm15, %v4400_v17, -1e+30  ;;  %vm6073_vm4 = vcmp.ne.f32.partialorder %v4373_v13, 0.0  ;;  %v4412_v45 = vsel %vm1002_vm1, %v986_v20, %v1018_v43  ;;  %v988_v12 = vmul.f32 %v972_v24, %v4406_v56  ;;  %v4460_v24 = vld [vmem:[%s4301_s7 + $0x70] sm:$0xff] }
 0x29c   : > { %v1019_v62 = vmul.f32 0.2, %v987_v63  ;;  %v974_v30 = vadd.f32 %v4303_v26, %v4264_v31  ;;  %vm1003_vm5 = vcmp.gt.f32.partialorder %v987_v63, 0.0  ;;  %v1050_v23 = vsel %vm6073_vm4, %v4412_v45, -1e+30  ;;  %v4430_v31 = vld [vmem:[%s4301_s7 + $0x58] sm:$0xff] }
 0x29d   : > { %vm6076_vm6 = vcmp.ne.f32.partialorder %v4391_v53, 0.0  ;;  %v1020_v1 = vmul.f32 0.2, %v988_v12  ;;  %v976_v19 = vadd.f32 %v4303_v26, %v4268_v33  ;;  %vm1004_vm7 = vcmp.gt.f32.partialorder %v988_v12, 0.0  ;;  %6140 = vst [vmem:[#allocation18_spill] sm:$0xff] %v4430_v31  ;;  %6142 = vst [vmem:[#allocation20_spill] sm:$0xff] %v4460_v24 }
 0x29e   : > { %v4424_v46 = vsel %vm1003_vm5, %v987_v63, %v1019_v62  ;;  %v990_v4 = vmul.f32 %v974_v30, %v4418_v59  ;;  %vm6075_vm10 = vcmp.ne.f32.partialorder %v4406_v56, 0.0  ;;  %vm6078_vm14 = vcmp.ne.f32.partialorder %v4418_v59, 0.0 }
 0x29f   : > { %1081 = vmax.xlane.f32.xlu1 %v1055_v7  ;;  %1067 = vmax.xlane.f32.xlu0 %v1048_v22  ;;  %v1051_v8 = vsel %vm6076_vm6, %v4424_v46, -1e+30  ;;  %v4436_v9 = vsel %vm1004_vm7, %v988_v12, %v1020_v1  ;;  %v992_v14 = vmul.f32 %v976_v19, %v4430_v31  ;;  %vm6070_vm5 = vcmp.ne.f32.partialorder %v4430_v31, 0.0  ;;  %v4455_v7 = vld [vmem:[%s4301_s7 + $0x68] sm:$0xff]  ;;  %v4465_v12 = vld [vmem:[%s4301_s7 + $0x60] sm:$0xff] }
 0x2a0   : > { %v1022_v10 = vmul.f32 0.2, %v990_v4  ;;  %vm1006_vm11 = vcmp.gt.f32.partialorder %v990_v4, 0.0  ;;  %v1052_v33 = vsel %vm6075_vm10, %v4436_v9, -1e+30  ;;  %6141 = vst [vmem:[#allocation19_spill] sm:$0xff] %v4455_v7 }
 0x2a1   : > { %v1024_v15 = vmul.f32 0.2, %v992_v14  ;;  %vm1008_vm1 = vcmp.gt.f32.partialorder %v992_v14, 0.0  ;;  %vm6071_vm7 = vcmp.ne.f32.partialorder %v4455_v7, 0.0  ;;  %6143 = vst [vmem:[#allocation21_spill] sm:$0xff] %v4465_v12  ;;  %vm837_vm12 = vcmp.ne.f32.partialorder %v4460_v24, 0.0 }
 0x2a2   : > { %v4443_v55 = vsel %vm1006_vm11, %v990_v4, %v1022_v10  ;;  %v4473_v10 = vld [vmem:[%s4301_s7 + $0x78] sm:$0xff] }
 0x2a3   : > { %1069 = vmax.xlane.f32.xlu0 %v1049_v16  ;;  %v1054_v20 = vsel %vm6078_vm14, %v4443_v55, -1e+30  ;;  %v4449_v28 = vsel %vm1008_vm1, %v992_v14, %v1024_v15  ;;  %6144 = vst [vmem:[#allocation22_spill] sm:$0xff] %v4473_v10  ;;  %vm835_vm1 = vcmp.ne.f32.partialorder %v4465_v12, 0.0 }
 0x2a4   : > { %v1056_v2 = vsel %vm6070_vm5, %v4449_v28, -1e+30  ;;  %vm838_vm5 = vcmp.ne.f32.partialorder %v4473_v10, 0.0 }
 0x2a7   : > { %1071 = vmax.xlane.f32.xlu0 %v1050_v23 }
 0x2ab   : > { %1073 = vmax.xlane.f32.xlu0 %v1051_v8 }
 0x2af   : > { %1075 = vmax.xlane.f32.xlu0 %v1052_v33 }
 0x2b3   : > { %1079 = vmax.xlane.f32.xlu0 %v1054_v20 }
 0x2b7   : > { %1083 = vmax.xlane.f32.xlu0 %v1056_v2 }
 0x2d9   : > { %v949_v22 = vpop.permute.xlu0 %948 }
 0x2da   : > { %v978_v43 = vadd.f32 %v4303_v26, %v949_v22 }
 0x2dc   : > { %v994_v63 = vmul.f32 %v978_v43, %v4455_v7 }
 0x2dd   : > { %v954_v16 = vpop.permute.xlu0 %953 }
 0x2de   : > { %v979_v62 = vadd.f32 %v4303_v26, %v954_v16  ;;  %v944_v30 = vpop.permute.xlu1 %943  ;;  %vm1010_vm11 = vcmp.gt.f32.partialorder %v994_v63, 0.0  ;;  %v1026_v23 = vmul.f32 0.2, %v994_v63 }
 0x2df   : > { %v977_v1 = vadd.f32 %v4303_v26, %v944_v30 }
 0x2e0   : > { %v995_v4 = vmul.f32 %v979_v62, %v4460_v24  ;;  %v4469_v19 = vsel %vm1010_vm11, %v994_v63, %v1026_v23 }
 0x2e1   : > { %v993_v8 = vmul.f32 %v977_v1, %v4465_v12  ;;  %v959_v14 = vpop.permute.xlu0 %958  ;;  %v1058_v33 = vsel %vm6071_vm7, %v4469_v19, -1e+30 }
 0x2e2   : > { %v980_v15 = vadd.f32 %v4303_v26, %v959_v14  ;;  %1087 = vmax.xlane.f32.xlu0 %v1058_v33  ;;  %v1027_v2 = vmul.f32 0.2, %v995_v4  ;;  %vm1011_vm11 = vcmp.gt.f32.partialorder %v995_v4, 0.0 }
 0x2e3   : > { %vm1009_vm0 = vcmp.gt.f32.partialorder %v993_v8, 0.0  ;;  %v1025_v20 = vmul.f32 0.2, %v993_v8 }
 0x2e4   : > { %v996_v22 = vmul.f32 %v980_v15, %v4473_v10  ;;  %v4488_v26 = vsel %vm1011_vm11, %v995_v4, %v1027_v2  ;;  %vm4565_vm11 = vmpackc.low %vm6073_vm4, %vm6074_vm15 }
 0x2e5   : > { %v4481_v43 = vsel %vm1009_vm0, %v993_v8, %v1025_v20  ;;  %v1059_v23 = vsel %vm837_vm12, %v4488_v26, -1e+30  ;;  %vm4527_vm0 = vmpackc.low %vm6081_vm2, %vm6088_vm3 }
 0x2e6   : > { %v1057_v63 = vsel %vm835_vm1, %v4481_v43, -1e+30  ;;  %vm1012_vm7 = vcmp.gt.f32.partialorder %v996_v22, 0.0  ;;  %v1028_v16 = vmul.f32 0.2, %v996_v22  ;;  %vm4582_vm4 = vmpackc.low %vm6075_vm10, %vm6076_vm6  ;;  %vm6159_vm10 = vcmp.ne.f32.partialorder %v4332_v5, 0.0 }
 0x2e7   : > { %1085 = vmax.xlane.f32.xlu1 %v1057_v63  ;;  %vm4598_vm15 = vmpackc.low %vm6078_vm14, %vm6079_vm8  ;;  %vm6160_vm6 = vcmp.ne.f32.partialorder %v4430_v31, 0.0 }
 0x2e8   : > { %v4490_v62 = vsel %vm1012_vm7, %v996_v22, %v1028_v16  ;;  %vm4546_vm7 = vmpackc.low %vm6077_vm13, %vm6080_vm9  ;;  %v6147_v22 = vmov 0 }
 0x2e9   : > { %v1060_v30 = vsel %vm838_vm5, %v4490_v62, -1e+30  ;;  %v6148_v22 = vsel %vm4546_vm7, 4294967295, %v6147_v22  ;;  %vm4614_vm13 = vmpackc.low %vm6160_vm6, %vm6159_vm10  ;;  %vm6164_vm10 = vcmp.ne.f32.partialorder %v4455_v7, 0.0 }
 0x2ea   : > { %1091 = vmax.xlane.f32.xlu0 %v1060_v30  ;;  %6149 = vst [vmem:[#allocation23_spill] sm:$0xff] %v6148_v22  ;;  %vm4642_vm14 = vmpackc.low %vm6164_vm10, %vm835_vm1 }
 0x2eb   : > { %1089 = vmax.xlane.f32.xlu1 %v1059_v23  ;;  %vm4667_vm10 = vmpackc.low %vm838_vm5, %vm837_vm12 }
 0x2fc   : > { %1327 = vperm.xlu1 %3509, %v3955_v29  }
 0x300   : > { %1335 = vperm.xlu1 %3509, %v3974_v34   ;;  %1331 = vperm.xlu0 %3510, %v3949_v27  }
 0x304   : > { %1339 = vperm.xlu1 %3509, %v3968_v32   ;;  %1367 = vperm.xlu0 %3510, %v4057_v54  }
 0x308   : > { %1343 = vperm.xlu1 %3509, %v3994_v39   ;;  %1375 = vperm.xlu0 %3510, %v4077_v58  }
 0x30c   : > { %1347 = vperm.xlu1 %3509, %v3988_v37   ;;  %1383 = vperm.xlu0 %3510, %v4091_v61  }
 0x310   : > { %1351 = vperm.xlu1 %3509, %v4015_v44  }
 0x314   : > { %1355 = vperm.xlu1 %3509, %v4008_v42  }
 0x318   : > { %1359 = vperm.xlu1 %3509, %v4036_v49  }
 0x31c   : > { %1363 = vperm.xlu1 %3509, %v4029_v47  }
 0x320   : > { %1371 = vperm.xlu1 %3509, %v4050_v52  }
 0x324   : > { %v1064_v27 = vpop.xlane.xlu1 %1063  ;;  %1379 = vperm.xlu1 %3509, %v4071_v57   ;;  %v1062_v29 = vpop.xlane.xlu0 %1061 }
 0x325   : > { %v1094_v32 = vsub.f32 %v4353_v3, %v1064_v27  ;;  %v1093_v34 = vsub.f32 %v4355_v41, %v1062_v29 }
 0x327   : > { %v1111_v37 = vmul.f32 1.442695, %v1094_v32  ;;  %v1109_v39 = vmul.f32 1.442695, %v1093_v34 }
 0x328   : > { %1387 = vperm.xlu1 %3509, %v4085_v60   ;;  %v1066_v44 = vpop.xlane.xlu0 %1065  ;;  %v1078_v1 = vpop.xlane.xlu1 %1077 }
 0x329   : > { %3521 = vpow2.f32 %v1111_v37  ;;  %v1095_v42 = vsub.f32 %v4369_v51, %v1066_v44  ;;  %v1101_v20 = vsub.f32 %v4367_v36, %v1078_v1  ;;  %v6150_v37 = vmov 0 }
 0x32a   : > { %3523 = vpow2.f32 %v1109_v39  ;;  %v6151_v37 = vsel %vm4565_vm11, 4294967295, %v6150_v37 }
 0x32b   : > { %v1113_v49 = vmul.f32 1.442695, %v1095_v42  ;;  %v1125_v36 = vmul.f32 1.442695, %v1101_v20  ;;  %6152 = vst [vmem:[#allocation24_spill] sm:$0xff] %v6151_v37 }
 0x32c   : > { %v1068_v47 = vpop.xlane.xlu0 %1067  ;;  %v1082_v63 = vpop.xlane.xlu1 %1081 }
 0x32d   : > { %v1096_v52 = vsub.f32 %v4386_v25, %v1068_v47  ;;  %3525 = vpow2.f32 %v1113_v49  ;;  %v1103_v23 = vsub.f32 %v4384_v21, %v1082_v63 }
 0x32f   : > { %v1115_v54 = vmul.f32 1.442695, %v1096_v52  ;;  %v1129_v21 = vmul.f32 1.442695, %v1103_v23  ;;  %v6153_v52 = vmov 0 }
 0x330   : > { %v1070_v57 = vpop.xlane.xlu0 %1069  ;;  %v6154_v52 = vsel %vm4582_vm4, 4294967295, %v6153_v52 }
 0x331   : > { %v1097_v58 = vsub.f32 %v4400_v17, %v1070_v57  ;;  %3527 = vpow2.f32 %v1115_v54  ;;  %6155 = vst [vmem:[#allocation25_spill] sm:$0xff] %v6154_v52 }
 0x333   : > { %v4519_v61 = vpop.eup %3521  ;;  %v1117_v60 = vmul.f32 1.442695, %v1097_v58  ;;  %v6156_v58 = vmov 0 }
 0x334   : > { %v4521_v3 = vpop.eup %3523  ;;  %v1072_v41 = vpop.xlane.xlu0 %1071  ;;  %v6157_v58 = vsel %vm4598_vm15, 4294967295, %v6156_v58 }
 0x335   : > { %v1098_v25 = vsub.f32 %v4412_v45, %v1072_v41  ;;  %v3117_v17 = vpack.c.bf16 %v4519_v61, %v4521_v3  ;;  %3529 = vpow2.f32 %v1117_v60  ;;  %6158 = vst [vmem:[#allocation26_spill] sm:$0xff] %v6157_v58 }
 0x337   : > { %v1119_v4 = vmul.f32 1.442695, %v1098_v25  ;;  %3349 = vmatprep.mubr.msk.bf16.mxu1 %vm4527_vm0, %v3117_v17  ;;  %v4537_v33 = vpop.eup %3525  ;;  %v6161_v17 = vmov 0 }
 0x338   : > { %v1074_v8 = vpop.xlane.xlu0 %1073  ;;  %v6162_v17 = vsel %vm4614_vm13, 4294967295, %v6161_v17 }
 0x339   : > { %3531 = vpow2.f32 %v1119_v4  ;;  %v1099_v14 = vsub.f32 %v4424_v46, %v1074_v8  ;;  %6163 = vst [vmem:[#allocation27_spill] sm:$0xff] %v6162_v17 }
 0x33b   : > { %v4539_v15 = vpop.eup %3527  ;;  %v1121_v45 = vmul.f32 1.442695, %v1099_v14 }
 0x33c   : > { %v1076_v2 = vpop.xlane.xlu0 %1075  ;;  %v3120_v46 = vpack.c.bf16 %v4539_v15, %v4537_v33 }
 0x33d   : > { %v1100_v16 = vsub.f32 %v4436_v9, %v1076_v2  ;;  %3533 = vpow2.f32 %v1121_v45 }
 0x33e   : > { %3350 = vmatmul.mubr.msk.bf16.vlgmr.msra.gmra.mrb[0].mxu1 %vm4546_vm7, %v3120_v46 }
 0x33f   : > { %v1123_v30 = vmul.f32 1.442695, %v1100_v16  ;;  %v4557_v32 = vpop.eup %3529 }
 0x340   : > { %v1080_v27 = vpop.xlane.xlu0 %1079 }
 0x341   : > { %3535 = vpow2.f32 %v1123_v30  ;;  %v1102_v29 = vsub.f32 %v4443_v55, %v1080_v27 }
 0x342   : > { %3537 = vpow2.f32 %v1125_v36 }
 0x343   : > { %v4559_v34 = vpop.eup %3531  ;;  %v1127_v9 = vmul.f32 1.442695, %v1102_v29 }
 0x344   : > { %v1084_v39 = vpop.xlane.xlu0 %1083  ;;  %v3123_v44 = vpack.c.bf16 %v4559_v34, %v4557_v32 }
 0x345   : > { %3539 = vpow2.f32 %v1127_v9  ;;  %v1104_v55 = vsub.f32 %v4449_v28, %v1084_v39 }
 0x346   : > { %3353 = vmatprep.mubr.msk.bf16.mxu1 %vm4565_vm11, %v3123_v44  ;;  %3541 = vpow2.f32 %v1129_v21 }
 0x347   : > { %v1131_v42 = vmul.f32 1.442695, %v1104_v55  ;;  %v4574_v47 = vpop.eup %3533 }
 0x349   : > { %3543 = vpow2.f32 %v1131_v42 }
 0x34b   : > { %v4576_v49 = vpop.eup %3535 }
 0x34c   : > { %v3126_v28 = vpack.c.bf16 %v4576_v49, %v4574_v47  ;;  %v4588_v54 = vpop.eup %3537 }
 0x34e   : > { %3354 = vmatmul.mubr.msk.bf16.gmra.mrb[4].mxu1 %vm4582_vm4, %v3126_v28 }
 0x34f   : > { %v4592_v57 = vpop.eup %3539 }
 0x350   : > { %v3129_v60 = vpack.c.bf16 %v4592_v57, %v4588_v54  ;;  %v4604_v41 = vpop.eup %3541 }
 0x352   : > { %3357 = vmatprep.mubr.msk.bf16.mxu1 %vm4598_vm15, %v3129_v60  ;;  %v6165_v60 = vmov 0 }
 0x353   : > { %v4608_v25 = vpop.eup %3543  ;;  %v6166_v60 = vsel %vm4642_vm14, 4294967295, %v6165_v60 }
 0x354   : > { %v3132_v1 = vpack.c.bf16 %v4608_v25, %v4604_v41  ;;  %6167 = vst [vmem:[#allocation28_spill] sm:$0xff] %v6166_v60 }
 0x356   : > { %3358 = vmatmul.mubr.msk.bf16.gmra.mrb[8].mxu1 %vm4614_vm13, %v3132_v1 }
 0x36f   : > { %v1088_v4 = vpop.xlane.xlu0 %1087 }
 0x370   : > { %v1106_v8 = vsub.f32 %v4469_v19, %v1088_v4 }
 0x372   : > { %v1135_v14 = vmul.f32 1.442695, %v1106_v8 }
 0x374   : > { %v1086_v20 = vpop.xlane.xlu1 %1085  ;;  %3545 = vpow2.f32 %v1135_v14 }
 0x375   : > { %v1105_v45 = vsub.f32 %v4481_v43, %v1086_v20 }
 0x377   : > { %v1133_v2 = vmul.f32 1.442695, %v1105_v45  ;;  %v1092_v63 = vpop.xlane.xlu0 %1091 }
 0x378   : > { %v1108_v16 = vsub.f32 %v4490_v62, %v1092_v63  ;;  %v1090_v46 = vpop.xlane.xlu1 %1089 }
 0x379   : > { %3547 = vpow2.f32 %v1133_v2  ;;  %v1107_v30 = vsub.f32 %v4488_v26, %v1090_v46 }
 0x37a   : > { %v1139_v36 = vmul.f32 1.442695, %v1108_v16 }
 0x37b   : > { %v1137_v23 = vmul.f32 1.442695, %v1107_v30 }
 0x37c   : > { %3549 = vpow2.f32 %v1139_v36  ;;  %v1328_v27 = vpop.permute.xlu1 %1327  ;;  %v6168_v36 = vmov 0 }
 0x37d   : > { %3551 = vpow2.f32 %v1137_v23  ;;  %v1394_v19 = vadd.f32 %v4305_v38, %v1328_v27  ;;  %v6169_v36 = vsel %vm4667_vm10, 4294967295, %v6168_v36 }
 0x37e   : > { %v4630_v44 = vpop.eup %3545  ;;  %6170 = vst [vmem:[#allocation29_spill] sm:$0xff] %v6169_v36 }
 0x37f   : > { %v1410_v29 = vmul.f32 %v1394_v19, %v4315_v6  ;;  %v1332_v9 = vpop.permute.xlu0 %1331 }
 0x380   : > { %v1395_v43 = vadd.f32 %v4305_v38, %v1332_v9  ;;  %v1336_v21 = vpop.permute.xlu1 %1335 }
 0x381   : > { %v1396_v39 = vadd.f32 %v4305_v38, %v1336_v21  ;;  %vm1426_vm6 = vcmp.gt.f32.partialorder %v1410_v29, 0.0  ;;  %v1442_v62 = vmul.f32 0.2, %v1410_v29 }
 0x382   : > { %v1411_v26 = vmul.f32 %v1395_v43, %v4312_v50 }
 0x383   : > { %v4633_v55 = vpop.eup %3547  ;;  %v1412_v42 = vmul.f32 %v1396_v39, %v4321_v35  ;;  %v4636_v28 = vsel %vm1426_vm6, %v1410_v29, %v1442_v62 }
 0x384   : > { %v1340_v1 = vpop.permute.xlu1 %1339  ;;  %v1474_v4 = vsel %vm6088_vm3, %v4636_v28, -1e+30  ;;  %v3135_v8 = vpack.c.bf16 %v4630_v44, %v4633_v55  ;;  %vm1427_vm8 = vcmp.gt.f32.partialorder %v1411_v26, 0.0  ;;  %v1443_v20 = vmul.f32 0.2, %v1411_v26 }
 0x385   : > { %v1397_v14 = vadd.f32 %v4305_v38, %v1340_v1  ;;  %1490 = vmax.xlane.f32.xlu0 %v1474_v4  ;;  %vm1428_vm6 = vcmp.gt.f32.partialorder %v1412_v42, 0.0  ;;  %v1444_v45 = vmul.f32 0.2, %v1412_v42  ;;  %v1368_v4 = vpop.permute.xlu0 %1367 }
 0x386   : > { %v4652_v2 = vpop.eup %3549  ;;  %3361 = vmatprep.mubr.msk.bf16.mxu1 %vm4642_vm14, %v3135_v8  ;;  %v4659_v46 = vsel %vm1427_vm8, %v1411_v26, %v1443_v20 }
 0x387   : > { %v4656_v63 = vpop.eup %3551  ;;  %v1413_v16 = vmul.f32 %v1397_v14, %v4335_v18  ;;  %v4661_v30 = vsel %vm1428_vm6, %v1412_v42, %v1444_v45  ;;  %v1475_v27 = vsel %vm6081_vm2, %v4659_v46, -1e+30  ;;  %vm6171_vm6 = vcmp.ne.f32.partialorder %v4335_v18, 0.0 }
 0x388   : > { %v1344_v23 = vpop.permute.xlu1 %1343  ;;  %v1476_v19 = vsel %vm6080_vm9, %v4661_v30, -1e+30  ;;  %v3138_v29 = vpack.c.bf16 %v4652_v2, %v4656_v63  ;;  %1492 = vmax.xlane.f32.xlu1 %v1475_v27 }
 0x389   : > { %v1398_v9 = vadd.f32 %v4305_v38, %v1344_v23  ;;  %1494 = vmax.xlane.f32.xlu0 %v1476_v19  ;;  %vm1429_vm8 = vcmp.gt.f32.partialorder %v1413_v16, 0.0  ;;  %v1445_v43 = vmul.f32 0.2, %v1413_v16 }
 0x38a   : > { %3362 = vmatmul.mubr.msk.bf16.gmra.mrb[12].mxu1 %vm4667_vm10, %v3138_v29  ;;  %v1404_v29 = vadd.f32 %v4305_v38, %v1368_v4 }
 0x38b   : > { %v1414_v21 = vmul.f32 %v1398_v9, %v4349_v0  ;;  %v4683_v39 = vsel %vm1429_vm8, %v1413_v16, %v1445_v43  ;;  %vm6172_vm8 = vcmp.ne.f32.partialorder %v4349_v0, 0.0  ;;  %v1376_v9 = vpop.permute.xlu0 %1375 }
 0x38c   : > { %v1348_v62 = vpop.permute.xlu1 %1347  ;;  %v1477_v26 = vsel %vm6171_vm6, %v4683_v39, -1e+30 }
 0x38d   : > { %v1399_v42 = vadd.f32 %v4305_v38, %v1348_v62  ;;  %1496 = vmax.xlane.f32.xlu0 %v1477_v26  ;;  %vm1430_vm9 = vcmp.gt.f32.partialorder %v1414_v21, 0.0  ;;  %v1446_v1 = vmul.f32 0.2, %v1414_v21 }
 0x38f   : > { %v1415_v8 = vmul.f32 %v1399_v42, %v4373_v13  ;;  %v4690_v14 = vsel %vm1430_vm9, %v1414_v21, %v1446_v1  ;;  %vm6173_vm9 = vcmp.ne.f32.partialorder %v4373_v13, 0.0 }
 0x390   : > { %v1352_v20 = vpop.permute.xlu1 %1351  ;;  %v1478_v45 = vsel %vm6172_vm8, %v4690_v14, -1e+30 }
 0x391   : > { %v1400_v16 = vadd.f32 %v4305_v38, %v1352_v20  ;;  %1498 = vmax.xlane.f32.xlu1 %v1478_v45  ;;  %vm1431_vm2 = vcmp.gt.f32.partialorder %v1415_v8, 0.0  ;;  %v1447_v23 = vmul.f32 0.2, %v1415_v8  ;;  %v1406_v20 = vadd.f32 %v4305_v38, %v1376_v9 }
 0x393   : > { %v1416_v27 = vmul.f32 %v1400_v16, %v4391_v53  ;;  %v4697_v19 = vsel %vm1431_vm2, %v1415_v8, %v1447_v23  ;;  %v1420_v8 = vmul.f32 %v1404_v29, %v4332_v5  ;;  %vm6174_vm2 = vcmp.ne.f32.partialorder %v4391_v53, 0.0 }
 0x394   : > { %v1356_v43 = vpop.permute.xlu1 %1355  ;;  %v1479_v21 = vsel %vm6173_vm9, %v4697_v19, -1e+30  ;;  %vm6175_vm9 = vcmp.ne.f32.partialorder %v4406_v56, 0.0 }
 0x395   : > { %v1401_v62 = vadd.f32 %v4305_v38, %v1356_v43  ;;  %1500 = vmax.xlane.f32.xlu0 %v1479_v21  ;;  %vm1432_vm6 = vcmp.gt.f32.partialorder %v1416_v27, 0.0  ;;  %v1448_v26 = vmul.f32 0.2, %v1416_v27  ;;  %v1384_v43 = vpop.permute.xlu0 %1383 }
 0x396   : > { %v1408_v36 = vadd.f32 %v4305_v38, %v1384_v43 }
 0x397   : > { %v1417_v42 = vmul.f32 %v1401_v62, %v4406_v56  ;;  %v4705_v1 = vsel %vm1432_vm6, %v1416_v27, %v1448_v26  ;;  %v1422_v27 = vmul.f32 %v1406_v20, %v4465_v12  ;;  %vm1436_vm6 = vcmp.gt.f32.partialorder %v1420_v8, 0.0 }
 0x398   : > { %v1360_v4 = vpop.permute.xlu1 %1359  ;;  %v1480_v45 = vsel %vm6174_vm2, %v4705_v1, -1e+30  ;;  %v1452_v26 = vmul.f32 0.2, %v1420_v8  ;;  %v1424_v43 = vmul.f32 %v1408_v36, %v4460_v24 }
 0x399   : > { %v1402_v16 = vadd.f32 %v4305_v38, %v1360_v4  ;;  %1502 = vmax.xlane.f32.xlu1 %v1480_v45  ;;  %vm1433_vm8 = vcmp.gt.f32.partialorder %v1417_v42, 0.0  ;;  %v1449_v23 = vmul.f32 0.2, %v1417_v42  ;;  %v1454_v17 = vmul.f32 0.2, %v1422_v27 }
 0x39a   : > { %v4728_v60 = vsel %vm1436_vm6, %v1420_v8, %v1452_v26  ;;  %vm6178_vm6 = vcmp.ne.f32.partialorder %v4332_v5, 0.0 }
 0x39b   : > { %v1418_v21 = vmul.f32 %v1402_v16, %v4318_v11  ;;  %v4714_v62 = vsel %vm1433_vm8, %v1417_v42, %v1449_v23  ;;  %vm6176_vm8 = vcmp.ne.f32.partialorder %v4318_v11, 0.0  ;;  %v1484_v8 = vsel %vm6178_vm6, %v4728_v60, -1e+30 }
 0x39c   : > { %v1364_v29 = vpop.permute.xlu1 %1363  ;;  %v1481_v9 = vsel %vm6175_vm9, %v4714_v62, -1e+30  ;;  %vm1438_vm9 = vcmp.gt.f32.partialorder %v1422_v27, 0.0  ;;  %vm6180_vm6 = vcmp.ne.f32.partialorder %v4455_v7, 0.0 }
 0x39d   : > { %v1403_v4 = vadd.f32 %v4305_v38, %v1364_v29  ;;  %1504 = vmax.xlane.f32.xlu0 %v1481_v9  ;;  %vm1434_vm2 = vcmp.gt.f32.partialorder %v1418_v21, 0.0  ;;  %v1450_v45 = vmul.f32 0.2, %v1418_v21  ;;  %v4741_v26 = vsel %vm1438_vm9, %v1422_v27, %v1454_v17 }
 0x39e   : > { %v1486_v17 = vsel %vm835_vm1, %v4741_v26, -1e+30 }
 0x39f   : > { %v1419_v16 = vmul.f32 %v1403_v4, %v4418_v59  ;;  %v4723_v42 = vsel %vm1434_vm2, %v1418_v21, %v1450_v45  ;;  %vm6177_vm2 = vcmp.ne.f32.partialorder %v4418_v59, 0.0 }
 0x3a0   : > { %v1372_v23 = vpop.permute.xlu1 %1371  ;;  %v1482_v20 = vsel %vm6176_vm8, %v4723_v42, -1e+30 }
 0x3a1   : > { %v1405_v29 = vadd.f32 %v4305_v38, %v1372_v23  ;;  %1506 = vmax.xlane.f32.xlu1 %v1482_v20  ;;  %vm1435_vm3 = vcmp.gt.f32.partialorder %v1419_v16, 0.0  ;;  %v1451_v9 = vmul.f32 0.2, %v1419_v16  ;;  %v1456_v20 = vmul.f32 0.2, %v1424_v43 }
 0x3a3   : > { %v1421_v4 = vmul.f32 %v1405_v29, %v4430_v31  ;;  %v4733_v21 = vsel %vm1435_vm3, %v1419_v16, %v1451_v9  ;;  %vm1440_vm3 = vcmp.gt.f32.partialorder %v1424_v43, 0.0 }
 0x3a4   : > { %v1380_v45 = vpop.permute.xlu1 %1379  ;;  %v1483_v58 = vsel %vm6177_vm2, %v4733_v21, -1e+30  ;;  %vm6179_vm2 = vcmp.ne.f32.partialorder %v4430_v31, 0.0 }
 0x3a5   : > { %v1407_v36 = vadd.f32 %v4305_v38, %v1380_v45  ;;  %1508 = vmax.xlane.f32.xlu0 %v1483_v58  ;;  %1510 = vmax.xlane.f32.xlu1 %v1484_v8  ;;  %vm1437_vm8 = vcmp.gt.f32.partialorder %v1421_v4, 0.0  ;;  %v1453_v23 = vmul.f32 0.2, %v1421_v4  ;;  %v4754_v45 = vsel %vm1440_vm3, %v1424_v43, %v1456_v20 }
 0x3a6   : > { %vm6181_vm3 = vcmp.ne.f32.partialorder %v4315_v6, 0.0 }
 0x3a7   : > { %v1423_v16 = vmul.f32 %v1407_v36, %v4455_v7  ;;  %v4745_v29 = vsel %vm1437_vm8, %v1421_v4, %v1453_v23  ;;  %v1488_v23 = vsel %vm837_vm12, %v4754_v45, -1e+30  ;;  %v1141_v20 = vsel %vm6181_vm3, %v4521_v3, 0.0 }
 0x3a8   : > { %v1388_v9 = vpop.permute.xlu1 %1387  ;;  %v1485_v52 = vsel %vm6179_vm2, %v4745_v29, -1e+30  ;;  %vm6182_vm2 = vcmp.ne.f32.partialorder %v4312_v50, 0.0  ;;  %vm6186_vm3 = vcmp.ne.f32.partialorder %v4373_v13, 0.0 }
 0x3a9   : > { %v1409_v58 = vadd.f32 %v4305_v38, %v1388_v9  ;;  %1512 = vmax.xlane.f32.xlu0 %v1485_v52  ;;  %1514 = vmax.xlane.f32.xlu1 %v1486_v17  ;;  %vm1439_vm9 = vcmp.gt.f32.partialorder %v1423_v16, 0.0  ;;  %v1455_v27 = vmul.f32 0.2, %v1423_v16 }
 0x3ab   : > { %v1425_v4 = vmul.f32 %v1409_v58, %v4473_v10  ;;  %v4757_v8 = vsel %vm1439_vm9, %v1423_v16, %v1455_v27  ;;  %v1142_v16 = vsel %vm6182_vm2, %v4519_v61, 0.0  ;;  %vm6183_vm9 = vcmp.ne.f32.partialorder %v4321_v35, 0.0 }
 0x3ac   : > { %v1487_v36 = vsel %vm6180_vm6, %v4757_v8, -1e+30  ;;  %v1143_v9 = vsel %vm6183_vm9, %v4537_v33, 0.0  ;;  %vm6184_vm6 = vcmp.ne.f32.partialorder %v4335_v18, 0.0  ;;  %v1146_v61 = vsel %vm6186_vm3, %v4559_v34, 0.0 }
 0x3ad   : > { %1516 = vmax.xlane.f32.xlu0 %v1487_v36  ;;  %1518 = vmax.xlane.f32.xlu1 %v1488_v23  ;;  %vm1441_vm8 = vcmp.gt.f32.partialorder %v1425_v4, 0.0  ;;  %v1457_v38 = vmul.f32 0.2, %v1425_v4  ;;  %v1144_v17 = vsel %vm6184_vm6, %v4539_v15, 0.0  ;;  %vm6187_vm2 = vcmp.ne.f32.partialorder %v4391_v53, 0.0 }
 0x3ae   : > { %v1147_v33 = vsel %vm6187_vm2, %v4574_v47, 0.0  ;;  %vm6188_vm9 = vcmp.ne.f32.partialorder %v4406_v56, 0.0  ;;  %vm6189_vm6 = vcmp.ne.f32.partialorder %v4318_v11, 0.0  ;;  %vm6191_vm3 = vcmp.ne.f32.partialorder %v4332_v5, 0.0 }
 0x3af   : > { %v4765_v52 = vsel %vm1441_vm8, %v1425_v4, %v1457_v38  ;;  %vm6185_vm8 = vcmp.ne.f32.partialorder %v4349_v0, 0.0  ;;  %v1148_v15 = vsel %vm6188_vm9, %v4576_v49, 0.0  ;;  %v1151_v47 = vsel %vm6191_vm3, %v4604_v41, 0.0 }
 0x3b0   : > { %v1489_v43 = vsel %vm838_vm5, %v4765_v52, -1e+30  ;;  %v1145_v3 = vsel %vm6185_vm8, %v4557_v32, 0.0  ;;  %v1149_v32 = vsel %vm6189_vm6, %v4588_v54, 0.0  ;;  %vm6190_vm8 = vcmp.ne.f32.partialorder %v4418_v59, 0.0 }
 0x3b1   : > { %1520 = vmax.xlane.f32.xlu0 %v1489_v43  ;;  %1157 = vadd.xlane.f32.xlu1 %v1141_v20  ;;  %v1150_v34 = vsel %vm6190_vm8, %v4592_v57, 0.0  ;;  %vm6192_vm2 = vcmp.ne.f32.partialorder %v4430_v31, 0.0  ;;  %v1153_v54 = vsel %vm835_vm1, %v4633_v55, 0.0  ;;  %vm6193_vm9 = vcmp.ne.f32.partialorder %v4455_v7, 0.0 }
 0x3b2   : > { %v1152_v49 = vsel %vm6192_vm2, %v4608_v25, 0.0  ;;  %v1154_v57 = vsel %vm6193_vm9, %v4630_v44, 0.0  ;;  %v1155_v41 = vsel %vm837_vm12, %v4656_v63, 0.0  ;;  %v1156_v25 = vsel %vm838_vm5, %v4652_v2, 0.0 }
 0x3b3   : > { %v6093_v58 = vmov 34   ;;  %vm6200_vm6 = vcmp.ne.f32.partialorder %v4315_v6, 0.0  ;;  %vm6203_vm8 = vcmp.ne.f32.partialorder %v4312_v50, 0.0  ;;  %vm6204_vm3 = vcmp.ne.f32.partialorder %v4321_v35, 0.0 }
 0x3b4   : > { %3512 = vset.pattern.permute.xlu1 %v6093_v58  ;;  %3511 = vset.pattern.permute.xlu0 %v6093_v58  ;;  %vm6207_vm2 = vcmp.ne.f32.partialorder %v4335_v18, 0.0  ;;  %vm6210_vm9 = vcmp.ne.f32.partialorder %v4349_v0, 0.0 }
 0x3b5   : > { %1159 = vadd.xlane.f32.xlu0 %v1142_v16  ;;  %1161 = vadd.xlane.f32.xlu1 %v1143_v9 }
 0x3b9   : > { %1163 = vadd.xlane.f32.xlu0 %v1144_v17  ;;  %1165 = vadd.xlane.f32.xlu1 %v1145_v3 }
 0x3bd   : > { %1167 = vadd.xlane.f32.xlu0 %v1146_v61  ;;  %1169 = vadd.xlane.f32.xlu1 %v1147_v33 }
 0x3c1   : > { %1171 = vadd.xlane.f32.xlu0 %v1148_v15  ;;  %1173 = vadd.xlane.f32.xlu1 %v1149_v32 }
 0x3c5   : > { %1175 = vadd.xlane.f32.xlu0 %v1150_v34  ;;  %1177 = vadd.xlane.f32.xlu1 %v1151_v47 }
 0x3c9   : > { %1179 = vadd.xlane.f32.xlu0 %v1152_v49  ;;  %1181 = vadd.xlane.f32.xlu1 %v1153_v54 }
 0x3cd   : > { %1183 = vadd.xlane.f32.xlu0 %v1154_v57  ;;  %1185 = vadd.xlane.f32.xlu1 %v1155_v41 }
 0x3d1   : > { %1187 = vadd.xlane.f32.xlu0 %v1156_v25 }
 0x411   : > { %v4820_v55 = vpop.f32.mrb[0].mxu1 }
 0x412   : > { %6194 = vst [vmem:[#allocation30_spill] sm:$0xff] %v4820_v55  ;;  %v1491_v27 = vpop.xlane.xlu0 %1490  ;;  %v4823_v4 = vpop.f32.mrb[1].mxu1 }
 0x413   : > { %v1522_v44 = vsub.f32 %v4636_v28, %v1491_v27  ;;  %6195 = vst [vmem:[#allocation31_spill] sm:$0xff] %v4823_v4  ;;  %v4825_v63 = vpop.f32.mrb[2].mxu1 }
 0x414   : > { %6196 = vst [vmem:[#allocation32_spill] sm:$0xff] %v4825_v63  ;;  %v4827_v23 = vpop.f32.mrb[3].mxu1 }
 0x415   : > { %v1538_v36 = vmul.f32 1.442695, %v1522_v44  ;;  %6197 = vst [vmem:[#allocation33_spill] sm:$0xff] %v4827_v23  ;;  %v1493_v38 = vpop.xlane.xlu1 %1492  ;;  %v3793_v23 = vld [vmem:[%s4301_s7 + $0x8] sm:$0xff] }
 0x416   : > { %v1495_v2 = vpop.xlane.xlu0 %1494  ;;  %v1523_v43 = vsub.f32 %v4659_v46, %v1493_v38 }
 0x417   : > { %3553 = vpow2.f32 %v1538_v36  ;;  %v1524_v20 = vsub.f32 %v4661_v30, %v1495_v2 }
 0x418   : > { %v1540_v16 = vmul.f32 1.442695, %v1523_v43 }
 0x419   : > { %v1542_v9 = vmul.f32 1.442695, %v1524_v20  ;;  %v3787_v20 = vld [vmem:[#allocation2 + $0x40] sm:$0xff] }
 0x41a   : > { %v1497_v17 = vpop.xlane.xlu0 %1496  ;;  %3555 = vpow2.f32 %v1540_v16 }
 0x41b   : > { %v1525_v28 = vsub.f32 %v4683_v39, %v1497_v17  ;;  %3557 = vpow2.f32 %v1542_v9 }
 0x41d   : > { %v1544_v3 = vmul.f32 1.442695, %v1525_v28 }
 0x41e   : > { %v1499_v61 = vpop.xlane.xlu1 %1498 }
 0x41f   : > { %3559 = vpow2.f32 %v1544_v3  ;;  %v1526_v33 = vsub.f32 %v4690_v14, %v1499_v61 }
 0x421   : > { %v3554_v15 = vpop.eup %3553  ;;  %v1546_v32 = vmul.f32 1.442695, %v1526_v33  ;;  %v4833_v34 = vpop.f32.mrb[4].mxu1 }
 0x422   : > { %6198 = vst [vmem:[#allocation34_spill] sm:$0xff] %v4833_v34  ;;  %v1501_v47 = vpop.xlane.xlu0 %1500  ;;  %v4835_v46 = vpop.f32.mrb[5].mxu1  ;;  %v1570_v30 = vsel %vm6200_vm6, %v3554_v15, 0.0  ;;  %vm6211_vm6 = vcmp.ne.f32.partialorder %v4373_v13, 0.0  ;;  %v3792_v34 = vld [vmem:[#allocation2 + $0x70] sm:$0xff] }
 0x423   : > { %6199 = vst [vmem:[#allocation35_spill] sm:$0xff] %v4835_v46  ;;  %3561 = vpow2.f32 %v1546_v32  ;;  %v1527_v49 = vsub.f32 %v4697_v19, %v1501_v47  ;;  %1586 = vadd.xlane.f32.xlu1 %v1570_v30  ;;  %v4840_v39 = vpop.f32.mrb[6].mxu1 }
 0x424   : > { %6201 = vst [vmem:[#allocation36_spill] sm:$0xff] %v4840_v39  ;;  %v4842_v54 = vpop.f32.mrb[7].mxu1  ;;  %v3556_v57 = vpop.eup %3555 }
 0x425   : > { %6202 = vst [vmem:[#allocation37_spill] sm:$0xff] %v4842_v54  ;;  %v1548_v14 = vmul.f32 1.442695, %v1527_v49  ;;  %v4844_v41 = vpop.eup %3557  ;;  %v1571_v25 = vsel %vm6203_vm8, %v3556_v57, 0.0  ;;  %v3141_v44 = vpack.c.bf16 %v3556_v57, %v3554_v15  ;;  %vm6212_vm8 = vcmp.ne.f32.partialorder %v4391_v53, 0.0 }
 0x426   : > { %v1503_v27 = vpop.xlane.xlu1 %1502  ;;  %1588 = vadd.xlane.f32.xlu0 %v1571_v25  ;;  %v1572_v19 = vsel %vm6204_vm3, %v4844_v41, 0.0  ;;  %vm6213_vm3 = vcmp.ne.f32.partialorder %v4406_v56, 0.0  ;;  %v3786_v25 = vld [vmem:[#allocation2 + $0x38] sm:$0xff] }
 0x427   : > { %3563 = vpow2.f32 %v1548_v14  ;;  %v1528_v36 = vsub.f32 %v4705_v1, %v1503_v27  ;;  %3381 = vmatprep.mubr.msk.bf16.mxu0 %vm4527_vm0, %v3141_v44  ;;  %1590 = vadd.xlane.f32.xlu1 %v1572_v19 }
 0x429   : > { %v4854_v38 = vpop.eup %3559  ;;  %v1550_v2 = vmul.f32 1.442695, %v1528_v36  ;;  %v4856_v43 = vpop.f32.mrb[8].mxu1 }
 0x42a   : > { %6205 = vst [vmem:[#allocation38_spill] sm:$0xff] %v4856_v43  ;;  %v1505_v16 = vpop.xlane.xlu0 %1504  ;;  %v4860_v9 = vpop.f32.mrb[9].mxu1  ;;  %v1573_v1 = vsel %vm6207_vm2, %v4854_v38, 0.0  ;;  %vm6214_vm2 = vcmp.ne.f32.partialorder %v4318_v11, 0.0 }
 0x42b   : > { %6206 = vst [vmem:[#allocation39_spill] sm:$0xff] %v4860_v9  ;;  %3565 = vpow2.f32 %v1550_v2  ;;  %v1529_v17 = vsub.f32 %v4714_v62, %v1505_v16  ;;  %1592 = vadd.xlane.f32.xlu0 %v1573_v1  ;;  %v4866_v28 = vpop.f32.mrb[10].mxu1  ;;  %v6229_v9 = vmov 34  }
 0x42c   : > { %6208 = vst [vmem:[#allocation40_spill] sm:$0xff] %v4866_v28  ;;  %v4868_v3 = vpop.f32.mrb[11].mxu1  ;;  %v6226_v28 = vld [vmem:[#allocation11_spill] sm:$0xff] }
 0x42d   : > { %6209 = vst [vmem:[#allocation41_spill] sm:$0xff] %v4868_v3  ;;  %v4870_v61 = vpop.eup %3561  ;;  %v1552_v33 = vmul.f32 1.442695, %v1529_v17 }
 0x42e   : > { %v1507_v15 = vpop.xlane.xlu1 %1506  ;;  %v1574_v32 = vsel %vm6210_vm9, %v4870_v61, 0.0  ;;  %vm6215_vm9 = vcmp.ne.f32.partialorder %v4332_v5, 0.0 }
 0x42f   : > { %3567 = vpow2.f32 %v1552_v33  ;;  %v1530_v47 = vsub.f32 %v4723_v42, %v1507_v15  ;;  %1594 = vadd.xlane.f32.xlu1 %v1574_v32 }
 0x431   : > { %v4876_v30 = vpop.eup %3563  ;;  %v1554_v62 = vmul.f32 1.442695, %v1530_v47 }
 0x432   : > { %v1511_v49 = vpop.xlane.xlu1 %1510  ;;  %v1509_v57 = vpop.xlane.xlu0 %1508  ;;  %v1575_v14 = vsel %vm6211_vm6, %v4876_v30, 0.0  ;;  %vm6216_vm6 = vcmp.ne.f32.partialorder %v4418_v59, 0.0 }
 0x433   : > { %3569 = vpow2.f32 %v1554_v62  ;;  %v1532_v27 = vsub.f32 %v4728_v60, %v1511_v49  ;;  %v1531_v44 = vsub.f32 %v4733_v21, %v1509_v57  ;;  %1596 = vadd.xlane.f32.xlu0 %v1575_v14  ;;  %v3777_v49 = vld [vmem:[#allocation2 + $0x8] sm:$0xff]  ;;  %v3778_v57 = vld [vmem:[#allocation2 + $0x10] sm:$0xff]  ;;  %v3779_v14 = vld [vmem:[#allocation2] sm:$0xff] }
 0x434   : > { %v3784_v62 = vld [vmem:[#allocation2 + $0x68] sm:$0xff] }
 0x435   : > { %v4885_v42 = vpop.eup %3565  ;;  %v1558_v36 = vmul.f32 1.442695, %v1532_v27  ;;  %v1556_v19 = vmul.f32 1.442695, %v1531_v44  ;;  %v3780_v27 = vld [vmem:[#allocation2 + $0x18] sm:$0xff]  ;;  %v3785_v21 = vld [vmem:[#allocation2 + $0x28] sm:$0xff] }
 0x436   : > { %v1576_v2 = vsel %vm6212_vm8, %v4885_v42, 0.0 }
 0x437   : > { %3571 = vpow2.f32 %v1558_v36  ;;  %1598 = vadd.xlane.f32.xlu1 %v1576_v2  ;;  %v3781_v36 = vld [vmem:[#allocation2 + $0x20] sm:$0xff] }
 0x438   : > { %3573 = vpow2.f32 %v1556_v19 }
 0x439   : > { %v4890_v16 = vpop.eup %3567 }
 0x43a   : > { %v1577_v60 = vsel %vm6213_vm3, %v4890_v16, 0.0  ;;  %vm6257_vm3 = vcmp.ne.f32.partialorder %v4312_v50, 0.0 }
 0x43b   : > { %1600 = vadd.xlane.f32.xlu0 %v1577_v60  ;;  %v3840_v60 = vmov 35  }
 0x43d   : > { %v4897_v1 = vpop.eup %3569 }
 0x43e   : > { %v1578_v17 = vsel %vm6214_vm2, %v4897_v1, 0.0 }
 0x43f   : > { %1602 = vadd.xlane.f32.xlu1 %v1578_v17 }
 0x441   : > { %v4902_v33 = vpop.eup %3571 }
 0x442   : > { %v4904_v15 = vpop.eup %3573  ;;  %v1580_v32 = vsel %vm6215_vm9, %v4902_v33, 0.0 }
 0x443   : > { %1606 = vadd.xlane.f32.xlu1 %v1580_v32  ;;  %v1579_v47 = vsel %vm6216_vm6, %v4904_v15, 0.0  ;;  %v3782_v32 = vld [vmem:[#allocation2 + $0x30] sm:$0xff]  ;;  %vm6258_vm6 = vcmp.ne.f32.partialorder %v4315_v6, 0.0 }
 0x444   : > { %1604 = vadd.xlane.f32.xlu0 %v1579_v47  ;;  %v3783_v47 = vld [vmem:[#allocation2 + $0x48] sm:$0xff] }
 0x454   : > { %1792 = vperm.xlu1 %3512, %v3777_v49  }
 0x458   : > { %1796 = vperm.xlu1 %3512, %v3778_v57  }
 0x45a   : > { %1788 = vperm.xlu0 %3511, %v3779_v14  }
 0x45c   : > { %1800 = vperm.xlu1 %3512, %v3780_v27  }
 0x45d   : > { %v4914_v44 = vpop.f32.mrb[12].mxu1 }
 0x45e   : > { %6217 = vst [vmem:[#allocation42_spill] sm:$0xff] %v4914_v44  ;;  %1804 = vperm.xlu0 %3511, %v3781_v36   ;;  %v4916_v19 = vpop.f32.mrb[13].mxu1  ;;  %v3791_v44 = vld [vmem:[#allocation2 + $0x50] sm:$0xff] }
 0x45f   : > { %6218 = vst [vmem:[#allocation43_spill] sm:$0xff] %v4916_v19  ;;  %v4918_v2 = vpop.f32.mrb[14].mxu1 }
 0x460   : > { %6219 = vst [vmem:[#allocation44_spill] sm:$0xff] %v4918_v2  ;;  %3513 = vset.pattern.permute.xlu1 %v3840_v60  ;;  %v4920_v17 = vpop.f32.mrb[15].mxu1 }
 0x461   : > { %6220 = vst [vmem:[#allocation45_spill] sm:$0xff] %v4920_v17  ;;  %2241 = vperm.xlu1 %3513, %v3779_v14   ;;  %v3788_v14 = vld [vmem:[#allocation2 + $0x58] sm:$0xff] }
 0x462   : > { %1812 = vperm.xlu0 %3511, %v3782_v32  }
 0x465   : > { %2245 = vperm.xlu1 %3513, %v3777_v49   ;;  %v3789_v49 = vld [vmem:[#allocation2 + $0x60] sm:$0xff] }
 0x466   : > { %1824 = vperm.xlu0 %3511, %v3783_v47  }
 0x469   : > { %2249 = vperm.xlu1 %3513, %v3778_v57   ;;  %v4923_v57 = vpop.xlane.xlu1 %1514 }
 0x46a   : > { %1840 = vperm.xlu0 %3511, %v3784_v62  }
 0x46d   : > { %2253 = vperm.xlu1 %3513, %v3780_v27   ;;  %v4925_v27 = vpop.xlane.xlu0 %1512  ;;  %v4928_v2 = vpop.xlane.xlu1 %1518 }
 0x46e   : > { %3519 = vset.pattern.permute.xlu0 %v3840_v60 }
 0x46f   : > { %2257 = vperm.xlu0 %3519, %v3781_v36   ;;  %v3790_v36 = vld [vmem:[#allocation2 + $0x78] sm:$0xff] }
 0x471   : > { %3514 = vset.pattern.permute.xlu1 %v6093_v58  ;;  %v4936_v17 = vpop.xlane.xlu1 %1157 }
 0x472   : > { %1808 = vperm.xlu1 %3514, %v3785_v21  }
 0x473   : > { %2269 = vperm.xlu0 %3519, %v3786_v25  }
 0x476   : > { %1816 = vperm.xlu1 %3514, %v3786_v25   ;;  %v6221_v25 = vld [vmem:[#allocation5_spill] sm:$0xff] }
 0x477   : > { %2273 = vperm.xlu0 %3519, %v3787_v20   ;;  %6223 = vst [vmem:[#allocation5_spill] sm:$0xff] %v4936_v17 }
 0x47a   : > { %3515 = vset.pattern.permute.xlu1 %v3840_v60 }
 0x47b   : > { %2285 = vperm.xlu0 %3519, %v3788_v14   ;;  %2261 = vperm.xlu1 %3515, %v3785_v21   ;;  %v4932_v21 = vpop.xlane.xlu0 %1516 }
 0x47f   : > { %2289 = vperm.xlu0 %3519, %v3789_v49   ;;  %2265 = vperm.xlu1 %3515, %v3782_v32   ;;  %v6222_v32 = vld [vmem:[#allocation7_spill] sm:$0xff]  ;;  %v4938_v19 = vpop.xlane.xlu0 %1520 }
 0x483   : > { %2301 = vperm.xlu0 %3519, %v3790_v36   ;;  %3516 = vset.pattern.permute.xlu1 %v6093_v58  ;;  %v4942_v58 = vpop.xlane.xlu1 %1161  ;;  %v4946_v43 = vpop.xlane.xlu0 %1159 }
 0x484   : > { %1820 = vperm.xlu1 %3516, %v3787_v20   ;;  %v6224_v20 = vld [vmem:[#allocation9_spill] sm:$0xff]  ;;  %6225 = vst [vmem:[#allocation7_spill] sm:$0xff] %v4942_v58  ;;  %6227 = vst [vmem:[#allocation46_spill] sm:$0xff] %v4946_v43 }
 0x487   : > { %1636 = vrot.lane.b32.xlu0 %v6221_v25, %s3841_s8  ;;  %v4948_v3 = vpop.xlane.xlu1 %1165 }
 0x488   : > { %1828 = vperm.xlu1 %3516, %v3791_v44   ;;  %6228 = vst [vmem:[#allocation47_spill] sm:$0xff] %v4948_v3 }
 0x48b   : > { %1640 = vrot.lane.b32.xlu0 %v6222_v32, %s3841_s8  ;;  %v4953_v39 = vpop.xlane.xlu1 %1169 }
 0x48c   : > { %1832 = vperm.xlu1 %3516, %v3788_v14   ;;  %v4951_v14 = vpop.xlane.xlu0 %1163  ;;  %6231 = vst [vmem:[#allocation49_spill] sm:$0xff] %v4953_v39 }
 0x48d   : > { %6230 = vst [vmem:[#allocation48_spill] sm:$0xff] %v4951_v14 }
 0x48f   : > { %1644 = vrot.lane.b32.xlu0 %v6224_v20, %s3841_s8  ;;  %v4957_v54 = vpop.xlane.xlu1 %1173 }
 0x490   : > { %3517 = vset.pattern.permute.xlu1 %v3840_v60  ;;  %6233 = vst [vmem:[#allocation51_spill] sm:$0xff] %v4957_v54 }
 0x491   : > { %2277 = vperm.xlu1 %3517, %v3783_v47   ;;  %v4955_v47 = vpop.xlane.xlu0 %1167 }
 0x492   : > { %6232 = vst [vmem:[#allocation50_spill] sm:$0xff] %v4955_v47 }
 0x493   : > { %1648 = vrot.lane.b32.xlu0 %v6226_v28, %s3841_s8  ;;  %v3796_v28 = vld [vmem:[%s4301_s7 + $0x18] sm:$0xff] }
 0x495   : > { %2281 = vperm.xlu1 %3517, %v3791_v44   ;;  %v4959_v46 = vpop.xlane.xlu0 %1171  ;;  %v4961_v44 = vpop.xlane.xlu1 %1177 }
 0x496   : > { %6234 = vst [vmem:[#allocation52_spill] sm:$0xff] %v4959_v46  ;;  %6235 = vst [vmem:[#allocation53_spill] sm:$0xff] %v4961_v44  ;;  %v6245_v44 = vld [vmem:[#allocation10_spill] sm:$0xff] }
 0x499   : > { %3518 = vset.pattern.permute.xlu1 %v6229_v9  ;;  %v4963_v9 = vpop.xlane.xlu0 %1175  ;;  %v4967_v63 = vpop.xlane.xlu1 %1181 }
 0x49a   : > { %1836 = vperm.xlu1 %3518, %v3789_v49   ;;  %6236 = vst [vmem:[#allocation54_spill] sm:$0xff] %v4963_v9  ;;  %v6237_v49 = vld [vmem:[#allocation4_spill] sm:$0xff] }
 0x49b   : > { %6238 = vst [vmem:[#allocation4_spill] sm:$0xff] %v4967_v63 }
 0x49d   : > { %v4969_v4 = vpop.xlane.xlu0 %1179  ;;  %v4973_v54 = vpop.xlane.xlu1 %1185 }
 0x49e   : > { %1844 = vperm.xlu1 %3518, %v3792_v34   ;;  %6239 = vst [vmem:[#allocation55_spill] sm:$0xff] %v4969_v4 }
 0x4a2   : > { %1848 = vperm.xlu1 %3518, %v3790_v36   ;;  %v6240_v36 = vld [vmem:[#allocation6_spill] sm:$0xff] }
 0x4a3   : > { %6241 = vst [vmem:[#allocation6_spill] sm:$0xff] %v4973_v54 }
 0x4a6   : > { %3520 = vset.pattern.permute.xlu1 %v3840_v60  ;;  %v6242_v60 = vld [vmem:[#allocation8_spill] sm:$0xff] }
 0x4a7   : > { %2293 = vperm.xlu1 %3520, %v3784_v62   ;;  %v4977_v62 = vpop.xlane.xlu0 %1183 }
 0x4a8   : > { %6243 = vst [vmem:[#allocation8_spill] sm:$0xff] %v4977_v62 }
 0x4ab   : > { %2297 = vperm.xlu1 %3520, %v3792_v34   ;;  %v4983_v9 = vpop.xlane.xlu0 %1187 }
 0x4ac   : > { %6246 = vst [vmem:[#allocation57_spill] sm:$0xff] %v4983_v9 }
 0x4af   : > { %1634 = vrot.lane.b32.xlu1 %v6237_v49, %s3841_s8 }
 0x4b0   : > { %v4979_v34 = vpop.xlane.xlu1 %1586 }
 0x4b1   : > { %6244 = vst [vmem:[#allocation56_spill] sm:$0xff] %v4979_v34 }
 0x4b3   : > { %1638 = vrot.lane.b32.xlu1 %v6240_v36, %s3841_s8  ;;  %v4987_v4 = vpop.xlane.xlu0 %1588 }
 0x4b4   : > { %v4985_v63 = vpop.xlane.xlu1 %1590  ;;  %6248 = vst [vmem:[#allocation59_spill] sm:$0xff] %v4987_v4 }
 0x4b5   : > { %6247 = vst [vmem:[#allocation58_spill] sm:$0xff] %v4985_v63 }
 0x4b7   : > { %1642 = vrot.lane.b32.xlu1 %v6242_v60, %s3841_s8 }
 0x4b8   : > { %v4993_v39 = vpop.xlane.xlu0 %1592 }
 0x4b9   : > { %6251 = vst [vmem:[#allocation62_spill] sm:$0xff] %v4993_v39 }
 0x4bb   : > { %1646 = vrot.lane.b32.xlu1 %v6245_v44, %s3841_s8 }
 0x4bc   : > { %v4989_v46 = vpop.xlane.xlu1 %1594 }
 0x4bd   : > { %6249 = vst [vmem:[#allocation60_spill] sm:$0xff] %v4989_v46 }
 0x4c0   : > { %v4997_v47 = vpop.xlane.xlu0 %1596 }
 0x4c1   : > { %6253 = vst [vmem:[#allocation64_spill] sm:$0xff] %v4997_v47 }
 0x4c4   : > { %v4991_v54 = vpop.xlane.xlu1 %1598 }
 0x4c5   : > { %6250 = vst [vmem:[#allocation61_spill] sm:$0xff] %v4991_v54 }
 0x4c8   : > { %v5001_v14 = vpop.xlane.xlu0 %1600 }
 0x4c9   : > { %6255 = vst [vmem:[#allocation66_spill] sm:$0xff] %v5001_v14  ;;  %v3795_v14 = vld [vmem:[%s4301_s7] sm:$0xff] }
 0x4cc   : > { %v4995_v62 = vpop.xlane.xlu1 %1602 }
 0x4cd   : > { %6252 = vst [vmem:[#allocation63_spill] sm:$0xff] %v4995_v62 }
 0x4d0   : > { %v4999_v3 = vpop.xlane.xlu1 %1606 }
 0x4d1   : > { %6254 = vst [vmem:[#allocation65_spill] sm:$0xff] %v4999_v3  ;;  %v5003_v17 = vpop.xlane.xlu0 %1604  ;;  %v3794_v3 = vld [vmem:[%s4301_s7 + $0x10] sm:$0xff] }
 0x4d2   : > { %6256 = vst [vmem:[#allocation67_spill] sm:$0xff] %v5003_v17 }
 0x4d4   : > { %v1793_v9 = vpop.permute.xlu1 %1792 }
 0x4d5   : > { %v1856_v55 = vadd.f32 %v4307_v40, %v1793_v9 }
 0x4d7   : > { %v1872_v58 = vmul.f32 %v3793_v23, %v1856_v55 }
 0x4d8   : > { %v1797_v43 = vpop.permute.xlu1 %1796 }
 0x4d9   : > { %v1857_v54 = vadd.f32 %v4307_v40, %v1797_v43  ;;  %v1789_v46 = vpop.permute.xlu0 %1788  ;;  %vm1888_vm8 = vcmp.gt.f32.partialorder %v1872_v58, 0.0  ;;  %v1904_v62 = vmul.f32 0.2, %v1872_v58 }
 0x4da   : > { %v1855_v34 = vadd.f32 %v4307_v40, %v1789_v46 }
 0x4db   : > { %v1873_v47 = vmul.f32 %v3794_v3, %v1857_v54  ;;  %v5010_v39 = vsel %vm1888_vm8, %v1872_v58, %v1904_v62 }
 0x4dc   : > { %v1871_v63 = vmul.f32 %v3795_v14, %v1855_v34  ;;  %v1801_v17 = vpop.permute.xlu1 %1800  ;;  %v1936_v55 = vsel %vm6257_vm3, %v5010_v39, -1e+30  ;;  %vm6259_vm3 = vcmp.ne.f32.partialorder %v4321_v35, 0.0 }
 0x4dd   : > { %v1858_v9 = vadd.f32 %v4307_v40, %v1801_v17  ;;  %1953 = vmax.xlane.f32.xlu0 %v1936_v55  ;;  %v1905_v4 = vmul.f32 0.2, %v1873_v47  ;;  %vm1889_vm9 = vcmp.gt.f32.partialorder %v1873_v47, 0.0 }
 0x4de   : > { %vm1887_vm2 = vcmp.gt.f32.partialorder %v1871_v63, 0.0  ;;  %v1903_v43 = vmul.f32 0.2, %v1871_v63 }
 0x4df   : > { %v1874_v10 = vmul.f32 %v3796_v28, %v1858_v9  ;;  %v5024_v34 = vsel %vm1889_vm9, %v1873_v47, %v1905_v4  ;;  %vm6260_vm9 = vcmp.ne.f32.partialorder %v4335_v18, 0.0 }
 0x4e0   : > { %v2242_v46 = vpop.permute.xlu1 %2241  ;;  %v5018_v54 = vsel %vm1887_vm2, %v1871_v63, %v1903_v43  ;;  %v1937_v63 = vsel %vm6259_vm3, %v5024_v34, -1e+30  ;;  %vm6261_vm3 = vcmp.ne.f32.partialorder %v4315_v6, 0.0 }
 0x4e1   : > { %v2308_v58 = vadd.f32 %v4309_v48, %v2242_v46  ;;  %v1935_v62 = vsel %vm6258_vm6, %v5018_v54, -1e+30  ;;  %v1906_v17 = vmul.f32 0.2, %v1874_v10  ;;  %vm1890_vm8 = vcmp.gt.f32.partialorder %v1874_v10, 0.0 }
 0x4e2   : > { %1951 = vmax.xlane.f32.xlu1 %v1935_v62  ;;  %v1805_v62 = vpop.permute.xlu0 %1804 }
 0x4e3   : > { %v2324_v55 = vmul.f32 %v3795_v14, %v2308_v58  ;;  %v5030_v9 = vsel %vm1890_vm8, %v1874_v10, %v1906_v17  ;;  %vm6262_vm8 = vcmp.ne.f32.partialorder %v4312_v50, 0.0 }
 0x4e4   : > { %v2246_v24 = vpop.permute.xlu1 %2245  ;;  %v1938_v4 = vsel %vm6260_vm9, %v5030_v9, -1e+30  ;;  %vm6267_vm9 = vcmp.ne.f32.partialorder %v4321_v35, 0.0 }
 0x4e5   : > { %v2309_v44 = vadd.f32 %v4309_v48, %v2246_v24  ;;  %v2356_v43 = vmul.f32 0.2, %v2324_v55  ;;  %vm2340_vm2 = vcmp.gt.f32.partialorder %v2324_v55, 0.0 }
 0x4e6   : > { %1955 = vmax.xlane.f32.xlu1 %v1937_v63 }
 0x4e7   : > { %v2325_v46 = vmul.f32 %v3793_v23, %v2309_v44  ;;  %v5035_v14 = vsel %vm2340_vm2, %v2324_v55, %v2356_v43  ;;  %v5051_v55 = vpop.permute.xlu0 %1812 }
 0x4e8   : > { %v2250_v7 = vpop.permute.xlu1 %2249  ;;  %v2388_v58 = vsel %vm6261_vm3, %v5035_v14, -1e+30  ;;  %vm6272_vm3 = vcmp.ne.f32.partialorder %v4335_v18, 0.0  ;;  %v1859_v18 = vadd.f32 %v4307_v40, %v1805_v62 }
 0x4e9   : > { %v2357_v47 = vmul.f32 0.2, %v2325_v46  ;;  %vm2341_vm6 = vcmp.gt.f32.partialorder %v2325_v46, 0.0 }
 0x4ea   : > { %1957 = vmax.xlane.f32.xlu1 %v1938_v4  ;;  %v2310_v4 = vadd.f32 %v4309_v48, %v2250_v7 }
 0x4eb   : > { %v5040_v10 = vsel %vm2341_vm6, %v2325_v46, %v2357_v47  ;;  %v5057_v46 = vpop.permute.xlu0 %1824 }
 0x4ec   : > { %v2254_v24 = vpop.permute.xlu1 %2253  ;;  %v2389_v44 = vsel %vm6262_vm8, %v5040_v10, -1e+30 }
 0x4ee   : > { %2404 = vmax.xlane.f32.xlu1 %v2388_v58  ;;  %v2326_v58 = vmul.f32 %v3794_v3, %v2310_v4  ;;  %v2311_v4 = vadd.f32 %v4309_v48, %v2254_v24 }
 0x4f0   : > { %v2358_v6 = vmul.f32 0.2, %v2326_v58  ;;  %vm2342_vm2 = vcmp.gt.f32.partialorder %v2326_v58, 0.0  ;;  %v2327_v59 = vmul.f32 %v3796_v28, %v2311_v4 }
 0x4f1   : > { %v5042_v23 = vpop.permute.xlu1 %1808 }
 0x4f2   : > { %2406 = vmax.xlane.f32.xlu1 %v2389_v44  ;;  %v5064_v44 = vpop.permute.xlu0 %1840  ;;  %v5072_v5 = vsel %vm2342_vm2, %v2326_v58, %v2358_v6  ;;  %vm2343_vm6 = vcmp.gt.f32.partialorder %v2327_v59, 0.0  ;;  %vm6275_vm2 = vcmp.ne.f32.partialorder %v4349_v0, 0.0 }
 0x4f3   : > { %2087 = vrot.lane.b32.xlu0 %v6237_v49, %s3842_s9  ;;  %6263 = vst [vmem:[#allocation68_spill] sm:$0xff] %v5064_v44  ;;  %6265 = vst [vmem:[#allocation70_spill] sm:$0xff] %v5072_v5 }
 0x4f5   : > { %v5049_v17 = vpop.permute.xlu1 %1816 }
 0x4f6   : > { %v5070_v20 = vpop.permute.xlu0 %2257 }
 0x4fa   : > { %v5053_v63 = vpop.permute.xlu1 %2261  ;;  %v5079_v31 = vpop.permute.xlu0 %2269 }
 0x4fe   : > { %v5055_v43 = vpop.permute.xlu1 %2265  ;;  %v5084_v44 = vpop.permute.xlu0 %2273 }
 0x502   : > { %v5090_v58 = vpop.permute.xlu0 %2285 }
 0x503   : > { %2540 = vrot.lane.b32.xlu1 %v6237_v49, %s3843_s10  ;;  %v5062_v47 = vpop.permute.xlu1 %1820  ;;  %v2390_v49 = vsel %vm6267_vm9, %v5072_v5, -1e+30 }
 0x507   : > { %v5066_v50 = vpop.permute.xlu1 %1828 }
 0x508   : > { %6264 = vst [vmem:[#allocation69_spill] sm:$0xff] %v5066_v50 }
 0x50b   : > { %v5068_v12 = vpop.permute.xlu1 %1832 }
 0x510   : > { %v5074_v7 = vpop.permute.xlu1 %2277 }
 0x511   : > { %6266 = vst [vmem:[#allocation71_spill] sm:$0xff] %v5074_v7  ;;  %v2359_v7 = vmul.f32 0.2, %v2327_v59 }
 0x512   : > { %2408 = vmax.xlane.f32.xlu0 %v2390_v49  ;;  %v5096_v49 = vpop.permute.xlu0 %2289 }
 0x513   : > { %v5094_v5 = vsel %vm2343_vm6, %v2327_v59, %v2359_v7  ;;  %6271 = vst [vmem:[#allocation75_spill] sm:$0xff] %v5096_v49 }
 0x514   : > { %v5081_v3 = vpop.permute.xlu1 %2281  ;;  %6270 = vst [vmem:[#allocation74_spill] sm:$0xff] %v5094_v5  ;;  %v2391_v24 = vsel %vm6272_vm3, %v5094_v5, -1e+30  ;;  %vm6282_vm3 = vcmp.ne.f32.partialorder %v4373_v13, 0.0 }
 0x515   : > { %6268 = vst [vmem:[#allocation72_spill] sm:$0xff] %v5081_v3 }
 0x516   : > { %v5105_v28 = vpop.permute.xlu0 %2301 }
 0x517   : > { %6273 = vst [vmem:[#allocation76_spill] sm:$0xff] %v5105_v28 }
 0x519   : > { %v5086_v50 = vpop.permute.xlu1 %1836 }
 0x51a   : > { %v1637_v59 = vpop.permute.xlu0 %1636 }
 0x51d   : > { %v5088_v6 = vpop.permute.xlu1 %1844 }
 0x51e   : > { %v1641_v5 = vpop.permute.xlu0 %1640 }
 0x521   : > { %v5092_v35 = vpop.permute.xlu1 %1848 }
 0x522   : > { %6269 = vst [vmem:[#allocation73_spill] sm:$0xff] %v5092_v35  ;;  %v1645_v49 = vpop.permute.xlu0 %1644 }
 0x526   : > { %v5098_v3 = vpop.permute.xlu1 %2293 }
 0x527   : > { %2410 = vmax.xlane.f32.xlu1 %v2391_v24  ;;  %v5113_v24 = vld [vmem:[%s4301_s7 + $0x20] sm:$0xff] }
 0x528   : > { %2089 = vrot.lane.b32.xlu0 %v6221_v25, %s3842_s9 }
 0x52a   : > { %v5107_v4 = vpop.permute.xlu1 %2297 }
 0x52b   : > { %6274 = vst [vmem:[#allocation77_spill] sm:$0xff] %v5107_v4  ;;  %v1875_v4 = vmul.f32 %v5113_v24, %v1859_v18  ;;  %v1649_v18 = vpop.permute.xlu0 %1648 }
 0x52d   : > { %vm1891_vm8 = vcmp.gt.f32.partialorder %v1875_v4, 0.0 }
 0x52e   : > { %v1635_v35 = vpop.permute.xlu1 %1634 }
 0x52f   : > { %3365 = vmatprep.subr.bf16.mxu0 %v1635_v35 }
 0x530   : > { %3366 = vmatpush3.bf16.msra.mxu0 %v1635_v35  ;;  %v1907_v35 = vmul.f32 0.2, %v1875_v4 }
 0x531   : > { %3367 = vmatprep.subr.bf16.mxu0 %v1637_v59 }
 0x532   : > { %v1639_v7 = vpop.permute.xlu1 %1638 }
 0x534   : > { %3368 = vmatpush3.bf16.msra.mxu0 %v1637_v59  ;;  %v5116_v59 = vsel %vm1891_vm8, %v1875_v4, %v1907_v35  ;;  %v1534_v4 = vsub.f32 %v4741_v26, %v4923_v57  ;;  %v1861_v26 = vadd.f32 %v4307_v40, %v5051_v55 }
 0x535   : > { %3369 = vmatprep.subr.bf16.mxu0 %v1639_v7 }
 0x536   : > { %v1643_v28 = vpop.permute.xlu1 %1642 }
 0x538   : > { %2542 = vrot.lane.b32.xlu1 %v6221_v25, %s3843_s10  ;;  %3370 = vmatpush3.bf16.msra.mxu0 %v1639_v7  ;;  %v1939_v25 = vsel %vm6275_vm2, %v5116_v59, -1e+30  ;;  %v1860_v7 = vadd.f32 %v4307_v40, %v5042_v23  ;;  %v1862_v23 = vadd.f32 %v4307_v40, %v5049_v17  ;;  %vm6283_vm2 = vcmp.ne.f32.partialorder %v4391_v53, 0.0 }
 0x539   : > { %3371 = vmatprep.subr.bf16.mxu0 %v1641_v5 }
 0x53a   : > { %v1647_v62 = vpop.permute.xlu1 %1646 }
 0x53c   : > { %3372 = vmatpush3.bf16.msra.mxu0 %v1641_v5  ;;  %v1533_v5 = vsub.f32 %v4745_v29, %v4925_v27  ;;  %v1537_v29 = vsub.f32 %v4765_v52, %v4938_v19  ;;  %v6276_v27 = vpack.c.bf16 %v4854_v38, %v4844_v41  ;;  %v1536_v52 = vsub.f32 %v4754_v45, %v4928_v2  ;;  %v5147_v38 = vld [vmem:[%s4301_s7 + $0x30] sm:$0xff]  ;;  %v3800_v45 = vld [vmem:[%s4301_s7 + $0x38] sm:$0xff] }
 0x53d   : > { %3373 = vmatprep.subr.bf16.mxu0 %v1643_v28  ;;  %v1877_v19 = vmul.f32 %v5147_v38, %v1861_v26  ;;  %v1878_v2 = vmul.f32 %v3800_v45, %v1862_v23 }
 0x53e   : > { %v1568_v41 = vmul.f32 1.442695, %v1537_v29 }
 0x53f   : > { %vm1893_vm6 = vcmp.gt.f32.partialorder %v1877_v19, 0.0  ;;  %vm1894_vm8 = vcmp.gt.f32.partialorder %v1878_v2, 0.0 }
 0x540   : > { %3374 = vmatpush3.bf16.msra.mxu0 %v1643_v28  ;;  %v1535_v28 = vsub.f32 %v4757_v8, %v4932_v21  ;;  %v3798_v8 = vld [vmem:[%s4301_s7 + $0x28] sm:$0xff]  ;;  %v6277_v21 = vpack.c.bf16 %v4876_v30, %v4870_v61  ;;  %v6278_v61 = vpack.c.bf16 %v4890_v16, %v4885_v42 }
 0x541   : > { %3375 = vmatprep.subr.bf16.mxu0 %v1645_v49  ;;  %v1876_v57 = vmul.f32 %v3798_v8, %v1860_v7 }
 0x542   : > { %v1564_v35 = vmul.f32 1.442695, %v1535_v28  ;;  %v6310_v28 = vld [vmem:[#allocation19_spill] sm:$0xff] }
 0x543   : > { %v1908_v55 = vmul.f32 0.2, %v1876_v57  ;;  %vm1892_vm9 = vcmp.gt.f32.partialorder %v1876_v57, 0.0 }
 0x544   : > { %3376 = vmatpush3.bf16.msra.mxu0 %v1645_v49  ;;  %v1560_v49 = vmul.f32 1.442695, %v1533_v5  ;;  %v2313_v5 = vadd.f32 %v4309_v48, %v5053_v63 }
 0x545   : > { %3377 = vmatprep.subr.bf16.mxu0 %v1647_v62  ;;  %v5165_v17 = vsel %vm1892_vm9, %v1876_v57, %v1908_v55  ;;  %v3808_v55 = vld [vmem:[%s4301_s7 + $0x78] sm:$0xff] }
 0x546   : > { %3575 = vpow2.f32 %v1560_v49  ;;  %v1940_v16 = vsel %vm6282_vm3, %v5165_v17, -1e+30  ;;  %v2329_v63 = vmul.f32 %v3798_v8, %v2313_v5 }
 0x547   : > { %1959 = vmax.xlane.f32.xlu0 %v1939_v25  ;;  %v1562_v25 = vmul.f32 1.442695, %v1534_v4  ;;  %3577 = vpow2.f32 %v1564_v35  ;;  %v1909_v4 = vmul.f32 0.2, %v1877_v19 }
 0x548   : > { %3378 = vmatpush3.bf16.msra.mxu0 %v1647_v62  ;;  %v1566_v62 = vmul.f32 1.442695, %v1536_v52  ;;  %v2361_v57 = vmul.f32 0.2, %v2329_v63  ;;  %vm2345_vm9 = vcmp.gt.f32.partialorder %v2329_v63, 0.0 }
 0x549   : > { %3379 = vmatprep.subr.bf16.mxu0 %v1649_v18  ;;  %3579 = vpow2.f32 %v1562_v25  ;;  %v5174_v7 = vsel %vm1893_vm6, %v1877_v19, %v1909_v4  ;;  %vm6286_vm6 = vcmp.ne.f32.partialorder %v4406_v56, 0.0 }
 0x54a   : > { %3581 = vpow2.f32 %v1568_v41  ;;  %v1941_v29 = vsel %vm6283_vm2, %v5174_v7, -1e+30  ;;  %v5200_v41 = vsel %vm2345_vm9, %v2329_v63, %v2361_v57  ;;  %v2315_v63 = vadd.f32 %v4309_v48, %v5079_v31 }
 0x54b   : > { %3583 = vpow2.f32 %v1566_v62  ;;  %v2393_v23 = vsel %vm6282_vm3, %v5200_v41, -1e+30  ;;  %vm6288_vm9 = vcmp.ne.f32.partialorder %v4349_v0, 0.0 }
 0x54c   : > { %3380 = vmatpush3.bf16.msra.mxu0 %v1649_v18  ;;  %v6280_v18 = vpack.c.bf16 %v4904_v15, %v4897_v1  ;;  %v1910_v1 = vmul.f32 0.2, %v1878_v2 }
 0x54e   : > { %v5191_v8 = vsel %vm1894_vm8, %v1878_v2, %v1910_v1  ;;  %v2312_v2 = vadd.f32 %v4309_v48, %v5070_v20 }
 0x54f   : > { %3382 = vmatmul.mubr.msk.bf16.vlgmr.msra.gmra.mrb[16].mxu0 %vm4546_vm7, %v6276_v27 }
 0x550   : > { %3385 = vmatprep.mubr.msk.bf16.mxu0 %vm4565_vm11, %v6277_v21  ;;  %v5167_v49 = vpop.eup %3575 }
 0x551   : > { %v5169_v42 = vpop.eup %3577  ;;  %v3156_v35 = vpack.c.bf16 %v5167_v49, %v4902_v33  ;;  %v1942_v33 = vsel %vm6286_vm6, %v5191_v8, -1e+30 }
 0x553   : > { %v5176_v15 = vpop.eup %3579 }
 0x554   : > { %v3159_v25 = vpack.c.bf16 %v5169_v42, %v5176_v15  ;;  %v5193_v21 = vpop.eup %3581 }
 0x555   : > { %v5198_v52 = vpop.eup %3583 }
 0x556   : > { %v3162_v19 = vpack.c.bf16 %v5193_v21, %v5198_v52 }
 0x557   : > { %3386 = vmatmul.mubr.msk.bf16.gmra.mrb[20].mxu0 %vm4582_vm4, %v6278_v61 }
 0x558   : > { %3389 = vmatprep.mubr.msk.bf16.mxu0 %vm4598_vm15, %v6280_v18 }
 0x55c   : > { %1961 = vmax.xlane.f32.xlu1 %v1940_v16  ;;  %v2328_v16 = vmul.f32 %v5113_v24, %v2312_v2 }
 0x55d   : > { %2091 = vrot.lane.b32.xlu0 %v6240_v36, %s3842_s9 }
 0x55e   : > { %v2360_v20 = vmul.f32 0.2, %v2328_v16  ;;  %vm2344_vm8 = vcmp.gt.f32.partialorder %v2328_v16, 0.0 }
 0x55f   : > { %3390 = vmatmul.mubr.msk.bf16.gmra.mrb[24].mxu0 %vm4614_vm13, %v3156_v35 }
 0x560   : > { %1963 = vmax.xlane.f32.xlu1 %v1941_v29  ;;  %3393 = vmatprep.mubr.msk.bf16.mxu0 %vm4642_vm14, %v3159_v25  ;;  %v2331_v29 = vmul.f32 %v3800_v45, %v2315_v63  ;;  %v5218_v24 = vsel %vm2344_vm8, %v2328_v16, %v2360_v20 }
 0x562   : > { %vm2347_vm2 = vcmp.gt.f32.partialorder %v2331_v29, 0.0 }
 0x564   : > { %1965 = vmax.xlane.f32.xlu1 %v1942_v33 }
 0x567   : > { %3394 = vmatmul.mubr.msk.bf16.gmra.mrb[28].mxu0 %vm4667_vm10, %v3162_v19 }
 0x568   : > { %2414 = vmax.xlane.f32.xlu1 %v2393_v23  ;;  %v2363_v23 = vmul.f32 0.2, %v2331_v29 }
 0x56a   : > { %v1954_v62 = vpop.xlane.xlu0 %1953 }
 0x56b   : > { %v1984_v61 = vsub.f32 %v5010_v39, %v1954_v62  ;;  %v5226_v62 = vsel %vm2347_vm2, %v2331_v29, %v2363_v23  ;;  %vm6290_vm2 = vcmp.ne.f32.partialorder %v4391_v53, 0.0 }
 0x56d   : > { %v2001_v18 = vmul.f32 1.442695, %v1984_v61 }
 0x56e   : > { %v2088_v5 = vpop.permute.xlu0 %2087 }
 0x56f   : > { %v1952_v4 = vpop.xlane.xlu1 %1951  ;;  %3397 = vmatprep.subr.bf16.mxu1 %v2088_v5  ;;  %3585 = vpow2.f32 %v2001_v18 }
 0x570   : > { %v1983_v1 = vsub.f32 %v5018_v54, %v1952_v4  ;;  %3398 = vmatpush3.bf16.msra.mxu1 %v2088_v5  ;;  %v2395_v5 = vsel %vm6286_vm6, %v5226_v62, -1e+30 }
 0x572   : > { %v1999_v35 = vmul.f32 1.442695, %v1983_v1 }
 0x573   : > { %v1956_v25 = vpop.xlane.xlu1 %1955 }
 0x574   : > { %3587 = vpow2.f32 %v1999_v35  ;;  %v1985_v39 = vsub.f32 %v5024_v34, %v1956_v25  ;;  %v2392_v34 = vsel %vm6288_vm9, %v5218_v24, -1e+30 }
 0x576   : > { %v2003_v57 = vmul.f32 1.442695, %v1985_v39 }
 0x577   : > { %v1958_v33 = vpop.xlane.xlu1 %1957 }
 0x578   : > { %v1986_v19 = vsub.f32 %v5030_v9, %v1958_v33  ;;  %3589 = vpow2.f32 %v2003_v57  ;;  %v1863_v57 = vadd.f32 %v4307_v40, %v5062_v47  ;;  %v3801_v33 = vld [vmem:[%s4301_s7 + $0x40] sm:$0xff] }
 0x579   : > { %2544 = vrot.lane.b32.xlu1 %v6240_v36, %s3843_s10  ;;  %v5228_v9 = vpop.eup %3585 }
 0x57a   : > { %v2005_v31 = vmul.f32 1.442695, %v1986_v19  ;;  %v1879_v19 = vmul.f32 %v3801_v33, %v1863_v57 }
 0x57b   : > { %v2405_v54 = vpop.xlane.xlu1 %2404 }
 0x57c   : > { %3591 = vpow2.f32 %v2005_v31  ;;  %v2436_v45 = vsub.f32 %v5035_v14, %v2405_v54  ;;  %2412 = vmax.xlane.f32.xlu0 %v2392_v34  ;;  %v1911_v31 = vmul.f32 0.2, %v1879_v19  ;;  %vm1895_vm8 = vcmp.gt.f32.partialorder %v1879_v19, 0.0 }
 0x57e   : > { %v5230_v61 = vpop.eup %3587  ;;  %v2452_v2 = vmul.f32 1.442695, %v2436_v45  ;;  %v5269_v47 = vsel %vm1895_vm8, %v1879_v19, %v1911_v31  ;;  %v3802_v45 = vld [vmem:[%s4301_s7 + $0x48] sm:$0xff] }
 0x57f   : > { %v2407_v36 = vpop.xlane.xlu1 %2406  ;;  %v3165_v18 = vpack.c.bf16 %v5228_v9, %v5230_v61 }
 0x580   : > { %v2437_v4 = vsub.f32 %v5040_v10, %v2407_v36  ;;  %2418 = vmax.xlane.f32.xlu0 %v2395_v5  ;;  %3593 = vpow2.f32 %v2452_v2  ;;  %v2314_v10 = vadd.f32 %v4309_v48, %v5055_v43  ;;  %v1866_v36 = vadd.f32 %v4307_v40, %v5068_v12 }
 0x581   : > { %3413 = vmatprep.mubr.msk.bf16.mxu1 %vm4527_vm0, %v3165_v18  ;;  %v2316_v5 = vadd.f32 %v4309_v48, %v5084_v44  ;;  %v3803_v18 = vld [vmem:[%s4301_s7 + $0x58] sm:$0xff]  ;;  %v6293_v44 = vld [vmem:[#allocation17_spill] sm:$0xff] }
 0x582   : > { %v2454_v14 = vmul.f32 1.442695, %v2437_v4  ;;  %v5240_v63 = vpop.eup %3589  ;;  %v2330_v20 = vmul.f32 %v5147_v38, %v2314_v10  ;;  %v1882_v4 = vmul.f32 %v3803_v18, %v1866_v36 }
 0x583   : > { %v2541_v16 = vpop.permute.xlu1 %2540  ;;  %v2332_v10 = vmul.f32 %v3801_v33, %v2316_v5  ;;  %v6295_v33 = vld [vmem:[#allocation18_spill] sm:$0xff]  ;;  %v6299_v5 = vld [vmem:[#allocation69_spill] sm:$0xff] }
 0x584   : > { %3595 = vpow2.f32 %v2454_v14  ;;  %3429 = vmatprep.subr.bf16.mxu0 %v2541_v16  ;;  %v2362_v23 = vmul.f32 0.2, %v2330_v20  ;;  %vm2346_vm3 = vcmp.gt.f32.partialorder %v2330_v20, 0.0  ;;  %v1914_v57 = vmul.f32 0.2, %v1882_v4 }
 0x585   : > { %3430 = vmatpush3.bf16.msra.mxu0 %v2541_v16  ;;  %vm1898_vm6 = vcmp.gt.f32.partialorder %v1882_v4, 0.0  ;;  %vm2348_vm8 = vcmp.gt.f32.partialorder %v2332_v10, 0.0 }
 0x586   : > { %v5242_v1 = vpop.eup %3591  ;;  %v5262_v43 = vsel %vm2346_vm3, %v2330_v20, %v2362_v23  ;;  %vm6294_vm3 = vcmp.ne.f32.partialorder %v6293_v44, 0.0  ;;  %v5295_v31 = vsel %vm1898_vm6, %v1882_v4, %v1914_v57  ;;  %v1865_v4 = vadd.f32 %v4307_v40, %v6299_v5 }
 0x587   : > { %v2394_v51 = vsel %vm6290_vm2, %v5262_v43, -1e+30  ;;  %vm6296_vm2 = vcmp.ne.f32.partialorder %v6295_v33, 0.0  ;;  %vm6298_vm6 = vmmov %vm6294_vm3  ;;  %v2319_v57 = vadd.f32 %v4309_v48, %v5090_v58 }
 0x58a   : > { %v5246_v25 = vpop.eup %3593 }
 0x58e   : > { %v5250_v29 = vpop.eup %3595 }
 0x58f   : > { %6289 = vst [vmem:[#allocation78_spill] sm:$0xff] %v5250_v29  ;;  %v3189_v39 = vpack.c.bf16 %v5250_v29, %v5246_v25 }
 0x591   : > { %3445 = vmatprep.mubr.msk.bf16.mxu0 %vm4527_vm0, %v3189_v39  ;;  %vm6291_vm0 = vcmp.ne.f32.partialorder %v4318_v11, 0.0  ;;  %v6292_v39 = vld [vmem:[#allocation71_spill] sm:$0xff] }
 0x592   : > { %v1943_v54 = vsel %vm6291_vm0, %v5269_v47, -1e+30 }
 0x596   : > { %2093 = vrot.lane.b32.xlu0 %v6222_v32, %s3842_s9 }
 0x59a   : > { %2546 = vrot.lane.b32.xlu0 %v6222_v32, %s3843_s10  ;;  %v1864_v32 = vadd.f32 %v4307_v40, %v5057_v46  ;;  %v2317_v46 = vadd.f32 %v4309_v48, %v6292_v39  ;;  %v6300_v39 = vld [vmem:[#allocation72_spill] sm:$0xff] }
 0x59c   : > { %v1880_v2 = vmul.f32 %v3802_v45, %v1864_v32  ;;  %v2333_v23 = vmul.f32 %v3802_v45, %v2317_v46  ;;  %v2318_v46 = vadd.f32 %v4309_v48, %v6300_v39 }
 0x59d   : > { %2416 = vmax.xlane.f32.xlu1 %v2394_v51  ;;  %v2364_v51 = vmul.f32 0.2, %v2332_v10 }
 0x59e   : > { %v1912_v14 = vmul.f32 0.2, %v1880_v2  ;;  %vm1896_vm9 = vcmp.gt.f32.partialorder %v1880_v2, 0.0  ;;  %v2365_v32 = vmul.f32 0.2, %v2333_v23  ;;  %vm2349_vm0 = vcmp.gt.f32.partialorder %v2333_v23, 0.0 }
 0x59f   : > { %v5271_v38 = vpop.xlane.xlu0 %2408 }
 0x5a0   : > { %v5290_v20 = vsel %vm1896_vm9, %v1880_v2, %v1912_v14  ;;  %vm6297_vm9 = vcmp.ne.f32.partialorder %v4318_v11, 0.0  ;;  %v5305_v2 = vsel %vm2349_vm0, %v2333_v23, %v2365_v32  ;;  %v3804_v14 = vld [vmem:[%s4301_s7 + $0x50] sm:$0xff]  ;;  %v2335_v23 = vmul.f32 %v3803_v18, %v2319_v57 }
 0x5a1   : > { %1967 = vmax.xlane.f32.xlu1 %v1943_v54  ;;  %v1944_v19 = vsel %vm6294_vm3, %v5290_v20, -1e+30  ;;  %v1946_v54 = vsel %vm6296_vm2, %v5295_v31, -1e+30  ;;  %v2397_v36 = vsel %vm6298_vm6, %v5305_v2, -1e+30 }
 0x5a2   : > { %vm2351_vm0 = vcmp.gt.f32.partialorder %v2335_v23, 0.0  ;;  %vm6305_vm6 = vcmp.ne.f32.partialorder %v6295_v33, 0.0 }
 0x5a3   : > { %v2090_v34 = vpop.permute.xlu0 %2089 }
 0x5a4   : > { %3399 = vmatprep.subr.bf16.mxu1 %v2090_v34 }
 0x5a5   : > { %3400 = vmatpush3.bf16.msra.mxu1 %v2090_v34  ;;  %v5300_v34 = vsel %vm2348_vm8, %v2332_v10, %v2364_v51  ;;  %v1881_v10 = vmul.f32 %v3804_v14, %v1865_v4  ;;  %v2367_v4 = vmul.f32 0.2, %v2335_v23 }
 0x5a6   : > { %v2396_v45 = vsel %vm6297_vm9, %v5300_v34, -1e+30 }
 0x5a7   : > { %vm1897_vm3 = vcmp.gt.f32.partialorder %v1881_v10, 0.0  ;;  %v5327_v18 = vsel %vm2351_vm0, %v2335_v23, %v2367_v4  ;;  %vm6311_vm0 = vcmp.ne.f32.partialorder %v6310_v28, 0.0 }
 0x5a8   : > { %6304 = vst [vmem:[#allocation71_spill] sm:$0xff] %v5327_v18 }
 0x5b2   : > { %2095 = vrot.lane.b32.xlu1 %v6242_v60, %s3842_s9 }
 0x5b4   : > { %v5286_v16 = vpop.xlane.xlu1 %2410 }
 0x5b8   : > { %v2543_v12 = vpop.permute.xlu1 %2542 }
 0x5b9   : > { %3431 = vmatprep.subr.bf16.mxu0 %v2543_v12  ;;  %1969 = vmax.xlane.f32.xlu0 %v1944_v19  ;;  %v1913_v19 = vmul.f32 0.2, %v1881_v10 }
 0x5ba   : > { %3432 = vmatpush3.bf16.msra.mxu0 %v2543_v12  ;;  %v2334_v12 = vmul.f32 %v3804_v14, %v2318_v46  ;;  %v2399_v14 = vsel %vm6305_vm6, %v5327_v18, -1e+30 }
 0x5bb   : > { %v5317_v51 = vsel %vm1897_vm3, %v1881_v10, %v1913_v19  ;;  %v6306_v10 = vld [vmem:[#allocation9_spill] sm:$0xff] }
 0x5bc   : > { %vm2350_vm8 = vcmp.gt.f32.partialorder %v2334_v12, 0.0 }
 0x5bd   : > { %1973 = vmax.xlane.f32.xlu0 %v1946_v54  ;;  %v2366_v54 = vmul.f32 0.2, %v2334_v12 }
 0x5bf   : > { %v5322_v5 = vsel %vm2350_vm8, %v2334_v12, %v2366_v54 }
 0x5c1   : > { %2420 = vmax.xlane.f32.xlu0 %v2396_v45  ;;  %v6301_v45 = vld [vmem:[#allocation15_spill] sm:$0xff] }
 0x5c2   : > { %vm6302_vm2 = vcmp.ne.f32.partialorder %v6301_v45, 0.0 }
 0x5c3   : > { %vm6303_vm9 = vmmov %vm6302_vm2 }
 0x5c4   : > { %v2398_v58 = vsel %vm6303_vm9, %v5322_v5, -1e+30 }
 0x5c5   : > { %2422 = vmax.xlane.f32.xlu0 %v2397_v36  ;;  %v1945_v36 = vsel %vm6302_vm2, %v5317_v51, -1e+30 }
 0x5d4   : > { %v1960_v32 = vpop.xlane.xlu0 %1959 }
 0x5d5   : > { %v1987_v46 = vsub.f32 %v5116_v59, %v1960_v32 }
 0x5d6   : > { %1971 = vmax.xlane.f32.xlu1 %v1945_v36 }
 0x5d7   : > { %v2007_v57 = vmul.f32 1.442695, %v1987_v46 }
 0x5d8   : > { %v2092_v39 = vpop.permute.xlu0 %2091 }
 0x5d9   : > { %3401 = vmatprep.subr.bf16.mxu1 %v2092_v39  ;;  %3597 = vpow2.f32 %v2007_v57 }
 0x5da   : > { %2424 = vmax.xlane.f32.xlu1 %v2398_v58  ;;  %3402 = vmatpush3.bf16.msra.mxu1 %v2092_v39  ;;  %v5344_v58 = vld [vmem:[%s4301_s7 + $0x60] sm:$0xff] }
 0x5db   : > { %2548 = vrot.lane.b32.xlu0 %v6242_v60, %s3843_s10  ;;  %v1867_v60 = vadd.f32 %v4307_v40, %v5086_v50 }
 0x5dd   : > { %v1883_v59 = vmul.f32 %v5344_v58, %v1867_v60 }
 0x5de   : > { %2426 = vmax.xlane.f32.xlu1 %v2399_v14 }
 0x5df   : > { %2550 = vrot.lane.b32.xlu0 %v6306_v10, %s3843_s10  ;;  %v1915_v50 = vmul.f32 0.2, %v1883_v59  ;;  %vm1899_vm3 = vcmp.gt.f32.partialorder %v1883_v59, 0.0 }
 0x5e3   : > { %v5350_v46 = vpop.eup %3597 }
 0x5e9   : > { %v1962_v12 = vpop.xlane.xlu1 %1961 }
 0x5ea   : > { %v1988_v19 = vsub.f32 %v5165_v17, %v1962_v12  ;;  %v5356_v12 = vsel %vm1899_vm3, %v1883_v59, %v1915_v50  ;;  %v5375_v50 = vld [vmem:[%s4301_s7 + $0x70] sm:$0xff]  ;;  %vm6316_vm3 = vmmov %vm6311_vm0 }
 0x5ec   : > { %v2009_v23 = vmul.f32 1.442695, %v1988_v19  ;;  %v1947_v19 = vsel %vm835_vm1, %v5356_v12, -1e+30 }
 0x5ed   : > { %v1964_v54 = vpop.xlane.xlu1 %1963 }
 0x5ee   : > { %3599 = vpow2.f32 %v2009_v23  ;;  %v1989_v36 = vsub.f32 %v5174_v7, %v1964_v54 }
 0x5ef   : > { %2097 = vrot.lane.b32.xlu1 %v6306_v10, %s3842_s9 }
 0x5f0   : > { %v2011_v4 = vmul.f32 1.442695, %v1989_v36  ;;  %v6308_v36 = vld [vmem:[#allocation68_spill] sm:$0xff] }
 0x5f1   : > { %v1966_v39 = vpop.xlane.xlu1 %1965 }
 0x5f2   : > { %v1990_v17 = vsub.f32 %v5191_v8, %v1966_v39  ;;  %3601 = vpow2.f32 %v2011_v4  ;;  %v1868_v4 = vadd.f32 %v4307_v40, %v6308_v36  ;;  %v3806_v39 = vld [vmem:[%s4301_s7 + $0x68] sm:$0xff] }
 0x5f4   : > { %v2013_v32 = vmul.f32 1.442695, %v1990_v17  ;;  %v1884_v59 = vmul.f32 %v3806_v39, %v1868_v4  ;;  %v1869_v17 = vadd.f32 %v4307_v40, %v5088_v6  ;;  %v2321_v4 = vadd.f32 %v4309_v48, %v5098_v3 }
 0x5f5   : > { %v5348_v14 = vpop.xlane.xlu1 %2414 }
 0x5f6   : > { %3603 = vpow2.f32 %v2013_v32  ;;  %v1916_v35 = vmul.f32 0.2, %v1884_v59  ;;  %vm1900_vm8 = vcmp.gt.f32.partialorder %v1884_v59, 0.0 }
 0x5f8   : > { %v5352_v7 = vpop.eup %3599  ;;  %v5385_v26 = vsel %vm1900_vm8, %v1884_v59, %v1916_v35 }
 0x5f9   : > { %v2545_v10 = vpop.permute.xlu1 %2544 }
 0x5fa   : > { %3433 = vmatprep.subr.bf16.mxu0 %v2545_v10 }
 0x5fb   : > { %3434 = vmatpush3.bf16.msra.mxu0 %v2545_v10  ;;  %v1885_v10 = vmul.f32 %v5375_v50, %v1869_v17  ;;  %v1948_v17 = vsel %vm6311_vm0, %v5385_v26, -1e+30 }
 0x5fc   : > { %v5361_v23 = vpop.eup %3601 }
 0x5fd   : > { %v1917_v6 = vmul.f32 0.2, %v1885_v10  ;;  %vm1901_vm2 = vcmp.gt.f32.partialorder %v1885_v10, 0.0 }
 0x5fe   : > { %1975 = vmax.xlane.f32.xlu0 %v1947_v19  ;;  %v6309_v19 = vld [vmem:[#allocation73_spill] sm:$0xff] }
 0x5ff   : > { %v1870_v57 = vadd.f32 %v4307_v40, %v6309_v19  ;;  %v2337_v40 = vmul.f32 %v3806_v39, %v2321_v4  ;;  %v5390_v19 = vsel %vm1901_vm2, %v1885_v10, %v1917_v6 }
 0x600   : > { %v5363_v54 = vpop.eup %3603  ;;  %v1949_v59 = vsel %vm837_vm12, %v5390_v19, -1e+30 }
 0x601   : > { %v1886_v36 = vmul.f32 %v3808_v55, %v1870_v57  ;;  %v6312_v57 = vld [vmem:[#allocation10_spill] sm:$0xff]  ;;  %v2369_v39 = vmul.f32 0.2, %v2337_v40  ;;  %vm2353_vm6 = vcmp.gt.f32.partialorder %v2337_v40, 0.0 }
 0x603   : > { %v1918_v30 = vmul.f32 0.2, %v1886_v36  ;;  %vm1902_vm9 = vcmp.gt.f32.partialorder %v1886_v36, 0.0  ;;  %v5402_v4 = vsel %vm2353_vm6, %v2337_v40, %v2369_v39  ;;  %v6322_v40 = vld [vmem:[#allocation76_spill] sm:$0xff]  ;;  %vm6338_vm6 = vmmov %vm6316_vm3 }
 0x604   : > { %6315 = vst [vmem:[#allocation17_spill] sm:$0xff] %v5402_v4  ;;  %v2401_v6 = vsel %vm6316_vm3, %v5402_v4, -1e+30  ;;  %v2323_v39 = vadd.f32 %v4309_v48, %v6322_v40 }
 0x605   : > { %v5397_v37 = vsel %vm1902_vm9, %v1886_v36, %v1918_v30  ;;  %vm6337_vm9 = vcmp.ne.f32.partialorder %v6295_v33, 0.0 }
 0x606   : > { %v1950_v10 = vsel %vm838_vm5, %v5397_v37, -1e+30 }
 0x609   : > { %v5372_v32 = vpop.xlane.xlu0 %2412 }
 0x60d   : > { %v5380_v60 = vpop.xlane.xlu0 %2418 }
 0x611   : > { %v2094_v27 = vpop.permute.xlu0 %2093 }
 0x612   : > { %3403 = vmatprep.subr.bf16.mxu1 %v2094_v27 }
 0x613   : > { %1977 = vmax.xlane.f32.xlu1 %v1948_v17  ;;  %3404 = vmatpush3.bf16.msra.mxu1 %v2094_v27 }
 0x614   : > { %2099 = vrot.lane.b32.xlu0 %v6312_v57, %s3842_s9 }
 0x615   : > { %v2547_v3 = vpop.permute.xlu0 %2546 }
 0x616   : > { %3435 = vmatprep.subr.bf16.mxu0 %v2547_v3 }
 0x617   : > { %1979 = vmax.xlane.f32.xlu1 %v1949_v59  ;;  %3436 = vmatpush3.bf16.msra.mxu0 %v2547_v3  ;;  %v6318_v59 = vld [vmem:[#allocation75_spill] sm:$0xff] }
 0x618   : > { %v2320_v30 = vadd.f32 %v4309_v48, %v6318_v59 }
 0x61b   : > { %1981 = vmax.xlane.f32.xlu1 %v1950_v10  ;;  %v2336_v10 = vmul.f32 %v5344_v58, %v2320_v30 }
 0x61d   : > { %v2368_v18 = vmul.f32 0.2, %v2336_v10  ;;  %vm2352_vm8 = vcmp.gt.f32.partialorder %v2336_v10, 0.0 }
 0x61f   : > { %2430 = vmax.xlane.f32.xlu1 %v2401_v6  ;;  %v2339_v6 = vmul.f32 %v3808_v55, %v2323_v39 }
 0x621   : > { %v2371_v58 = vmul.f32 0.2, %v2339_v6  ;;  %vm2355_vm2 = vcmp.gt.f32.partialorder %v2339_v6, 0.0 }
 0x622   : > { %v5407_v17 = vpop.f32.mrb[16].mxu0 }
 0x623   : > { %6317 = vst [vmem:[#allocation18_spill] sm:$0xff] %v5407_v17  ;;  %v5411_v36 = vpop.f32.mrb[17].mxu0 }
 0x624   : > { %6319 = vst [vmem:[#allocation69_spill] sm:$0xff] %v5411_v36  ;;  %v5413_v3 = vpop.f32.mrb[18].mxu0 }
 0x625   : > { %6320 = vst [vmem:[#allocation72_spill] sm:$0xff] %v5413_v3  ;;  %v5415_v22 = vpop.f32.mrb[19].mxu0 }
 0x626   : > { %6321 = vst [vmem:[#allocation15_spill] sm:$0xff] %v5415_v22  ;;  %v5430_v22 = vsel %vm2352_vm8, %v2336_v10, %v2368_v18 }
 0x627   : > { %v2400_v55 = vsel %vm835_vm1, %v5430_v22, -1e+30 }
 0x62a   : > { %v5420_v29 = vpop.xlane.xlu1 %2416  ;;  %v5422_v4 = vpop.f32.mrb[20].mxu0 }
 0x62b   : > { %6323 = vst [vmem:[#allocation9_spill] sm:$0xff] %v5422_v4  ;;  %v5424_v17 = vpop.f32.mrb[21].mxu0  ;;  %v5441_v4 = vsel %vm2355_vm2, %v2339_v6, %v2371_v58  ;;  %v6335_v58 = vld [vmem:[#allocation77_spill] sm:$0xff] }
 0x62c   : > { %6324 = vst [vmem:[#allocation21_spill] sm:$0xff] %v5424_v17  ;;  %v5426_v59 = vpop.f32.mrb[22].mxu0 }
 0x62d   : > { %6325 = vst [vmem:[#allocation68_spill] sm:$0xff] %v5426_v59  ;;  %v5428_v36 = vpop.f32.mrb[23].mxu0 }
 0x62e   : > { %6326 = vst [vmem:[#allocation73_spill] sm:$0xff] %v5428_v36  ;;  %v1968_v3 = vpop.xlane.xlu1 %1967 }
 0x62f   : > { %v1991_v6 = vsub.f32 %v5269_v47, %v1968_v3 }
 0x630   : > { %2552 = vrot.lane.b32.xlu1 %v6312_v57, %s3843_s10  ;;  %v2403_v57 = vsel %vm838_vm5, %v5441_v4, -1e+30 }
 0x632   : > { %v2096_v30 = vpop.permute.xlu1 %2095  ;;  %v5434_v40 = vpop.f32.mrb[24].mxu0 }
 0x633   : > { %6327 = vst [vmem:[#allocation19_spill] sm:$0xff] %v5434_v40  ;;  %3405 = vmatprep.subr.bf16.mxu1 %v2096_v30  ;;  %2428 = vmax.xlane.f32.xlu0 %v2400_v55  ;;  %v5439_v39 = vpop.f32.mrb[25].mxu0 }
 0x634   : > { %6328 = vst [vmem:[#allocation10_spill] sm:$0xff] %v5439_v39  ;;  %3406 = vmatpush3.bf16.msra.mxu1 %v2096_v30  ;;  %v5443_v18 = vpop.f32.mrb[26].mxu0  ;;  %v2322_v30 = vadd.f32 %v4309_v48, %v6335_v58  ;;  %v2015_v39 = vmul.f32 1.442695, %v1991_v6  ;;  %v1584_v58 = vsel %vm837_vm12, %v5198_v52, 0.0 }
 0x635   : > { %6329 = vst [vmem:[#allocation20_spill] sm:$0xff] %v5443_v18  ;;  %v5445_v10 = vpop.f32.mrb[27].mxu0 }
 0x636   : > { %6330 = vst [vmem:[#allocation22_spill] sm:$0xff] %v5445_v10  ;;  %v2338_v36 = vmul.f32 %v5375_v50, %v2322_v30  ;;  %3605 = vpow2.f32 %v2015_v39 }
 0x637   : > { %2434 = vmax.xlane.f32.xlu0 %v2403_v57 }
 0x638   : > { %vm2354_vm0 = vcmp.gt.f32.partialorder %v2338_v36, 0.0 }
 0x63a   : > { %v5450_v40 = vpop.f32.mrb[28].mxu0 }
 0x63b   : > { %6331 = vst [vmem:[#allocation75_spill] sm:$0xff] %v5450_v40  ;;  %v5452_v17 = vpop.f32.mrb[29].mxu0  ;;  %v6408_v27 = vld [vmem:[#allocation10_spill] sm:$0xff] }
 0x63c   : > { %6332 = vst [vmem:[#allocation76_spill] sm:$0xff] %v5452_v17  ;;  %v5454_v59 = vpop.f32.mrb[30].mxu0  ;;  %v2370_v17 = vmul.f32 0.2, %v2338_v36 }
 0x63d   : > { %6333 = vst [vmem:[#allocation79_spill] sm:$0xff] %v5454_v59  ;;  %v5456_v55 = vpop.f32.mrb[31].mxu0  ;;  %v6336_v59 = vld [vmem:[#allocation11_spill] sm:$0xff] }
 0x63e   : > { %6334 = vst [vmem:[#allocation80_spill] sm:$0xff] %v5456_v55  ;;  %v5466_v3 = vsel %vm2354_vm0, %v2338_v36, %v2370_v17 }
 0x63f   : > { %v2402_v39 = vsel %vm837_vm12, %v5466_v3, -1e+30 }
 0x646   : > { %v1970_v18 = vpop.xlane.xlu0 %1969 }
 0x647   : > { %v1992_v10 = vsub.f32 %v5290_v20, %v1970_v18  ;;  %v5474_v18 = vpop.eup %3605 }
 0x649   : > { %v2017_v57 = vmul.f32 1.442695, %v1992_v10 }
 0x64a   : > { %v1974_v40 = vpop.xlane.xlu0 %1973 }
 0x64b   : > { %3607 = vpow2.f32 %v2017_v57 }
 0x64d   : > { %2101 = vrot.lane.b32.xlu0 %v6336_v59, %s3842_s9 }
 0x64e   : > { %v2421_v55 = vpop.xlane.xlu0 %2420 }
 0x64f   : > { %v2444_v47 = vsub.f32 %v5300_v34, %v2421_v55  ;;  %v1994_v55 = vsub.f32 %v5295_v31, %v1974_v40 }
 0x651   : > { %2554 = vrot.lane.b32.xlu0 %v6336_v59, %s3843_s10  ;;  %v2468_v48 = vmul.f32 1.442695, %v2444_v47  ;;  %v1583_v59 = vsel %vm6338_vm6, %v5169_v42, 0.0  ;;  %v2021_v47 = vmul.f32 1.442695, %v1994_v55  ;;  %v1585_v42 = vsel %vm838_vm5, %v5193_v21, 0.0 }
 0x652   : > { %v2423_v20 = vpop.xlane.xlu0 %2422  ;;  %vm6348_vm6 = vcmp.ne.f32.partialorder %v4373_v13, 0.0 }
 0x653   : > { %v2445_v50 = vsub.f32 %v5305_v2, %v2423_v20  ;;  %3609 = vpow2.f32 %v2468_v48  ;;  %v1581_v2 = vsel %vm6337_vm9, %v5167_v49, 0.0  ;;  %v6339_v20 = vld [vmem:[#allocation13_spill] sm:$0xff]  ;;  %vm6347_vm9 = vcmp.ne.f32.partialorder %v4349_v0, 0.0 }
 0x654   : > { %2432 = vmax.xlane.f32.xlu1 %v2402_v39  ;;  %vm6340_vm3 = vcmp.ne.f32.partialorder %v6339_v20, 0.0 }
 0x655   : > { %v5476_v10 = vpop.eup %3607  ;;  %v2470_v6 = vmul.f32 1.442695, %v2445_v50  ;;  %v2031_v50 = vsel %vm6340_vm3, %v5230_v61, 0.0  ;;  %v1582_v61 = vsel %vm835_vm1, %v5176_v15, 0.0  ;;  %v2036_v15 = vsel %vm6348_vm6, %v5352_v7, 0.0 }
 0x656   : > { %v2549_v34 = vpop.permute.xlu0 %2548  ;;  %v3177_v17 = vpack.c.bf16 %v5476_v10, %v5474_v18  ;;  %vm6349_vm3 = vcmp.ne.f32.partialorder %v4391_v53, 0.0  ;;  %vm6354_vm6 = vcmp.ne.f32.partialorder %v6295_v33, 0.0 }
 0x657   : > { %3611 = vpow2.f32 %v2470_v6  ;;  %3437 = vmatprep.subr.bf16.mxu0 %v2549_v34  ;;  %v6341_v6 = vld [vmem:[#allocation12_spill] sm:$0xff] }
 0x658   : > { %1608 = vadd.xlane.f32.xlu1 %v1581_v2  ;;  %3438 = vmatpush3.bf16.msra.mxu0 %v2549_v34  ;;  %3613 = vpow2.f32 %v2021_v47  ;;  %vm6342_vm8 = vcmp.ne.f32.partialorder %v6341_v6, 0.0  ;;  %v2035_v47 = vsel %vm6347_vm9, %v5350_v46, 0.0  ;;  %vm6353_vm9 = vcmp.ne.f32.partialorder %v6301_v45, 0.0 }
 0x659   : > { %v2032_v34 = vsel %vm6342_vm8, %v5228_v9, 0.0  ;;  %v6345_v9 = vld [vmem:[#allocation16_spill] sm:$0xff]  ;;  %vm6350_vm8 = vcmp.ne.f32.partialorder %v4406_v56, 0.0 }
 0x65a   : > { %v2551_v36 = vpop.permute.xlu0 %2550  ;;  %vm6346_vm0 = vcmp.ne.f32.partialorder %v6345_v9, 0.0 }
 0x65b   : > { %3439 = vmatprep.subr.bf16.mxu0 %v2551_v36  ;;  %v2034_v55 = vsel %vm6346_vm0, %v5242_v1, 0.0  ;;  %vm6352_vm0 = vcmp.ne.f32.partialorder %v6293_v44, 0.0 }
 0x65c   : > { %1612 = vadd.xlane.f32.xlu1 %v1583_v59  ;;  %3440 = vmatpush3.bf16.msra.mxu0 %v2551_v36 }
 0x65d   : > { %v5490_v30 = vpop.eup %3609 }
 0x660   : > { %1614 = vadd.xlane.f32.xlu1 %v1584_v58 }
 0x661   : > { %v5492_v49 = vpop.eup %3611 }
 0x662   : > { %v3201_v57 = vpack.c.bf16 %v5492_v49, %v5490_v30  ;;  %v5516_v36 = vpop.eup %3613 }
 0x663   : > { %v1972_v48 = vpop.xlane.xlu1 %1971 }
 0x664   : > { %v1993_v31 = vsub.f32 %v5317_v51, %v1972_v48  ;;  %1616 = vadd.xlane.f32.xlu1 %v1585_v42  ;;  %v6343_v51 = vld [vmem:[#allocation14_spill] sm:$0xff]  ;;  %v2037_v48 = vsel %vm6349_vm3, %v5361_v23, 0.0  ;;  %v2038_v42 = vsel %vm6350_vm8, %v5363_v54, 0.0  ;;  %vm6357_vm3 = vcmp.ne.f32.partialorder %v6310_v28, 0.0 }
 0x665   : > { %vm6344_vm2 = vcmp.ne.f32.partialorder %v6343_v51, 0.0  ;;  %vm6358_vm8 = vcmp.ne.f32.partialorder %v6339_v20, 0.0 }
 0x666   : > { %v2019_v40 = vmul.f32 1.442695, %v1993_v31  ;;  %v2033_v2 = vsel %vm6344_vm2, %v5240_v63, 0.0  ;;  %vm6351_vm2 = vcmp.ne.f32.partialorder %v4318_v11, 0.0 }
 0x667   : > { %v5500_v52 = vpop.xlane.xlu1 %2424  ;;  %v2039_v31 = vsel %vm6351_vm2, %v5474_v18, 0.0  ;;  %vm6361_vm2 = vcmp.ne.f32.partialorder %v6341_v6, 0.0 }
 0x668   : > { %3615 = vpow2.f32 %v2019_v40  ;;  %2047 = vadd.xlane.f32.xlu1 %v2031_v50  ;;  %v2040_v40 = vsel %vm6352_vm0, %v5476_v10, 0.0  ;;  %vm6362_vm0 = vcmp.ne.f32.partialorder %v6343_v51, 0.0 }
 0x66b   : > { %v5505_v39 = vpop.xlane.xlu1 %2426 }
 0x66c   : > { %2049 = vadd.xlane.f32.xlu1 %v2032_v34  ;;  %v2042_v34 = vsel %vm6354_vm6, %v5516_v36, 0.0  ;;  %vm6365_vm6 = vcmp.ne.f32.partialorder %v4349_v0, 0.0 }
 0x66f   : > { %v2098_v21 = vpop.permute.xlu1 %2097 }
 0x670   : > { %2051 = vadd.xlane.f32.xlu1 %v2033_v2  ;;  %3407 = vmatprep.subr.bf16.mxu1 %v2098_v21 }
 0x671   : > { %1610 = vadd.xlane.f32.xlu0 %v1582_v61  ;;  %3408 = vmatpush3.bf16.msra.mxu1 %v2098_v21 }
 0x672   : > { %v5518_v59 = vpop.eup %3615 }
 0x673   : > { %v2041_v50 = vsel %vm6353_vm9, %v5518_v59, 0.0  ;;  %vm6364_vm9 = vcmp.ne.f32.partialorder %v6345_v9, 0.0 }
 0x674   : > { %2053 = vadd.xlane.f32.xlu1 %v2034_v55 }
 0x675   : > { %2055 = vadd.xlane.f32.xlu0 %v2035_v47 }
 0x678   : > { %2057 = vadd.xlane.f32.xlu1 %v2036_v15 }
 0x679   : > { %2059 = vadd.xlane.f32.xlu0 %v2037_v48 }
 0x67c   : > { %2061 = vadd.xlane.f32.xlu1 %v2038_v42 }
 0x67d   : > { %2063 = vadd.xlane.f32.xlu0 %v2039_v31 }
 0x680   : > { %2065 = vadd.xlane.f32.xlu1 %v2040_v40 }
 0x681   : > { %2067 = vadd.xlane.f32.xlu0 %v2041_v50  ;;  %v6355_v50 = vld [vmem:[#allocation70_spill] sm:$0xff] }
 0x684   : > { %2069 = vadd.xlane.f32.xlu1 %v2042_v34  ;;  %v2438_v34 = vsub.f32 %v6355_v50, %v5271_v38  ;;  %v2446_v50 = vsub.f32 %v5322_v5, %v5500_v52 }
 0x68b   : > { %v1976_v21 = vpop.xlane.xlu0 %1975 }
 0x68c   : > { %v1995_v2 = vsub.f32 %v5356_v12, %v1976_v21 }
 0x68e   : > { %v2023_v61 = vmul.f32 1.442695, %v1995_v2 }
 0x68f   : > { %v2100_v55 = vpop.permute.xlu0 %2099 }
 0x690   : > { %3617 = vpow2.f32 %v2023_v61  ;;  %3409 = vmatprep.subr.bf16.mxu1 %v2100_v55 }
 0x691   : > { %3410 = vmatpush3.bf16.msra.mxu1 %v2100_v55  ;;  %v6356_v55 = vld [vmem:[#allocation74_spill] sm:$0xff] }
 0x692   : > { %v2439_v58 = vsub.f32 %v6356_v55, %v5286_v16 }
 0x69a   : > { %v5550_v47 = vpop.eup %3617 }
 0x69b   : > { %v2043_v15 = vsel %vm835_vm1, %v5550_v47, 0.0 }
 0x69c   : > { %2071 = vadd.xlane.f32.xlu0 %v2043_v15  ;;  %v2456_v15 = vmul.f32 1.442695, %v2438_v34 }
 0x6a0   : > { %v1978_v48 = vpop.xlane.xlu1 %1977 }
 0x6a1   : > { %v1996_v42 = vsub.f32 %v5385_v26, %v1978_v48  ;;  %v2440_v26 = vsub.f32 %v5218_v24, %v5372_v32 }
 0x6a3   : > { %v2025_v31 = vmul.f32 1.442695, %v1996_v42 }
 0x6a4   : > { %v1980_v40 = vpop.xlane.xlu1 %1979 }
 0x6a5   : > { %3619 = vpow2.f32 %v2025_v31  ;;  %v1997_v12 = vsub.f32 %v5390_v19, %v1980_v40  ;;  %v2458_v31 = vmul.f32 1.442695, %v2439_v58  ;;  %v2441_v19 = vsub.f32 %v5200_v41, %v5348_v14 }
 0x6a6   : > { %v2460_v40 = vmul.f32 1.442695, %v2440_v26  ;;  %v2443_v41 = vsub.f32 %v5226_v62, %v5380_v60  ;;  %v2484_v62 = vsel %vm6358_vm8, %v5246_v25, 0.0  ;;  %v6363_v26 = vld [vmem:[#allocation17_spill] sm:$0xff]  ;;  %vm6367_vm8 = vcmp.ne.f32.partialorder %v4391_v53, 0.0 }
 0x6a7   : > { %v2027_v21 = vmul.f32 1.442695, %v1997_v12  ;;  %v2462_v24 = vmul.f32 1.442695, %v2441_v19 }
 0x6a8   : > { %v1982_v2 = vpop.xlane.xlu1 %1981  ;;  %v2466_v58 = vmul.f32 1.442695, %v2443_v41 }
 0x6a9   : > { %3621 = vpow2.f32 %v2027_v21  ;;  %v1998_v61 = vsub.f32 %v5397_v37, %v1982_v2  ;;  %v2442_v37 = vsub.f32 %v5262_v43, %v5420_v29  ;;  %v2472_v21 = vmul.f32 1.442695, %v2446_v50  ;;  %v6359_v2 = vld [vmem:[#allocation71_spill] sm:$0xff]  ;;  %v6400_v50 = vld [vmem:[#allocation61_spill] sm:$0xff] }
 0x6ab   : > { %v2029_v48 = vmul.f32 1.442695, %v1998_v61  ;;  %v2464_v14 = vmul.f32 1.442695, %v2442_v37  ;;  %v2447_v61 = vsub.f32 %v6359_v2, %v5505_v39 }
 0x6ac   : > { %v2431_v42 = vpop.xlane.xlu1 %2430 }
 0x6ad   : > { %3623 = vpow2.f32 %v2029_v48  ;;  %v2474_v25 = vmul.f32 1.442695, %v2447_v61  ;;  %v2449_v48 = vsub.f32 %v6363_v26, %v2431_v42  ;;  %v6390_v26 = vld [vmem:[#allocation18_spill] sm:$0xff] }
 0x6ae   : > { %3625 = vpow2.f32 %v2456_v15  ;;  %v6360_v15 = vld [vmem:[#allocation78_spill] sm:$0xff] }
 0x6af   : > { %v5566_v38 = vpop.eup %3619  ;;  %3627 = vpow2.f32 %v2458_v31  ;;  %v2485_v5 = vsel %vm6361_vm2, %v6360_v15, 0.0  ;;  %v2478_v37 = vmul.f32 1.442695, %v2449_v48  ;;  %vm6368_vm2 = vcmp.ne.f32.partialorder %v4406_v56, 0.0  ;;  %v6411_v15 = vld [vmem:[#allocation75_spill] sm:$0xff] }
 0x6b0   : > { %v2553_v12 = vpop.permute.xlu1 %2552  ;;  %v2044_v16 = vsel %vm6357_vm3, %v5566_v38, 0.0  ;;  %3629 = vpow2.f32 %v2460_v40  ;;  %vm6366_vm3 = vcmp.ne.f32.partialorder %v4373_v13, 0.0 }
 0x6b1   : > { %2073 = vadd.xlane.f32.xlu1 %v2044_v16  ;;  %3441 = vmatprep.subr.bf16.mxu0 %v2553_v12  ;;  %3631 = vpow2.f32 %v2462_v24 }
 0x6b2   : > { %3442 = vmatpush3.bf16.msra.mxu0 %v2553_v12  ;;  %3633 = vpow2.f32 %v2464_v14 }
 0x6b3   : > { %v5573_v32 = vpop.eup %3621  ;;  %3635 = vpow2.f32 %v2466_v58 }
 0x6b4   : > { %v2045_v29 = vsel %vm837_vm12, %v5573_v32, 0.0  ;;  %3637 = vpow2.f32 %v2472_v21 }
 0x6b5   : > { %2075 = vadd.xlane.f32.xlu0 %v2045_v29  ;;  %3639 = vpow2.f32 %v2474_v25 }
 0x6b7   : > { %v5580_v43 = vpop.eup %3623 }
 0x6b8   : > { %v2046_v34 = vsel %vm838_vm5, %v5580_v43, 0.0  ;;  %v5590_v60 = vpop.eup %3625 }
 0x6b9   : > { %2077 = vadd.xlane.f32.xlu1 %v2046_v34  ;;  %2500 = vadd.xlane.f32.xlu0 %v2484_v62  ;;  %v3628_v55 = vpop.eup %3627  ;;  %v2486_v52 = vsel %vm6362_vm0, %v5590_v60, 0.0  ;;  %vm6369_vm0 = vcmp.ne.f32.partialorder %v4318_v11, 0.0  ;;  %v6372_v11 = vpack.c.bf16 %v5242_v1, %v5240_v63  ;;  %v6374_v62 = vpack.c.bf16 %v5352_v7, %v5350_v46 }
 0x6ba   : > { %v3630_v20 = vpop.eup %3629  ;;  %v2487_v39 = vsel %vm6364_vm9, %v3628_v55, 0.0  ;;  %v2492_v13 = vsel %vm6369_vm0, %v5490_v30, 0.0  ;;  %vm6370_vm9 = vcmp.ne.f32.partialorder %v6293_v44, 0.0 }
 0x6bb   : > { %v3632_v31 = vpop.eup %3631  ;;  %v2488_v19 = vsel %vm6365_vm6, %v3630_v20, 0.0  ;;  %v2493_v53 = vsel %vm6370_vm9, %v5492_v49, 0.0  ;;  %vm6371_vm6 = vcmp.ne.f32.partialorder %v6301_v45, 0.0  ;;  %v3192_v45 = vpack.c.bf16 %v3628_v55, %v5590_v60 }
 0x6bc   : > { %v3634_v40 = vpop.eup %3633  ;;  %v2489_v16 = vsel %vm6366_vm3, %v3632_v31, 0.0  ;;  %vm6376_vm3 = vcmp.ne.f32.partialorder %v6295_v33, 0.0  ;;  %v3195_v2 = vpack.c.bf16 %v3632_v31, %v3630_v20  ;;  %v6378_v33 = vpack.c.bf16 %v5363_v54, %v5361_v23  ;;  %v6389_v20 = vld [vmem:[#allocation64_spill] sm:$0xff] }
 0x6bd   : > { %2502 = vadd.xlane.f32.xlu1 %v2485_v5  ;;  %2504 = vadd.xlane.f32.xlu0 %v2486_v52  ;;  %v2490_v42 = vsel %vm6367_vm8, %v3634_v40, 0.0  ;;  %v3636_v24 = vpop.eup %3635  ;;  %vm6377_vm8 = vcmp.ne.f32.partialorder %v6310_v28, 0.0  ;;  %v6381_v28 = vld [vmem:[#allocation59_spill] sm:$0xff]  ;;  %v3183_v23 = vpack.c.bf16 %v5566_v38, %v5550_v47  ;;  %v6382_v54 = vpack.c.bf16 %v5516_v36, %v5518_v59  ;;  %v6386_v47 = vld [vmem:[#allocation62_spill] sm:$0xff] }
 0x6be   : > { %v3638_v29 = vpop.eup %3637  ;;  %v3198_v55 = vpack.c.bf16 %v3636_v24, %v3634_v40  ;;  %v3186_v59 = vpack.c.bf16 %v5580_v43, %v5573_v32  ;;  %v6388_v52 = vld [vmem:[#allocation15_spill] sm:$0xff]  ;;  %v6391_v32 = vld [vmem:[#allocation66_spill] sm:$0xff] }
 0x6bf   : > { %v3640_v58 = vpop.eup %3639  ;;  %v6393_v40 = vld [vmem:[#allocation67_spill] sm:$0xff] }
 0x6c0   : > { %v2429_v6 = vpop.xlane.xlu0 %2428  ;;  %v2495_v21 = vsel %vm6376_vm3, %v3640_v58, 0.0  ;;  %v3204_v10 = vpack.c.bf16 %v3640_v58, %v3638_v29 }
 0x6c1   : > { %2506 = vadd.xlane.f32.xlu1 %v2487_v39  ;;  %2508 = vadd.xlane.f32.xlu0 %v2488_v19  ;;  %v2448_v51 = vsub.f32 %v5430_v22, %v2429_v6  ;;  %v2491_v22 = vsel %vm6368_vm2, %v3636_v24, 0.0  ;;  %v6392_v19 = vld [vmem:[#allocation72_spill] sm:$0xff] }
 0x6c3   : > { %v2476_v12 = vmul.f32 1.442695, %v2448_v51 }
 0x6c4   : > { %v2435_v9 = vpop.xlane.xlu0 %2434 }
 0x6c5   : > { %3641 = vpow2.f32 %v2476_v12  ;;  %2510 = vadd.xlane.f32.xlu1 %v2489_v16  ;;  %2512 = vadd.xlane.f32.xlu0 %v2490_v42  ;;  %v2451_v0 = vsub.f32 %v5441_v4, %v2435_v9  ;;  %v2494_v4 = vsel %vm6371_vm6, %v3638_v29, 0.0  ;;  %v6394_v42 = vld [vmem:[#allocation73_spill] sm:$0xff] }
 0x6c6   : > { %3643 = vpow2.f32 %v2478_v37 }
 0x6c7   : > { %v2482_v41 = vmul.f32 1.442695, %v2451_v0  ;;  %v6395_v0 = vld [vmem:[#allocation68_spill] sm:$0xff] }
 0x6c8   : > { %v2102_v14 = vpop.permute.xlu0 %2101 }
 0x6c9   : > { %2514 = vadd.xlane.f32.xlu1 %v2491_v22  ;;  %2516 = vadd.xlane.f32.xlu0 %v2492_v13  ;;  %3645 = vpow2.f32 %v2482_v41  ;;  %v6396_v22 = vld [vmem:[#allocation56_spill] sm:$0xff] }
 0x6ca   : > { %3411 = vmatprep.subr.bf16.mxu1 %v2102_v14  ;;  %3647 = vrcp.f32 %v6381_v28  ;;  %v6407_v28 = vld [vmem:[#allocation9_spill] sm:$0xff] }
 0x6cb   : > { %3412 = vmatpush3.bf16.msra.mxu1 %v2102_v14  ;;  %v6397_v14 = vld [vmem:[#allocation22_spill] sm:$0xff] }
 0x6cc   : > { %v2555_v56 = vpop.permute.xlu0 %2554 }
 0x6cd   : > { %2518 = vadd.xlane.f32.xlu1 %v2493_v53  ;;  %2520 = vadd.xlane.f32.xlu0 %v2494_v4  ;;  %v6398_v4 = vld [vmem:[#allocation60_spill] sm:$0xff] }
 0x6ce   : > { %3414 = vmatmul.mubr.msk.bf16.vlgmr.msra.gmra.mrb[16].mxu1 %vm4546_vm7, %v6372_v11  ;;  %3443 = vmatprep.subr.bf16.mxu0 %v2555_v56 }
 0x6cf   : > { %v3642_v34 = vpop.eup %3641  ;;  %3417 = vmatprep.mubr.msk.bf16.mxu1 %vm4565_vm11, %v6374_v62  ;;  %3444 = vmatpush3.bf16.msra.mxu0 %v2555_v56  ;;  %v6399_v56 = vld [vmem:[#allocation20_spill] sm:$0xff] }
 0x6d0   : > { %v2496_v63 = vsel %vm835_vm1, %v3642_v34, 0.0  ;;  %v3644_v1 = vpop.eup %3643  ;;  %v6401_v62 = vld [vmem:[#allocation80_spill] sm:$0xff] }
 0x6d1   : > { %2522 = vadd.xlane.f32.xlu1 %v2495_v21  ;;  %2524 = vadd.xlane.f32.xlu0 %v2496_v63  ;;  %v2497_v46 = vsel %vm6377_vm8, %v3644_v1, 0.0  ;;  %v3207_v49 = vpack.c.bf16 %v3644_v1, %v3642_v34  ;;  %v6402_v21 = vld [vmem:[#allocation69_spill] sm:$0xff]  ;;  %v6403_v1 = vld [vmem:[#allocation63_spill] sm:$0xff] }
 0x6d2   : > { %3446 = vmatmul.mubr.msk.bf16.vlgmr.msra.gmra.mrb[32].mxu0 %vm4546_vm7, %v3192_v45 }
 0x6d3   : > { %3449 = vmatprep.mubr.msk.bf16.mxu0 %vm4565_vm11, %v3195_v2  ;;  %v3646_v7 = vpop.eup %3645  ;;  %v6404_v2 = vld [vmem:[#allocation79_spill] sm:$0xff] }
 0x6d4   : > { %v2499_v61 = vsel %vm838_vm5, %v3646_v7, 0.0  ;;  %v3648_v5 = vpop.eup %3647 }
 0x6d5   : > { %2526 = vadd.xlane.f32.xlu1 %v2497_v46 }
 0x6d6   : > { %3418 = vmatmul.mubr.msk.bf16.gmra.mrb[20].mxu1 %vm4582_vm4, %v6378_v33  ;;  %v6405_v33 = vld [vmem:[#allocation21_spill] sm:$0xff] }
 0x6d7   : > { %3421 = vmatprep.mubr.msk.bf16.mxu1 %vm4598_vm15, %v3177_v17  ;;  %v6385_v17 = vld [vmem:[#allocation58_spill] sm:$0xff] }
 0x6d8   : > { %3649 = vrcp.f32 %v6385_v17 }
 0x6d9   : > { %2530 = vadd.xlane.f32.xlu1 %v2499_v61  ;;  %3651 = vrcp.f32 %v6386_v47  ;;  %v6406_v61 = vld [vmem:[#allocation65_spill] sm:$0xff] }
 0x6da   : > { %3450 = vmatmul.mubr.msk.bf16.gmra.mrb[36].mxu0 %vm4582_vm4, %v3198_v55  ;;  %vm6427_vm4 = vcmask 261120  }
 0x6db   : > { %3453 = vmatprep.mubr.msk.bf16.mxu0 %vm4598_vm15, %v3201_v57  ;;  %vm2919_vm15 = vcmask 195584   ;;  %vm6433_vm5 = vmmov %vm6427_vm4 }
 0x6dc   : > { %vm6436_vm1 = vmmov %vm6427_vm4 }
 0x6dd   : > { %vm6439_vm7 = vmmov %vm6436_vm1 }
 0x6de   : > { %3422 = vmatmul.mubr.msk.bf16.gmra.mrb[24].mxu1 %vm4614_vm13, %v6382_v54  ;;  %vm6442_vm11 = vmmov %vm6436_vm1 }
 0x6df   : > { %3425 = vmatprep.mubr.msk.bf16.mxu1 %vm4642_vm14, %v3183_v23  ;;  %vm6446_vm2 = vmmov %vm6436_vm1 }
 0x6e0   : > { %vm6448_vm0 = vmmov %vm6436_vm1 }
 0x6e1   : > { %v2433_v30 = vpop.xlane.xlu1 %2432  ;;  %vm6450_vm9 = vmmov %vm6448_vm0 }
 0x6e2   : > { %v2450_v57 = vsub.f32 %v5466_v3, %v2433_v30  ;;  %3454 = vmatmul.mubr.msk.bf16.gmra.mrb[40].mxu0 %vm4614_vm13, %v3204_v10  ;;  %v1772_v3 = vmul.f32 %v3648_v5, %v6388_v52  ;;  %v3650_v25 = vpop.eup %3649  ;;  %v6409_v30 = vld [vmem:[#allocation19_spill] sm:$0xff]  ;;  %vm2902_vm13 = vcmask 130048   ;;  %vm6452_vm6 = vmmov %vm6448_vm0 }
 0x6e3   : > { %3457 = vmatprep.mubr.msk.bf16.mxu0 %vm4642_vm14, %v3207_v49  ;;  %v1773_v48 = vmul.f32 %v3650_v25, %v6390_v26  ;;  %v3652_v43 = vpop.eup %3651  ;;  %vm6430_vm14 = vmmov %vm6427_vm4 }
 0x6e4   : > { %v2480_v36 = vmul.f32 1.442695, %v2450_v57  ;;  %v1774_v6 = vmul.f32 %v3652_v43, %v6392_v19  ;;  %vm6454_vm3 = vmmov %vm6448_vm0 }
 0x6e5   : > { %v1609_v38 = vpop.xlane.xlu1 %1608  ;;  %vm6456_vm8 = vmmov %vm6448_vm0 }
 0x6e6   : > { %3653 = vpow2.f32 %v2480_v36  ;;  %3426 = vmatmul.mubr.msk.bf16.gmra.mrb[28].mxu1 %vm4667_vm10, %v3186_v59  ;;  %v6410_v59 = vld [vmem:[#allocation76_spill] sm:$0xff] }
 0x6e7   : > { %3655 = vrcp.f32 %v6389_v20 }
 0x6e8   : > { %3657 = vrcp.f32 %v6391_v32 }
 0x6e9   : > { %v1613_v31 = vpop.xlane.xlu1 %1612  ;;  %3659 = vrcp.f32 %v6393_v40 }
 0x6ea   : > { %2711 = vrot.lane.b32.xlu1 %v1772_v3, %s3844_s11  ;;  %3661 = vrcp.f32 %v1609_v38 }
 0x6eb   : > { %3663 = vrcp.f32 %v1613_v31 }
 0x6ec   : > { %3665 = vrcp.f32 %v6396_v22 }
 0x6ed   : > { %v1615_v12 = vpop.xlane.xlu1 %1614 }
 0x6ee   : > { %2713 = vrot.lane.b32.xlu1 %v1773_v48, %s3844_s11 }
 0x6f0   : > { %v3654_v39 = vpop.eup %3653 }
 0x6f1   : > { %v2498_v51 = vsel %vm837_vm12, %v3654_v39, 0.0  ;;  %v3210_v37 = vpack.c.bf16 %v3646_v7, %v3654_v39  ;;  %v3656_v16 = vpop.eup %3655  ;;  %v1617_v35 = vpop.xlane.xlu1 %1616  ;;  %vm2885_vm12 = vcmask 64512  }
 0x6f2   : > { %2528 = vadd.xlane.f32.xlu0 %v2498_v51  ;;  %2715 = vrot.lane.b32.xlu1 %v1774_v6, %s3844_s11  ;;  %v1776_v9 = vmul.f32 %v3656_v16, %v6394_v42  ;;  %v3658_v24 = vpop.eup %3657  ;;  %3667 = vrcp.f32 %v1617_v35  ;;  %v6412_v51 = vld [vmem:[#allocation46_spill] sm:$0xff] }
 0x6f3   : > { %3458 = vmatmul.mubr.msk.bf16.gmra.mrb[44].mxu0 %vm4667_vm10, %v3210_v37  ;;  %v1778_v41 = vmul.f32 %v3658_v24, %v6395_v0  ;;  %v3660_v13 = vpop.eup %3659  ;;  %3669 = vrcp.f32 %v6398_v4  ;;  %v6414_v24 = vld [vmem:[#allocation33_spill] sm:$0xff]  ;;  %vm6444_vm10 = vmmov %vm6436_vm1 }
 0x6f4   : > { %v1780_v29 = vmul.f32 %v3660_v13, %v6397_v14  ;;  %v3662_v53 = vpop.eup %3661  ;;  %3671 = vrcp.f32 %v6400_v50  ;;  %v6415_v13 = vld [vmem:[#allocation30_spill] sm:$0xff] }
 0x6f5   : > { %v1782_v58 = vmul.f32 %v3662_v53, %v6399_v56  ;;  %v3664_v11 = vpop.eup %3663  ;;  %3673 = vrcp.f32 %v6403_v1  ;;  %v2048_v10 = vpop.xlane.xlu1 %2047 }
 0x6f6   : > { %2719 = vrot.lane.b32.xlu1 %v1776_v9, %s3844_s11  ;;  %v3666_v34 = vpop.eup %3665  ;;  %v1784_v44 = vmul.f32 %v3664_v11, %v6401_v62  ;;  %3675 = vrcp.f32 %v6406_v61 }
 0x6f7   : > { %v1771_v63 = vmul.f32 %v3666_v34, %v6402_v21 }
 0x6f9   : > { %v2050_v36 = vpop.xlane.xlu1 %2049 }
 0x6fa   : > { %2723 = vrot.lane.b32.xlu1 %v1778_v41, %s3844_s11 }
 0x6fc   : > { %v3668_v45 = vpop.eup %3667 }
 0x6fd   : > { %v1786_v46 = vmul.f32 %v3668_v45, %v6404_v2  ;;  %v3670_v7 = vpop.eup %3669  ;;  %v2052_v52 = vpop.xlane.xlu1 %2051 }
 0x6fe   : > { %2727 = vrot.lane.b32.xlu1 %v1780_v29, %s3844_s11  ;;  %v1775_v8 = vmul.f32 %v3670_v7, %v6405_v33  ;;  %v1611_v60 = vpop.xlane.xlu0 %1610  ;;  %v3672_v55 = vpop.eup %3671 }
 0x6ff   : > { %3677 = vrcp.f32 %v1611_v60  ;;  %v1777_v23 = vmul.f32 %v3672_v55, %v6407_v28  ;;  %v3674_v54 = vpop.eup %3673 }
 0x700   : > { %3679 = vrcp.f32 %v1615_v12  ;;  %v1779_v18 = vmul.f32 %v3674_v54, %v6408_v27  ;;  %v3676_v17 = vpop.eup %3675  ;;  %v6413_v12 = vld [vmem:[#allocation7_spill] sm:$0xff] }
 0x701   : > { %v1781_v49 = vmul.f32 %v3676_v17, %v6409_v30  ;;  %v2054_v3 = vpop.xlane.xlu1 %2053  ;;  %3681 = vrcp.f32 %v6412_v51 }
 0x702   : > { %2731 = vrot.lane.b32.xlu1 %v1782_v58, %s3844_s11  ;;  %3683 = vrcp.f32 %v6413_v12  ;;  %v2056_v4 = vpop.xlane.xlu0 %2055 }
 0x703   : > { %3685 = vrcp.f32 %v2048_v10 }
 0x704   : > { %3687 = vrcp.f32 %v2050_v36 }
 0x705   : > { %v2058_v20 = vpop.xlane.xlu1 %2057  ;;  %3689 = vrcp.f32 %v2052_v52 }
 0x706   : > { %2735 = vrot.lane.b32.xlu1 %v1784_v44, %s3844_s11  ;;  %v2060_v56 = vpop.xlane.xlu0 %2059  ;;  %3691 = vrcp.f32 %v2054_v3 }
 0x707   : > { %3693 = vrcp.f32 %v2056_v4 }
 0x708   : > { %2709 = vrot.lane.b32.xlu0 %v1771_v63, %s3844_s11  ;;  %3695 = vrcp.f32 %v2058_v20 }
 0x709   : > { %v3678_v57 = vpop.eup %3677  ;;  %v2062_v25 = vpop.xlane.xlu1 %2061  ;;  %3697 = vrcp.f32 %v2060_v56 }
 0x70a   : > { %2739 = vrot.lane.b32.xlu1 %v1786_v46, %s3844_s11  ;;  %v1783_v47 = vmul.f32 %v3678_v57, %v6410_v59  ;;  %v3680_v38 = vpop.eup %3679  ;;  %v2064_v58 = vpop.xlane.xlu0 %2063  ;;  %3699 = vrcp.f32 %v2062_v25 }
 0x70b   : > { %v1785_v5 = vmul.f32 %v3680_v38, %v6411_v15  ;;  %v3682_v42 = vpop.eup %3681  ;;  %3701 = vrcp.f32 %v2064_v58 }
 0x70c   : > { %2717 = vrot.lane.b32.xlu0 %v1775_v8, %s3844_s11  ;;  %v1311_v0 = vmul.f32 %v3682_v42, %v6414_v24  ;;  %v3684_v41 = vpop.eup %3683 }
 0x70d   : > { %v2066_v26 = vpop.xlane.xlu1 %2065  ;;  %v1312_v14 = vmul.f32 %v3684_v41, %v6415_v13  ;;  %v3686_v62 = vpop.eup %3685 }
 0x70e   : > { %v2068_v11 = vpop.xlane.xlu0 %2067  ;;  %v3688_v1 = vpop.eup %3687  ;;  %3703 = vrcp.f32 %v2066_v26 }
 0x70f   : > { %v3690_v33 = vpop.eup %3689  ;;  %3705 = vrcp.f32 %v2068_v11 }
 0x710   : > { %2721 = vrot.lane.b32.xlu0 %v1777_v23, %s3844_s11  ;;  %v3692_v55 = vpop.eup %3691 }
 0x711   : > { %v5726_v48 = vpop.xlane.xlu1 %2069 }
 0x712   : > { %3707 = vrcp.f32 %v5726_v48 }
 0x714   : > { %2725 = vrot.lane.b32.xlu0 %v1779_v18, %s3844_s11  ;;  %v3694_v18 = vpop.eup %3693 }
 0x718   : > { %2729 = vrot.lane.b32.xlu0 %v1781_v49, %s3844_s11  ;;  %v3696_v49 = vpop.eup %3695 }
 0x71c   : > { %2733 = vrot.lane.b32.xlu0 %v1783_v47, %s3844_s11  ;;  %v3698_v47 = vpop.eup %3697 }
 0x71d   : > { %v3700_v3 = vpop.eup %3699 }
 0x71e   : > { %v3702_v51 = vpop.eup %3701 }
 0x71f   : > { %v3704_v24 = vpop.eup %3703 }
 0x720   : > { %2737 = vrot.lane.b32.xlu0 %v1785_v5, %s3844_s11 }
 0x729   : > { %v2072_v50 = vpop.xlane.xlu0 %2071 }
 0x72a   : > { %3709 = vrcp.f32 %v2072_v50 }
 0x73e   : > { %v5728_v31 = vpop.xlane.xlu1 %2073 }
 0x73f   : > { %3711 = vrcp.f32 %v5728_v31 }
 0x742   : > { %v2076_v45 = vpop.xlane.xlu0 %2075 }
 0x743   : > { %3713 = vrcp.f32 %v2076_v45 }
 0x746   : > { %v5730_v32 = vpop.xlane.xlu1 %2077  ;;  %v2501_v23 = vpop.xlane.xlu0 %2500 }
 0x747   : > { %3715 = vrcp.f32 %v5730_v32 }
 0x748   : > { %3717 = vrcp.f32 %v2501_v23 }
 0x74a   : > { %v5732_v43 = vpop.xlane.xlu1 %2502  ;;  %v2505_v15 = vpop.xlane.xlu0 %2504 }
 0x74b   : > { %3719 = vrcp.f32 %v5732_v43 }
 0x74c   : > { %3721 = vrcp.f32 %v2505_v15 }
 0x74e   : > { %v5734_v39 = vpop.xlane.xlu1 %2506  ;;  %v2509_v41 = vpop.xlane.xlu0 %2508 }
 0x74f   : > { %3723 = vrcp.f32 %v5734_v39 }
 0x750   : > { %3725 = vrcp.f32 %v2509_v41 }
 0x752   : > { %v5736_v19 = vpop.xlane.xlu1 %2510  ;;  %v2513_v32 = vpop.xlane.xlu0 %2512 }
 0x753   : > { %3727 = vrcp.f32 %v5736_v19 }
 0x754   : > { %3729 = vrcp.f32 %v2513_v32 }
 0x756   : > { %v5738_v6 = vpop.xlane.xlu1 %2514  ;;  %v2517_v43 = vpop.xlane.xlu0 %2516 }
 0x757   : > { %3731 = vrcp.f32 %v5738_v6 }
 0x758   : > { %3733 = vrcp.f32 %v2517_v43 }
 0x75a   : > { %v5740_v40 = vpop.xlane.xlu1 %2518 }
 0x75b   : > { %3735 = vrcp.f32 %v5740_v40 }
 0x75e   : > { %v5743_v37 = vpop.xlane.xlu1 %2522 }
 0x762   : > { %v5746_v16 = vpop.xlane.xlu1 %2526 }
 0x766   : > { %v5748_v9 = vpop.xlane.xlu1 %2530 }
 0x76a   : > { %v2712_v35 = vpop.permute.xlu1 %2711 }
 0x76b   : > { %v5752_v22 = vsel %vm2885_vm12, %v1311_v0, %v2712_v35 }
 0x76e   : > { %v2714_v29 = vpop.permute.xlu1 %2713 }
 0x76f   : > { %v5756_v53 = vsel %vm2885_vm12, %v1312_v14, %v2714_v29  ;;  %v3706_v14 = vpop.eup %3705 }
 0x770   : > { %v3708_v56 = vpop.eup %3707 }
 0x7a1   : > { %v3415_v34 = vpop.f32.mrb[16].mxu1 }
 0x7a2   : > { %v2145_v44 = vpop.f32.mrb[17].mxu1  ;;  %v2226_v60 = vmul.f32 %v3690_v33, %v3415_v34  ;;  %v3710_v34 = vpop.eup %3709 }
 0x7a3   : > { %v2224_v21 = vmul.f32 %v3686_v62, %v2145_v44  ;;  %v3416_v63 = vpop.f32.mrb[18].mxu1 }
 0x7a4   : > { %v2148_v2 = vpop.f32.mrb[19].mxu1  ;;  %v2227_v54 = vmul.f32 %v3692_v55, %v3416_v63 }
 0x7a5   : > { %v2225_v46 = vmul.f32 %v3688_v1, %v2148_v2  ;;  %v5758_v7 = vpop.f32.mrb[32].mxu0  ;;  %2773 = vrot.lane.b32.xlu0 %v2224_v21, %s3845_s12  ;;  %v3712_v21 = vpop.eup %3711 }
 0x7a6   : > { %v5761_v8 = vpop.f32.mrb[33].mxu0  ;;  %v3714_v2 = vpop.eup %3713 }
 0x7a7   : > { %v5763_v61 = vpop.f32.mrb[34].mxu0  ;;  %2775 = vrot.lane.b32.xlu1 %v2225_v46, %s3845_s12  ;;  %v3716_v33 = vpop.eup %3715 }
 0x7a8   : > { %v5766_v28 = vpop.f32.mrb[35].mxu0  ;;  %v3718_v55 = vpop.eup %3717 }
 0x7a9   : > { %2777 = vrot.lane.b32.xlu0 %v2226_v60, %s3845_s12  ;;  %v3419_v27 = vpop.f32.mrb[20].mxu1  ;;  %v2677_v23 = vmul.f32 %v3718_v55, %v5761_v8 }
 0x7aa   : > { %v2161_v10 = vpop.f32.mrb[21].mxu1  ;;  %v2230_v5 = vmul.f32 %v3698_v47, %v3419_v27 }
 0x7ab   : > { %v2228_v17 = vmul.f32 %v3694_v18, %v2161_v10  ;;  %2779 = vrot.lane.b32.xlu1 %v2227_v54, %s3845_s12  ;;  %v3420_v30 = vpop.f32.mrb[22].mxu1  ;;  %v3720_v54 = vpop.eup %3719 }
 0x7ac   : > { %v2164_v57 = vpop.f32.mrb[23].mxu1  ;;  %v2231_v25 = vmul.f32 %v3700_v3, %v3420_v30  ;;  %v2678_v39 = vmul.f32 %v3720_v54, %v5766_v28  ;;  %v3722_v27 = vpop.eup %3721 }
 0x7ad   : > { %v2229_v36 = vmul.f32 %v3696_v49, %v2164_v57  ;;  %v5770_v59 = vpop.f32.mrb[36].mxu0  ;;  %2781 = vrot.lane.b32.xlu0 %v2228_v17, %s3845_s12  ;;  %v2521_v10 = vpop.xlane.xlu0 %2520  ;;  %v2679_v17 = vmul.f32 %v3722_v27, %v5758_v7 }
 0x7ae   : > { %v5774_v38 = vpop.f32.mrb[37].mxu0  ;;  %v3724_v19 = vpop.eup %3723  ;;  %3737 = vrcp.f32 %v2521_v10 }
 0x7af   : > { %v5776_v52 = vpop.f32.mrb[38].mxu0  ;;  %2783 = vrot.lane.b32.xlu1 %v2229_v36, %s3845_s12  ;;  %v2680_v49 = vmul.f32 %v3724_v19, %v5763_v61  ;;  %v3726_v28 = vpop.eup %3725  ;;  %3739 = vrcp.f32 %v5743_v37 }
 0x7b0   : > { %v5779_v20 = vpop.f32.mrb[39].mxu0  ;;  %v2681_v6 = vmul.f32 %v3726_v28, %v5774_v38  ;;  %v3728_v36 = vpop.eup %3727 }
 0x7b1   : > { %2785 = vrot.lane.b32.xlu0 %v2230_v5, %s3845_s12  ;;  %v3423_v26 = vpop.f32.mrb[24].mxu1  ;;  %v2525_v7 = vpop.xlane.xlu0 %2524  ;;  %v2682_v47 = vmul.f32 %v3728_v36, %v5779_v20 }
 0x7b2   : > { %v2177_v48 = vpop.f32.mrb[25].mxu1  ;;  %v2234_v31 = vmul.f32 %v3706_v14, %v3423_v26  ;;  %v3730_v15 = vpop.eup %3729  ;;  %3741 = vrcp.f32 %v2525_v7 }
 0x7b3   : > { %v2232_v12 = vmul.f32 %v3702_v51, %v2177_v48  ;;  %2787 = vrot.lane.b32.xlu1 %v2231_v25, %s3845_s12  ;;  %v3424_v42 = vpop.f32.mrb[26].mxu1  ;;  %v2683_v61 = vmul.f32 %v3730_v15, %v5770_v59  ;;  %v3732_v5 = vpop.eup %3731  ;;  %3743 = vrcp.f32 %v5746_v16 }
 0x7b4   : > { %v2180_v0 = vpop.f32.mrb[27].mxu1  ;;  %v2235_v11 = vmul.f32 %v3708_v56, %v3424_v42  ;;  %v2684_v38 = vmul.f32 %v3732_v5, %v5776_v52  ;;  %v3734_v3 = vpop.eup %3733 }
 0x7b5   : > { %v2233_v35 = vmul.f32 %v3704_v24, %v2180_v0  ;;  %v5784_v13 = vpop.f32.mrb[40].mxu0  ;;  %2789 = vrot.lane.b32.xlu0 %v2232_v12, %s3845_s12  ;;  %v2529_v40 = vpop.xlane.xlu0 %2528 }
 0x7b6   : > { %v5788_v29 = vpop.f32.mrb[41].mxu0  ;;  %v3736_v25 = vpop.eup %3735  ;;  %3745 = vrcp.f32 %v2529_v40 }
 0x7b7   : > { %v5790_v4 = vpop.f32.mrb[42].mxu0  ;;  %2791 = vrot.lane.b32.xlu1 %v2233_v35, %s3845_s12  ;;  %v2685_v20 = vmul.f32 %v3734_v3, %v5788_v29  ;;  %3747 = vrcp.f32 %v5748_v9  ;;  %v2938_v3 = vld [vmem:[%s3903_s27 + $0x8] sm:$0xff] }
 0x7b8   : > { %v5793_v58 = vpop.f32.mrb[43].mxu0  ;;  %v3738_v59 = vpop.eup %3737 }
 0x7b9   : > { %2793 = vrot.lane.b32.xlu0 %v2234_v31, %s3845_s12  ;;  %v3427_v50 = vpop.f32.mrb[28].mxu1  ;;  %v2686_v37 = vmul.f32 %v3736_v25, %v5793_v58  ;;  %v2687_v52 = vmul.f32 %v3738_v59, %v5784_v13  ;;  %v3740_v26 = vpop.eup %3739  ;;  %v6424_v25 = vld [vmem:[#allocation54_spill] sm:$0xff] }
 0x7ba   : > { %v2193_v62 = vpop.f32.mrb[29].mxu1  ;;  %v2238_v46 = vmul.f32 %v3714_v2, %v3427_v50  ;;  %v2688_v16 = vmul.f32 %v3740_v26, %v5790_v4  ;;  %v2710_v35 = vpop.permute.xlu0 %2709  ;;  %v6425_v26 = vld [vmem:[#allocation32_spill] sm:$0xff] }
 0x7bb   : > { %v2236_v44 = vmul.f32 %v3710_v34, %v2193_v62  ;;  %2795 = vrot.lane.b32.xlu1 %v2235_v11, %s3845_s12  ;;  %v3428_v45 = vpop.f32.mrb[30].mxu1  ;;  %v5837_v13 = vpop.permute.xlu1 %2715 }
 0x7bc   : > { %v2196_v63 = vpop.f32.mrb[31].mxu1  ;;  %v2239_v60 = vmul.f32 %v3716_v33, %v3428_v45  ;;  %v3742_v51 = vpop.eup %3741 }
 0x7bd   : > { %v2237_v1 = vmul.f32 %v3712_v21, %v2196_v63  ;;  %2797 = vrot.lane.b32.xlu0 %v2236_v44, %s3845_s12  ;;  %v3744_v12 = vpop.eup %3743 }
 0x7be   : > { %v5839_v14 = vpop.permute.xlu0 %2717 }
 0x7bf   : > { %2799 = vrot.lane.b32.xlu1 %v2237_v1, %s3845_s12  ;;  %v5841_v29 = vpop.permute.xlu1 %2719 }
 0x7c0   : > { %v3746_v24 = vpop.eup %3745 }
 0x7c1   : > { %2801 = vrot.lane.b32.xlu0 %v2238_v46, %s3845_s12  ;;  %v3748_v9 = vpop.eup %3747 }
 0x7c2   : > { %v5843_v31 = vpop.permute.xlu0 %2721 }
 0x7c3   : > { %2803 = vrot.lane.b32.xlu1 %v2239_v60, %s3845_s12  ;;  %v5845_v4 = vpop.permute.xlu1 %2723  ;;  %v6416_v60 = vld [vmem:[#allocation5_spill] sm:$0xff] }
 0x7c4   : > { %3749 = vrcp.f32 %v6416_v60 }
 0x7c5   : > { %2837 = vrot.lane.b32.xlu0 %v2677_v23, %s3846_s16 }
 0x7c6   : > { %v3459_v18 = vpop.f32.mrb[44].mxu0  ;;  %v5847_v56 = vpop.permute.xlu0 %2725 }
 0x7c7   : > { %v2646_v30 = vpop.f32.mrb[45].mxu0  ;;  %2839 = vrot.lane.b32.xlu1 %v2678_v39, %s3846_s16  ;;  %v2691_v0 = vmul.f32 %v3746_v24, %v3459_v18  ;;  %v5849_v58 = vpop.permute.xlu1 %2727  ;;  %v6417_v39 = vld [vmem:[#allocation48_spill] sm:$0xff]  ;;  %v6418_v18 = vld [vmem:[#allocation47_spill] sm:$0xff] }
 0x7c8   : > { %v3460_v8 = vpop.f32.mrb[46].mxu0  ;;  %v2689_v48 = vmul.f32 %v3742_v51, %v2646_v30  ;;  %3751 = vrcp.f32 %v6417_v39  ;;  %v6419_v30 = vld [vmem:[#allocation50_spill] sm:$0xff]  ;;  %v6429_v39 = vld [vmem:[#allocation55_spill] sm:$0xff] }
 0x7c9   : > { %v2649_v57 = vpop.f32.mrb[47].mxu0  ;;  %2841 = vrot.lane.b32.xlu0 %v2679_v17, %s3846_s16  ;;  %v2692_v41 = vmul.f32 %v3748_v9, %v3460_v8  ;;  %3753 = vrcp.f32 %v6418_v18  ;;  %v6420_v8 = vld [vmem:[#allocation49_spill] sm:$0xff] }
 0x7ca   : > { %v2690_v42 = vmul.f32 %v3744_v12, %v2649_v57  ;;  %v5851_v11 = vpop.permute.xlu0 %2729  ;;  %3755 = vrcp.f32 %v6419_v30  ;;  %v6421_v57 = vld [vmem:[#allocation31_spill] sm:$0xff] }
 0x7cb   : > { %2843 = vrot.lane.b32.xlu1 %v2680_v49, %s3846_s16  ;;  %v5853_v50 = vpop.permute.xlu1 %2731  ;;  %3757 = vrcp.f32 %v6420_v8 }
 0x7cd   : > { %2845 = vrot.lane.b32.xlu0 %v2681_v6, %s3846_s16  ;;  %v6422_v6 = vld [vmem:[#allocation52_spill] sm:$0xff] }
 0x7ce   : > { %v5855_v34 = vpop.permute.xlu0 %2733  ;;  %v3750_v17 = vpop.eup %3749  ;;  %3759 = vrcp.f32 %v6422_v6  ;;  %v6432_v6 = vld [vmem:[#allocation4_spill] sm:$0xff] }
 0x7cf   : > { %2847 = vrot.lane.b32.xlu1 %v2682_v47, %s3846_s16  ;;  %v5857_v62 = vpop.permute.xlu1 %2735  ;;  %v1310_v28 = vmul.f32 %v3750_v17, %v6421_v57  ;;  %v2937_v47 = vld [vmem:[%s3903_s27] sm:$0xff]  ;;  %v6431_v17 = vld [vmem:[#allocation37_spill] sm:$0xff] }
 0x7d0   : > { %v2941_v57 = vld [vmem:[%s3903_s27 + $0x20] sm:$0xff] }
 0x7d1   : > { %2849 = vrot.lane.b32.xlu0 %v2683_v61, %s3846_s16  ;;  %v2886_v7 = vsel %vm2885_vm12, %v1310_v28, %v2710_v35  ;;  %v6423_v61 = vld [vmem:[#allocation51_spill] sm:$0xff] }
 0x7d2   : > { %v5859_v32 = vpop.permute.xlu0 %2737  ;;  %v3752_v15 = vpop.eup %3751  ;;  %3761 = vrcp.f32 %v6423_v61  ;;  %v6434_v61 = vld [vmem:[#allocation34_spill] sm:$0xff] }
 0x7d3   : > { %2851 = vrot.lane.b32.xlu1 %v2684_v38, %s3846_s16  ;;  %v5861_v44 = vpop.permute.xlu1 %2739  ;;  %3763 = vrcp.f32 %v6424_v25 }
 0x7d5   : > { %2853 = vrot.lane.b32.xlu0 %v2685_v20, %s3846_s16  ;;  %v3754_v20 = vpop.eup %3753 }
 0x7d6   : > { %v3756_v12 = vpop.eup %3755 }
 0x7d7   : > { %2855 = vrot.lane.b32.xlu1 %v2686_v37, %s3846_s16  ;;  %v3758_v60 = vpop.eup %3757  ;;  %v1315_v30 = vmul.f32 %v3756_v12, %v6431_v17 }
 0x7d8   : > { %v3760_v28 = vpop.eup %3759 }
 0x7d9   : > { %2857 = vrot.lane.b32.xlu0 %v2687_v52, %s3846_s16 }
 0x7db   : > { %2859 = vrot.lane.b32.xlu1 %v2688_v16, %s3846_s16  ;;  %v1313_v16 = vmul.f32 %v3752_v15, %v6425_v26  ;;  %v2891_v15 = vsel %vm2885_vm12, %v1315_v30, %v5841_v29  ;;  %v2943_v26 = vld [vmem:[%s3903_s27 + $0x30] sm:$0xff] }
 0x7dd   : > { %2861 = vrot.lane.b32.xlu0 %v2689_v48, %s3846_s16  ;;  %v2939_v48 = vld [vmem:[%s3903_s27 + $0x10] sm:$0xff] }
 0x7df   : > { %2863 = vrot.lane.b32.xlu1 %v2690_v42, %s3846_s16  ;;  %v6426_v42 = vld [vmem:[#allocation53_spill] sm:$0xff] }
 0x7e0   : > { %3765 = vrcp.f32 %v6426_v42 }
 0x7e1   : > { %2865 = vrot.lane.b32.xlu0 %v2691_v0, %s3846_s16  ;;  %3767 = vrcp.f32 %v6429_v39 }
 0x7e2   : > { %3769 = vrcp.f32 %v6432_v6 }
 0x7e3   : > { %2867 = vrot.lane.b32.xlu1 %v2692_v41, %s3846_s16  ;;  %v6428_v41 = vld [vmem:[#allocation35_spill] sm:$0xff] }
 0x7e4   : > { %v1314_v35 = vmul.f32 %v3754_v20, %v6428_v41  ;;  %v6441_v41 = vld [vmem:[#allocation57_spill] sm:$0xff] }
 0x817   : > { %v2774_v45 = vpop.permute.xlu0 %2773 }
 0x818   : > { %v2903_v5 = vsel %vm2902_vm13, %v2886_v7, %v2774_v45 }
 0x819   : > { %v2776_v21 = vpop.permute.xlu1 %2775 }
 0x81a   : > { %v2904_v37 = vsel %vm2902_vm13, %v5752_v22, %v2776_v21  ;;  %v2889_v22 = vsel %vm2885_vm12, %v1313_v16, %v5837_v13  ;;  %v2940_v21 = vld [vmem:[%s3903_s27 + $0x18] sm:$0xff]  ;;  %v2890_v13 = vsel %vm2885_vm12, %v1314_v35, %v5839_v14 }
 0x81b   : > { %v2778_v63 = vpop.permute.xlu0 %2777 }
 0x81c   : > { %v2905_v24 = vsel %vm2902_vm13, %v5756_v53, %v2778_v63 }
 0x81d   : > { %v2780_v1 = vpop.permute.xlu1 %2779 }
 0x81e   : > { %v2906_v18 = vsel %vm2902_vm13, %v2889_v22, %v2780_v1 }
 0x81f   : > { %v2782_v2 = vpop.permute.xlu0 %2781 }
 0x820   : > { %v2907_v7 = vsel %vm2902_vm13, %v2890_v13, %v2782_v2  ;;  %v6445_v13 = vld [vmem:[#allocation38_spill] sm:$0xff] }
 0x821   : > { %v5863_v46 = vpop.permute.xlu1 %2783 }
 0x822   : > { %v2908_v2 = vsel %vm2902_vm13, %v2891_v15, %v5863_v46 }
 0x823   : > { %v5865_v33 = vpop.permute.xlu0 %2785 }
 0x825   : > { %v5867_v43 = vpop.permute.xlu1 %2787 }
 0x827   : > { %v5870_v55 = vpop.permute.xlu0 %2789 }
 0x829   : > { %v5872_v23 = vpop.permute.xlu1 %2791 }
 0x82b   : > { %v5874_v54 = vpop.permute.xlu0 %2793 }
 0x82d   : > { %v5877_v27 = vpop.permute.xlu1 %2795 }
 0x82f   : > { %v5880_v10 = vpop.permute.xlu0 %2797 }
 0x831   : > { %v5883_v19 = vpop.permute.xlu1 %2799 }
 0x833   : > { %v5886_v49 = vpop.permute.xlu0 %2801 }
 0x835   : > { %v5890_v36 = vpop.permute.xlu1 %2803 }
 0x837   : > { %v2838_v40 = vpop.permute.xlu0 %2837 }
 0x838   : > { %v2920_v38 = vsel %vm2919_vm15, %v2903_v5, %v2838_v40  ;;  %v1316_v5 = vmul.f32 %v3758_v60, %v6434_v61  ;;  %v2942_v40 = vld [vmem:[%s3903_s27 + $0x28] sm:$0xff]  ;;  %v2947_v61 = vld [vmem:[%s3903_s27 + $0x50] sm:$0xff] }
 0x839   : > { %v2953_v59 = vadd.f32 %v2937_v47, %v2920_v38  ;;  %v2840_v52 = vpop.permute.xlu1 %2839  ;;  %v3762_v38 = vpop.eup %3761 }
 0x83a   : > { %v2921_v51 = vsel %vm2919_vm15, %v2904_v37, %v2840_v52  ;;  %v6437_v37 = vld [vmem:[#allocation36_spill] sm:$0xff]  ;;  %v2892_v29 = vsel %vm2885_vm12, %v1316_v5, %v5843_v31  ;;  %v3764_v16 = vpop.eup %3763 }
 0x83b   : > { %2970 = vst.msk [vmem:[%s5900_s19] sm:$0xff] %vm6427_vm4, %v2953_v59  ;;  %v2954_v0 = vadd.f32 %v2938_v3, %v2921_v51  ;;  %v2842_v9 = vpop.permute.xlu0 %2841  ;;  %v6435_v3 = vld [vmem:[#allocation8_spill] sm:$0xff]  ;;  %v1317_v59 = vmul.f32 %v3760_v28, %v6437_v37  ;;  %v6438_v51 = vld [vmem:[#allocation6_spill] sm:$0xff]  ;;  %v2909_v46 = vsel %vm2902_vm13, %v2892_v29, %v5865_v33  ;;  %v3766_v22 = vpop.eup %3765  ;;  %v6451_v29 = vld [vmem:[#allocation45_spill] sm:$0xff] }
 0x83c   : > { %v2922_v45 = vsel %vm2919_vm15, %v2905_v24, %v2842_v9  ;;  %3771 = vrcp.f32 %v6435_v3  ;;  %v6440_v24 = vld [vmem:[#allocation39_spill] sm:$0xff]  ;;  %vm6457_vm4 = vmmov %vm6448_vm0 }
 0x83d   : > { %2971 = vst.msk [vmem:[%s5900_s19 + $0x8] sm:$0xff] %vm6430_vm14, %v2954_v0  ;;  %v2955_v53 = vadd.f32 %v2939_v48, %v2922_v45  ;;  %v2844_v63 = vpop.permute.xlu1 %2843  ;;  %3773 = vrcp.f32 %v6438_v51  ;;  %v2893_v42 = vsel %vm2885_vm12, %v1317_v59, %v5845_v4  ;;  %v1318_v31 = vmul.f32 %v3762_v38, %v6440_v24  ;;  %v2944_v9 = vld [vmem:[%s3903_s27 + $0x38] sm:$0xff]  ;;  %vm6458_vm14 = vmmov %vm6448_vm0 }
 0x83e   : > { %v2923_v8 = vsel %vm2919_vm15, %v2906_v18, %v2844_v63  ;;  %3775 = vrcp.f32 %v6441_v41  ;;  %v2910_v33 = vsel %vm2902_vm13, %v2893_v42, %v5867_v43  ;;  %v2945_v18 = vld [vmem:[%s3903_s27 + $0x40] sm:$0xff] }
 0x83f   : > { %2972 = vst.msk [vmem:[%s5900_s19 + $0x10] sm:$0xff] %vm6433_vm5, %v2955_v53  ;;  %v2956_v1 = vadd.f32 %v2940_v21, %v2923_v8  ;;  %v2846_v47 = vpop.permute.xlu0 %2845  ;;  %v6443_v21 = vld [vmem:[#allocation41_spill] sm:$0xff]  ;;  %v2894_v60 = vsel %vm2885_vm12, %v1318_v31, %v5847_v56  ;;  %v3768_v53 = vpop.eup %3767  ;;  %v1320_v8 = vmul.f32 %v3766_v22, %v6445_v13  ;;  %v6449_v38 = vld [vmem:[#allocation43_spill] sm:$0xff]  ;;  %v6455_v22 = vld [vmem:[#allocation44_spill] sm:$0xff] }
 0x840   : > { %v2924_v14 = vsel %vm2919_vm15, %v2907_v7, %v2846_v47  ;;  %v1319_v4 = vmul.f32 %v3764_v16, %v6443_v21  ;;  %v2911_v63 = vsel %vm2902_vm13, %v2894_v60, %v5870_v55  ;;  %v3770_v28 = vpop.eup %3769  ;;  %v2949_v16 = vld [vmem:[%s3903_s27 + $0x60] sm:$0xff]  ;;  %v2950_v31 = vld [vmem:[%s3903_s27 + $0x68] sm:$0xff]  ;;  %vm6459_vm5 = vmmov %vm6448_vm0 }
 0x841   : > { %2973 = vst.msk [vmem:[%s5900_s19 + $0x18] sm:$0xff] %vm6436_vm1, %v2956_v1  ;;  %v2957_v20 = vadd.f32 %v2941_v57, %v2924_v14  ;;  %v2848_v25 = vpop.permute.xlu1 %2847  ;;  %v2946_v57 = vld [vmem:[%s3903_s27 + $0x48] sm:$0xff]  ;;  %v1322_v3 = vmul.f32 %v3770_v28, %v6449_v38 }
 0x842   : > { %v2925_v52 = vsel %vm2919_vm15, %v2908_v2, %v2848_v25  ;;  %v2895_v30 = vsel %vm2885_vm12, %v1319_v4, %v5849_v58  ;;  %v6447_v1 = vld [vmem:[#allocation40_spill] sm:$0xff]  ;;  %v2896_v58 = vsel %vm2885_vm12, %v1320_v8, %v5851_v11 }
 0x843   : > { %2974 = vst.msk [vmem:[%s5900_s19 + $0x20] sm:$0xff] %vm6439_vm7, %v2957_v20  ;;  %v2958_v48 = vadd.f32 %v2942_v40, %v2925_v52  ;;  %v2850_v12 = vpop.permute.xlu0 %2849  ;;  %v2912_v6 = vsel %vm2902_vm13, %v2895_v30, %v5872_v23  ;;  %v1321_v47 = vmul.f32 %v3768_v53, %v6447_v1  ;;  %v2913_v14 = vsel %vm2902_vm13, %v2896_v58, %v5874_v54  ;;  %v2948_v20 = vld [vmem:[%s3903_s27 + $0x58] sm:$0xff] }
 0x844   : > { %v2926_v0 = vsel %vm2919_vm15, %v2909_v46, %v2850_v12  ;;  %v6453_v12 = vld [vmem:[#allocation42_spill] sm:$0xff] }
 0x845   : > { %2975 = vst.msk [vmem:[%s5900_s19 + $0x28] sm:$0xff] %vm6442_vm11, %v2958_v48  ;;  %v2959_v35 = vadd.f32 %v2943_v26, %v2926_v0  ;;  %v2852_v45 = vpop.permute.xlu1 %2851  ;;  %v2897_v2 = vsel %vm2885_vm12, %v1321_v47, %v5853_v50  ;;  %v2898_v26 = vsel %vm2885_vm12, %v1322_v3, %v5855_v34 }
 0x846   : > { %v2927_v39 = vsel %vm2919_vm15, %v2910_v33, %v2852_v45  ;;  %v3772_v5 = vpop.eup %3771  ;;  %v2914_v37 = vsel %vm2902_vm13, %v2897_v2, %v5877_v27  ;;  %v2915_v46 = vsel %vm2902_vm13, %v2898_v26, %v5880_v10 }
 0x847   : > { %2976 = vst.msk [vmem:[%s5900_s19 + $0x30] sm:$0xff] %vm6444_vm10, %v2959_v35  ;;  %v2960_v43 = vadd.f32 %v2944_v9, %v2927_v39  ;;  %v2854_v17 = vpop.permute.xlu0 %2853  ;;  %v3774_v25 = vpop.eup %3773  ;;  %v1323_v52 = vmul.f32 %v3772_v5, %v6451_v29  ;;  %v2951_v35 = vld [vmem:[%s3903_s27 + $0x70] sm:$0xff]  ;;  %v2952_v39 = vld [vmem:[%s3903_s27 + $0x78] sm:$0xff] }
 0x848   : > { %v2928_v56 = vsel %vm2919_vm15, %v2911_v63, %v2854_v17  ;;  %v3776_v51 = vpop.eup %3775  ;;  %v1324_v42 = vmul.f32 %v3774_v25, %v6453_v12 }
 0x849   : > { %2977 = vst.msk [vmem:[%s5900_s19 + $0x38] sm:$0xff] %vm6446_vm2, %v2960_v43  ;;  %v2961_v55 = vadd.f32 %v2945_v18, %v2928_v56  ;;  %v2856_v7 = vpop.permute.xlu1 %2855  ;;  %v2899_v24 = vsel %vm2885_vm12, %v1323_v52, %v5857_v62  ;;  %v1325_v41 = vmul.f32 %v3776_v51, %v6455_v22 }
 0x84a   : > { %v2929_v15 = vsel %vm2919_vm15, %v2912_v6, %v2856_v7  ;;  %v2916_v0 = vsel %vm2902_vm13, %v2899_v24, %v5883_v19  ;;  %v2900_v33 = vsel %vm2885_vm12, %v1324_v42, %v5859_v32 }
 0x84b   : > { %2978 = vst.msk [vmem:[%s5900_s19 + $0x40] sm:$0xff] %vm6448_vm0, %v2961_v55  ;;  %v2962_v23 = vadd.f32 %v2946_v57, %v2929_v15  ;;  %v2858_v40 = vpop.permute.xlu0 %2857  ;;  %v2917_v45 = vsel %vm2902_vm13, %v2900_v33, %v5886_v49  ;;  %v2901_v4 = vsel %vm2885_vm12, %v1325_v41, %v5861_v44 }
 0x84c   : > { %v2930_v11 = vsel %vm2919_vm15, %v2913_v14, %v2858_v40  ;;  %v2918_v32 = vsel %vm2902_vm13, %v2901_v4, %v5890_v36 }
 0x84d   : > { %2979 = vst.msk [vmem:[%s5900_s19 + $0x48] sm:$0xff] %vm6450_vm9, %v2962_v23  ;;  %v2963_v54 = vadd.f32 %v2947_v61, %v2930_v11  ;;  %v2860_v59 = vpop.permute.xlu1 %2859 }
 0x84e   : > { %v2931_v50 = vsel %vm2919_vm15, %v2914_v37, %v2860_v59 }
 0x84f   : > { %2980 = vst.msk [vmem:[%s5900_s19 + $0x50] sm:$0xff] %vm6452_vm6, %v2963_v54  ;;  %v2964_v27 = vadd.f32 %v2948_v20, %v2931_v50  ;;  %v2862_v48 = vpop.permute.xlu0 %2861 }
 0x850   : > { %v2932_v34 = vsel %vm2919_vm15, %v2915_v46, %v2862_v48 }
 0x851   : > { %2981 = vst.msk [vmem:[%s5900_s19 + $0x58] sm:$0xff] %vm6454_vm3, %v2964_v27  ;;  %v2965_v10 = vadd.f32 %v2949_v16, %v2932_v34  ;;  %v2864_v9 = vpop.permute.xlu1 %2863 }
 0x852   : > { %v2933_v62 = vsel %vm2919_vm15, %v2916_v0, %v2864_v9 }
 0x853   : > { %2982 = vst.msk [vmem:[%s5900_s19 + $0x60] sm:$0xff] %vm6456_vm8, %v2965_v10  ;;  %v2966_v19 = vadd.f32 %v2950_v31, %v2933_v62  ;;  %v2866_v21 = vpop.permute.xlu0 %2865 }
 0x854   : > { %v2934_v60 = vsel %vm2919_vm15, %v2917_v45, %v2866_v21 }
 0x855   : > { %2983 = vst.msk [vmem:[%s5900_s19 + $0x68] sm:$0xff] %vm6457_vm4, %v2966_v19  ;;  %v2967_v18 = vadd.f32 %v2951_v35, %v2934_v60  ;;  %v2868_v53 = vpop.permute.xlu1 %2867 }
 0x856   : > { %v2935_v63 = vsel %vm2919_vm15, %v2918_v32, %v2868_v53 }
 0x857   : > { %2984 = vst.msk [vmem:[%s5900_s19 + $0x70] sm:$0xff] %vm6458_vm14, %v2967_v18  ;;  %v2968_v49 = vadd.f32 %v2952_v39, %v2935_v63 }
 0x859   : > { %2985 = vst.msk [vmem:[%s5900_s19 + $0x78] sm:$0xff] %vm6459_vm5, %v2968_v49 }
 0x85a PF: > { %s13_s14 = sadd.s32 1, %s3831_s14   ;;  %s6460_s12 = smov %s3827_s13 }
 0x85b   : > { %p10_p5 = scmp.ge.s32.totalorder %s13_s14, 5   ;;  %s6461_s13 = smov %s6463_s15 }
 0x85d   :  { %12 = sbr.rel (!%p10_p5) target bundleno = 2 (0x2), region = 71 }

// kernel: gat_forward.4
= control target key start
LH: loop header
LB: loop body
LE: loop exit
PB: predicated region body
PF: predicated region fallthrough
CT: control target
= control target key end

     0   :  { %s3960_s12 = smov 0   ;;  %s3962_s13 = smov 0   ;;  %s6184_s0 = inlined_call_operand.vmem [shape: f32[3,128,32], index: 0, kind: input, shape index: {}]   ;;  %s6185_s1 = inlined_call_operand.vmem [shape: f32[32,40], index: 1, kind: input, shape index: {}]   ;;  %s6186_s2 = inlined_call_operand.vmem [shape: f32[3,128,128], index: 2, kind: input, shape index: {}]   ;;  %s6187_s3 = inlined_call_operand.vmem [shape: f32[3,128,32], index: 3, kind: output, shape index: {}]  }
   0x1   :  { %s3964_s14 = smov 0  }
   0x2 LB: > { %s25_s15 = sadd.s32 1, %s3920_s13  ;;  %p3138_p0 = scmp.ge.s32.totalorder %s3924_s14, 1  ;;  %s3924_s14 = sphi %s3964_s14, %s13_s14   ;;  %s3920_s13 = sphi %s3962_s13, %s6619_s13   ;;  %s3916_s12 = sphi %s3960_s12, %s6618_s12  }
   0x3   : > { %p27_p1 = scmp.ge.s32.totalorder %s25_s15, 3  ;;  %p168_p2 = scmp.lt.s32.totalorder %s3924_s14, 4 }
   0x5   : > { %s6621_s15 = smov (%p27_p1, %s25_s15), 0  ;;  %p169_p3 = pnand %p3138_p0, %p168_p2 }
   0x7   : > { %172 = sbr.rel (%p169_p3) target bundleno = 2123 (0x84b), region = 32 }
   0xe   : > { %v251_v0 = vld [vmem:[%s6185_s1] sm:$0xff]  ;;  %v252_v1 = vld [vmem:[%s6185_s1 + $0x8] sm:$0xff]  ;;  %v253_v2 = vld [vmem:[%s6185_s1 + $0x10] sm:$0xff]  ;;  %p205_p4 = scmp.lt.s32.totalorder %s3916_s12, 2  ;;  %vm6205_vm0 = vcmask 261120   ;;  %v6188_v22 = vmov 32  }
   0xf   : > { %v3522_v3 = vpack.c.bf16 %v252_v1, %v251_v0  ;;  %v254_v4 = vld [vmem:[%s6185_s1 + $0x18] sm:$0xff]  ;;  %3568 = vset.pattern.permute.xlu0 %v6188_v22  ;;  %vm449_vm1 = vcmask 326656   ;;  %s3927_s28 = smov 91   ;;  %s3928_s29 = smov 92  }
  0x10   : > { %v3526_v5 = vpack.c.bf16 %v254_v4, %v253_v2  ;;  %s6623_s12 = smov (!%p205_p4, %s3916_s12), 2  ;;  %s3929_s30 = smov 89  }
  0x11   : > { %3523 = vmatprep.subr.bf16.mxu0 %v3522_v3  ;;  %s3990_s24 = sshll.u32 %s6623_s12, 7  ;;  %s3930_s4 = smov 90  }
  0x12   : > { %3525 = vmatpush3.bf16.msra.mxu0 %v3522_v3  ;;  %s3996_s27 = scalar_lea.vmem %s6184_s0, %s3990_s24  ;;  %s4394_s7 = scalar_lea.vmem %s6186_s2, %s3990_s24 }
  0x13   : > { %3527 = vmatprep.subr.bf16.mxu0 %v3526_v5  ;;  %v235_v6 = vld [vmem:[%s3996_s27] sm:$0xff]  ;;  %v236_v7 = vld [vmem:[%s3996_s27 + $0x8] sm:$0xff]  ;;  %v237_v8 = vld [vmem:[%s3996_s27 + $0x10] sm:$0xff]  ;;  %s3934_s8 = smov 120   ;;  %s3935_s9 = smov 112  }
  0x14   : > { %3370 = vmatprep.mubr.msk.f32.mxu0 %vm6205_vm0, %v235_v6  ;;  %v238_v9 = vld [vmem:[%s3996_s27 + $0x18] sm:$0xff]  ;;  %v239_v10 = vld [vmem:[%s3996_s27 + $0x20] sm:$0xff]  ;;  %v240_v11 = vld [vmem:[%s3996_s27 + $0x28] sm:$0xff]  ;;  %s3936_s10 = smov 104   ;;  %s3937_s11 = smov 8  }
  0x15   : > { %v241_v12 = vld [vmem:[%s3996_s27 + $0x30] sm:$0xff]  ;;  %v242_v13 = vld [vmem:[%s3996_s27 + $0x38] sm:$0xff]  ;;  %v243_v14 = vld [vmem:[%s3996_s27 + $0x40] sm:$0xff]  ;;  %s3938_s12 = smov 16   ;;  %s3939_s16 = smov 24  }
  0x16   : > { %3529 = vmatpush3.bf16.msra.mxu0 %v3526_v5  ;;  %v244_v15 = vld [vmem:[%s3996_s27 + $0x48] sm:$0xff]  ;;  %v245_v16 = vld [vmem:[%s3996_s27 + $0x50] sm:$0xff]  ;;  %v246_v17 = vld [vmem:[%s3996_s27 + $0x58] sm:$0xff]  ;;  %s6056_s19 = scalar_lea.vmem %s6187_s3, %s3990_s24 }
  0x17   : > { %v247_v18 = vld [vmem:[%s3996_s27 + $0x60] sm:$0xff]  ;;  %v248_v19 = vld [vmem:[%s3996_s27 + $0x68] sm:$0xff]  ;;  %v249_v20 = vld [vmem:[%s3996_s27 + $0x70] sm:$0xff] }
  0x18   : > { %v250_v21 = vld [vmem:[%s3996_s27 + $0x78] sm:$0xff] }
  0x19   : > { %3371 = vmatmul.mubr.msk.f32.vlgmr.msra.gmra.mrb[0].mxu0 %vm6205_vm0, %v236_v7 }
  0x1a   : > { %3373 = vmatprep.mubr.msk.f32.mxu0 %vm6205_vm0, %v237_v8 }
  0x1d   : > { %3374 = vmatmul.mubr.msk.f32.gmra.mrb[2].mxu0 %vm6205_vm0, %v238_v9 }
  0x1e   : > { %3376 = vmatprep.mubr.msk.f32.mxu0 %vm6205_vm0, %v239_v10 }
  0x21   : > { %3377 = vmatmul.mubr.msk.f32.gmra.mrb[4].mxu0 %vm6205_vm0, %v240_v11 }
  0x22   : > { %3379 = vmatprep.mubr.msk.f32.mxu0 %vm6205_vm0, %v241_v12 }
  0x25   : > { %3380 = vmatmul.mubr.msk.f32.gmra.mrb[6].mxu0 %vm6205_vm0, %v242_v13 }
  0x26   : > { %3382 = vmatprep.mubr.msk.f32.mxu0 %vm6205_vm0, %v243_v14 }
  0x29   : > { %3383 = vmatmul.mubr.msk.f32.gmra.mrb[8].mxu0 %vm6205_vm0, %v244_v15 }
  0x2a   : > { %3385 = vmatprep.mubr.msk.f32.mxu0 %vm6205_vm0, %v245_v16 }
  0x2d   : > { %3386 = vmatmul.mubr.msk.f32.gmra.mrb[10].mxu0 %vm6205_vm0, %v246_v17 }
  0x2e   : > { %3388 = vmatprep.mubr.msk.f32.mxu0 %vm6205_vm0, %v247_v18 }
  0x31   : > { %3389 = vmatmul.mubr.msk.f32.gmra.mrb[12].mxu0 %vm6205_vm0, %v248_v19 }
  0x32   : > { %3391 = vmatprep.mubr.msk.f32.mxu0 %vm6205_vm0, %v249_v20 }
  0x35   : > { %3392 = vmatmul.mubr.msk.f32.gmra.mrb[14].mxu0 %vm6205_vm0, %v250_v21 }
  0xec   : > { %v3372_v23 = vpop.f32.mrb[0].mxu0 }
  0xed   : > { %451 = vst.msk [vmem:[#allocation2 + $0x8] sm:$0xff] %vm449_vm1, %v3372_v23  ;;  %565 = vrot.lane.b32.xlu1 %v3372_v23, %s3927_s28  ;;  %484 = vrot.lane.b32.xlu0 %v3372_v23, %s3928_s29  ;;  %v370_v24 = vpop.f32.mrb[1].mxu0 }
  0xee   : > { %450 = vst.msk [vmem:[#allocation2] sm:$0xff] %vm449_vm1, %v370_v24 }
  0xf0   : > { %v3375_v25 = vpop.f32.mrb[2].mxu0 }
  0xf1   : > { %727 = vrot.lane.b32.xlu1 %v3372_v23, %s3929_s30  ;;  %646 = vrot.lane.b32.xlu0 %v3372_v23, %s3930_s4  ;;  %453 = vst.msk [vmem:[#allocation2 + $0x18] sm:$0xff] %vm449_vm1, %v3375_v25  ;;  %v4038_v26 = vpop.f32.mrb[3].mxu0 }
  0xf2   : > { %452 = vst.msk [vmem:[#allocation2 + $0x10] sm:$0xff] %vm449_vm1, %v4038_v26 }
  0xf4   : > { %v4042_v27 = vld [vmem:[#allocation2 + $0x8] sm:$0xff]  ;;  %v4044_v28 = vpop.f32.mrb[4].mxu0 }
  0xf5   : > { %563 = vrot.lane.b32.xlu1 %v370_v24, %s3927_s28  ;;  %482 = vrot.lane.b32.xlu0 %v370_v24, %s3928_s29  ;;  %v4048_v29 = vld [vmem:[#allocation2] sm:$0xff]  ;;  %455 = vst.msk [vmem:[#allocation2 + $0x28] sm:$0xff] %vm449_vm1, %v4044_v28  ;;  %v4052_v30 = vpop.f32.mrb[5].mxu0 }
  0xf6   : > { %v4056_v31 = vpack.c.bf16 %v4042_v27, %v4048_v29  ;;  %454 = vst.msk [vmem:[#allocation2 + $0x20] sm:$0xff] %vm449_vm1, %v4052_v30 }
  0xf8   : > { %6275 = vst [vmem:[#allocation4_spill] sm:$0xff] %v4056_v31  ;;  %3394 = vmatprep.subr.bf16.mxu1 %v4056_v31  ;;  %v4061_v32 = vld [vmem:[#allocation2 + $0x18] sm:$0xff]  ;;  %v4063_v33 = vpop.f32.mrb[6].mxu0 }
  0xf9   : > { %725 = vrot.lane.b32.xlu1 %v370_v24, %s3929_s30  ;;  %644 = vrot.lane.b32.xlu0 %v370_v24, %s3930_s4  ;;  %v4067_v34 = vld [vmem:[#allocation2 + $0x10] sm:$0xff]  ;;  %457 = vst.msk [vmem:[#allocation2 + $0x38] sm:$0xff] %vm449_vm1, %v4063_v33  ;;  %v4071_v35 = vpop.f32.mrb[7].mxu0 }
  0xfa   : > { %3395 = vmatpush3.bf16.msra.mxu1 %v4056_v31  ;;  %v4076_v36 = vpack.c.bf16 %v4061_v32, %v4067_v34  ;;  %456 = vst.msk [vmem:[#allocation2 + $0x30] sm:$0xff] %vm449_vm1, %v4071_v35 }
  0xfc   : > { %6276 = vst [vmem:[#allocation5_spill] sm:$0xff] %v4076_v36  ;;  %3396 = vmatprep.subr.bf16.mxu1 %v4076_v36  ;;  %v4081_v37 = vld [vmem:[#allocation2 + $0x28] sm:$0xff]  ;;  %v4083_v38 = vpop.f32.mrb[8].mxu0 }
  0xfd   : > { %650 = vrot.lane.b32.xlu0 %v3375_v25, %s3930_s4  ;;  %488 = vrot.lane.b32.xlu1 %v3375_v25, %s3928_s29  ;;  %v4087_v39 = vld [vmem:[#allocation2 + $0x20] sm:$0xff]  ;;  %459 = vst.msk [vmem:[#allocation2 + $0x48] sm:$0xff] %vm449_vm1, %v4083_v38  ;;  %v4091_v40 = vpop.f32.mrb[9].mxu0 }
  0xfe   : > { %3397 = vmatpush3.bf16.msra.mxu1 %v4076_v36  ;;  %v4096_v41 = vpack.c.bf16 %v4081_v37, %v4087_v39  ;;  %458 = vst.msk [vmem:[#allocation2 + $0x40] sm:$0xff] %vm449_vm1, %v4091_v40 }
 0x100   : > { %6277 = vst [vmem:[#allocation6_spill] sm:$0xff] %v4096_v41  ;;  %3398 = vmatprep.subr.bf16.mxu1 %v4096_v41  ;;  %v4101_v42 = vld [vmem:[#allocation2 + $0x38] sm:$0xff]  ;;  %v4103_v43 = vpop.f32.mrb[10].mxu0 }
 0x101   : > { %569 = vrot.lane.b32.xlu1 %v3375_v25, %s3927_s28  ;;  %648 = vrot.lane.b32.xlu0 %v4038_v26, %s3930_s4  ;;  %v4108_v44 = vld [vmem:[#allocation2 + $0x30] sm:$0xff]  ;;  %461 = vst.msk [vmem:[#allocation2 + $0x58] sm:$0xff] %vm449_vm1, %v4103_v43  ;;  %v4112_v45 = vpop.f32.mrb[11].mxu0 }
 0x102   : > { %3399 = vmatpush3.bf16.msra.mxu1 %v4096_v41  ;;  %v4117_v46 = vpack.c.bf16 %v4101_v42, %v4108_v44  ;;  %460 = vst.msk [vmem:[#allocation2 + $0x50] sm:$0xff] %vm449_vm1, %v4112_v45 }
 0x104   : > { %6278 = vst [vmem:[#allocation7_spill] sm:$0xff] %v4117_v46  ;;  %3400 = vmatprep.subr.bf16.mxu1 %v4117_v46  ;;  %v4122_v47 = vld [vmem:[#allocation2 + $0x48] sm:$0xff]  ;;  %v4124_v48 = vpop.f32.mrb[12].mxu0 }
 0x105   : > { %731 = vrot.lane.b32.xlu1 %v3375_v25, %s3929_s30  ;;  %654 = vrot.lane.b32.xlu0 %v4044_v28, %s3930_s4  ;;  %v4129_v49 = vld [vmem:[#allocation2 + $0x40] sm:$0xff]  ;;  %463 = vst.msk [vmem:[#allocation2 + $0x68] sm:$0xff] %vm449_vm1, %v4124_v48  ;;  %v4133_v50 = vpop.f32.mrb[13].mxu0 }
 0x106   : > { %3401 = vmatpush3.bf16.msra.mxu1 %v4117_v46  ;;  %v4138_v51 = vpack.c.bf16 %v4122_v47, %v4129_v49  ;;  %462 = vst.msk [vmem:[#allocation2 + $0x60] sm:$0xff] %vm449_vm1, %v4133_v50 }
 0x108   : > { %6279 = vst [vmem:[#allocation8_spill] sm:$0xff] %v4138_v51  ;;  %3402 = vmatprep.subr.bf16.mxu1 %v4138_v51  ;;  %v4143_v52 = vld [vmem:[#allocation2 + $0x58] sm:$0xff]  ;;  %v4145_v53 = vpop.f32.mrb[14].mxu0 }
 0x109   : > { %486 = vrot.lane.b32.xlu1 %v4038_v26, %s3928_s29  ;;  %888 = vperm.xlu0 %3568, %v4042_v27   ;;  %v4150_v54 = vld [vmem:[#allocation2 + $0x50] sm:$0xff]  ;;  %465 = vst.msk [vmem:[#allocation2 + $0x78] sm:$0xff] %vm449_vm1, %v4145_v53  ;;  %v4154_v55 = vpop.f32.mrb[15].mxu0 }
 0x10a   : > { %3403 = vmatpush3.bf16.msra.mxu1 %v4138_v51  ;;  %v4159_v56 = vpack.c.bf16 %v4143_v52, %v4150_v54  ;;  %464 = vst.msk [vmem:[#allocation2 + $0x70] sm:$0xff] %vm449_vm1, %v4154_v55 }
 0x10c   : > { %6280 = vst [vmem:[#allocation9_spill] sm:$0xff] %v4159_v56  ;;  %3404 = vmatprep.subr.bf16.mxu1 %v4159_v56  ;;  %v4164_v57 = vld [vmem:[#allocation2 + $0x68] sm:$0xff] }
 0x10d   : > { %567 = vrot.lane.b32.xlu1 %v4038_v26, %s3927_s28  ;;  %490 = vrot.lane.b32.xlu0 %v4052_v30, %s3928_s29  ;;  %v4170_v58 = vld [vmem:[#allocation2 + $0x60] sm:$0xff] }
 0x10e   : > { %3405 = vmatpush3.bf16.msra.mxu1 %v4159_v56  ;;  %v4175_v59 = vpack.c.bf16 %v4164_v57, %v4170_v58 }
 0x110   : > { %6281 = vst [vmem:[#allocation10_spill] sm:$0xff] %v4175_v59  ;;  %3406 = vmatprep.subr.bf16.mxu1 %v4175_v59  ;;  %v4178_v60 = vld [vmem:[#allocation2 + $0x78] sm:$0xff] }
 0x111   : > { %729 = vrot.lane.b32.xlu1 %v4038_v26, %s3929_s30  ;;  %652 = vrot.lane.b32.xlu0 %v4052_v30, %s3930_s4  ;;  %v4184_v61 = vld [vmem:[#allocation2 + $0x70] sm:$0xff] }
 0x112   : > { %3407 = vmatpush3.bf16.msra.mxu1 %v4175_v59  ;;  %v4189_v62 = vpack.c.bf16 %v4178_v60, %v4184_v61 }
 0x114   : > { %6282 = vst [vmem:[#allocation11_spill] sm:$0xff] %v4189_v62  ;;  %3408 = vmatprep.subr.bf16.mxu1 %v4189_v62 }
 0x115   : > { %492 = vrot.lane.b32.xlu1 %v4044_v28, %s3928_s29  ;;  %883 = vperm.xlu0 %3568, %v4048_v29  }
 0x116   : > { %3409 = vmatpush3.bf16.msra.mxu1 %v4189_v62 }
 0x119   : > { %573 = vrot.lane.b32.xlu1 %v4044_v28, %s3927_s28  ;;  %658 = vrot.lane.b32.xlu0 %v4063_v33, %s3930_s4 }
 0x11d   : > { %735 = vrot.lane.b32.xlu1 %v4044_v28, %s3929_s30  ;;  %898 = vperm.xlu0 %3568, %v4061_v32  }
 0x121   : > { %571 = vrot.lane.b32.xlu1 %v4052_v30, %s3927_s28  ;;  %494 = vrot.lane.b32.xlu0 %v4071_v35, %s3928_s29 }
 0x125   : > { %733 = vrot.lane.b32.xlu1 %v4052_v30, %s3929_s30  ;;  %656 = vrot.lane.b32.xlu0 %v4071_v35, %s3930_s4 }
 0x129   : > { %496 = vrot.lane.b32.xlu1 %v4063_v33, %s3928_s29  ;;  %893 = vperm.xlu0 %3568, %v4067_v34  }
 0x12d   : > { %577 = vrot.lane.b32.xlu1 %v4063_v33, %s3927_s28  ;;  %662 = vrot.lane.b32.xlu0 %v4083_v38, %s3930_s4 }
 0x131   : > { %739 = vrot.lane.b32.xlu1 %v4063_v33, %s3929_s30  ;;  %908 = vperm.xlu0 %3568, %v4081_v37  }
 0x135   : > { %575 = vrot.lane.b32.xlu1 %v4071_v35, %s3927_s28  ;;  %498 = vrot.lane.b32.xlu0 %v4091_v40, %s3928_s29 }
 0x139   : > { %737 = vrot.lane.b32.xlu1 %v4071_v35, %s3929_s30  ;;  %660 = vrot.lane.b32.xlu0 %v4091_v40, %s3930_s4 }
 0x13d   : > { %500 = vrot.lane.b32.xlu1 %v4083_v38, %s3928_s29  ;;  %903 = vperm.xlu0 %3568, %v4087_v39  }
 0x141   : > { %581 = vrot.lane.b32.xlu1 %v4083_v38, %s3927_s28  ;;  %666 = vrot.lane.b32.xlu0 %v4103_v43, %s3930_s4 }
 0x145   : > { %743 = vrot.lane.b32.xlu1 %v4083_v38, %s3929_s30  ;;  %918 = vperm.xlu0 %3568, %v4101_v42  }
 0x149   : > { %579 = vrot.lane.b32.xlu1 %v4091_v40, %s3927_s28  ;;  %502 = vrot.lane.b32.xlu0 %v4112_v45, %s3928_s29 }
 0x14d   : > { %741 = vrot.lane.b32.xlu1 %v4091_v40, %s3929_s30  ;;  %913 = vperm.xlu0 %3568, %v4108_v44  }
 0x151   : > { %504 = vrot.lane.b32.xlu1 %v4103_v43, %s3928_s29  ;;  %670 = vrot.lane.b32.xlu0 %v4124_v48, %s3930_s4 }
 0x155   : > { %585 = vrot.lane.b32.xlu1 %v4103_v43, %s3927_s28  ;;  %928 = vperm.xlu0 %3568, %v4122_v47  }
 0x159   : > { %747 = vrot.lane.b32.xlu1 %v4103_v43, %s3929_s30  ;;  %506 = vrot.lane.b32.xlu0 %v4133_v50, %s3928_s29 }
 0x15d   : > { %583 = vrot.lane.b32.xlu1 %v4112_v45, %s3927_s28  ;;  %668 = vrot.lane.b32.xlu0 %v4133_v50, %s3930_s4 }
 0x15f   : > { %v4261_v63 = vpop.permute.xlu1 %565  ;;  %v485_v0 = vpop.permute.xlu0 %484 }
 0x161   : > { %664 = vrot.lane.b32.xlu1 %v4112_v45, %s3930_s4  ;;  %923 = vperm.xlu0 %3568, %v4129_v49  }
 0x163   : > { %v4266_v1 = vpop.permute.xlu1 %727  ;;  %v4272_v3 = vpop.permute.xlu0 %646 }
 0x165   : > { %745 = vrot.lane.b32.xlu1 %v4112_v45, %s3929_s30  ;;  %674 = vrot.lane.b32.xlu0 %v4145_v53, %s3930_s4 }
 0x167   : > { %v564_v2 = vpop.permute.xlu1 %563  ;;  %v483_v5 = vpop.permute.xlu0 %482 }
 0x169   : > { %508 = vrot.lane.b32.xlu1 %v4124_v48, %s3928_s29  ;;  %938 = vperm.xlu0 %3568, %v4143_v52  }
 0x16b   : > { %v4277_v4 = vpop.permute.xlu1 %725  ;;  %v4287_v8 = vpop.permute.xlu0 %644 }
 0x16d   : > { %589 = vrot.lane.b32.xlu1 %v4124_v48, %s3927_s28  ;;  %510 = vrot.lane.b32.xlu0 %v4154_v55, %s3928_s29 }
 0x16f   : > { %v489_v6 = vpop.permute.xlu1 %488  ;;  %v4296_v10 = vpop.permute.xlu0 %650 }
 0x171   : > { %751 = vrot.lane.b32.xlu1 %v4124_v48, %s3929_s30  ;;  %672 = vrot.lane.b32.xlu0 %v4154_v55, %s3930_s4 }
 0x173   : > { %v570_v7 = vpop.permute.xlu1 %569  ;;  %v4300_v13 = vpop.permute.xlu0 %648 }
 0x175   : > { %587 = vrot.lane.b32.xlu1 %v4133_v50, %s3927_s28  ;;  %933 = vperm.xlu0 %3568, %v4150_v54  }
 0x177   : > { %v4292_v9 = vpop.permute.xlu1 %731  ;;  %v4306_v15 = vpop.permute.xlu0 %654 }
 0x179   : > { %749 = vrot.lane.b32.xlu1 %v4133_v50, %s3929_s30 }
 0x17b   : > { %v487_v11 = vpop.permute.xlu1 %486 }
 0x17d   : > { %512 = vrot.lane.b32.xlu1 %v4145_v53, %s3928_s29 }
 0x17f   : > { %v568_v12 = vpop.permute.xlu1 %567 }
 0x181   : > { %593 = vrot.lane.b32.xlu1 %v4145_v53, %s3927_s28 }
 0x183   : > { %v4304_v14 = vpop.permute.xlu1 %729 }
 0x185   : > { %755 = vrot.lane.b32.xlu1 %v4145_v53, %s3929_s30 }
 0x187   : > { %v493_v16 = vpop.permute.xlu1 %492 }
 0x188   : > { %v4310_v17 = vpop.permute.xlu0 %888 }
 0x189   : > { %591 = vrot.lane.b32.xlu1 %v4154_v55, %s3927_s28 }
 0x18b   : > { %v574_v18 = vpop.permute.xlu1 %573 }
 0x18c   : > { %v491_v19 = vpop.permute.xlu0 %490 }
 0x18d   : > { %753 = vrot.lane.b32.xlu1 %v4154_v55, %s3929_s30 }
 0x18f   : > { %v4316_v20 = vpop.permute.xlu1 %735 }
 0x190   : > { %v4318_v21 = vpop.permute.xlu0 %652 }
 0x193   : > { %v572_v23 = vpop.permute.xlu1 %571  ;;  %530 = vxpose.xlu0.b32.start [1/16] (narrow) %v483_v5, 8 }
 0x194   : > { %v4320_v24 = vpop.permute.xlu0 %883 }
 0x197   : > { %v4322_v25 = vpop.permute.xlu1 %733  ;;  %531 = vxpose.xlu0.b32.cont [2/16] (narrow) %v485_v0, 8 }
 0x198   : > { %v4324_v26 = vpop.permute.xlu0 %658 }
 0x19b   : > { %v497_v28 = vpop.permute.xlu1 %496  ;;  %532 = vxpose.xlu0.b32.cont [3/16] (narrow) %v487_v11, 8 }
 0x19c   : > { %v4326_v30 = vpop.permute.xlu0 %898 }
 0x19f   : > { %v578_v33 = vpop.permute.xlu1 %577  ;;  %533 = vxpose.xlu0.b32.cont [4/16] (narrow) %v489_v6, 8 }
 0x1a0   : > { %v495_v35 = vpop.permute.xlu0 %494 }
 0x1a3   : > { %v4328_v38 = vpop.permute.xlu1 %739  ;;  %534 = vxpose.xlu0.b32.cont [5/16] (narrow) %v491_v19, 8 }
 0x1a4   : > { %v4330_v40 = vpop.permute.xlu0 %656 }
 0x1a7   : > { %v576_v43 = vpop.permute.xlu1 %575  ;;  %535 = vxpose.xlu0.b32.cont [6/16] (narrow) %v493_v16, 8 }
 0x1a8   : > { %v4332_v45 = vpop.permute.xlu0 %893 }
 0x1ab   : > { %v4334_v48 = vpop.permute.xlu1 %737  ;;  %536 = vxpose.xlu0.b32.cont [7/16] (narrow) %v495_v35, 8 }
 0x1ac   : > { %v4336_v50 = vpop.permute.xlu0 %662 }
 0x1af   : > { %v501_v53 = vpop.permute.xlu1 %500  ;;  %537 = vxpose.xlu0.b32.cont [8/16] (narrow) %v497_v28, 8 }
 0x1b0   : > { %v4338_v55 = vpop.permute.xlu0 %908 }
 0x1b3   : > { %v582_v0 = vpop.permute.xlu1 %581 }
 0x1b4   : > { %v499_v5 = vpop.permute.xlu0 %498 }
 0x1b5   : > { %538 = vxpose.xlu0.b32.cont [9/16] (narrow) %v499_v5, 8 }
 0x1b6   : > { %611 = vxpose.xlu1.b32.start [1/16] (narrow) %v564_v2, 8 }
 0x1b7   : > { %v4340_v6 = vpop.permute.xlu1 %743 }
 0x1b8   : > { %v4342_v11 = vpop.permute.xlu0 %660 }
 0x1b9   : > { %539 = vxpose.xlu0.b32.cont [10/16] (narrow) %v501_v53, 8 }
 0x1ba   : > { %612 = vxpose.xlu1.b32.cont [2/16] (narrow) %v4261_v63, 8 }
 0x1bb   : > { %v580_v16 = vpop.permute.xlu1 %579 }
 0x1bc   : > { %v4345_v19 = vpop.permute.xlu0 %903 }
 0x1be   : > { %613 = vxpose.xlu1.b32.cont [3/16] (narrow) %v568_v12, 8 }
 0x1bf   : > { %v4347_v35 = vpop.permute.xlu1 %741 }
 0x1c0   : > { %v4349_v28 = vpop.permute.xlu0 %666 }
 0x1c2   : > { %614 = vxpose.xlu1.b32.cont [4/16] (narrow) %v570_v7, 8 }
 0x1c3   : > { %v505_v22 = vpop.permute.xlu1 %504 }
 0x1c4   : > { %v4351_v62 = vpop.permute.xlu0 %918 }
 0x1c6   : > { %615 = vxpose.xlu1.b32.cont [5/16] (narrow) %v572_v23, 8 }
 0x1c7   : > { %v586_v2 = vpop.permute.xlu1 %585 }
 0x1c8   : > { %v503_v5 = vpop.permute.xlu0 %502 }
 0x1c9   : > { %540 = vxpose.xlu0.b32.cont [11/16] (narrow) %v503_v5, 8 }
 0x1ca   : > { %616 = vxpose.xlu1.b32.cont [6/16] (narrow) %v574_v18, 8 }
 0x1cb   : > { %v4353_v53 = vpop.permute.xlu1 %747 }
 0x1cc   : > { %v4355_v63 = vpop.permute.xlu0 %913 }
 0x1cd   : > { %541 = vxpose.xlu0.b32.cont [12/16] (narrow) %v505_v22, 8 }
 0x1ce   : > { %617 = vxpose.xlu1.b32.cont [7/16] (narrow) %v576_v43, 8 }
 0x1cf   : > { %v584_v12 = vpop.permute.xlu1 %583 }
 0x1d0   : > { %v671_v56 = vpop.permute.xlu0 %670 }
 0x1d2   : > { %618 = vxpose.xlu1.b32.cont [8/16] (narrow) %v578_v33, 8 }
 0x1d3   : > { %v665_v46 = vpop.permute.xlu1 %664 }
 0x1d4   : > { %v4357_v36 = vpop.permute.xlu0 %928 }
 0x1d6   : > { %619 = vxpose.xlu1.b32.cont [9/16] (narrow) %v580_v16, 8 }
 0x1d7   : > { %v746_v7 = vpop.permute.xlu1 %745 }
 0x1d8   : > { %v507_v59 = vpop.permute.xlu0 %506 }
 0x1d9   : > { %542 = vxpose.xlu0.b32.cont [13/16] (narrow) %v507_v59, 8 }
 0x1da   : > { %620 = vxpose.xlu1.b32.cont [10/16] (narrow) %v582_v0, 8 }
 0x1db   : > { %v509_v23 = vpop.permute.xlu1 %508 }
 0x1dc   : > { %v669_v5 = vpop.permute.xlu0 %668 }
 0x1dd   : > { %543 = vxpose.xlu0.b32.cont [14/16] (narrow) %v509_v23, 8 }
 0x1de   : > { %621 = vxpose.xlu1.b32.cont [11/16] (narrow) %v584_v12, 8 }
 0x1df   : > { %v590_v18 = vpop.permute.xlu1 %589 }
 0x1e0   : > { %v4359_v51 = vpop.permute.xlu0 %923 }
 0x1e2   : > { %622 = vxpose.xlu1.b32.cont [12/16] (narrow) %v586_v2, 8 }
 0x1e3   : > { %v752_v22 = vpop.permute.xlu1 %751 }
 0x1e4   : > { %v675_v43 = vpop.permute.xlu0 %674 }
 0x1e7   : > { %v588_v41 = vpop.permute.xlu1 %587 }
 0x1e8   : > { %v4361_v33 = vpop.permute.xlu0 %938  ;;  %623 = vxpose.xlu1.b32.cont [13/16] (narrow) %v588_v41, 8 }
 0x1eb   : > { %v750_v31 = vpop.permute.xlu1 %749 }
 0x1ec   : > { %624 = vxpose.xlu1.b32.cont [14/16] (narrow) %v590_v18, 8  ;;  %v511_v16 = vpop.permute.xlu0 %510  ;;  %v4428_v18 = vld [vmem:[%s4394_s7 + $0x18] sm:$0xff] }
 0x1ed   : > { %544 = vxpose.xlu0.b32.cont [15/16] (narrow) %v511_v16, 8  ;;  %6289 = vst [vmem:[#allocation17_spill] sm:$0xff] %v4428_v18  ;;  %vm6213_vm13 = vcmp.ne.f32.partialorder %v4428_v18, 0.0 }
 0x1ef   : > { %v513_v59 = vpop.permute.xlu1 %512 }
 0x1f0   : > { %v673_v41 = vpop.permute.xlu0 %672 }
 0x1f1   : > { %545 = vxpose.xlu0.b32.end [16/16] (narrow) %v513_v59, 8 }
 0x1f3   : > { %v594_v0 = vpop.permute.xlu1 %593 }
 0x1f5   : > { %692 = vxpose.xlu0.b32.start [1/16] (narrow) %v4287_v8, 8  ;;  %v6283_v8 = vmov 32  }
 0x1f7   : > { %v756_v12 = vpop.permute.xlu1 %755 }
 0x1f9   : > { %693 = vxpose.xlu0.b32.cont [2/16] (narrow) %v4272_v3, 8 }
 0x1fb   : > { %v592_v23 = vpop.permute.xlu1 %591 }
 0x1fc   : > { %625 = vxpose.xlu1.b32.cont [15/16] (narrow) %v592_v23, 8 }
 0x1fd   : > { %694 = vxpose.xlu0.b32.cont [3/16] (narrow) %v4300_v13, 8 }
 0x200   : > { %626 = vxpose.xlu1.b32.end [16/16] (narrow) %v594_v0, 8  ;;  %v4442_v0 = vld [vmem:[%s4394_s7 + $0x20] sm:$0xff] }
 0x201   : > { %695 = vxpose.xlu0.b32.cont [4/16] (narrow) %v4296_v10, 8  ;;  %vm6210_vm15 = vcmp.ne.f32.partialorder %v4442_v0, 0.0 }
 0x204   : > { %773 = vxpose.xlu1.b32.start [1/16] (narrow) %v4277_v4, 8 }
 0x205   : > { %696 = vxpose.xlu0.b32.cont [5/16] (narrow) %v4318_v21, 8 }
 0x208   : > { %774 = vxpose.xlu1.b32.cont [2/16] (narrow) %v4266_v1, 8  ;;  %v934_v1 = vpop.permute.xlu0 %933 }
 0x209   : > { %697 = vxpose.xlu0.b32.cont [6/16] (narrow) %v4306_v15, 8 }
 0x20c   : > { %775 = vxpose.xlu1.b32.cont [3/16] (narrow) %v4304_v14, 8 }
 0x20d   : > { %698 = vxpose.xlu0.b32.cont [7/16] (narrow) %v4330_v40, 8 }
 0x210   : > { %776 = vxpose.xlu1.b32.cont [4/16] (narrow) %v4292_v9, 8  ;;  %v961_v9 = vlaneseq }
 0x211   : > { %699 = vxpose.xlu0.b32.cont [8/16] (narrow) %v4324_v26, 8 }
 0x212   : > { %v962_v13 = vshrl.u32 %v961_v9, 7 }
 0x214   : > { %777 = vxpose.xlu1.b32.cont [5/16] (narrow) %v4322_v25, 8  ;;  %v963_v14 = vsub.s32 0, %v962_v13  ;;  %v1392_v15 = vsub.s32 1, %v962_v13  ;;  %v2306_v21 = vsub.s32 3, %v962_v13 }
 0x215   : > { %700 = vxpose.xlu0.b32.cont [9/16] (narrow) %v4342_v11, 8  ;;  %v4411_v11 = vld [vmem:[%s4394_s7 + $0x40] sm:$0xff] }
 0x216   : > { %6286 = vst [vmem:[#allocation14_spill] sm:$0xff] %v4411_v11  ;;  %vm6215_vm8 = vcmp.ne.f32.partialorder %v4411_v11, 0.0 }
 0x218   : > { %778 = vxpose.xlu1.b32.cont [6/16] (narrow) %v4316_v20, 8  ;;  %v1853_v20 = vsub.s32 2, %v962_v13  ;;  %v4466_v13 = vld [vmem:[%s4394_s7 + $0x28] sm:$0xff] }
 0x219   : > { %701 = vxpose.xlu0.b32.cont [10/16] (narrow) %v4336_v50, 8  ;;  %v4405_v50 = vld [vmem:[%s4394_s7 + $0x8] sm:$0xff] }
 0x21a   : > { %6284 = vst [vmem:[#allocation12_spill] sm:$0xff] %v4405_v50  ;;  %vm6217_vm2 = vcmp.ne.f32.partialorder %v4405_v50, 0.0 }
 0x21c   : > { %779 = vxpose.xlu1.b32.cont [7/16] (narrow) %v4334_v48, 8 }
 0x21d   : > { %702 = vxpose.xlu0.b32.cont [11/16] (narrow) %v665_v46, 8  ;;  %v754_v46 = vpop.permute.xlu1 %753 }
 0x220   : > { %780 = vxpose.xlu1.b32.cont [8/16] (narrow) %v4328_v38, 8 }
 0x221   : > { %703 = vxpose.xlu0.b32.cont [12/16] (narrow) %v4349_v28, 8 }
 0x224   : > { %781 = vxpose.xlu1.b32.cont [9/16] (narrow) %v4347_v35, 8  ;;  %v4414_v35 = vld [vmem:[%s4394_s7 + $0x10] sm:$0xff] }
 0x225   : > { %704 = vxpose.xlu0.b32.cont [13/16] (narrow) %v669_v5, 8  ;;  %6287 = vst [vmem:[#allocation15_spill] sm:$0xff] %v4414_v35  ;;  %v4425_v5 = vld [vmem:[%s4394_s7 + $0x50] sm:$0xff]  ;;  %vm6216_vm9 = vcmp.ne.f32.partialorder %v4414_v35, 0.0 }
 0x226   : > { %6288 = vst [vmem:[#allocation16_spill] sm:$0xff] %v4425_v5  ;;  %vm6208_vm12 = vcmp.ne.f32.partialorder %v4425_v5, 0.0 }
 0x228   : > { %782 = vxpose.xlu1.b32.cont [10/16] (narrow) %v4340_v6, 8  ;;  %v4408_v6 = vld [vmem:[%s4394_s7] sm:$0xff] }
 0x229   : > { %705 = vxpose.xlu0.b32.cont [14/16] (narrow) %v671_v56, 8  ;;  %6285 = vst [vmem:[#allocation13_spill] sm:$0xff] %v4408_v6  ;;  %vm6224_vm3 = vcmp.ne.f32.partialorder %v4408_v6, 0.0 }
 0x22c   : > { %783 = vxpose.xlu1.b32.cont [11/16] (narrow) %v746_v7, 8 }
 0x22d   : > { %706 = vxpose.xlu0.b32.cont [15/16] (narrow) %v673_v41, 8 }
 0x230   : > { %784 = vxpose.xlu1.b32.cont [12/16] (narrow) %v4353_v53, 8 }
 0x231   : > { %707 = vxpose.xlu0.b32.end [16/16] (narrow) %v675_v43, 8 }
 0x234   : > { %785 = vxpose.xlu1.b32.cont [13/16] (narrow) %v750_v31, 8  ;;  %v3931_v31 = vmov 33  }
 0x235   : > { %v546_v3 = vpop.trf.xlu0 }
 0x236   : > { %562 = vst [vmem:[#allocation3] sm:$0x1] %v546_v3 }
 0x238   : > { %786 = vxpose.xlu1.b32.cont [14/16] (narrow) %v752_v22, 8 }
 0x23c   : > { %787 = vxpose.xlu1.b32.cont [15/16] (narrow) %v754_v46, 8 }
 0x240   : > { %788 = vxpose.xlu1.b32.end [16/16] (narrow) %v756_v12, 8 }
 0x244   : > { %v627_v4 = vpop.trf.xlu1 }
 0x245   : > { %643 = vst [vmem:[#allocation3 + $0x1] sm:$0x1] %v627_v4 }
 0x25a   : > { %948 = vperm.xlu0 %3568, %v4164_v57  }
 0x25e   : > { %3569 = vset.pattern.permute.xlu1 %v6283_v8  ;;  %953 = vperm.xlu0 %3568, %v4184_v61  }
 0x25f   : > { %943 = vperm.xlu1 %3569, %v4170_v58  }
 0x262   : > { %958 = vperm.xlu0 %3568, %v4178_v60  }
 0x263   : > { %3570 = vset.pattern.permute.xlu1 %v3931_v31 }
 0x266   : > { %3571 = vset.pattern.permute.xlu0 %v3931_v31 }
 0x275   : > { %v708_v56 = vpop.trf.xlu0 }
 0x276   : > { %724 = vst [vmem:[#allocation3 + $0x2] sm:$0x1] %v708_v56 }
 0x284   : > { %v789_v10 = vpop.trf.xlu1 }
 0x285   : > { %805 = vst [vmem:[#allocation3 + $0x3] sm:$0x1] %v789_v10 }
 0x28c   : > { %v880_v25 = vld [vmem:[#allocation3] sm:$0xf] }
 0x28d   : > { %v4396_v26 = vrot.slane %v880_v25, %v963_v14  ;;  %v4398_v38 = vrot.slane %v880_v25, %v1392_v15  ;;  %v4400_v40 = vrot.slane %v880_v25, %v1853_v20  ;;  %v4402_v48 = vrot.slane %v880_v25, %v2306_v21 }
 0x28f   : > { %v966_v28 = vadd.f32 %v4396_v26, %v4310_v17  ;;  %v965_v2 = vadd.f32 %v4396_v26, %v4320_v24  ;;  %v973_v53 = vadd.f32 %v4396_v26, %v4359_v51  ;;  %v967_v7 = vadd.f32 %v4396_v26, %v4332_v45 }
 0x290   : > { %v975_v22 = vadd.f32 %v4396_v26, %v934_v1  ;;  %v968_v17 = vadd.f32 %v4396_v26, %v4326_v30  ;;  %v969_v12 = vadd.f32 %v4396_v26, %v4345_v19  ;;  %v970_v8 = vadd.f32 %v4396_v26, %v4338_v55 }
 0x291   : > { %v982_v43 = vmul.f32 %v966_v28, %v4405_v50  ;;  %v981_v24 = vmul.f32 %v965_v2, %v4408_v6  ;;  %v989_v51 = vmul.f32 %v973_v53, %v4411_v11  ;;  %v983_v16 = vmul.f32 %v967_v7, %v4414_v35  ;;  %v4484_v53 = vld [vmem:[%s4394_s7 + $0x30] sm:$0xff] }
 0x292   : > { %v991_v45 = vmul.f32 %v975_v22, %v4425_v5  ;;  %v984_v59 = vmul.f32 %v968_v17, %v4428_v18  ;;  %v985_v10 = vmul.f32 %v969_v12, %v4442_v0  ;;  %v986_v20 = vmul.f32 %v970_v8, %v4466_v13 }
 0x293   : > { %vm998_vm4 = vcmp.gt.f32.partialorder %v982_v43, 0.0  ;;  %v1014_v30 = vmul.f32 0.2, %v982_v43  ;;  %vm997_vm5 = vcmp.gt.f32.partialorder %v981_v24, 0.0  ;;  %v1013_v23 = vmul.f32 0.2, %v981_v24 }
 0x294   : > { %vm1005_vm6 = vcmp.gt.f32.partialorder %v989_v51, 0.0  ;;  %v1021_v41 = vmul.f32 0.2, %v989_v51  ;;  %vm999_vm7 = vcmp.gt.f32.partialorder %v983_v16, 0.0  ;;  %v1015_v1 = vmul.f32 0.2, %v983_v16 }
 0x295   : > { %v4446_v3 = vsel %vm998_vm4, %v982_v43, %v1014_v30  ;;  %v4448_v46 = vsel %vm997_vm5, %v981_v24, %v1013_v23  ;;  %v1023_v9 = vmul.f32 0.2, %v991_v45  ;;  %vm1007_vm10 = vcmp.gt.f32.partialorder %v991_v45, 0.0 }
 0x296   : > { %v1046_v4 = vsel %vm6217_vm2, %v4446_v3, -1e+30  ;;  %v1045_v19 = vsel %vm6224_vm3, %v4448_v46, -1e+30  ;;  %v4460_v31 = vsel %vm1005_vm6, %v989_v51, %v1021_v41  ;;  %v4462_v56 = vsel %vm999_vm7, %v983_v16, %v1015_v1  ;;  %v4499_v51 = vld [vmem:[%s4394_s7 + $0x38] sm:$0xff] }
 0x297   : > { %1063 = vmax.xlane.f32.xlu1 %v1046_v4  ;;  %1061 = vmax.xlane.f32.xlu0 %v1045_v19  ;;  %vm1000_vm11 = vcmp.gt.f32.partialorder %v984_v59, 0.0  ;;  %v1016_v14 = vmul.f32 0.2, %v984_v59  ;;  %v1053_v55 = vsel %vm6215_vm8, %v4460_v31, -1e+30  ;;  %v4477_v21 = vsel %vm1007_vm10, %v991_v45, %v1023_v9 }
 0x298   : > { %v1047_v15 = vsel %vm6216_vm9, %v4462_v56, -1e+30  ;;  %v1017_v28 = vmul.f32 0.2, %v985_v10  ;;  %v971_v2 = vadd.f32 %v4396_v26, %v4355_v63  ;;  %vm1001_vm14 = vcmp.gt.f32.partialorder %v985_v10, 0.0 }
 0x299   : > { %v4479_v25 = vsel %vm1000_vm11, %v984_v59, %v1016_v14  ;;  %v1055_v7 = vsel %vm6208_vm12, %v4477_v21, -1e+30  ;;  %v1018_v43 = vmul.f32 0.2, %v986_v20  ;;  %v972_v24 = vadd.f32 %v4396_v26, %v4351_v62  ;;  %v4511_v62 = vld [vmem:[%s4394_s7 + $0x48] sm:$0xff] }
 0x29a   : > { %v1048_v22 = vsel %vm6213_vm13, %v4479_v25, -1e+30  ;;  %v4493_v17 = vsel %vm1001_vm14, %v985_v10, %v1017_v28  ;;  %v987_v63 = vmul.f32 %v971_v2, %v4484_v53  ;;  %vm1002_vm1 = vcmp.gt.f32.partialorder %v986_v20, 0.0  ;;  %6290 = vst [vmem:[#allocation18_spill] sm:$0xff] %v4511_v62 }
 0x29b   : > { %1077 = vmax.xlane.f32.xlu1 %v1053_v55  ;;  %1065 = vmax.xlane.f32.xlu0 %v1047_v15  ;;  %v1049_v16 = vsel %vm6210_vm15, %v4493_v17, -1e+30  ;;  %vm6209_vm4 = vcmp.ne.f32.partialorder %v4466_v13, 0.0  ;;  %v4505_v45 = vsel %vm1002_vm1, %v986_v20, %v1018_v43  ;;  %v988_v12 = vmul.f32 %v972_v24, %v4499_v51  ;;  %v4553_v24 = vld [vmem:[%s4394_s7 + $0x70] sm:$0xff] }
 0x29c   : > { %v1019_v59 = vmul.f32 0.2, %v987_v63  ;;  %v974_v30 = vadd.f32 %v4396_v26, %v4357_v36  ;;  %vm1003_vm5 = vcmp.gt.f32.partialorder %v987_v63, 0.0  ;;  %v1050_v23 = vsel %vm6209_vm4, %v4505_v45, -1e+30  ;;  %v4523_v36 = vld [vmem:[%s4394_s7 + $0x58] sm:$0xff] }
 0x29d   : > { %vm6212_vm6 = vcmp.ne.f32.partialorder %v4484_v53, 0.0  ;;  %v1020_v1 = vmul.f32 0.2, %v988_v12  ;;  %v976_v19 = vadd.f32 %v4396_v26, %v4361_v33  ;;  %vm1004_vm7 = vcmp.gt.f32.partialorder %v988_v12, 0.0  ;;  %6291 = vst [vmem:[#allocation19_spill] sm:$0xff] %v4523_v36  ;;  %6293 = vst [vmem:[#allocation21_spill] sm:$0xff] %v4553_v24 }
 0x29e   : > { %v4517_v41 = vsel %vm1003_vm5, %v987_v63, %v1019_v59  ;;  %v990_v4 = vmul.f32 %v974_v30, %v4511_v62  ;;  %vm6211_vm10 = vcmp.ne.f32.partialorder %v4499_v51, 0.0  ;;  %vm6214_vm14 = vcmp.ne.f32.partialorder %v4511_v62, 0.0 }
 0x29f   : > { %1081 = vmax.xlane.f32.xlu1 %v1055_v7  ;;  %1067 = vmax.xlane.f32.xlu0 %v1048_v22  ;;  %v1051_v8 = vsel %vm6212_vm6, %v4517_v41, -1e+30  ;;  %v4529_v9 = vsel %vm1004_vm7, %v988_v12, %v1020_v1  ;;  %v992_v14 = vmul.f32 %v976_v19, %v4523_v36  ;;  %vm6206_vm5 = vcmp.ne.f32.partialorder %v4523_v36, 0.0  ;;  %v4548_v7 = vld [vmem:[%s4394_s7 + $0x68] sm:$0xff]  ;;  %v4558_v12 = vld [vmem:[%s4394_s7 + $0x60] sm:$0xff] }
 0x2a0   : > { %v1022_v10 = vmul.f32 0.2, %v990_v4  ;;  %vm1006_vm11 = vcmp.gt.f32.partialorder %v990_v4, 0.0  ;;  %v1052_v33 = vsel %vm6211_vm10, %v4529_v9, -1e+30  ;;  %6292 = vst [vmem:[#allocation20_spill] sm:$0xff] %v4548_v7 }
 0x2a1   : > { %v1024_v15 = vmul.f32 0.2, %v992_v14  ;;  %vm1008_vm1 = vcmp.gt.f32.partialorder %v992_v14, 0.0  ;;  %vm6207_vm7 = vcmp.ne.f32.partialorder %v4548_v7, 0.0  ;;  %6294 = vst [vmem:[#allocation22_spill] sm:$0xff] %v4558_v12  ;;  %vm837_vm12 = vcmp.ne.f32.partialorder %v4553_v24, 0.0 }
 0x2a2   : > { %v4536_v55 = vsel %vm1006_vm11, %v990_v4, %v1022_v10  ;;  %v4566_v10 = vld [vmem:[%s4394_s7 + $0x78] sm:$0xff] }
 0x2a3   : > { %1069 = vmax.xlane.f32.xlu0 %v1049_v16  ;;  %v1054_v20 = vsel %vm6214_vm14, %v4536_v55, -1e+30  ;;  %v4542_v28 = vsel %vm1008_vm1, %v992_v14, %v1024_v15  ;;  %6295 = vst [vmem:[#allocation23_spill] sm:$0xff] %v4566_v10  ;;  %vm835_vm1 = vcmp.ne.f32.partialorder %v4558_v12, 0.0 }
 0x2a4   : > { %v1056_v2 = vsel %vm6206_vm5, %v4542_v28, -1e+30  ;;  %vm838_vm5 = vcmp.ne.f32.partialorder %v4566_v10, 0.0 }
 0x2a7   : > { %1071 = vmax.xlane.f32.xlu0 %v1050_v23 }
 0x2ab   : > { %1073 = vmax.xlane.f32.xlu0 %v1051_v8 }
 0x2af   : > { %1075 = vmax.xlane.f32.xlu0 %v1052_v33 }
 0x2b3   : > { %1079 = vmax.xlane.f32.xlu0 %v1054_v20 }
 0x2b7   : > { %1083 = vmax.xlane.f32.xlu0 %v1056_v2 }
 0x2d9   : > { %v949_v22 = vpop.permute.xlu0 %948 }
 0x2da   : > { %v978_v43 = vadd.f32 %v4396_v26, %v949_v22 }
 0x2dc   : > { %v994_v63 = vmul.f32 %v978_v43, %v4548_v7 }
 0x2dd   : > { %v954_v16 = vpop.permute.xlu0 %953 }
 0x2de   : > { %v979_v59 = vadd.f32 %v4396_v26, %v954_v16  ;;  %v944_v30 = vpop.permute.xlu1 %943  ;;  %vm1010_vm11 = vcmp.gt.f32.partialorder %v994_v63, 0.0  ;;  %v1026_v23 = vmul.f32 0.2, %v994_v63 }
 0x2df   : > { %v977_v1 = vadd.f32 %v4396_v26, %v944_v30 }
 0x2e0   : > { %v995_v4 = vmul.f32 %v979_v59, %v4553_v24  ;;  %v4562_v19 = vsel %vm1010_vm11, %v994_v63, %v1026_v23 }
 0x2e1   : > { %v993_v8 = vmul.f32 %v977_v1, %v4558_v12  ;;  %v959_v14 = vpop.permute.xlu0 %958  ;;  %v1058_v33 = vsel %vm6207_vm7, %v4562_v19, -1e+30 }
 0x2e2   : > { %v980_v15 = vadd.f32 %v4396_v26, %v959_v14  ;;  %1087 = vmax.xlane.f32.xlu0 %v1058_v33  ;;  %v1027_v2 = vmul.f32 0.2, %v995_v4  ;;  %vm1011_vm11 = vcmp.gt.f32.partialorder %v995_v4, 0.0 }
 0x2e3   : > { %vm1009_vm0 = vcmp.gt.f32.partialorder %v993_v8, 0.0  ;;  %v1025_v20 = vmul.f32 0.2, %v993_v8 }
 0x2e4   : > { %v996_v22 = vmul.f32 %v980_v15, %v4566_v10  ;;  %v4581_v26 = vsel %vm1011_vm11, %v995_v4, %v1027_v2  ;;  %vm4658_vm11 = vmpackc.low %vm6209_vm4, %vm6210_vm15 }
 0x2e5   : > { %v4574_v43 = vsel %vm1009_vm0, %v993_v8, %v1025_v20  ;;  %v1059_v23 = vsel %vm837_vm12, %v4581_v26, -1e+30  ;;  %vm4620_vm0 = vmpackc.low %vm6217_vm2, %vm6224_vm3 }
 0x2e6   : > { %v1057_v63 = vsel %vm835_vm1, %v4574_v43, -1e+30  ;;  %vm1012_vm7 = vcmp.gt.f32.partialorder %v996_v22, 0.0  ;;  %v1028_v16 = vmul.f32 0.2, %v996_v22  ;;  %vm4675_vm4 = vmpackc.low %vm6211_vm10, %vm6212_vm6  ;;  %vm6311_vm10 = vcmp.ne.f32.partialorder %v4425_v5, 0.0 }
 0x2e7   : > { %1085 = vmax.xlane.f32.xlu1 %v1057_v63  ;;  %vm4691_vm15 = vmpackc.low %vm6214_vm14, %vm6215_vm8  ;;  %vm6312_vm6 = vcmp.ne.f32.partialorder %v4523_v36, 0.0 }
 0x2e8   : > { %v4583_v59 = vsel %vm1012_vm7, %v996_v22, %v1028_v16  ;;  %vm4639_vm7 = vmpackc.low %vm6213_vm13, %vm6216_vm9  ;;  %v6299_v22 = vmov 0 }
 0x2e9   : > { %v1060_v30 = vsel %vm838_vm5, %v4583_v59, -1e+30  ;;  %v6300_v22 = vsel %vm4639_vm7, 4294967295, %v6299_v22  ;;  %vm4707_vm13 = vmpackc.low %vm6312_vm6, %vm6311_vm10  ;;  %vm6316_vm10 = vcmp.ne.f32.partialorder %v4548_v7, 0.0 }
 0x2ea   : > { %1091 = vmax.xlane.f32.xlu0 %v1060_v30  ;;  %6301 = vst [vmem:[#allocation25_spill] sm:$0xff] %v6300_v22  ;;  %vm4735_vm14 = vmpackc.low %vm6316_vm10, %vm835_vm1 }
 0x2eb   : > { %1089 = vmax.xlane.f32.xlu1 %v1059_v23  ;;  %vm4760_vm10 = vmpackc.low %vm838_vm5, %vm837_vm12 }
 0x2fc   : > { %1327 = vperm.xlu1 %3570, %v4048_v29  }
 0x300   : > { %1335 = vperm.xlu1 %3570, %v4067_v34   ;;  %1331 = vperm.xlu0 %3571, %v4042_v27  }
 0x304   : > { %1339 = vperm.xlu1 %3570, %v4061_v32   ;;  %1367 = vperm.xlu0 %3571, %v4150_v54  }
 0x308   : > { %1343 = vperm.xlu1 %3570, %v4087_v39   ;;  %1375 = vperm.xlu0 %3571, %v4170_v58  }
 0x30c   : > { %1347 = vperm.xlu1 %3570, %v4081_v37   ;;  %1383 = vperm.xlu0 %3571, %v4184_v61  }
 0x310   : > { %1351 = vperm.xlu1 %3570, %v4108_v44  }
 0x314   : > { %1355 = vperm.xlu1 %3570, %v4101_v42  }
 0x318   : > { %1359 = vperm.xlu1 %3570, %v4129_v49  }
 0x31c   : > { %1363 = vperm.xlu1 %3570, %v4122_v47  }
 0x320   : > { %1371 = vperm.xlu1 %3570, %v4143_v52  }
 0x324   : > { %v1064_v27 = vpop.xlane.xlu1 %1063  ;;  %1379 = vperm.xlu1 %3570, %v4164_v57   ;;  %v1062_v29 = vpop.xlane.xlu0 %1061 }
 0x325   : > { %v1094_v32 = vsub.f32 %v4446_v3, %v1064_v27  ;;  %v1093_v34 = vsub.f32 %v4448_v46, %v1062_v29 }
 0x327   : > { %v1111_v37 = vmul.f32 1.442695, %v1094_v32  ;;  %v1109_v39 = vmul.f32 1.442695, %v1093_v34 }
 0x328   : > { %1387 = vperm.xlu1 %3570, %v4178_v60   ;;  %v1066_v44 = vpop.xlane.xlu0 %1065  ;;  %v1078_v1 = vpop.xlane.xlu1 %1077 }
 0x329   : > { %3582 = vpow2.f32 %v1111_v37  ;;  %v1095_v42 = vsub.f32 %v4462_v56, %v1066_v44  ;;  %v6296_v56 = vmov 0  ;;  %v1101_v20 = vsub.f32 %v4460_v31, %v1078_v1 }
 0x32a   : > { %3584 = vpow2.f32 %v1109_v39  ;;  %v6297_v56 = vsel %vm4620_vm0, 4294967295, %v6296_v56  ;;  %v6302_v37 = vmov 0 }
 0x32b   : > { %v1113_v49 = vmul.f32 1.442695, %v1095_v42  ;;  %6298 = vst [vmem:[#allocation24_spill] sm:$0xff] %v6297_v56  ;;  %v1125_v31 = vmul.f32 1.442695, %v1101_v20  ;;  %v6303_v37 = vsel %vm4658_vm11, 4294967295, %v6302_v37 }
 0x32c   : > { %v1068_v47 = vpop.xlane.xlu0 %1067  ;;  %v1082_v63 = vpop.xlane.xlu1 %1081  ;;  %6304 = vst [vmem:[#allocation26_spill] sm:$0xff] %v6303_v37 }
 0x32d   : > { %v1096_v52 = vsub.f32 %v4479_v25, %v1068_v47  ;;  %3586 = vpow2.f32 %v1113_v49  ;;  %v1103_v23 = vsub.f32 %v4477_v21, %v1082_v63 }
 0x32f   : > { %v1115_v54 = vmul.f32 1.442695, %v1096_v52  ;;  %v1129_v21 = vmul.f32 1.442695, %v1103_v23  ;;  %v6305_v52 = vmov 0 }
 0x330   : > { %v1070_v57 = vpop.xlane.xlu0 %1069  ;;  %v6306_v52 = vsel %vm4675_vm4, 4294967295, %v6305_v52 }
 0x331   : > { %v1097_v58 = vsub.f32 %v4493_v17, %v1070_v57  ;;  %3588 = vpow2.f32 %v1115_v54  ;;  %6307 = vst [vmem:[#allocation27_spill] sm:$0xff] %v6306_v52 }
 0x333   : > { %v4612_v61 = vpop.eup %3582  ;;  %v1117_v60 = vmul.f32 1.442695, %v1097_v58  ;;  %v6308_v58 = vmov 0 }
 0x334   : > { %v4614_v3 = vpop.eup %3584  ;;  %v1072_v46 = vpop.xlane.xlu0 %1071  ;;  %v6309_v58 = vsel %vm4691_vm15, 4294967295, %v6308_v58 }
 0x335   : > { %v1098_v25 = vsub.f32 %v4505_v45, %v1072_v46  ;;  %v3162_v17 = vpack.c.bf16 %v4612_v61, %v4614_v3  ;;  %3590 = vpow2.f32 %v1117_v60  ;;  %6310 = vst [vmem:[#allocation28_spill] sm:$0xff] %v6309_v58 }
 0x337   : > { %v1119_v4 = vmul.f32 1.442695, %v1098_v25  ;;  %3410 = vmatprep.mubr.msk.bf16.mxu1 %vm4620_vm0, %v3162_v17  ;;  %v4630_v33 = vpop.eup %3586  ;;  %v6313_v17 = vmov 0 }
 0x338   : > { %v1074_v8 = vpop.xlane.xlu0 %1073  ;;  %v6314_v17 = vsel %vm4707_vm13, 4294967295, %v6313_v17 }
 0x339   : > { %3592 = vpow2.f32 %v1119_v4  ;;  %v1099_v14 = vsub.f32 %v4517_v41, %v1074_v8  ;;  %6315 = vst [vmem:[#allocation29_spill] sm:$0xff] %v6314_v17 }
 0x33b   : > { %v4632_v15 = vpop.eup %3588  ;;  %v1121_v45 = vmul.f32 1.442695, %v1099_v14 }
 0x33c   : > { %v1076_v2 = vpop.xlane.xlu0 %1075  ;;  %v3165_v41 = vpack.c.bf16 %v4632_v15, %v4630_v33 }
 0x33d   : > { %v1100_v16 = vsub.f32 %v4529_v9, %v1076_v2  ;;  %3594 = vpow2.f32 %v1121_v45 }
 0x33e   : > { %3411 = vmatmul.mubr.msk.bf16.vlgmr.msra.gmra.mrb[0].mxu1 %vm4639_vm7, %v3165_v41 }
 0x33f   : > { %v1123_v30 = vmul.f32 1.442695, %v1100_v16  ;;  %v4650_v32 = vpop.eup %3590 }
 0x340   : > { %v1080_v27 = vpop.xlane.xlu0 %1079 }
 0x341   : > { %3596 = vpow2.f32 %v1123_v30  ;;  %v1102_v29 = vsub.f32 %v4536_v55, %v1080_v27 }
 0x342   : > { %3598 = vpow2.f32 %v1125_v31 }
 0x343   : > { %v4652_v34 = vpop.eup %3592  ;;  %v1127_v9 = vmul.f32 1.442695, %v1102_v29 }
 0x344   : > { %v1084_v39 = vpop.xlane.xlu0 %1083  ;;  %v3168_v44 = vpack.c.bf16 %v4652_v34, %v4650_v32 }
 0x345   : > { %3600 = vpow2.f32 %v1127_v9  ;;  %v1104_v55 = vsub.f32 %v4542_v28, %v1084_v39 }
 0x346   : > { %3414 = vmatprep.mubr.msk.bf16.mxu1 %vm4658_vm11, %v3168_v44  ;;  %3602 = vpow2.f32 %v1129_v21 }
 0x347   : > { %v1131_v42 = vmul.f32 1.442695, %v1104_v55  ;;  %v4667_v47 = vpop.eup %3594 }
 0x349   : > { %3604 = vpow2.f32 %v1131_v42 }
 0x34b   : > { %v4669_v49 = vpop.eup %3596 }
 0x34c   : > { %v3171_v28 = vpack.c.bf16 %v4669_v49, %v4667_v47  ;;  %v4681_v54 = vpop.eup %3598 }
 0x34e   : > { %3415 = vmatmul.mubr.msk.bf16.gmra.mrb[4].mxu1 %vm4675_vm4, %v3171_v28 }
 0x34f   : > { %v4685_v57 = vpop.eup %3600 }
 0x350   : > { %v3174_v60 = vpack.c.bf16 %v4685_v57, %v4681_v54  ;;  %v4697_v46 = vpop.eup %3602 }
 0x352   : > { %3418 = vmatprep.mubr.msk.bf16.mxu1 %vm4691_vm15, %v3174_v60  ;;  %v6317_v60 = vmov 0 }
 0x353   : > { %v4701_v25 = vpop.eup %3604  ;;  %v6318_v60 = vsel %vm4735_vm14, 4294967295, %v6317_v60 }
 0x354   : > { %v3177_v1 = vpack.c.bf16 %v4701_v25, %v4697_v46  ;;  %6319 = vst [vmem:[#allocation30_spill] sm:$0xff] %v6318_v60 }
 0x356   : > { %3419 = vmatmul.mubr.msk.bf16.gmra.mrb[8].mxu1 %vm4707_vm13, %v3177_v1 }
 0x36f   : > { %v1088_v4 = vpop.xlane.xlu0 %1087 }
 0x370   : > { %v1106_v8 = vsub.f32 %v4562_v19, %v1088_v4 }
 0x372   : > { %v1135_v14 = vmul.f32 1.442695, %v1106_v8 }
 0x374   : > { %v1086_v20 = vpop.xlane.xlu1 %1085  ;;  %3606 = vpow2.f32 %v1135_v14 }
 0x375   : > { %v1105_v45 = vsub.f32 %v4574_v43, %v1086_v20 }
 0x377   : > { %v1133_v2 = vmul.f32 1.442695, %v1105_v45  ;;  %v1092_v63 = vpop.xlane.xlu0 %1091 }
 0x378   : > { %v1108_v16 = vsub.f32 %v4583_v59, %v1092_v63  ;;  %v1090_v41 = vpop.xlane.xlu1 %1089 }
 0x379   : > { %3608 = vpow2.f32 %v1133_v2  ;;  %v1107_v30 = vsub.f32 %v4581_v26, %v1090_v41 }
 0x37a   : > { %v1139_v31 = vmul.f32 1.442695, %v1108_v16 }
 0x37b   : > { %v1137_v23 = vmul.f32 1.442695, %v1107_v30 }
 0x37c   : > { %3610 = vpow2.f32 %v1139_v31  ;;  %v1328_v27 = vpop.permute.xlu1 %1327  ;;  %v6320_v31 = vmov 0 }
 0x37d   : > { %3612 = vpow2.f32 %v1137_v23  ;;  %v1394_v19 = vadd.f32 %v4398_v38, %v1328_v27  ;;  %v6321_v31 = vsel %vm4760_vm10, 4294967295, %v6320_v31 }
 0x37e   : > { %v4723_v44 = vpop.eup %3606  ;;  %6322 = vst [vmem:[#allocation31_spill] sm:$0xff] %v6321_v31 }
 0x37f   : > { %v1410_v29 = vmul.f32 %v1394_v19, %v4408_v6  ;;  %v1332_v9 = vpop.permute.xlu0 %1331 }
 0x380   : > { %v1395_v43 = vadd.f32 %v4398_v38, %v1332_v9  ;;  %v1336_v21 = vpop.permute.xlu1 %1335 }
 0x381   : > { %v1396_v39 = vadd.f32 %v4398_v38, %v1336_v21  ;;  %vm1426_vm6 = vcmp.gt.f32.partialorder %v1410_v29, 0.0  ;;  %v1442_v59 = vmul.f32 0.2, %v1410_v29 }
 0x382   : > { %v1411_v26 = vmul.f32 %v1395_v43, %v4405_v50 }
 0x383   : > { %v4726_v55 = vpop.eup %3608  ;;  %v1412_v42 = vmul.f32 %v1396_v39, %v4414_v35  ;;  %v4729_v28 = vsel %vm1426_vm6, %v1410_v29, %v1442_v59 }
 0x384   : > { %v1340_v1 = vpop.permute.xlu1 %1339  ;;  %v1474_v4 = vsel %vm6224_vm3, %v4729_v28, -1e+30  ;;  %v3180_v8 = vpack.c.bf16 %v4723_v44, %v4726_v55  ;;  %vm1427_vm8 = vcmp.gt.f32.partialorder %v1411_v26, 0.0  ;;  %v1443_v20 = vmul.f32 0.2, %v1411_v26 }
 0x385   : > { %v1397_v14 = vadd.f32 %v4398_v38, %v1340_v1  ;;  %1490 = vmax.xlane.f32.xlu0 %v1474_v4  ;;  %vm1428_vm6 = vcmp.gt.f32.partialorder %v1412_v42, 0.0  ;;  %v1444_v45 = vmul.f32 0.2, %v1412_v42  ;;  %v1368_v4 = vpop.permute.xlu0 %1367 }
 0x386   : > { %v4745_v2 = vpop.eup %3610  ;;  %3422 = vmatprep.mubr.msk.bf16.mxu1 %vm4735_vm14, %v3180_v8  ;;  %v4752_v41 = vsel %vm1427_vm8, %v1411_v26, %v1443_v20 }
 0x387   : > { %v4749_v63 = vpop.eup %3612  ;;  %v1413_v16 = vmul.f32 %v1397_v14, %v4428_v18  ;;  %v4754_v30 = vsel %vm1428_vm6, %v1412_v42, %v1444_v45  ;;  %v1475_v27 = vsel %vm6217_vm2, %v4752_v41, -1e+30  ;;  %vm6323_vm6 = vcmp.ne.f32.partialorder %v4428_v18, 0.0 }
 0x388   : > { %v1344_v23 = vpop.permute.xlu1 %1343  ;;  %v1476_v19 = vsel %vm6216_vm9, %v4754_v30, -1e+30  ;;  %v3183_v29 = vpack.c.bf16 %v4745_v2, %v4749_v63  ;;  %1492 = vmax.xlane.f32.xlu1 %v1475_v27 }
 0x389   : > { %v1398_v9 = vadd.f32 %v4398_v38, %v1344_v23  ;;  %1494 = vmax.xlane.f32.xlu0 %v1476_v19  ;;  %vm1429_vm8 = vcmp.gt.f32.partialorder %v1413_v16, 0.0  ;;  %v1445_v43 = vmul.f32 0.2, %v1413_v16 }
 0x38a   : > { %3423 = vmatmul.mubr.msk.bf16.gmra.mrb[12].mxu1 %vm4760_vm10, %v3183_v29  ;;  %v1404_v29 = vadd.f32 %v4398_v38, %v1368_v4 }
 0x38b   : > { %v1414_v21 = vmul.f32 %v1398_v9, %v4442_v0  ;;  %v4776_v39 = vsel %vm1429_vm8, %v1413_v16, %v1445_v43  ;;  %vm6324_vm8 = vcmp.ne.f32.partialorder %v4442_v0, 0.0  ;;  %v1376_v9 = vpop.permute.xlu0 %1375 }
 0x38c   : > { %v1348_v59 = vpop.permute.xlu1 %1347  ;;  %v1477_v26 = vsel %vm6323_vm6, %v4776_v39, -1e+30 }
 0x38d   : > { %v1399_v42 = vadd.f32 %v4398_v38, %v1348_v59  ;;  %1496 = vmax.xlane.f32.xlu0 %v1477_v26  ;;  %vm1430_vm9 = vcmp.gt.f32.partialorder %v1414_v21, 0.0  ;;  %v1446_v1 = vmul.f32 0.2, %v1414_v21 }
 0x38f   : > { %v1415_v8 = vmul.f32 %v1399_v42, %v4466_v13  ;;  %v4783_v14 = vsel %vm1430_vm9, %v1414_v21, %v1446_v1  ;;  %vm6325_vm9 = vcmp.ne.f32.partialorder %v4466_v13, 0.0 }
 0x390   : > { %v1352_v20 = vpop.permute.xlu1 %1351  ;;  %v1478_v45 = vsel %vm6324_vm8, %v4783_v14, -1e+30 }
 0x391   : > { %v1400_v16 = vadd.f32 %v4398_v38, %v1352_v20  ;;  %1498 = vmax.xlane.f32.xlu1 %v1478_v45  ;;  %vm1431_vm2 = vcmp.gt.f32.partialorder %v1415_v8, 0.0  ;;  %v1447_v23 = vmul.f32 0.2, %v1415_v8  ;;  %v1406_v20 = vadd.f32 %v4398_v38, %v1376_v9 }
 0x393   : > { %v1416_v27 = vmul.f32 %v1400_v16, %v4484_v53  ;;  %v4790_v19 = vsel %vm1431_vm2, %v1415_v8, %v1447_v23  ;;  %v1420_v8 = vmul.f32 %v1404_v29, %v4425_v5  ;;  %vm6326_vm2 = vcmp.ne.f32.partialorder %v4484_v53, 0.0 }
 0x394   : > { %v1356_v43 = vpop.permute.xlu1 %1355  ;;  %v1479_v21 = vsel %vm6325_vm9, %v4790_v19, -1e+30  ;;  %vm6327_vm9 = vcmp.ne.f32.partialorder %v4499_v51, 0.0 }
 0x395   : > { %v1401_v59 = vadd.f32 %v4398_v38, %v1356_v43  ;;  %1500 = vmax.xlane.f32.xlu0 %v1479_v21  ;;  %vm1432_vm6 = vcmp.gt.f32.partialorder %v1416_v27, 0.0  ;;  %v1448_v26 = vmul.f32 0.2, %v1416_v27  ;;  %v1384_v43 = vpop.permute.xlu0 %1383 }
 0x396   : > { %v1408_v31 = vadd.f32 %v4398_v38, %v1384_v43 }
 0x397   : > { %v1417_v42 = vmul.f32 %v1401_v59, %v4499_v51  ;;  %v4798_v1 = vsel %vm1432_vm6, %v1416_v27, %v1448_v26  ;;  %v1422_v27 = vmul.f32 %v1406_v20, %v4558_v12  ;;  %vm1436_vm6 = vcmp.gt.f32.partialorder %v1420_v8, 0.0 }
 0x398   : > { %v1360_v4 = vpop.permute.xlu1 %1359  ;;  %v1480_v45 = vsel %vm6326_vm2, %v4798_v1, -1e+30  ;;  %v1452_v26 = vmul.f32 0.2, %v1420_v8  ;;  %v1424_v43 = vmul.f32 %v1408_v31, %v4553_v24 }
 0x399   : > { %v1402_v16 = vadd.f32 %v4398_v38, %v1360_v4  ;;  %1502 = vmax.xlane.f32.xlu1 %v1480_v45  ;;  %vm1433_vm8 = vcmp.gt.f32.partialorder %v1417_v42, 0.0  ;;  %v1449_v23 = vmul.f32 0.2, %v1417_v42  ;;  %v1454_v17 = vmul.f32 0.2, %v1422_v27 }
 0x39a   : > { %v4821_v60 = vsel %vm1436_vm6, %v1420_v8, %v1452_v26  ;;  %vm6330_vm6 = vcmp.ne.f32.partialorder %v4425_v5, 0.0 }
 0x39b   : > { %v1418_v21 = vmul.f32 %v1402_v16, %v4411_v11  ;;  %v4807_v59 = vsel %vm1433_vm8, %v1417_v42, %v1449_v23  ;;  %vm6328_vm8 = vcmp.ne.f32.partialorder %v4411_v11, 0.0  ;;  %v1484_v8 = vsel %vm6330_vm6, %v4821_v60, -1e+30 }
 0x39c   : > { %v1364_v29 = vpop.permute.xlu1 %1363  ;;  %v1481_v9 = vsel %vm6327_vm9, %v4807_v59, -1e+30  ;;  %vm1438_vm9 = vcmp.gt.f32.partialorder %v1422_v27, 0.0  ;;  %vm6332_vm6 = vcmp.ne.f32.partialorder %v4548_v7, 0.0 }
 0x39d   : > { %v1403_v4 = vadd.f32 %v4398_v38, %v1364_v29  ;;  %1504 = vmax.xlane.f32.xlu0 %v1481_v9  ;;  %vm1434_vm2 = vcmp.gt.f32.partialorder %v1418_v21, 0.0  ;;  %v1450_v45 = vmul.f32 0.2, %v1418_v21  ;;  %v4834_v26 = vsel %vm1438_vm9, %v1422_v27, %v1454_v17 }
 0x39e   : > { %v1486_v17 = vsel %vm835_vm1, %v4834_v26, -1e+30 }
 0x39f   : > { %v1419_v16 = vmul.f32 %v1403_v4, %v4511_v62  ;;  %v4816_v42 = vsel %vm1434_vm2, %v1418_v21, %v1450_v45  ;;  %vm6329_vm2 = vcmp.ne.f32.partialorder %v4511_v62, 0.0 }
 0x3a0   : > { %v1372_v23 = vpop.permute.xlu1 %1371  ;;  %v1482_v20 = vsel %vm6328_vm8, %v4816_v42, -1e+30 }
 0x3a1   : > { %v1405_v29 = vadd.f32 %v4398_v38, %v1372_v23  ;;  %1506 = vmax.xlane.f32.xlu1 %v1482_v20  ;;  %vm1435_vm3 = vcmp.gt.f32.partialorder %v1419_v16, 0.0  ;;  %v1451_v9 = vmul.f32 0.2, %v1419_v16  ;;  %v1456_v20 = vmul.f32 0.2, %v1424_v43 }
 0x3a3   : > { %v1421_v4 = vmul.f32 %v1405_v29, %v4523_v36  ;;  %v4826_v21 = vsel %vm1435_vm3, %v1419_v16, %v1451_v9  ;;  %vm1440_vm3 = vcmp.gt.f32.partialorder %v1424_v43, 0.0 }
 0x3a4   : > { %v1380_v45 = vpop.permute.xlu1 %1379  ;;  %v1483_v58 = vsel %vm6329_vm2, %v4826_v21, -1e+30  ;;  %vm6331_vm2 = vcmp.ne.f32.partialorder %v4523_v36, 0.0 }
 0x3a5   : > { %v1407_v31 = vadd.f32 %v4398_v38, %v1380_v45  ;;  %1508 = vmax.xlane.f32.xlu0 %v1483_v58  ;;  %1510 = vmax.xlane.f32.xlu1 %v1484_v8  ;;  %vm1437_vm8 = vcmp.gt.f32.partialorder %v1421_v4, 0.0  ;;  %v1453_v23 = vmul.f32 0.2, %v1421_v4  ;;  %v4847_v45 = vsel %vm1440_vm3, %v1424_v43, %v1456_v20 }
 0x3a6   : > { %vm6333_vm3 = vcmp.ne.f32.partialorder %v4408_v6, 0.0 }
 0x3a7   : > { %v1423_v16 = vmul.f32 %v1407_v31, %v4548_v7  ;;  %v4838_v29 = vsel %vm1437_vm8, %v1421_v4, %v1453_v23  ;;  %v1488_v23 = vsel %vm837_vm12, %v4847_v45, -1e+30  ;;  %v1141_v20 = vsel %vm6333_vm3, %v4614_v3, 0.0 }
 0x3a8   : > { %v1388_v9 = vpop.permute.xlu1 %1387  ;;  %v1485_v52 = vsel %vm6331_vm2, %v4838_v29, -1e+30  ;;  %vm6334_vm2 = vcmp.ne.f32.partialorder %v4405_v50, 0.0  ;;  %vm6338_vm3 = vcmp.ne.f32.partialorder %v4466_v13, 0.0 }
 0x3a9   : > { %v1409_v58 = vadd.f32 %v4398_v38, %v1388_v9  ;;  %1512 = vmax.xlane.f32.xlu0 %v1485_v52  ;;  %1514 = vmax.xlane.f32.xlu1 %v1486_v17  ;;  %vm1439_vm9 = vcmp.gt.f32.partialorder %v1423_v16, 0.0  ;;  %v1455_v27 = vmul.f32 0.2, %v1423_v16 }
 0x3ab   : > { %v1425_v4 = vmul.f32 %v1409_v58, %v4566_v10  ;;  %v4850_v8 = vsel %vm1439_vm9, %v1423_v16, %v1455_v27  ;;  %v1142_v16 = vsel %vm6334_vm2, %v4612_v61, 0.0  ;;  %vm6335_vm9 = vcmp.ne.f32.partialorder %v4414_v35, 0.0  ;;  %v3886_v10 = vld [vmem:[%s4394_s7] sm:$0xff] }
 0x3ac   : > { %v1487_v31 = vsel %vm6332_vm6, %v4850_v8, -1e+30  ;;  %v1143_v9 = vsel %vm6335_vm9, %v4630_v33, 0.0  ;;  %vm6336_vm6 = vcmp.ne.f32.partialorder %v4428_v18, 0.0  ;;  %v1146_v61 = vsel %vm6338_vm3, %v4652_v34, 0.0 }
 0x3ad   : > { %1516 = vmax.xlane.f32.xlu0 %v1487_v31  ;;  %1518 = vmax.xlane.f32.xlu1 %v1488_v23  ;;  %vm1441_vm8 = vcmp.gt.f32.partialorder %v1425_v4, 0.0  ;;  %v1457_v38 = vmul.f32 0.2, %v1425_v4  ;;  %v1144_v17 = vsel %vm6336_vm6, %v4632_v15, 0.0  ;;  %vm6339_vm2 = vcmp.ne.f32.partialorder %v4484_v53, 0.0 }
 0x3ae   : > { %v1147_v33 = vsel %vm6339_vm2, %v4667_v47, 0.0  ;;  %v6229_v58 = vmov 34   ;;  %vm6340_vm9 = vcmp.ne.f32.partialorder %v4499_v51, 0.0  ;;  %vm6341_vm6 = vcmp.ne.f32.partialorder %v4411_v11, 0.0 }
 0x3af   : > { %v4858_v52 = vsel %vm1441_vm8, %v1425_v4, %v1457_v38  ;;  %vm6337_vm8 = vcmp.ne.f32.partialorder %v4442_v0, 0.0  ;;  %3572 = vset.pattern.permute.xlu1 %v6229_v58  ;;  %3573 = vset.pattern.permute.xlu0 %v6229_v58  ;;  %v1148_v15 = vsel %vm6340_vm9, %v4669_v49, 0.0  ;;  %vm6343_vm3 = vcmp.ne.f32.partialorder %v4425_v5, 0.0 }
 0x3b0   : > { %v1489_v43 = vsel %vm838_vm5, %v4858_v52, -1e+30  ;;  %v1145_v3 = vsel %vm6337_vm8, %v4650_v32, 0.0  ;;  %v1149_v32 = vsel %vm6341_vm6, %v4681_v54, 0.0  ;;  %vm6342_vm8 = vcmp.ne.f32.partialorder %v4511_v62, 0.0 }
 0x3b1   : > { %1520 = vmax.xlane.f32.xlu0 %v1489_v43  ;;  %1157 = vadd.xlane.f32.xlu1 %v1141_v20  ;;  %v1150_v34 = vsel %vm6342_vm8, %v4685_v57, 0.0  ;;  %v1151_v47 = vsel %vm6343_vm3, %v4697_v46, 0.0  ;;  %vm6344_vm2 = vcmp.ne.f32.partialorder %v4523_v36, 0.0  ;;  %v1153_v54 = vsel %vm835_vm1, %v4726_v55, 0.0 }
 0x3b2   : > { %v1152_v49 = vsel %vm6344_vm2, %v4701_v25, 0.0  ;;  %vm6345_vm9 = vcmp.ne.f32.partialorder %v4548_v7, 0.0  ;;  %v1155_v46 = vsel %vm837_vm12, %v4749_v63, 0.0  ;;  %v1156_v25 = vsel %vm838_vm5, %v4745_v2, 0.0 }
 0x3b3   : > { %v1154_v57 = vsel %vm6345_vm9, %v4723_v44, 0.0  ;;  %vm6352_vm6 = vcmp.ne.f32.partialorder %v4408_v6, 0.0  ;;  %vm6355_vm8 = vcmp.ne.f32.partialorder %v4405_v50, 0.0  ;;  %vm6356_vm3 = vcmp.ne.f32.partialorder %v4414_v35, 0.0 }
 0x3b4   : > { %vm6359_vm2 = vcmp.ne.f32.partialorder %v4428_v18, 0.0 }
 0x3b5   : > { %1159 = vadd.xlane.f32.xlu0 %v1142_v16  ;;  %1161 = vadd.xlane.f32.xlu1 %v1143_v9 }
 0x3b9   : > { %1163 = vadd.xlane.f32.xlu0 %v1144_v17  ;;  %1165 = vadd.xlane.f32.xlu1 %v1145_v3 }
 0x3bd   : > { %1167 = vadd.xlane.f32.xlu0 %v1146_v61  ;;  %1169 = vadd.xlane.f32.xlu1 %v1147_v33 }
 0x3c1   : > { %1171 = vadd.xlane.f32.xlu0 %v1148_v15  ;;  %1173 = vadd.xlane.f32.xlu1 %v1149_v32 }
 0x3c5   : > { %1175 = vadd.xlane.f32.xlu0 %v1150_v34  ;;  %1177 = vadd.xlane.f32.xlu1 %v1151_v47 }
 0x3c9   : > { %1179 = vadd.xlane.f32.xlu0 %v1152_v49  ;;  %1181 = vadd.xlane.f32.xlu1 %v1153_v54 }
 0x3cd   : > { %1183 = vadd.xlane.f32.xlu0 %v1154_v57  ;;  %1185 = vadd.xlane.f32.xlu1 %v1155_v46 }
 0x3d1   : > { %1187 = vadd.xlane.f32.xlu0 %v1156_v25 }
 0x411   : > { %v4913_v27 = vpop.f32.mrb[0].mxu1 }
 0x412   : > { %6346 = vst [vmem:[#allocation32_spill] sm:$0xff] %v4913_v27  ;;  %v1491_v55 = vpop.xlane.xlu0 %1490  ;;  %v4916_v31 = vpop.f32.mrb[1].mxu1 }
 0x413   : > { %v1522_v4 = vsub.f32 %v4729_v28, %v1491_v55  ;;  %6347 = vst [vmem:[#allocation33_spill] sm:$0xff] %v4916_v31  ;;  %v4918_v23 = vpop.f32.mrb[2].mxu1 }
 0x414   : > { %6348 = vst [vmem:[#allocation34_spill] sm:$0xff] %v4918_v23  ;;  %v4920_v38 = vpop.f32.mrb[3].mxu1  ;;  %v3885_v23 = vld [vmem:[#allocation2 + $0x70] sm:$0xff] }
 0x415   : > { %v1538_v44 = vmul.f32 1.442695, %v1522_v4  ;;  %6349 = vst [vmem:[#allocation35_spill] sm:$0xff] %v4920_v38  ;;  %v1493_v63 = vpop.xlane.xlu1 %1492 }
 0x416   : > { %v1495_v43 = vpop.xlane.xlu0 %1494  ;;  %v1523_v20 = vsub.f32 %v4752_v41, %v1493_v63 }
 0x417   : > { %3614 = vpow2.f32 %v1538_v44  ;;  %v1524_v2 = vsub.f32 %v4754_v30, %v1495_v43  ;;  %v3870_v43 = vld [vmem:[#allocation2] sm:$0xff] }
 0x418   : > { %v1540_v16 = vmul.f32 1.442695, %v1523_v20  ;;  %v3871_v20 = vld [vmem:[#allocation2 + $0x10] sm:$0xff] }
 0x419   : > { %v1542_v9 = vmul.f32 1.442695, %v1524_v2  ;;  %v3872_v2 = vld [vmem:[#allocation2 + $0x18] sm:$0xff] }
 0x41a   : > { %v1497_v17 = vpop.xlane.xlu0 %1496  ;;  %3616 = vpow2.f32 %v1540_v16  ;;  %v3873_v16 = vld [vmem:[#allocation2 + $0x8] sm:$0xff] }
 0x41b   : > { %v1525_v28 = vsub.f32 %v4776_v39, %v1497_v17  ;;  %3618 = vpow2.f32 %v1542_v9  ;;  %v6231_v9 = vmov 35   ;;  %v3874_v17 = vld [vmem:[#allocation2 + $0x28] sm:$0xff] }
 0x41d   : > { %v1544_v3 = vmul.f32 1.442695, %v1525_v28  ;;  %v3875_v28 = vld [vmem:[#allocation2 + $0x38] sm:$0xff] }
 0x41f   : > { %3620 = vpow2.f32 %v1544_v3  ;;  %v3876_v3 = vld [vmem:[#allocation2 + $0x40] sm:$0xff] }
 0x421   : > { %v3615_v61 = vpop.eup %3614  ;;  %v4925_v33 = vpop.f32.mrb[4].mxu1 }
 0x422   : > { %6350 = vst [vmem:[#allocation36_spill] sm:$0xff] %v4925_v33  ;;  %v4927_v15 = vpop.f32.mrb[5].mxu1  ;;  %v1570_v32 = vsel %vm6352_vm6, %v3615_v61, 0.0 }
 0x423   : > { %6351 = vst [vmem:[#allocation37_spill] sm:$0xff] %v4927_v15  ;;  %1586 = vadd.xlane.f32.xlu1 %v1570_v32  ;;  %v4931_v41 = vpop.f32.mrb[6].mxu1  ;;  %v3878_v32 = vld [vmem:[#allocation2 + $0x60] sm:$0xff] }
 0x424   : > { %6353 = vst [vmem:[#allocation38_spill] sm:$0xff] %v4931_v41  ;;  %v4933_v30 = vpop.f32.mrb[7].mxu1  ;;  %v3617_v34 = vpop.eup %3616 }
 0x425   : > { %6354 = vst [vmem:[#allocation39_spill] sm:$0xff] %v4933_v30  ;;  %v4935_v47 = vpop.eup %3618  ;;  %v1571_v39 = vsel %vm6355_vm8, %v3617_v34, 0.0  ;;  %v3186_v49 = vpack.c.bf16 %v3617_v34, %v3615_v61  ;;  %v3877_v61 = vld [vmem:[#allocation2 + $0x58] sm:$0xff]  ;;  %v3879_v34 = vld [vmem:[#allocation2 + $0x20] sm:$0xff] }
 0x426   : > { %1588 = vadd.xlane.f32.xlu0 %v1571_v39  ;;  %v1572_v54 = vsel %vm6356_vm3, %v4935_v47, 0.0  ;;  %v3880_v39 = vld [vmem:[#allocation2 + $0x78] sm:$0xff] }
 0x427   : > { %3442 = vmatprep.mubr.msk.bf16.mxu0 %vm4620_vm0, %v3186_v49  ;;  %1590 = vadd.xlane.f32.xlu1 %v1572_v54  ;;  %v3881_v49 = vld [vmem:[#allocation2 + $0x30] sm:$0xff] }
 0x429   : > { %v4944_v57 = vpop.eup %3620  ;;  %v4946_v46 = vpop.f32.mrb[8].mxu1 }
 0x42a   : > { %6357 = vst [vmem:[#allocation40_spill] sm:$0xff] %v4946_v46  ;;  %v4950_v55 = vpop.f32.mrb[9].mxu1  ;;  %v1573_v4 = vsel %vm6359_vm2, %v4944_v57, 0.0  ;;  %vm6396_vm2 = vcmp.ne.f32.partialorder %v4405_v50, 0.0 }
 0x42b   : > { %6358 = vst [vmem:[#allocation41_spill] sm:$0xff] %v4950_v55  ;;  %1592 = vadd.xlane.f32.xlu0 %v1573_v4  ;;  %v4955_v44 = vpop.f32.mrb[10].mxu1 }
 0x42c   : > { %6360 = vst [vmem:[#allocation42_spill] sm:$0xff] %v4955_v44  ;;  %v4957_v63 = vpop.f32.mrb[11].mxu1  ;;  %v4975_v44 = vpop.xlane.xlu0 %1500 }
 0x42d   : > { %6361 = vst [vmem:[#allocation43_spill] sm:$0xff] %v4957_v63  ;;  %v6370_v63 = vmov 35  }
 0x438   : > { %1788 = vperm.xlu1 %3572, %v3870_v43  }
 0x43c   : > { %1796 = vperm.xlu1 %3572, %v3871_v20  }
 0x440   : > { %1800 = vperm.xlu1 %3572, %v3872_v2  }
 0x441   : > { %1792 = vperm.xlu0 %3573, %v3873_v16  }
 0x444   : > { %3574 = vset.pattern.permute.xlu1 %v6231_v9 }
 0x445   : > { %1808 = vperm.xlu0 %3573, %v3874_v17   ;;  %2241 = vperm.xlu1 %3574, %v3870_v43  }
 0x449   : > { %1816 = vperm.xlu0 %3573, %v3875_v28   ;;  %2245 = vperm.xlu1 %3574, %v3873_v16   ;;  %v3882_v16 = vld [vmem:[#allocation2 + $0x48] sm:$0xff] }
 0x44d   : > { %1820 = vperm.xlu0 %3573, %v3876_v3   ;;  %2249 = vperm.xlu1 %3574, %v3871_v20  }
 0x451   : > { %1832 = vperm.xlu0 %3573, %v3877_v61   ;;  %2253 = vperm.xlu1 %3574, %v3872_v2   ;;  %v4971_v2 = vpop.xlane.xlu1 %1498 }
 0x455   : > { %1836 = vperm.xlu0 %3573, %v3878_v32   ;;  %3575 = vset.pattern.permute.xlu1 %v6229_v58  ;;  %v4973_v25 = vpop.xlane.xlu1 %1502  ;;  %v3883_v58 = vld [vmem:[#allocation2 + $0x68] sm:$0xff] }
 0x456   : > { %1804 = vperm.xlu1 %3575, %v3879_v34  }
 0x459   : > { %1848 = vperm.xlu0 %3573, %v3880_v39  }
 0x45a   : > { %1812 = vperm.xlu1 %3575, %v3881_v49  }
 0x45d   : > { %3580 = vset.pattern.permute.xlu0 %v6231_v9  ;;  %v4962_v54 = vpop.f32.mrb[12].mxu1 }
 0x45e   : > { %6362 = vst [vmem:[#allocation44_spill] sm:$0xff] %v4962_v54  ;;  %2261 = vperm.xlu0 %3580, %v3874_v17   ;;  %v4964_v4 = vpop.f32.mrb[13].mxu1  ;;  %3576 = vset.pattern.permute.xlu1 %v6231_v9  ;;  %v4977_v17 = vpop.xlane.xlu1 %1506  ;;  %v6366_v9 = vld [vmem:[#allocation4_spill] sm:$0xff] }
 0x45f   : > { %6363 = vst [vmem:[#allocation45_spill] sm:$0xff] %v4964_v4  ;;  %v4967_v43 = vpop.f32.mrb[14].mxu1  ;;  %2257 = vperm.xlu1 %3576, %v3879_v34   ;;  %v4981_v34 = vpop.xlane.xlu0 %1504  ;;  %v3884_v4 = vld [vmem:[#allocation2 + $0x50] sm:$0xff] }
 0x460   : > { %6364 = vst [vmem:[#allocation46_spill] sm:$0xff] %v4967_v43  ;;  %v4969_v20 = vpop.f32.mrb[15].mxu1  ;;  %v6367_v43 = vmov 34  }
 0x461   : > { %6365 = vst [vmem:[#allocation47_spill] sm:$0xff] %v4969_v20 }
 0x462   : > { %2277 = vperm.xlu0 %3580, %v3882_v16   ;;  %v4986_v20 = vpop.xlane.xlu1 %1510 }
 0x463   : > { %2265 = vperm.xlu1 %3576, %v3881_v49   ;;  %v6368_v49 = vld [vmem:[#allocation6_spill] sm:$0xff]  ;;  %v4988_v54 = vpop.xlane.xlu0 %1508 }
 0x466   : > { %2293 = vperm.xlu0 %3580, %v3883_v58   ;;  %v4993_v46 = vpop.xlane.xlu1 %1514 }
 0x467   : > { %2269 = vperm.xlu1 %3576, %v3875_v28   ;;  %v6369_v28 = vld [vmem:[#allocation8_spill] sm:$0xff]  ;;  %v4995_v41 = vpop.xlane.xlu0 %1512 }
 0x46a   : > { %1634 = vrot.lane.b32.xlu0 %v6366_v9, %s3934_s8  ;;  %v4999_v55 = vpop.xlane.xlu1 %1518 }
 0x46b   : > { %3577 = vset.pattern.permute.xlu1 %v6367_v43  ;;  %v5001_v33 = vpop.xlane.xlu0 %1516 }
 0x46c   : > { %1824 = vperm.xlu1 %3577, %v3882_v16   ;;  %v6371_v16 = vld [vmem:[#allocation10_spill] sm:$0xff] }
 0x46e   : > { %1638 = vrot.lane.b32.xlu0 %v6368_v49, %s3934_s8  ;;  %v5003_v30 = vpop.xlane.xlu1 %1157 }
 0x46f   : > { %6372 = vst [vmem:[#allocation4_spill] sm:$0xff] %v5003_v30  ;;  %v5005_v15 = vpop.xlane.xlu0 %1520 }
 0x470   : > { %1828 = vperm.xlu1 %3577, %v3884_v4  }
 0x472   : > { %1642 = vrot.lane.b32.xlu0 %v6369_v28, %s3934_s8  ;;  %v5008_v31 = vpop.xlane.xlu1 %1161 }
 0x473   : > { %6373 = vst [vmem:[#allocation6_spill] sm:$0xff] %v5008_v31 }
 0x474   : > { %3578 = vset.pattern.permute.xlu1 %v6370_v63 }
 0x475   : > { %2273 = vperm.xlu1 %3578, %v3876_v3   ;;  %v5010_v3 = vpop.xlane.xlu0 %1159 }
 0x476   : > { %1646 = vrot.lane.b32.xlu0 %v6371_v16, %s3934_s8  ;;  %6374 = vst [vmem:[#allocation48_spill] sm:$0xff] %v5010_v3 }
 0x479   : > { %2281 = vperm.xlu1 %3578, %v3884_v4   ;;  %v5013_v4 = vpop.xlane.xlu1 %1165  ;;  %v5015_v27 = vpop.xlane.xlu0 %1163 }
 0x47a   : > { %6375 = vst [vmem:[#allocation49_spill] sm:$0xff] %v5013_v4  ;;  %6376 = vst [vmem:[#allocation50_spill] sm:$0xff] %v5015_v27 }
 0x47d   : > { %2285 = vperm.xlu1 %3578, %v3877_v61   ;;  %v5017_v61 = vpop.xlane.xlu1 %1169  ;;  %v5019_v30 = vpop.xlane.xlu0 %1167 }
 0x47e   : > { %6377 = vst [vmem:[#allocation51_spill] sm:$0xff] %v5017_v61  ;;  %6378 = vst [vmem:[#allocation52_spill] sm:$0xff] %v5019_v30 }
 0x481   : > { %3579 = vset.pattern.permute.xlu1 %v6367_v43  ;;  %v5023_v43 = vpop.xlane.xlu1 %1173  ;;  %v5025_v38 = vpop.xlane.xlu0 %1171 }
 0x482   : > { %1840 = vperm.xlu1 %3579, %v3883_v58   ;;  %v6379_v58 = vld [vmem:[#allocation5_spill] sm:$0xff]  ;;  %6381 = vst [vmem:[#allocation53_spill] sm:$0xff] %v5025_v38 }
 0x483   : > { %6380 = vst [vmem:[#allocation5_spill] sm:$0xff] %v5023_v43 }
 0x485   : > { %v5031_v4 = vpop.xlane.xlu0 %1175 }
 0x486   : > { %1844 = vperm.xlu1 %3579, %v3885_v23   ;;  %6384 = vst [vmem:[#allocation55_spill] sm:$0xff] %v5031_v4 }
 0x489   : > { %v5039_v61 = vpop.xlane.xlu0 %1179 }
 0x48a   : > { %3581 = vset.pattern.permute.xlu1 %v6370_v63  ;;  %v6382_v63 = vld [vmem:[#allocation7_spill] sm:$0xff]  ;;  %6388 = vst [vmem:[#allocation57_spill] sm:$0xff] %v5039_v61 }
 0x48b   : > { %2289 = vperm.xlu1 %3581, %v3878_v32   ;;  %v5029_v32 = vpop.xlane.xlu1 %1177 }
 0x48c   : > { %6383 = vst [vmem:[#allocation54_spill] sm:$0xff] %v5029_v32 }
 0x48d   : > { %v5043_v38 = vpop.xlane.xlu0 %1183 }
 0x48e   : > { %6390 = vst [vmem:[#allocation59_spill] sm:$0xff] %v5043_v38 }
 0x48f   : > { %2297 = vperm.xlu1 %3581, %v3885_v23   ;;  %v6385_v23 = vld [vmem:[#allocation9_spill] sm:$0xff]  ;;  %v5037_v30 = vpop.xlane.xlu1 %1181 }
 0x490   : > { %6387 = vst [vmem:[#allocation56_spill] sm:$0xff] %v5037_v30 }
 0x491   : > { %v5047_v32 = vpop.xlane.xlu0 %1187 }
 0x492   : > { %6392 = vst [vmem:[#allocation61_spill] sm:$0xff] %v5047_v32 }
 0x493   : > { %2301 = vperm.xlu1 %3581, %v3880_v39   ;;  %v6386_v39 = vld [vmem:[#allocation11_spill] sm:$0xff]  ;;  %v5041_v43 = vpop.xlane.xlu1 %1185 }
 0x494   : > { %6389 = vst [vmem:[#allocation58_spill] sm:$0xff] %v5041_v43 }
 0x497   : > { %1636 = vrot.lane.b32.xlu1 %v6379_v58, %s3934_s8 }
 0x49b   : > { %1640 = vrot.lane.b32.xlu1 %v6382_v63, %s3934_s8 }
 0x49f   : > { %1644 = vrot.lane.b32.xlu1 %v6385_v23, %s3934_s8 }
 0x4a3   : > { %1648 = vrot.lane.b32.xlu1 %v6386_v39, %s3934_s8 }
 0x4b0   : > { %v5045_v27 = vpop.xlane.xlu1 %1586 }
 0x4b1   : > { %6391 = vst [vmem:[#allocation60_spill] sm:$0xff] %v5045_v27 }
 0x4b3   : > { %v5051_v31 = vpop.xlane.xlu0 %1588 }
 0x4b4   : > { %v5049_v4 = vpop.xlane.xlu1 %1590  ;;  %6394 = vst [vmem:[#allocation63_spill] sm:$0xff] %v5051_v31 }
 0x4b5   : > { %6393 = vst [vmem:[#allocation62_spill] sm:$0xff] %v5049_v4  ;;  %v5061_v4 = vld [vmem:[%s4394_s7 + $0x10] sm:$0xff] }
 0x4b8   : > { %v1789_v3 = vpop.permute.xlu1 %1788  ;;  %v5055_v61 = vpop.xlane.xlu0 %1592 }
 0x4b9   : > { %v1855_v39 = vadd.f32 %v4400_v40, %v1789_v3  ;;  %6395 = vst [vmem:[#allocation64_spill] sm:$0xff] %v5055_v61 }
 0x4bb   : > { %v1871_v30 = vmul.f32 %v3886_v10, %v1855_v39 }
 0x4bc   : > { %v1797_v43 = vpop.permute.xlu1 %1796 }
 0x4bd   : > { %v1857_v38 = vadd.f32 %v4400_v40, %v1797_v43  ;;  %vm1887_vm9 = vcmp.gt.f32.partialorder %v1871_v30, 0.0  ;;  %v1903_v27 = vmul.f32 0.2, %v1871_v30  ;;  %v3888_v43 = vld [vmem:[%s4394_s7 + $0x8] sm:$0xff] }
 0x4bf   : > { %v5058_v32 = vsel %vm1887_vm9, %v1871_v30, %v1903_v27  ;;  %v1873_v31 = vmul.f32 %v5061_v4, %v1857_v38  ;;  %v5073_v27 = vld [vmem:[%s4394_s7 + $0x18] sm:$0xff] }
 0x4c0   : > { %v1793_v24 = vpop.permute.xlu0 %1792  ;;  %v1801_v7 = vpop.permute.xlu1 %1800  ;;  %v1935_v39 = vsel %vm6352_vm6, %v5058_v32, -1e+30  ;;  %vm6398_vm6 = vcmp.ne.f32.partialorder %v4414_v35, 0.0 }
 0x4c1   : > { %v1856_v3 = vadd.f32 %v4400_v40, %v1793_v24  ;;  %v1858_v61 = vadd.f32 %v4400_v40, %v1801_v7  ;;  %1951 = vmax.xlane.f32.xlu0 %v1935_v39  ;;  %v1905_v5 = vmul.f32 0.2, %v1873_v31  ;;  %vm1889_vm3 = vcmp.gt.f32.partialorder %v1873_v31, 0.0 }
 0x4c3   : > { %v1872_v16 = vmul.f32 %v3888_v43, %v1856_v3  ;;  %v1874_v30 = vmul.f32 %v5073_v27, %v1858_v61  ;;  %v5084_v28 = vsel %vm1889_vm3, %v1873_v31, %v1905_v5  ;;  %vm6400_vm3 = vcmp.ne.f32.partialorder %v4428_v18, 0.0 }
 0x4c4   : > { %v5070_v12 = vpop.permute.xlu0 %1808  ;;  %v2242_v23 = vpop.permute.xlu1 %2241 }
 0x4c5   : > { %vm1888_vm8 = vcmp.gt.f32.partialorder %v1872_v16, 0.0  ;;  %v1904_v38 = vmul.f32 0.2, %v1872_v16  ;;  %v2308_v24 = vadd.f32 %v4402_v48, %v2242_v23  ;;  %v1906_v61 = vmul.f32 0.2, %v1874_v30 }
 0x4c6   : > { %vm1890_vm9 = vcmp.gt.f32.partialorder %v1874_v30, 0.0 }
 0x4c7   : > { %v5077_v36 = vsel %vm1888_vm8, %v1872_v16, %v1904_v38  ;;  %v2324_v3 = vmul.f32 %v3886_v10, %v2308_v24  ;;  %v1937_v16 = vsel %vm6398_vm6, %v5084_v28, -1e+30  ;;  %v5092_v56 = vsel %vm1890_vm9, %v1874_v30, %v1906_v61 }
 0x4c8   : > { %v5079_v11 = vpop.permute.xlu0 %1816  ;;  %v1936_v7 = vsel %vm6396_vm2, %v5077_v36, -1e+30  ;;  %v2246_v39 = vpop.permute.xlu1 %2245  ;;  %v1938_v5 = vsel %vm6400_vm3, %v5092_v56, -1e+30  ;;  %vm6402_vm9 = vcmp.ne.f32.partialorder %v4408_v6, 0.0  ;;  %vm6405_vm6 = vcmp.ne.f32.partialorder %v4405_v50, 0.0 }
 0x4c9   : > { %1953 = vmax.xlane.f32.xlu1 %v1936_v7  ;;  %v2309_v62 = vadd.f32 %v4402_v48, %v2246_v39  ;;  %v2356_v10 = vmul.f32 0.2, %v2324_v3  ;;  %vm2340_vm8 = vcmp.gt.f32.partialorder %v2324_v3, 0.0  ;;  %vm6412_vm3 = vcmp.ne.f32.partialorder %v4414_v35, 0.0 }
 0x4ca   : > { %v1527_v35 = vsub.f32 %v4790_v19, %v4975_v44  ;;  %v1529_v19 = vsub.f32 %v4807_v59, %v4981_v34 }
 0x4cb   : > { %v2325_v23 = vmul.f32 %v3888_v43, %v2309_v62  ;;  %v5099_v7 = vsel %vm2340_vm8, %v2324_v3, %v2356_v10 }
 0x4cc   : > { %v5087_v63 = vpop.permute.xlu0 %1820  ;;  %v2250_v38 = vpop.permute.xlu1 %2249  ;;  %v2388_v62 = vsel %vm6402_vm9, %v5099_v7, -1e+30  ;;  %vm6414_vm9 = vcmp.ne.f32.partialorder %v4428_v18, 0.0 }
 0x4cd   : > { %6397 = vst [vmem:[#allocation65_spill] sm:$0xff] %v5087_v63  ;;  %1955 = vmax.xlane.f32.xlu1 %v1937_v16  ;;  %v2357_v39 = vmul.f32 0.2, %v2325_v23  ;;  %vm2341_vm2 = vcmp.gt.f32.partialorder %v2325_v23, 0.0  ;;  %v2310_v6 = vadd.f32 %v4402_v48, %v2250_v38 }
 0x4cf   : > { %v5106_v43 = vsel %vm2341_vm2, %v2325_v23, %v2357_v39 }
 0x4d0   : > { %v5094_v24 = vpop.permute.xlu0 %1832  ;;  %v2254_v31 = vpop.permute.xlu1 %2253  ;;  %6403 = vst [vmem:[#allocation68_spill] sm:$0xff] %v5106_v43  ;;  %v2389_v3 = vsel %vm6405_vm6, %v5106_v43, -1e+30 }
 0x4d1   : > { %6399 = vst [vmem:[#allocation66_spill] sm:$0xff] %v5094_v24  ;;  %1957 = vmax.xlane.f32.xlu1 %v1938_v5 }
 0x4d4   : > { %v5101_v63 = vpop.permute.xlu0 %1836 }
 0x4d5   : > { %6401 = vst [vmem:[#allocation67_spill] sm:$0xff] %v5101_v63  ;;  %2404 = vmax.xlane.f32.xlu1 %v2388_v62  ;;  %v1805_v30 = vpop.permute.xlu1 %1804 }
 0x4d7   : > { %2087 = vrot.lane.b32.xlu0 %v6366_v9, %s3935_s9 }
 0x4d8   : > { %v5110_v61 = vpop.permute.xlu0 %1848 }
 0x4d9   : > { %6404 = vst [vmem:[#allocation69_spill] sm:$0xff] %v5110_v61  ;;  %2406 = vmax.xlane.f32.xlu1 %v2389_v3  ;;  %v5115_v16 = vpop.permute.xlu1 %1812  ;;  %v2326_v3 = vmul.f32 %v5061_v4, %v2310_v6  ;;  %v2311_v6 = vadd.f32 %v4402_v48, %v2254_v31 }
 0x4db   : > { %vm2342_vm8 = vcmp.gt.f32.partialorder %v2326_v3, 0.0  ;;  %v2327_v4 = vmul.f32 %v5073_v27, %v2311_v6 }
 0x4dd   : > { %v5117_v10 = vpop.permute.xlu0 %2261  ;;  %vm2343_vm2 = vcmp.gt.f32.partialorder %v2327_v4, 0.0 }
 0x4de   : > { %v5119_v5 = vpop.permute.xlu1 %2257 }
 0x4e1   : > { %v5121_v23 = vpop.permute.xlu0 %2277 }
 0x4e2   : > { %6406 = vst [vmem:[#allocation70_spill] sm:$0xff] %v5121_v23  ;;  %v5123_v39 = vpop.permute.xlu1 %2265  ;;  %v2358_v23 = vmul.f32 0.2, %v2326_v3 }
 0x4e3   : > { %6407 = vst [vmem:[#allocation71_spill] sm:$0xff] %v5123_v39 }
 0x4e5   : > { %v5125_v62 = vpop.permute.xlu0 %2293 }
 0x4e6   : > { %6408 = vst [vmem:[#allocation72_spill] sm:$0xff] %v5125_v62  ;;  %v5128_v61 = vpop.permute.xlu1 %2269  ;;  %v5137_v62 = vsel %vm2342_vm8, %v2326_v3, %v2358_v23  ;;  %v2359_v23 = vmul.f32 0.2, %v2327_v4  ;;  %vm6416_vm8 = vcmp.ne.f32.partialorder %v4442_v0, 0.0 }
 0x4e7   : > { %6410 = vst [vmem:[#allocation74_spill] sm:$0xff] %v5137_v62  ;;  %v2390_v39 = vsel %vm6412_vm3, %v5137_v62, -1e+30 }
 0x4e8   : > { %v5154_v3 = vsel %vm2343_vm2, %v2327_v4, %v2359_v23  ;;  %v1859_v4 = vadd.f32 %v4400_v40, %v1805_v30 }
 0x4e9   : > { %v1635_v63 = vpop.permute.xlu0 %1634  ;;  %6413 = vst [vmem:[#allocation76_spill] sm:$0xff] %v5154_v3 }
 0x4ea   : > { %3426 = vmatprep.subr.bf16.mxu0 %v1635_v63  ;;  %2540 = vrot.lane.b32.xlu1 %v6366_v9, %s3936_s10 }
 0x4eb   : > { %3427 = vmatpush3.bf16.msra.mxu0 %v1635_v63  ;;  %v5133_v50 = vpop.permute.xlu1 %1824 }
 0x4ed   : > { %v1639_v62 = vpop.permute.xlu0 %1638 }
 0x4ef   : > { %v5135_v24 = vpop.permute.xlu1 %1828 }
 0x4f0   : > { %6409 = vst [vmem:[#allocation73_spill] sm:$0xff] %v5135_v24 }
 0x4f4   : > { %v5139_v38 = vpop.permute.xlu1 %2273 }
 0x4f5   : > { %6411 = vst [vmem:[#allocation75_spill] sm:$0xff] %v5139_v38 }
 0x4f6   : > { %2408 = vmax.xlane.f32.xlu0 %v2390_v39  ;;  %v2391_v39 = vsel %vm6414_vm9, %v5154_v3, -1e+30  ;;  %v5175_v3 = vld [vmem:[%s4394_s7 + $0x20] sm:$0xff]  ;;  %vm6420_vm9 = vcmp.ne.f32.partialorder %v4466_v13, 0.0 }
 0x4f7   : > { %v1875_v18 = vmul.f32 %v5175_v3, %v1859_v4  ;;  %v1552_v4 = vmul.f32 1.442695, %v1529_v19 }
 0x4f8   : > { %v5144_v43 = vpop.permute.xlu1 %2281 }
 0x4f9   : > { %vm1891_vm6 = vcmp.gt.f32.partialorder %v1875_v18, 0.0 }
 0x4fc   : > { %v5146_v9 = vpop.permute.xlu1 %2285 }
 0x501   : > { %v5150_v63 = vpop.permute.xlu1 %1840 }
 0x505   : > { %v5152_v24 = vpop.permute.xlu1 %1844 }
 0x50a   : > { %v5156_v38 = vpop.permute.xlu1 %2289 }
 0x50c   : > { %2089 = vrot.lane.b32.xlu0 %v6379_v58, %s3935_s9 }
 0x50e   : > { %2410 = vmax.xlane.f32.xlu1 %v2391_v39  ;;  %v5163_v27 = vpop.permute.xlu1 %2297  ;;  %v1526_v39 = vsub.f32 %v4783_v14, %v4971_v2  ;;  %v1531_v14 = vsub.f32 %v4826_v21, %v4988_v54  ;;  %v1528_v2 = vsub.f32 %v4798_v1, %v4973_v25  ;;  %v1533_v1 = vsub.f32 %v4838_v29, %v4995_v41 }
 0x50f   : > { %6415 = vst [vmem:[#allocation77_spill] sm:$0xff] %v5163_v27  ;;  %v1548_v27 = vmul.f32 1.442695, %v1527_v35  ;;  %v1530_v35 = vsub.f32 %v4816_v42, %v4977_v17  ;;  %v1532_v42 = vsub.f32 %v4821_v60, %v4986_v20  ;;  %v6417_v20 = vpack.c.bf16 %v4944_v57, %v4935_v47 }
 0x510   : > { %v1546_v30 = vmul.f32 1.442695, %v1526_v39  ;;  %v1556_v59 = vmul.f32 1.442695, %v1531_v14  ;;  %v1550_v34 = vmul.f32 1.442695, %v1528_v2  ;;  %v1861_v57 = vadd.f32 %v4400_v40, %v5115_v16 }
 0x511   : > { %3622 = vpow2.f32 %v1548_v27  ;;  %v1554_v54 = vmul.f32 1.442695, %v1530_v35  ;;  %v1534_v27 = vsub.f32 %v4834_v26, %v4993_v46  ;;  %v1560_v39 = vmul.f32 1.442695, %v1533_v1 }
 0x512   : > { %v5165_v31 = vpop.permute.xlu1 %2301  ;;  %3624 = vpow2.f32 %v1546_v30  ;;  %v1537_v26 = vsub.f32 %v4858_v52, %v5005_v15  ;;  %v3891_v30 = vld [vmem:[%s4394_s7 + $0x28] sm:$0xff]  ;;  %v2312_v2 = vadd.f32 %v4402_v48, %v5119_v5 }
 0x513   : > { %3626 = vpow2.f32 %v1552_v4  ;;  %v1562_v60 = vmul.f32 1.442695, %v1534_v27 }
 0x514   : > { %3628 = vpow2.f32 %v1556_v59  ;;  %v1568_v15 = vmul.f32 1.442695, %v1537_v26  ;;  %v2328_v5 = vmul.f32 %v5175_v3, %v2312_v2 }
 0x515   : > { %3630 = vpow2.f32 %v1550_v34  ;;  %v2313_v34 = vadd.f32 %v4402_v48, %v5117_v10 }
 0x516   : > { %v1637_v6 = vpop.permute.xlu1 %1636  ;;  %3632 = vpow2.f32 %v1554_v54 }
 0x517   : > { %3428 = vmatprep.subr.bf16.mxu0 %v1637_v6  ;;  %3634 = vpow2.f32 %v1560_v39  ;;  %v2329_v3 = vmul.f32 %v3891_v30, %v2313_v34 }
 0x518   : > { %3429 = vmatpush3.bf16.msra.mxu0 %v1637_v6  ;;  %v1643_v6 = vpop.permute.xlu0 %1642 }
 0x519   : > { %3430 = vmatprep.subr.bf16.mxu0 %v1639_v62  ;;  %v2361_v26 = vmul.f32 0.2, %v2329_v3 }
 0x51a   : > { %v1641_v23 = vpop.permute.xlu1 %1640 }
 0x51b   : > { %v5197_v17 = vpop.eup %3622 }
 0x51c   : > { %3431 = vmatpush3.bf16.msra.mxu0 %v1639_v62  ;;  %v1907_v62 = vmul.f32 0.2, %v1875_v18  ;;  %v5201_v29 = vpop.eup %3624 }
 0x51d   : > { %3432 = vmatprep.subr.bf16.mxu0 %v1641_v23  ;;  %v5218_v46 = vpop.eup %3626 }
 0x51e   : > { %v1645_v44 = vpop.permute.xlu1 %1644 }
 0x51f   : > { %2542 = vrot.lane.b32.xlu1 %v6379_v58, %s3936_s10  ;;  %v5186_v58 = vsel %vm1891_vm6, %v1875_v18, %v1907_v62  ;;  %v1535_v18 = vsub.f32 %v4850_v8, %v5001_v33  ;;  %v1860_v8 = vadd.f32 %v4400_v40, %v5070_v12  ;;  %v3192_v33 = vpack.c.bf16 %v5197_v17, %v5201_v29  ;;  %v5223_v62 = vpop.eup %3628 }
 0x520   : > { %3433 = vmatpush3.bf16.msra.mxu0 %v1641_v23  ;;  %v1647_v23 = vpop.permute.xlu0 %1646  ;;  %v1939_v21 = vsel %vm6416_vm8, %v5186_v58, -1e+30  ;;  %v1536_v12 = vsub.f32 %v4847_v45, %v4999_v55  ;;  %v5225_v52 = vpop.eup %3630  ;;  %v5232_v55 = vld [vmem:[%s4394_s7 + $0x30] sm:$0xff]  ;;  %vm2344_vm6 = vcmp.gt.f32.partialorder %v2328_v5, 0.0  ;;  %vm6423_vm8 = vcmp.ne.f32.partialorder %v4484_v53, 0.0 }
 0x521   : > { %3434 = vmatprep.subr.bf16.mxu0 %v1643_v6  ;;  %v1564_v41 = vmul.f32 1.442695, %v1535_v18  ;;  %v1876_v47 = vmul.f32 %v3891_v30, %v1860_v8  ;;  %v5227_v19 = vpop.eup %3632  ;;  %v3195_v45 = vpack.c.bf16 %v5218_v46, %v5225_v52  ;;  %v1877_v14 = vmul.f32 %v5232_v55, %v1861_v57 }
 0x522   : > { %v1649_v25 = vpop.permute.xlu1 %1648  ;;  %v3198_v16 = vpack.c.bf16 %v5223_v62, %v5227_v19  ;;  %v5243_v59 = vpop.eup %3634 }
 0x523   : > { %3636 = vpow2.f32 %v1564_v41  ;;  %v1908_v35 = vmul.f32 0.2, %v1876_v47  ;;  %vm1892_vm3 = vcmp.gt.f32.partialorder %v1876_v47, 0.0  ;;  %v1909_v54 = vmul.f32 0.2, %v1877_v14 }
 0x524   : > { %3435 = vmatpush3.bf16.msra.mxu0 %v1643_v6  ;;  %v1558_v6 = vmul.f32 1.442695, %v1532_v42  ;;  %vm1893_vm2 = vcmp.gt.f32.partialorder %v1877_v14, 0.0  ;;  %v2360_v41 = vmul.f32 0.2, %v2328_v5 }
 0x525   : > { %3436 = vmatprep.subr.bf16.mxu0 %v1645_v44  ;;  %v5265_v39 = vsel %vm1893_vm2, %v1877_v14, %v1909_v54  ;;  %vm6424_vm2 = vcmp.ne.f32.partialorder %v4442_v0, 0.0  ;;  %v1862_v14 = vadd.f32 %v4400_v40, %v5079_v11 }
 0x526   : > { %3638 = vpow2.f32 %v1558_v6 }
 0x527   : > { %3640 = vpow2.f32 %v1562_v60 }
 0x528   : > { %3437 = vmatpush3.bf16.msra.mxu0 %v1645_v44  ;;  %v1566_v44 = vmul.f32 1.442695, %v1536_v12  ;;  %3642 = vpow2.f32 %v1568_v15 }
 0x529   : > { %3438 = vmatprep.subr.bf16.mxu0 %v1647_v23 }
 0x52a   : > { %3644 = vpow2.f32 %v1566_v44 }
 0x52b   : > { %1959 = vmax.xlane.f32.xlu0 %v1939_v21  ;;  %v5248_v21 = vsel %vm1892_vm3, %v1876_v47, %v1908_v35  ;;  %vm2345_vm3 = vcmp.gt.f32.partialorder %v2329_v3, 0.0  ;;  %v3893_v35 = vld [vmem:[%s4394_s7 + $0x38] sm:$0xff] }
 0x52c   : > { %3439 = vmatpush3.bf16.msra.mxu0 %v1647_v23  ;;  %v1940_v42 = vsel %vm6420_vm9, %v5248_v21, -1e+30  ;;  %v5285_v57 = vsel %vm2345_vm3, %v2329_v3, %v2361_v26  ;;  %v1878_v34 = vmul.f32 %v3893_v35, %v1862_v14  ;;  %vm6427_vm3 = vcmp.ne.f32.partialorder %v4499_v51, 0.0 }
 0x52d   : > { %3440 = vmatprep.subr.bf16.mxu0 %v1649_v25  ;;  %v5250_v1 = vpop.eup %3636  ;;  %6425 = vst [vmem:[#allocation78_spill] sm:$0xff] %v5285_v57  ;;  %v2393_v44 = vsel %vm6420_vm9, %v5285_v57, -1e+30 }
 0x530   : > { %3441 = vmatpush3.bf16.msra.mxu0 %v1649_v25  ;;  %v5252_v25 = vpop.eup %3638 }
 0x531   : > { %v5254_v18 = vpop.eup %3640  ;;  %v3201_v10 = vpack.c.bf16 %v5243_v59, %v5252_v25 }
 0x532   : > { %v3204_v27 = vpack.c.bf16 %v5250_v1, %v5254_v18  ;;  %v5274_v60 = vpop.eup %3642 }
 0x533   : > { %3443 = vmatmul.mubr.msk.bf16.vlgmr.msra.gmra.mrb[16].mxu0 %vm4639_vm7, %v6417_v20  ;;  %v5276_v20 = vsel %vm2344_vm6, %v2328_v5, %v2360_v41  ;;  %v2315_v5 = vadd.f32 %v4402_v48, %v5128_v61  ;;  %v1910_v41 = vmul.f32 0.2, %v1878_v34  ;;  %vm1894_vm6 = vcmp.gt.f32.partialorder %v1878_v34, 0.0 }
 0x534   : > { %3446 = vmatprep.mubr.msk.bf16.mxu0 %vm4658_vm11, %v3192_v33  ;;  %v1941_v33 = vsel %vm6423_vm8, %v5265_v39, -1e+30  ;;  %v5278_v12 = vpop.eup %3644  ;;  %v2392_v30 = vsel %vm6424_vm2, %v5276_v20, -1e+30  ;;  %vm6429_vm2 = vmmov %vm6427_vm3 }
 0x535   : > { %v3207_v47 = vpack.c.bf16 %v5274_v60, %v5278_v12  ;;  %v2331_v3 = vmul.f32 %v3893_v35, %v2315_v5  ;;  %v6430_v5 = vld [vmem:[#allocation68_spill] sm:$0xff] }
 0x537   : > { %v2363_v26 = vmul.f32 0.2, %v2331_v3  ;;  %vm2347_vm8 = vcmp.gt.f32.partialorder %v2331_v3, 0.0 }
 0x53b   : > { %3447 = vmatmul.mubr.msk.bf16.gmra.mrb[20].mxu0 %vm4675_vm4, %v3195_v45 }
 0x53c   : > { %3450 = vmatprep.mubr.msk.bf16.mxu0 %vm4691_vm15, %v3198_v16 }
 0x541   : > { %2091 = vrot.lane.b32.xlu0 %v6368_v49, %s3935_s9 }
 0x543   : > { %1961 = vmax.xlane.f32.xlu1 %v1940_v42  ;;  %3451 = vmatmul.mubr.msk.bf16.gmra.mrb[24].mxu0 %vm4707_vm13, %v3201_v10 }
 0x544   : > { %3454 = vmatprep.mubr.msk.bf16.mxu0 %vm4735_vm14, %v3204_v27 }
 0x547   : > { %1963 = vmax.xlane.f32.xlu1 %v1941_v33 }
 0x54b   : > { %2412 = vmax.xlane.f32.xlu1 %v2392_v30  ;;  %3455 = vmatmul.mubr.msk.bf16.gmra.mrb[28].mxu0 %vm4760_vm10, %v3207_v47 }
 0x54e   : > { %v1952_v45 = vpop.xlane.xlu0 %1951 }
 0x54f   : > { %2414 = vmax.xlane.f32.xlu1 %v2393_v44  ;;  %v1983_v2 = vsub.f32 %v5058_v32, %v1952_v45  ;;  %v5300_v32 = vsel %vm1894_vm6, %v1878_v34, %v1910_v41  ;;  %v5308_v45 = vsel %vm2347_vm8, %v2331_v3, %v2363_v26  ;;  %vm6435_vm8 = vcmp.ne.f32.partialorder %v4484_v53, 0.0 }
 0x550   : > { %6428 = vst [vmem:[#allocation79_spill] sm:$0xff] %v5308_v45 }
 0x551   : > { %v1999_v54 = vmul.f32 1.442695, %v1983_v2 }
 0x552   : > { %v2088_v16 = vpop.permute.xlu0 %2087 }
 0x553   : > { %3458 = vmatprep.subr.bf16.mxu1 %v2088_v16  ;;  %3646 = vpow2.f32 %v1999_v54 }
 0x554   : > { %3459 = vmatpush3.bf16.msra.mxu1 %v2088_v16 }
 0x556   : > { %v1954_v42 = vpop.xlane.xlu1 %1953 }
 0x557   : > { %v1984_v10 = vsub.f32 %v5077_v36, %v1954_v42  ;;  %v1942_v36 = vsel %vm6427_vm3, %v5300_v32, -1e+30 }
 0x559   : > { %v2001_v27 = vmul.f32 1.442695, %v1984_v10 }
 0x55a   : > { %v1956_v33 = vpop.xlane.xlu1 %1955 }
 0x55b   : > { %3648 = vpow2.f32 %v2001_v27  ;;  %v1985_v11 = vsub.f32 %v5084_v28, %v1956_v33 }
 0x55d   : > { %v2003_v30 = vmul.f32 1.442695, %v1985_v11  ;;  %v5311_v2 = vpop.eup %3646  ;;  %v6432_v11 = vld [vmem:[#allocation71_spill] sm:$0xff] }
 0x55e   : > { %v1958_v47 = vpop.xlane.xlu1 %1957  ;;  %v2314_v26 = vadd.f32 %v4402_v48, %v6432_v11  ;;  %v3895_v11 = vld [vmem:[%s4394_s7 + $0x40] sm:$0xff] }
 0x55f   : > { %v1986_v61 = vsub.f32 %v5092_v56, %v1958_v47  ;;  %3650 = vpow2.f32 %v2003_v30  ;;  %v2395_v56 = vsel %vm6429_vm2, %v5308_v45, -1e+30 }
 0x560   : > { %2544 = vrot.lane.b32.xlu1 %v6368_v49, %s3936_s10  ;;  %1965 = vmax.xlane.f32.xlu0 %v1942_v36  ;;  %v1864_v36 = vadd.f32 %v4400_v40, %v5133_v50 }
 0x561   : > { %v2005_v44 = vmul.f32 1.442695, %v1986_v61  ;;  %v2330_v61 = vmul.f32 %v5232_v55, %v2314_v26 }
 0x562   : > { %v2405_v28 = vpop.xlane.xlu1 %2404 }
 0x563   : > { %3652 = vpow2.f32 %v2005_v44  ;;  %v2436_v14 = vsub.f32 %v5099_v7, %v2405_v28  ;;  %v6434_v44 = vld [vmem:[#allocation7_spill] sm:$0xff]  ;;  %v3894_v28 = vld [vmem:[%s4394_s7 + $0x48] sm:$0xff]  ;;  %vm2346_vm9 = vcmp.gt.f32.partialorder %v2330_v61, 0.0 }
 0x564   : > { %2418 = vmax.xlane.f32.xlu0 %v2395_v56  ;;  %v2362_v56 = vmul.f32 0.2, %v2330_v61 }
 0x565   : > { %v5316_v16 = vpop.eup %3648  ;;  %v2452_v35 = vmul.f32 1.442695, %v2436_v14  ;;  %v1880_v14 = vmul.f32 %v3894_v28, %v1864_v36  ;;  %v3896_v36 = vld [vmem:[%s4394_s7 + $0x58] sm:$0xff] }
 0x566   : > { %v2407_v49 = vpop.xlane.xlu1 %2406  ;;  %v3210_v34 = vpack.c.bf16 %v5316_v16, %v5311_v2 }
 0x567   : > { %v2437_v54 = vsub.f32 %v6430_v5, %v2407_v49  ;;  %3654 = vpow2.f32 %v2452_v35  ;;  %v5347_v35 = vsel %vm2346_vm9, %v2330_v61, %v2362_v56  ;;  %v1912_v55 = vmul.f32 0.2, %v1880_v14  ;;  %v6436_v5 = vld [vmem:[#allocation18_spill] sm:$0xff] }
 0x568   : > { %3474 = vmatprep.mubr.msk.bf16.mxu1 %vm4620_vm0, %v3210_v34  ;;  %vm1896_vm6 = vcmp.gt.f32.partialorder %v1880_v14, 0.0  ;;  %v2394_v50 = vsel %vm6435_vm8, %v5347_v35, -1e+30 }
 0x569   : > { %v2454_v7 = vmul.f32 1.442695, %v2437_v54  ;;  %v5323_v3 = vpop.eup %3650  ;;  %v5354_v34 = vsel %vm1896_vm6, %v1880_v14, %v1912_v55  ;;  %v6440_v14 = vld [vmem:[#allocation75_spill] sm:$0xff] }
 0x56a   : > { %v2541_v10 = vpop.permute.xlu1 %2540  ;;  %v2316_v56 = vadd.f32 %v4402_v48, %v6440_v14 }
 0x56b   : > { %3656 = vpow2.f32 %v2454_v7  ;;  %3490 = vmatprep.subr.bf16.mxu0 %v2541_v10  ;;  %v6438_v7 = vld [vmem:[#allocation65_spill] sm:$0xff] }
 0x56c   : > { %3491 = vmatpush3.bf16.msra.mxu0 %v2541_v10  ;;  %v1863_v10 = vadd.f32 %v4400_v40, %v6438_v7  ;;  %v2332_v41 = vmul.f32 %v3895_v11, %v2316_v56 }
 0x56d   : > { %v5325_v27 = vpop.eup %3652 }
 0x56e   : > { %v1879_v26 = vmul.f32 %v3895_v11, %v1863_v10  ;;  %v2364_v6 = vmul.f32 0.2, %v2332_v41  ;;  %vm2348_vm6 = vcmp.gt.f32.partialorder %v2332_v41, 0.0  ;;  %v6445_v11 = vld [vmem:[#allocation19_spill] sm:$0xff] }
 0x56f   : > { %vm6446_vm8 = vcmp.ne.f32.partialorder %v6445_v11, 0.0 }
 0x570   : > { %v1911_v55 = vmul.f32 0.2, %v1879_v26  ;;  %vm1895_vm3 = vcmp.gt.f32.partialorder %v1879_v26, 0.0  ;;  %v5383_v56 = vsel %vm2348_vm6, %v2332_v41, %v2364_v6  ;;  %v2318_v41 = vadd.f32 %v4402_v48, %v5144_v43 }
 0x571   : > { %v5329_v33 = vpop.eup %3654 }
 0x572   : > { %v5371_v7 = vsel %vm1895_vm3, %v1879_v26, %v1911_v55 }
 0x575   : > { %v5333_v30 = vpop.eup %3656 }
 0x576   : > { %6433 = vst [vmem:[#allocation68_spill] sm:$0xff] %v5333_v30  ;;  %v3234_v47 = vpack.c.bf16 %v5333_v30, %v5329_v33 }
 0x578   : > { %3506 = vmatprep.mubr.msk.bf16.mxu0 %vm4620_vm0, %v3234_v47  ;;  %vm6437_vm0 = vcmp.ne.f32.partialorder %v6436_v5, 0.0  ;;  %v6439_v47 = vld [vmem:[#allocation66_spill] sm:$0xff] }
 0x579   : > { %v1944_v54 = vsel %vm6437_vm0, %v5354_v34, -1e+30  ;;  %v1866_v61 = vadd.f32 %v4400_v40, %v6439_v47  ;;  %v6443_v47 = vld [vmem:[#allocation14_spill] sm:$0xff] }
 0x57a   : > { %2093 = vrot.lane.b32.xlu0 %v6434_v44, %s3935_s9  ;;  %vm6444_vm9 = vcmp.ne.f32.partialorder %v6443_v47, 0.0 }
 0x57b   : > { %vm6447_vm3 = vmmov %vm6444_vm9 }
 0x57e   : > { %2546 = vrot.lane.b32.xlu0 %v6434_v44, %s3936_s10  ;;  %v1882_v44 = vmul.f32 %v3896_v36, %v1866_v61  ;;  %v1943_v61 = vsel %vm6444_vm9, %v5371_v7, -1e+30 }
 0x580   : > { %v1914_v10 = vmul.f32 0.2, %v1882_v44  ;;  %vm1898_vm2 = vcmp.gt.f32.partialorder %v1882_v44, 0.0 }
 0x582   : > { %v5378_v8 = vsel %vm1898_vm2, %v1882_v44, %v1914_v10  ;;  %vm6449_vm2 = vcmp.ne.f32.partialorder %v6436_v5, 0.0  ;;  %v3897_v10 = vld [vmem:[%s4394_s7 + $0x50] sm:$0xff] }
 0x583   : > { %v5352_v49 = vpop.xlane.xlu0 %2408  ;;  %v1946_v26 = vsel %vm6446_vm8, %v5378_v8, -1e+30 }
 0x584   : > { %2416 = vmax.xlane.f32.xlu1 %v2394_v50  ;;  %v6441_v50 = vld [vmem:[#allocation8_spill] sm:$0xff] }
 0x587   : > { %v2090_v42 = vpop.permute.xlu0 %2089 }
 0x588   : > { %1969 = vmax.xlane.f32.xlu1 %v1944_v54  ;;  %3460 = vmatprep.subr.bf16.mxu1 %v2090_v42  ;;  %v6442_v54 = vld [vmem:[#allocation70_spill] sm:$0xff] }
 0x589   : > { %3461 = vmatpush3.bf16.msra.mxu1 %v2090_v42  ;;  %v2317_v42 = vadd.f32 %v4402_v48, %v6442_v54 }
 0x58b   : > { %v2333_v14 = vmul.f32 %v3894_v28, %v2317_v42  ;;  %v2396_v28 = vsel %vm6447_vm3, %v5383_v56, -1e+30  ;;  %v6450_v42 = vld [vmem:[#allocation73_spill] sm:$0xff] }
 0x58d   : > { %v2365_v55 = vmul.f32 0.2, %v2333_v14  ;;  %vm2349_vm0 = vcmp.gt.f32.partialorder %v2333_v14, 0.0 }
 0x58f   : > { %v5388_v44 = vsel %vm2349_vm0, %v2333_v14, %v2365_v55 }
 0x590   : > { %6448 = vst [vmem:[#allocation24_spill] sm:$0xff] %v5388_v44  ;;  %v2397_v54 = vsel %vm6449_vm2, %v5388_v44, -1e+30  ;;  %vm6456_vm2 = vcmp.ne.f32.partialorder %v6445_v11, 0.0  ;;  %v5449_v44 = vld [vmem:[%s4394_s7 + $0x70] sm:$0xff] }
 0x599   : > { %2095 = vrot.lane.b32.xlu1 %v6441_v50, %s3935_s9 }
 0x59b   : > { %v5373_v15 = vpop.xlane.xlu1 %2410 }
 0x59d   : > { %1967 = vmax.xlane.f32.xlu0 %v1943_v61  ;;  %v2334_v61 = vmul.f32 %v3897_v10, %v2318_v41 }
 0x59f   : > { %v2543_v23 = vpop.permute.xlu1 %2542  ;;  %v2366_v30 = vmul.f32 0.2, %v2334_v61  ;;  %vm2350_vm6 = vcmp.gt.f32.partialorder %v2334_v61, 0.0 }
 0x5a0   : > { %3492 = vmatprep.subr.bf16.mxu0 %v2543_v23 }
 0x5a1   : > { %3493 = vmatpush3.bf16.msra.mxu0 %v2543_v23  ;;  %1973 = vmax.xlane.f32.xlu0 %v1946_v26  ;;  %v1865_v23 = vadd.f32 %v4400_v40, %v6450_v42  ;;  %v2319_v26 = vadd.f32 %v4402_v48, %v5146_v9  ;;  %v5405_v37 = vsel %vm2350_vm6, %v2334_v61, %v2366_v30 }
 0x5a3   : > { %v1881_v6 = vmul.f32 %v3897_v10, %v1865_v23  ;;  %v2335_v14 = vmul.f32 %v3896_v36, %v2319_v26  ;;  %v6455_v10 = vld [vmem:[#allocation9_spill] sm:$0xff]  ;;  %v6457_v26 = vld [vmem:[#allocation67_spill] sm:$0xff] }
 0x5a5   : > { %2420 = vmax.xlane.f32.xlu0 %v2396_v28  ;;  %v1913_v28 = vmul.f32 0.2, %v1881_v6  ;;  %vm1897_vm9 = vcmp.gt.f32.partialorder %v1881_v6, 0.0  ;;  %v2367_v43 = vmul.f32 0.2, %v2335_v14  ;;  %vm2351_vm0 = vcmp.gt.f32.partialorder %v2335_v14, 0.0 }
 0x5a7   : > { %v5400_v4 = vsel %vm1897_vm9, %v1881_v6, %v1913_v28  ;;  %v5412_v36 = vsel %vm2351_vm0, %v2335_v14, %v2367_v43  ;;  %v1867_v28 = vadd.f32 %v4400_v40, %v6457_v26  ;;  %v1868_v26 = vadd.f32 %v4400_v40, %v5150_v63 }
 0x5a8   : > { %6454 = vst [vmem:[#allocation71_spill] sm:$0xff] %v5412_v36  ;;  %v2399_v30 = vsel %vm6456_vm2, %v5412_v36, -1e+30 }
 0x5a9   : > { %2422 = vmax.xlane.f32.xlu0 %v2397_v54  ;;  %v6451_v54 = vld [vmem:[#allocation16_spill] sm:$0xff] }
 0x5aa   : > { %vm6452_vm8 = vcmp.ne.f32.partialorder %v6451_v54, 0.0 }
 0x5ab   : > { %v1945_v42 = vsel %vm6452_vm8, %v5400_v4, -1e+30  ;;  %vm6453_vm3 = vmmov %vm6452_vm8 }
 0x5ac   : > { %v2398_v9 = vsel %vm6453_vm3, %v5405_v37, -1e+30 }
 0x5b8   : > { %v1960_v55 = vpop.xlane.xlu0 %1959 }
 0x5b9   : > { %v1987_v6 = vsub.f32 %v5186_v58, %v1960_v55 }
 0x5bb   : > { %v2007_v41 = vmul.f32 1.442695, %v1987_v6 }
 0x5bc   : > { %v2092_v23 = vpop.permute.xlu0 %2091 }
 0x5bd   : > { %1971 = vmax.xlane.f32.xlu1 %v1945_v42  ;;  %3462 = vmatprep.subr.bf16.mxu1 %v2092_v23  ;;  %3658 = vpow2.f32 %v2007_v41 }
 0x5be   : > { %3463 = vmatpush3.bf16.msra.mxu1 %v2092_v23  ;;  %v3898_v23 = vld [vmem:[%s4394_s7 + $0x60] sm:$0xff] }
 0x5bf   : > { %2548 = vrot.lane.b32.xlu0 %v6441_v50, %s3936_s10  ;;  %v1883_v43 = vmul.f32 %v3898_v23, %v1867_v28 }
 0x5c1   : > { %2424 = vmax.xlane.f32.xlu1 %v2398_v9  ;;  %v1915_v58 = vmul.f32 0.2, %v1883_v43  ;;  %vm1899_vm9 = vcmp.gt.f32.partialorder %v1883_v43, 0.0 }
 0x5c3   : > { %2097 = vrot.lane.b32.xlu0 %v6455_v10, %s3935_s9  ;;  %v5434_v6 = vsel %vm1899_vm9, %v1883_v43, %v1915_v58  ;;  %v1869_v58 = vadd.f32 %v4400_v40, %v5152_v24 }
 0x5c5   : > { %2426 = vmax.xlane.f32.xlu1 %v2399_v30 }
 0x5d0   : > { %v1962_v50 = vpop.xlane.xlu1 %1961 }
 0x5d1   : > { %v1988_v61 = vsub.f32 %v5248_v21, %v1962_v50  ;;  %v5430_v21 = vpop.eup %3658 }
 0x5d3   : > { %v2009_v42 = vmul.f32 1.442695, %v1988_v61  ;;  %v1947_v61 = vsel %vm835_vm1, %v5434_v6, -1e+30 }
 0x5d4   : > { %v1964_v14 = vpop.xlane.xlu1 %1963 }
 0x5d5   : > { %3660 = vpow2.f32 %v2009_v42  ;;  %v1989_v28 = vsub.f32 %v5265_v39, %v1964_v14  ;;  %v3899_v42 = vld [vmem:[%s4394_s7 + $0x68] sm:$0xff] }
 0x5d6   : > { %2550 = vrot.lane.b32.xlu1 %v6455_v10, %s3936_s10  ;;  %v1884_v43 = vmul.f32 %v3899_v42, %v1868_v26  ;;  %v6461_v14 = vld [vmem:[#allocation72_spill] sm:$0xff] }
 0x5d7   : > { %v2011_v22 = vmul.f32 1.442695, %v1989_v28  ;;  %v2321_v24 = vadd.f32 %v4402_v48, %v6461_v14 }
 0x5d8   : > { %v5426_v9 = vpop.xlane.xlu1 %2412  ;;  %v1916_v39 = vmul.f32 0.2, %v1884_v43  ;;  %vm1900_vm6 = vcmp.gt.f32.partialorder %v1884_v43, 0.0 }
 0x5d9   : > { %3662 = vpow2.f32 %v2011_v22  ;;  %v6463_v22 = vld [vmem:[#allocation20_spill] sm:$0xff] }
 0x5da   : > { %vm6464_vm0 = vcmp.ne.f32.partialorder %v6463_v22, 0.0 }
 0x5db   : > { %vm6468_vm9 = vmmov %vm6464_vm0 }
 0x5dc   : > { %v5428_v55 = vpop.xlane.xlu1 %2414 }
 0x5dd   : > { %6458 = vst [vmem:[#allocation7_spill] sm:$0xff] %v5428_v55 }
 0x5df   : > { %v5432_v30 = vpop.eup %3660 }
 0x5e0   : > { %v2545_v41 = vpop.permute.xlu1 %2544 }
 0x5e1   : > { %3494 = vmatprep.subr.bf16.mxu0 %v2545_v41 }
 0x5e2   : > { %3495 = vmatpush3.bf16.msra.mxu0 %v2545_v41  ;;  %1975 = vmax.xlane.f32.xlu0 %v1947_v61  ;;  %v1885_v41 = vmul.f32 %v5449_v44, %v1869_v58  ;;  %v2320_v61 = vadd.f32 %v4402_v48, %v5156_v38 }
 0x5e4   : > { %v2336_v26 = vmul.f32 %v3898_v23, %v2320_v61  ;;  %vm1901_vm8 = vcmp.gt.f32.partialorder %v1885_v41, 0.0 }
 0x5e6   : > { %v2368_v23 = vmul.f32 0.2, %v2336_v26  ;;  %vm2352_vm3 = vcmp.gt.f32.partialorder %v2336_v26, 0.0 }
 0x5ed   : > { %v1966_v36 = vpop.xlane.xlu0 %1965 }
 0x5ee   : > { %v1990_v10 = vsub.f32 %v5300_v32, %v1966_v36  ;;  %v5458_v32 = vsel %vm1900_vm6, %v1884_v43, %v1916_v39  ;;  %v1917_v36 = vmul.f32 0.2, %v1885_v41  ;;  %v5467_v43 = vpop.eup %3662 }
 0x5ef   : > { %v1948_v38 = vsel %vm6464_vm0, %v5458_v32, -1e+30 }
 0x5f0   : > { %v2013_v45 = vmul.f32 1.442695, %v1990_v10  ;;  %v6462_v10 = vld [vmem:[#allocation10_spill] sm:$0xff] }
 0x5f1   : > { %v5454_v63 = vpop.xlane.xlu0 %2418 }
 0x5f2   : > { %6460 = vst [vmem:[#allocation18_spill] sm:$0xff] %v5454_v63  ;;  %3664 = vpow2.f32 %v2013_v45  ;;  %v2337_v45 = vmul.f32 %v3899_v42, %v2321_v24  ;;  %v5465_v63 = vsel %vm1901_vm8, %v1885_v41, %v1917_v36 }
 0x5f3   : > { %v1949_v14 = vsel %vm837_vm12, %v5465_v63, -1e+30 }
 0x5f4   : > { %v2369_v42 = vmul.f32 0.2, %v2337_v45  ;;  %vm2353_vm2 = vcmp.gt.f32.partialorder %v2337_v45, 0.0 }
 0x5f5   : > { %v2094_v28 = vpop.permute.xlu0 %2093 }
 0x5f6   : > { %3464 = vmatprep.subr.bf16.mxu1 %v2094_v28  ;;  %v5481_v36 = vsel %vm2353_vm2, %v2337_v45, %v2369_v42  ;;  %v2323_v45 = vadd.f32 %v4402_v48, %v5165_v31  ;;  %vm6491_vm2 = vcmp.ne.f32.partialorder %v4484_v53, 0.0  ;;  %v6555_v31 = vld [vmem:[#allocation64_spill] sm:$0xff] }
 0x5f7   : > { %3465 = vmatpush3.bf16.msra.mxu1 %v2094_v28  ;;  %v5474_v28 = vsel %vm2352_vm3, %v2336_v26, %v2368_v23  ;;  %6467 = vst [vmem:[#allocation66_spill] sm:$0xff] %v5481_v36  ;;  %v6470_v26 = vld [vmem:[#allocation69_spill] sm:$0xff]  ;;  %vm6490_vm3 = vcmp.ne.f32.partialorder %v4466_v13, 0.0 }
 0x5f8   : > { %2099 = vrot.lane.b32.xlu0 %v6462_v10, %s3935_s9  ;;  %6466 = vst [vmem:[#allocation65_spill] sm:$0xff] %v5474_v28  ;;  %v2400_v24 = vsel %vm835_vm1, %v5474_v28, -1e+30  ;;  %v1870_v23 = vadd.f32 %v4400_v40, %v6470_v26  ;;  %v3901_v28 = vld [vmem:[%s4394_s7 + $0x78] sm:$0xff] }
 0x5f9   : > { %v2547_v58 = vpop.permute.xlu0 %2546 }
 0x5fa   : > { %1977 = vmax.xlane.f32.xlu1 %v1948_v38  ;;  %3496 = vmatprep.subr.bf16.mxu0 %v2547_v58  ;;  %v2401_v38 = vsel %vm6468_vm9, %v5481_v36, -1e+30  ;;  %v2339_v36 = vmul.f32 %v3901_v28, %v2323_v45  ;;  %vm6492_vm9 = vcmp.ne.f32.partialorder %v4499_v51, 0.0 }
 0x5fb   : > { %3497 = vmatpush3.bf16.msra.mxu0 %v2547_v58 }
 0x5fc   : > { %v5469_v61 = vpop.eup %3664  ;;  %vm2355_vm8 = vcmp.gt.f32.partialorder %v2339_v36, 0.0 }
 0x5fe   : > { %1979 = vmax.xlane.f32.xlu1 %v1949_v14 }
 0x602   : > { %2428 = vmax.xlane.f32.xlu1 %v2400_v24  ;;  %v1886_v24 = vmul.f32 %v3901_v28, %v1870_v23 }
 0x604   : > { %vm1902_vm6 = vcmp.gt.f32.partialorder %v1886_v24, 0.0 }
 0x606   : > { %2430 = vmax.xlane.f32.xlu1 %v2401_v38  ;;  %v5486_v58 = vpop.f32.mrb[16].mxu0 }
 0x607   : > { %6469 = vst [vmem:[#allocation75_spill] sm:$0xff] %v5486_v58  ;;  %v5490_v14 = vpop.f32.mrb[17].mxu0  ;;  %v1918_v58 = vmul.f32 0.2, %v1886_v24 }
 0x608   : > { %6471 = vst [vmem:[#allocation8_spill] sm:$0xff] %v5490_v14  ;;  %v5492_v41 = vpop.f32.mrb[18].mxu0  ;;  %v2371_v14 = vmul.f32 0.2, %v2339_v36 }
 0x609   : > { %6472 = vst [vmem:[#allocation70_spill] sm:$0xff] %v5492_v41  ;;  %v5494_v57 = vpop.f32.mrb[19].mxu0  ;;  %v5509_v41 = vsel %vm1902_vm6, %v1886_v24, %v1918_v58  ;;  %vm6493_vm6 = vcmp.ne.f32.partialorder %v6443_v47, 0.0 }
 0x60a   : > { %6473 = vst [vmem:[#allocation14_spill] sm:$0xff] %v5494_v57  ;;  %6478 = vst [vmem:[#allocation67_spill] sm:$0xff] %v5509_v41  ;;  %v1950_v28 = vsel %vm838_vm5, %v5509_v41, -1e+30 }
 0x60e   : > { %v5499_v42 = vpop.f32.mrb[20].mxu0 }
 0x60f   : > { %6474 = vst [vmem:[#allocation19_spill] sm:$0xff] %v5499_v42  ;;  %v5501_v38 = vpop.f32.mrb[21].mxu0  ;;  %v5520_v42 = vsel %vm2355_vm8, %v2339_v36, %v2371_v14  ;;  %vm6494_vm8 = vcmp.ne.f32.partialorder %v6436_v5, 0.0 }
 0x610   : > { %6475 = vst [vmem:[#allocation73_spill] sm:$0xff] %v5501_v38  ;;  %v5503_v55 = vpop.f32.mrb[22].mxu0  ;;  %6482 = vst [vmem:[#allocation10_spill] sm:$0xff] %v5520_v42 }
 0x611   : > { %6476 = vst [vmem:[#allocation16_spill] sm:$0xff] %v5503_v55  ;;  %v5505_v40 = vpop.xlane.xlu1 %2416  ;;  %v5507_v26 = vpop.f32.mrb[23].mxu0  ;;  %v6556_v39 = vld [vmem:[#allocation14_spill] sm:$0xff] }
 0x612   : > { %6477 = vst [vmem:[#allocation9_spill] sm:$0xff] %v5507_v26 }
 0x615   : > { %v1970_v23 = vpop.xlane.xlu1 %1969 }
 0x616   : > { %v5511_v57 = vpop.f32.mrb[24].mxu0  ;;  %v1992_v14 = vsub.f32 %v5354_v34, %v1970_v23  ;;  %v1576_v23 = vsel %vm6491_vm2, %v5225_v52, 0.0  ;;  %vm6497_vm2 = vcmp.ne.f32.partialorder %v6445_v11, 0.0 }
 0x617   : > { %6479 = vst [vmem:[#allocation22_spill] sm:$0xff] %v5511_v57  ;;  %2552 = vrot.lane.b32.xlu1 %v6462_v10, %s3936_s10  ;;  %1981 = vmax.xlane.f32.xlu0 %v1950_v28  ;;  %v5518_v45 = vpop.f32.mrb[25].mxu0  ;;  %v2403_v57 = vsel %vm838_vm5, %v5520_v42, -1e+30 }
 0x618   : > { %6481 = vst [vmem:[#allocation72_spill] sm:$0xff] %v5518_v45  ;;  %v5522_v55 = vpop.f32.mrb[26].mxu0 }
 0x619   : > { %6483 = vst [vmem:[#allocation20_spill] sm:$0xff] %v5522_v55  ;;  %v2096_v58 = vpop.permute.xlu1 %2095  ;;  %v5524_v24 = vpop.f32.mrb[27].mxu0  ;;  %v6488_v55 = vld [vmem:[#allocation77_spill] sm:$0xff] }
 0x61a   : > { %6484 = vst [vmem:[#allocation21_spill] sm:$0xff] %v5524_v24  ;;  %3466 = vmatprep.subr.bf16.mxu1 %v2096_v58  ;;  %v2322_v45 = vadd.f32 %v4402_v48, %v6488_v55  ;;  %v2017_v24 = vmul.f32 1.442695, %v1992_v14 }
 0x61b   : > { %3467 = vmatpush3.bf16.msra.mxu1 %v2096_v58  ;;  %2434 = vmax.xlane.f32.xlu0 %v2403_v57 }
 0x61c   : > { %v2338_v57 = vmul.f32 %v5449_v44, %v2322_v45  ;;  %3666 = vpow2.f32 %v2017_v24  ;;  %v1577_v24 = vsel %vm6492_vm9, %v5218_v46, 0.0  ;;  %vm6498_vm9 = vcmp.ne.f32.partialorder %v6463_v22, 0.0 }
 0x61e   : > { %v5529_v38 = vpop.f32.mrb[28].mxu0  ;;  %vm2354_vm0 = vcmp.gt.f32.partialorder %v2338_v57, 0.0 }
 0x61f   : > { %6485 = vst [vmem:[#allocation69_spill] sm:$0xff] %v5529_v38  ;;  %v5531_v10 = vpop.f32.mrb[29].mxu0  ;;  %v6489_v38 = vld [vmem:[#allocation11_spill] sm:$0xff] }
 0x620   : > { %6486 = vst [vmem:[#allocation23_spill] sm:$0xff] %v5531_v10  ;;  %v5533_v28 = vpop.f32.mrb[30].mxu0  ;;  %v2370_v10 = vmul.f32 0.2, %v2338_v57 }
 0x621   : > { %6487 = vst [vmem:[#allocation80_spill] sm:$0xff] %v5533_v28  ;;  %v5535_v36 = vpop.f32.mrb[31].mxu0 }
 0x622   : > { %v5550_v34 = vsel %vm2354_vm0, %v2338_v57, %v2370_v10  ;;  %vm6495_vm0 = vcmp.ne.f32.partialorder %v6451_v54, 0.0 }
 0x623   : > { %v2402_v55 = vsel %vm837_vm12, %v5550_v34, -1e+30 }
 0x62a   : > { %v1968_v26 = vpop.xlane.xlu0 %1967 }
 0x62b   : > { %v1991_v41 = vsub.f32 %v5371_v7, %v1968_v26  ;;  %v5552_v7 = vpop.eup %3666 }
 0x62d   : > { %v2015_v42 = vmul.f32 1.442695, %v1991_v41 }
 0x62e   : > { %v1974_v58 = vpop.xlane.xlu0 %1973 }
 0x62f   : > { %3668 = vpow2.f32 %v2015_v42  ;;  %v1994_v45 = vsub.f32 %v5378_v8, %v1974_v58  ;;  %v1579_v8 = vsel %vm6494_vm8, %v5223_v62, 0.0  ;;  %v1580_v58 = vsel %vm6495_vm0, %v5252_v25, 0.0 }
 0x631   : > { %2101 = vrot.lane.b32.xlu0 %v6489_v38, %s3935_s9  ;;  %v2021_v10 = vmul.f32 1.442695, %v1994_v45 }
 0x632   : > { %v5544_v28 = vpop.xlane.xlu0 %2420 }
 0x633   : > { %3670 = vpow2.f32 %v2021_v10  ;;  %v6503_v10 = vld [vmem:[#allocation15_spill] sm:$0xff] }
 0x634   : > { %vm6504_vm0 = vcmp.ne.f32.partialorder %v6503_v10, 0.0 }
 0x635   : > { %2554 = vrot.lane.b32.xlu0 %v6489_v38, %s3936_s10  ;;  %v1575_v38 = vsel %vm6490_vm3, %v5197_v17, 0.0  ;;  %v1578_v17 = vsel %vm6493_vm6, %v5227_v19, 0.0  ;;  %vm6496_vm3 = vcmp.ne.f32.partialorder %v4442_v0, 0.0 }
 0x636   : > { %v5548_v48 = vpop.xlane.xlu0 %2422  ;;  %v1574_v19 = vsel %vm6496_vm3, %v5201_v29, 0.0  ;;  %v1583_v29 = vsel %vm6498_vm9, %v5250_v1, 0.0  ;;  %v6501_v1 = vld [vmem:[#allocation12_spill] sm:$0xff]  ;;  %vm6508_vm9 = vcmp.ne.f32.partialorder %v4466_v13, 0.0 }
 0x637   : > { %vm6502_vm8 = vcmp.ne.f32.partialorder %v6501_v1, 0.0 }
 0x639   : > { %v5554_v44 = vpop.eup %3668 }
 0x63a   : > { %v2549_v41 = vpop.permute.xlu0 %2548  ;;  %v3222_v42 = vpack.c.bf16 %v5552_v7, %v5554_v44 }
 0x63b   : > { %2432 = vmax.xlane.f32.xlu1 %v2402_v55  ;;  %3498 = vmatprep.subr.bf16.mxu0 %v2549_v41 }
 0x63c   : > { %3499 = vmatpush3.bf16.msra.mxu0 %v2549_v41  ;;  %v1581_v41 = vsel %vm6497_vm2, %v5243_v59, 0.0  ;;  %v1584_v59 = vsel %vm837_vm12, %v5278_v12, 0.0  ;;  %v2033_v12 = vsel %vm6504_vm0, %v5323_v3, 0.0  ;;  %vm6507_vm2 = vcmp.ne.f32.partialorder %v4442_v0, 0.0 }
 0x63d   : > { %v5591_v62 = vpop.eup %3670  ;;  %vm6511_vm0 = vcmp.ne.f32.partialorder %v6443_v47, 0.0 }
 0x63e   : > { %v2098_v26 = vpop.permute.xlu0 %2097 }
 0x63f   : > { %1596 = vadd.xlane.f32.xlu1 %v1575_v38  ;;  %3468 = vmatprep.subr.bf16.mxu1 %v2098_v26  ;;  %v1582_v38 = vsel %vm835_vm1, %v5254_v18, 0.0  ;;  %v1585_v18 = vsel %vm838_vm5, %v5274_v60, 0.0 }
 0x640   : > { %3469 = vmatpush3.bf16.msra.mxu1 %v2098_v26 }
 0x643   : > { %1598 = vadd.xlane.f32.xlu1 %v1576_v23  ;;  %v6499_v23 = vld [vmem:[#allocation13_spill] sm:$0xff] }
 0x644   : > { %vm6500_vm6 = vcmp.ne.f32.partialorder %v6499_v23, 0.0 }
 0x645   : > { %v2031_v45 = vsel %vm6500_vm6, %v5311_v2, 0.0  ;;  %v2035_v2 = vsel %vm6507_vm2, %v5430_v21, 0.0  ;;  %vm6509_vm6 = vcmp.ne.f32.partialorder %v4484_v53, 0.0  ;;  %vm6513_vm2 = vcmp.ne.f32.partialorder %v6451_v54, 0.0 }
 0x647   : > { %1600 = vadd.xlane.f32.xlu1 %v1577_v24  ;;  %v2032_v24 = vsel %vm6502_vm8, %v5316_v16, 0.0  ;;  %v2036_v16 = vsel %vm6508_vm9, %v5432_v30, 0.0  ;;  %vm6510_vm8 = vcmp.ne.f32.partialorder %v4499_v51, 0.0  ;;  %vm6514_vm9 = vcmp.ne.f32.partialorder %v6445_v11, 0.0 }
 0x64a   : > { %v1972_v14 = vpop.xlane.xlu1 %1971 }
 0x64b   : > { %v1993_v57 = vsub.f32 %v5400_v4, %v1972_v14  ;;  %1602 = vadd.xlane.f32.xlu1 %v1578_v17  ;;  %v6505_v14 = vld [vmem:[#allocation17_spill] sm:$0xff]  ;;  %v2037_v17 = vsel %vm6509_vm6, %v5467_v43, 0.0  ;;  %vm6516_vm6 = vcmp.ne.f32.partialorder %v6463_v22, 0.0 }
 0x64c   : > { %vm6506_vm3 = vcmp.ne.f32.partialorder %v6505_v14, 0.0 }
 0x64d   : > { %v2019_v55 = vmul.f32 1.442695, %v1993_v57  ;;  %v2034_v60 = vsel %vm6506_vm3, %v5325_v27, 0.0  ;;  %v2038_v57 = vsel %vm6510_vm8, %v5469_v61, 0.0  ;;  %vm6512_vm3 = vcmp.ne.f32.partialorder %v6436_v5, 0.0 }
 0x64e   : > { %v5575_v52 = vpop.xlane.xlu1 %2424  ;;  %vm6518_vm8 = vcmp.ne.f32.partialorder %v6499_v23, 0.0 }
 0x64f   : > { %3672 = vpow2.f32 %v2019_v55  ;;  %1604 = vadd.xlane.f32.xlu1 %v1579_v8  ;;  %v2039_v8 = vsel %vm6511_vm0, %v5554_v44, 0.0  ;;  %vm6522_vm0 = vcmp.ne.f32.partialorder %v6503_v10, 0.0  ;;  %v6526_v10 = vld [vmem:[#allocation18_spill] sm:$0xff] }
 0x652   : > { %v5580_v46 = vpop.xlane.xlu1 %2426 }
 0x653   : > { %1606 = vadd.xlane.f32.xlu1 %v1580_v58 }
 0x654   : > { %1594 = vadd.xlane.f32.xlu0 %v1574_v19  ;;  %v2040_v19 = vsel %vm6512_vm3, %v5552_v7, 0.0  ;;  %vm6524_vm3 = vcmp.ne.f32.partialorder %v4442_v0, 0.0 }
 0x656   : > { %v2551_v4 = vpop.permute.xlu1 %2550 }
 0x657   : > { %1608 = vadd.xlane.f32.xlu1 %v1581_v41  ;;  %3500 = vmatprep.subr.bf16.mxu0 %v2551_v4 }
 0x658   : > { %3501 = vmatpush3.bf16.msra.mxu0 %v2551_v4  ;;  %1610 = vadd.xlane.f32.xlu0 %v1582_v38 }
 0x659   : > { %v5596_v25 = vpop.eup %3672 }
 0x65a   : > { %v3225_v26 = vpack.c.bf16 %v5591_v62, %v5596_v25  ;;  %v2041_v38 = vsel %vm6513_vm2, %v5596_v25, 0.0  ;;  %vm6528_vm2 = vcmp.ne.f32.partialorder %v4484_v53, 0.0 }
 0x65b   : > { %1612 = vadd.xlane.f32.xlu1 %v1583_v29 }
 0x65c   : > { %1614 = vadd.xlane.f32.xlu0 %v1584_v59 }
 0x65f   : > { %1616 = vadd.xlane.f32.xlu1 %v1585_v18 }
 0x660   : > { %2047 = vadd.xlane.f32.xlu0 %v2031_v45 }
 0x663   : > { %2049 = vadd.xlane.f32.xlu1 %v2032_v24 }
 0x664   : > { %2051 = vadd.xlane.f32.xlu0 %v2033_v12 }
 0x667   : > { %2053 = vadd.xlane.f32.xlu1 %v2034_v60 }
 0x668   : > { %2055 = vadd.xlane.f32.xlu0 %v2035_v2  ;;  %v6515_v2 = vld [vmem:[#allocation74_spill] sm:$0xff] }
 0x66b   : > { %2057 = vadd.xlane.f32.xlu1 %v2036_v16  ;;  %v2438_v16 = vsub.f32 %v6515_v2, %v5352_v49 }
 0x66c   : > { %2059 = vadd.xlane.f32.xlu0 %v2037_v17 }
 0x66f   : > { %2061 = vadd.xlane.f32.xlu1 %v2038_v57  ;;  %v1976_v55 = vpop.xlane.xlu0 %1975 }
 0x670   : > { %v1995_v58 = vsub.f32 %v5434_v6, %v1976_v55  ;;  %2063 = vadd.xlane.f32.xlu0 %v2039_v8  ;;  %v2042_v6 = vsel %vm6514_vm9, %v5591_v62, 0.0  ;;  %v2456_v55 = vmul.f32 1.442695, %v2438_v16  ;;  %v2440_v8 = vsub.f32 %v5276_v20, %v5426_v9 }
 0x671   : > { %v2444_v9 = vsub.f32 %v5383_v56, %v5544_v28  ;;  %v6520_v56 = vld [vmem:[#allocation78_spill] sm:$0xff]  ;;  %vm6530_vm9 = vcmp.ne.f32.partialorder %v6443_v47, 0.0 }
 0x672   : > { %v2023_v4 = vmul.f32 1.442695, %v1995_v58 }
 0x673   : > { %2065 = vadd.xlane.f32.xlu1 %v2040_v19  ;;  %v2100_v41 = vpop.permute.xlu0 %2099 }
 0x674   : > { %3674 = vpow2.f32 %v2023_v4  ;;  %2067 = vadd.xlane.f32.xlu0 %v2041_v38  ;;  %3470 = vmatprep.subr.bf16.mxu1 %v2100_v41  ;;  %v2442_v4 = vsub.f32 %v5347_v35, %v5505_v40  ;;  %v2468_v35 = vmul.f32 1.442695, %v2444_v9  ;;  %v2446_v40 = vsub.f32 %v5405_v37, %v5575_v52 }
 0x675   : > { %3471 = vmatpush3.bf16.msra.mxu1 %v2100_v41 }
 0x676   : > { %v2464_v20 = vmul.f32 1.442695, %v2442_v4  ;;  %v2472_v2 = vmul.f32 1.442695, %v2446_v40 }
 0x677   : > { %2069 = vadd.xlane.f32.xlu1 %v2042_v6  ;;  %v6517_v6 = vld [vmem:[#allocation76_spill] sm:$0xff] }
 0x67e   : > { %v5646_v29 = vpop.eup %3674 }
 0x67f   : > { %v2043_v59 = vsel %vm835_vm1, %v5646_v29, 0.0 }
 0x680   : > { %2071 = vadd.xlane.f32.xlu0 %v2043_v59  ;;  %v2439_v59 = vsub.f32 %v6517_v6, %v5373_v15 }
 0x682   : > { %v2458_v16 = vmul.f32 1.442695, %v2439_v59  ;;  %v6529_v59 = vld [vmem:[#allocation71_spill] sm:$0xff] }
 0x687   : > { %v1978_v18 = vpop.xlane.xlu1 %1977 }
 0x688   : > { %v1996_v45 = vsub.f32 %v5458_v32, %v1978_v18  ;;  %v2460_v32 = vmul.f32 1.442695, %v2440_v8  ;;  %v2484_v18 = vsel %vm6518_vm8, %v5329_v33, 0.0  ;;  %v6523_v33 = vld [vmem:[#allocation67_spill] sm:$0xff]  ;;  %vm6538_vm8 = vcmp.ne.f32.partialorder %v6501_v1, 0.0 }
 0x68a   : > { %v2025_v24 = vmul.f32 1.442695, %v1996_v45 }
 0x68b   : > { %v1980_v12 = vpop.xlane.xlu1 %1979 }
 0x68c   : > { %3676 = vpow2.f32 %v2025_v24  ;;  %v1997_v60 = vsub.f32 %v5465_v63, %v1980_v12  ;;  %v6519_v24 = vld [vmem:[#allocation7_spill] sm:$0xff]  ;;  %v6521_v12 = vld [vmem:[#allocation65_spill] sm:$0xff] }
 0x68d   : > { %v2441_v28 = vsub.f32 %v6520_v56, %v6519_v24  ;;  %v6531_v56 = vld [vmem:[#allocation66_spill] sm:$0xff] }
 0x68e   : > { %v2027_v17 = vmul.f32 1.442695, %v1997_v60 }
 0x68f   : > { %v2429_v57 = vpop.xlane.xlu1 %2428 }
 0x690   : > { %3678 = vpow2.f32 %v2027_v17  ;;  %v2448_v60 = vsub.f32 %v6521_v12, %v2429_v57  ;;  %v2462_v17 = vmul.f32 1.442695, %v2441_v28  ;;  %v6525_v57 = vld [vmem:[#allocation24_spill] sm:$0xff] }
 0x691   : > { %3680 = vpow2.f32 %v2456_v55  ;;  %v2445_v4 = vsub.f32 %v6525_v57, %v5548_v48  ;;  %v2447_v48 = vsub.f32 %v6529_v59, %v5580_v46 }
 0x692   : > { %3682 = vpow2.f32 %v2460_v32  ;;  %v2476_v15 = vmul.f32 1.442695, %v2448_v60 }
 0x693   : > { %v5657_v58 = vpop.xlane.xlu1 %2430  ;;  %3684 = vpow2.f32 %v2464_v20  ;;  %v2470_v40 = vmul.f32 1.442695, %v2445_v4  ;;  %v2474_v47 = vmul.f32 1.442695, %v2447_v48 }
 0x694   : > { %3686 = vpow2.f32 %v2468_v35  ;;  %v2449_v28 = vsub.f32 %v6531_v56, %v5657_v58 }
 0x695   : > { %3688 = vpow2.f32 %v2472_v2  ;;  %v6532_v2 = vpack.c.bf16 %v5325_v27, %v5323_v3 }
 0x696   : > { %v5659_v19 = vpop.eup %3676  ;;  %3690 = vpow2.f32 %v2458_v16 }
 0x697   : > { %v2553_v63 = vpop.permute.xlu1 %2552  ;;  %v2044_v49 = vsel %vm6516_vm6, %v5659_v19, 0.0  ;;  %3692 = vpow2.f32 %v2462_v17  ;;  %vm6536_vm6 = vcmp.ne.f32.partialorder %v6451_v54, 0.0  ;;  %v3228_v44 = vpack.c.bf16 %v5659_v19, %v5646_v29 }
 0x698   : > { %2073 = vadd.xlane.f32.xlu1 %v2044_v49  ;;  %3502 = vmatprep.subr.bf16.mxu0 %v2553_v63  ;;  %v6527_v49 = vld [vmem:[#allocation79_spill] sm:$0xff]  ;;  %3694 = vpow2.f32 %v2476_v15 }
 0x699   : > { %3503 = vmatpush3.bf16.msra.mxu0 %v2553_v63  ;;  %v2443_v20 = vsub.f32 %v6527_v49, %v6526_v10 }
 0x69a   : > { %v5666_v41 = vpop.eup %3678 }
 0x69b   : > { %v2045_v38 = vsel %vm837_vm12, %v5666_v41, 0.0  ;;  %v3681_v45 = vpop.eup %3680  ;;  %v2466_v0 = vmul.f32 1.442695, %v2443_v20 }
 0x69c   : > { %2075 = vadd.xlane.f32.xlu0 %v2045_v38  ;;  %v2486_v37 = vsel %vm6522_vm0, %v3681_v45, 0.0  ;;  %v3683_v52 = vpop.eup %3682  ;;  %vm6603_vm0 = vcmask 261120  }
 0x69d   : > { %v2488_v8 = vsel %vm6524_vm3, %v3683_v52, 0.0  ;;  %v3685_v32 = vpop.eup %3684 }
 0x69e   : > { %v2490_v38 = vsel %vm6528_vm2, %v3685_v32, 0.0  ;;  %v3687_v35 = vpop.eup %3686  ;;  %vm6604_vm2 = vmmov %vm6603_vm0 }
 0x69f   : > { %v3689_v24 = vpop.eup %3688 }
 0x6a0   : > { %2500 = vadd.xlane.f32.xlu0 %v2484_v18  ;;  %v2492_v18 = vsel %vm6530_vm9, %v3687_v35, 0.0  ;;  %v3691_v53 = vpop.eup %3690  ;;  %v2494_v58 = vsel %vm6536_vm6, %v3689_v24, 0.0  ;;  %vm6605_vm6 = vmmov %vm6603_vm0 }
 0x6a1   : > { %v3693_v60 = vpop.eup %3692 }
 0x6a2   : > { %v3695_v46 = vpop.eup %3694  ;;  %v3240_v27 = vpack.c.bf16 %v3693_v60, %v3683_v52  ;;  %v6539_v52 = vpack.c.bf16 %v5469_v61, %v5467_v43  ;;  %v6543_v43 = vld [vmem:[#allocation10_spill] sm:$0xff] }
 0x6a3   : > { %v2496_v54 = vsel %vm835_vm1, %v3695_v46, 0.0  ;;  %vm6542_vm1 = vcmp.ne.f32.partialorder %v6505_v14, 0.0 }
 0x6a4   : > { %2504 = vadd.xlane.f32.xlu0 %v2486_v37  ;;  %v1982_v55 = vpop.xlane.xlu0 %1981  ;;  %v6534_v37 = vpack.c.bf16 %v5432_v30, %v5430_v21  ;;  %v6537_v21 = vld [vmem:[#allocation68_spill] sm:$0xff]  ;;  %v2487_v1 = vsel %vm6542_vm1, %v3691_v53, 0.0  ;;  %vm6606_vm1 = vmmov %vm6603_vm0 }
 0x6a5   : > { %v1998_v23 = vsub.f32 %v6523_v33, %v1982_v55  ;;  %v3237_v55 = vpack.c.bf16 %v3691_v53, %v3681_v45  ;;  %v2478_v33 = vmul.f32 1.442695, %v2449_v28  ;;  %v2485_v30 = vsel %vm6538_vm8, %v6537_v21, 0.0 }
 0x6a7   : > { %v2029_v63 = vmul.f32 1.442695, %v1998_v23 }
 0x6a8   : > { %2508 = vadd.xlane.f32.xlu0 %v2488_v8  ;;  %v2435_v9 = vpop.xlane.xlu0 %2434 }
 0x6a9   : > { %3696 = vpow2.f32 %v2029_v63  ;;  %v2451_v61 = vsub.f32 %v6543_v43, %v2435_v9 }
 0x6aa   : > { %3698 = vpow2.f32 %v2470_v40 }
 0x6ab   : > { %3700 = vpow2.f32 %v2466_v0  ;;  %v2482_v10 = vmul.f32 1.442695, %v2451_v61  ;;  %v6563_v61 = vld [vmem:[#allocation19_spill] sm:$0xff] }
 0x6ac   : > { %2512 = vadd.xlane.f32.xlu0 %v2490_v38  ;;  %v2102_v6 = vpop.permute.xlu0 %2101  ;;  %3702 = vpow2.f32 %v2474_v47 }
 0x6ad   : > { %3472 = vmatprep.subr.bf16.mxu1 %v2102_v6  ;;  %3704 = vpow2.f32 %v2478_v33 }
 0x6ae   : > { %3473 = vmatpush3.bf16.msra.mxu1 %v2102_v6  ;;  %3706 = vpow2.f32 %v2482_v10 }
 0x6b0   : > { %2516 = vadd.xlane.f32.xlu0 %v2492_v18  ;;  %v2555_v12 = vpop.permute.xlu0 %2554  ;;  %v6553_v18 = vld [vmem:[#allocation62_spill] sm:$0xff] }
 0x6b1   : > { %3475 = vmatmul.mubr.msk.bf16.vlgmr.msra.gmra.mrb[16].mxu1 %vm4639_vm7, %v6532_v2  ;;  %3504 = vmatprep.subr.bf16.mxu0 %v2555_v12  ;;  %v6557_v2 = vld [vmem:[#allocation75_spill] sm:$0xff] }
 0x6b2   : > { %3478 = vmatprep.mubr.msk.bf16.mxu1 %vm4658_vm11, %v6534_v37  ;;  %3505 = vmatpush3.bf16.msra.mxu0 %v2555_v12 }
 0x6b3   : > { %v3697_v15 = vpop.eup %3696 }
 0x6b4   : > { %2520 = vadd.xlane.f32.xlu0 %v2494_v58  ;;  %v2046_v3 = vsel %vm838_vm5, %v3697_v15, 0.0  ;;  %v3699_v45 = vpop.eup %3698  ;;  %v3231_v25 = vpack.c.bf16 %v3697_v15, %v5666_v41  ;;  %v6558_v58 = vld [vmem:[#allocation8_spill] sm:$0xff] }
 0x6b5   : > { %2077 = vadd.xlane.f32.xlu1 %v2046_v3  ;;  %3507 = vmatmul.mubr.msk.bf16.vlgmr.msra.gmra.mrb[32].mxu0 %vm4639_vm7, %v3237_v55  ;;  %v3701_v8 = vpop.eup %3700  ;;  %v3246_v4 = vpack.c.bf16 %v3699_v45, %v3687_v35  ;;  %vm6544_vm7 = vcmp.ne.f32.partialorder %v4466_v13, 0.0  ;;  %v6559_v55 = vld [vmem:[#allocation70_spill] sm:$0xff] }
 0x6b6   : > { %3510 = vmatprep.mubr.msk.bf16.mxu0 %vm4658_vm11, %v3240_v27  ;;  %v3243_v57 = vpack.c.bf16 %v3701_v8, %v3685_v32  ;;  %v3703_v63 = vpop.eup %3702  ;;  %v2489_v7 = vsel %vm6544_vm7, %v3693_v60, 0.0  ;;  %v6565_v32 = vld [vmem:[#allocation72_spill] sm:$0xff]  ;;  %vm2919_vm11 = vcmask 195584  }
 0x6b7   : > { %v3249_v49 = vpack.c.bf16 %v3703_v63, %v3689_v24  ;;  %v6554_v24 = vld [vmem:[#allocation60_spill] sm:$0xff] }
 0x6b8   : > { %2524 = vadd.xlane.f32.xlu0 %v2496_v54 }
 0x6b9   : > { %2502 = vadd.xlane.f32.xlu1 %v2485_v30  ;;  %3479 = vmatmul.mubr.msk.bf16.gmra.mrb[20].mxu1 %vm4675_vm4, %v6539_v52  ;;  %v6560_v30 = vld [vmem:[#allocation9_spill] sm:$0xff] }
 0x6ba   : > { %3482 = vmatprep.mubr.msk.bf16.mxu1 %vm4691_vm15, %v3222_v42  ;;  %v3705_v42 = vpop.eup %3704  ;;  %v6561_v52 = vld [vmem:[#allocation73_spill] sm:$0xff] }
 0x6bb   : > { %v3252_v20 = vpack.c.bf16 %v3705_v42, %v3695_v46  ;;  %v3707_v40 = vpop.eup %3706 }
 0x6bd   : > { %2506 = vadd.xlane.f32.xlu1 %v2487_v1  ;;  %3511 = vmatmul.mubr.msk.bf16.gmra.mrb[36].mxu0 %vm4675_vm4, %v3243_v57  ;;  %vm6548_vm4 = vcmp.ne.f32.partialorder %v6436_v5, 0.0  ;;  %v2499_v5 = vsel %vm838_vm5, %v3707_v40, 0.0  ;;  %vm2902_vm5 = vcmask 130048  }
 0x6be   : > { %3514 = vmatprep.mubr.msk.bf16.mxu0 %vm4691_vm15, %v3246_v4  ;;  %vm6547_vm15 = vcmp.ne.f32.partialorder %v4499_v51, 0.0  ;;  %v2493_v29 = vsel %vm6548_vm4, %v3699_v45, 0.0  ;;  %v6562_v4 = vld [vmem:[#allocation16_spill] sm:$0xff] }
 0x6bf   : > { %v2491_v13 = vsel %vm6547_vm15, %v3701_v8, 0.0  ;;  %vm6607_vm15 = vmmov %vm6603_vm0 }
 0x6c1   : > { %2510 = vadd.xlane.f32.xlu1 %v2489_v7  ;;  %3483 = vmatmul.mubr.msk.bf16.gmra.mrb[24].mxu1 %vm4707_vm13, %v3225_v26 }
 0x6c2   : > { %3486 = vmatprep.mubr.msk.bf16.mxu1 %vm4735_vm14, %v3228_v44 }
 0x6c5   : > { %2514 = vadd.xlane.f32.xlu1 %v2491_v13  ;;  %3515 = vmatmul.mubr.msk.bf16.gmra.mrb[40].mxu0 %vm4707_vm13, %v3249_v49  ;;  %vm6550_vm13 = vcmp.ne.f32.partialorder %v6445_v11, 0.0  ;;  %v6552_v11 = vld [vmem:[#allocation63_spill] sm:$0xff] }
 0x6c6   : > { %3518 = vmatprep.mubr.msk.bf16.mxu0 %vm4735_vm14, %v3252_v20  ;;  %v2495_v38 = vsel %vm6550_vm13, %v3703_v63, 0.0  ;;  %vm6551_vm14 = vcmp.ne.f32.partialorder %v6463_v22, 0.0  ;;  %v6566_v20 = vld [vmem:[#allocation20_spill] sm:$0xff]  ;;  %vm6608_vm13 = vmmov %vm6603_vm0 }
 0x6c7   : > { %v2497_v41 = vsel %vm6551_vm14, %v3705_v42, 0.0  ;;  %v6564_v42 = vld [vmem:[#allocation21_spill] sm:$0xff] }
 0x6c8   : > { %v2433_v62 = vpop.xlane.xlu1 %2432 }
 0x6c9   : > { %v2450_v26 = vsub.f32 %v5550_v34, %v2433_v62  ;;  %2518 = vadd.xlane.f32.xlu1 %v2493_v29  ;;  %3487 = vmatmul.mubr.msk.bf16.gmra.mrb[28].mxu1 %vm4760_vm10, %v3231_v25  ;;  %v6567_v25 = vld [vmem:[#allocation22_spill] sm:$0xff] }
 0x6cb   : > { %v2480_v19 = vmul.f32 1.442695, %v2450_v26 }
 0x6cc   : > { %v1597_v9 = vpop.xlane.xlu1 %1596 }
 0x6cd   : > { %3708 = vpow2.f32 %v2480_v19  ;;  %2522 = vadd.xlane.f32.xlu1 %v2495_v38 }
 0x6ce   : > { %3710 = vrcp.f32 %v6552_v11 }
 0x6cf   : > { %3712 = vrcp.f32 %v6553_v18 }
 0x6d0   : > { %v1599_v35 = vpop.xlane.xlu1 %1598  ;;  %3714 = vrcp.f32 %v6554_v24 }
 0x6d1   : > { %2526 = vadd.xlane.f32.xlu1 %v2497_v41  ;;  %3716 = vrcp.f32 %v6555_v31  ;;  %v6569_v41 = vld [vmem:[#allocation80_spill] sm:$0xff] }
 0x6d2   : > { %3718 = vrcp.f32 %v1597_v9  ;;  %v6568_v9 = vld [vmem:[#allocation23_spill] sm:$0xff] }
 0x6d4   : > { %v1601_v34 = vpop.xlane.xlu1 %1600 }
 0x6d5   : > { %2530 = vadd.xlane.f32.xlu1 %v2499_v5 }
 0x6d7   : > { %v3709_v0 = vpop.eup %3708 }
 0x6d8   : > { %v1603_v6 = vpop.xlane.xlu1 %1602  ;;  %v2498_v59 = vsel %vm837_vm12, %v3709_v0, 0.0  ;;  %v3255_v48 = vpack.c.bf16 %v3707_v40, %v3709_v0  ;;  %v3711_v53 = vpop.eup %3710  ;;  %vm2885_vm12 = vcmask 64512  }
 0x6d9   : > { %2528 = vadd.xlane.f32.xlu0 %v2498_v59  ;;  %v1772_v12 = vmul.f32 %v3711_v53, %v6556_v39  ;;  %v3713_v60 = vpop.eup %3712  ;;  %v6571_v39 = vld [vmem:[#allocation48_spill] sm:$0xff] }
 0x6da   : > { %3519 = vmatmul.mubr.msk.bf16.gmra.mrb[44].mxu0 %vm4760_vm10, %v3255_v48  ;;  %v1773_v16 = vmul.f32 %v3713_v60, %v6557_v2  ;;  %v3715_v47 = vpop.eup %3714  ;;  %v6572_v60 = vld [vmem:[#allocation6_spill] sm:$0xff] }
 0x6db   : > { %v3717_v37 = vpop.eup %3716  ;;  %v1771_v15 = vmul.f32 %v3715_v47, %v6558_v58 }
 0x6dc   : > { %v1605_v22 = vpop.xlane.xlu1 %1604  ;;  %v3719_v17 = vpop.eup %3718  ;;  %v1774_v33 = vmul.f32 %v3717_v37, %v6559_v55  ;;  %v6573_v37 = vld [vmem:[#allocation35_spill] sm:$0xff] }
 0x6dd   : > { %v1776_v45 = vmul.f32 %v3719_v17, %v6560_v30 }
 0x6e0   : > { %v1607_v28 = vpop.xlane.xlu1 %1606 }
 0x6e1   : > { %v1595_v56 = vpop.xlane.xlu0 %1594 }
 0x6e2   : > { %3720 = vrcp.f32 %v1595_v56 }
 0x6e3   : > { %3722 = vrcp.f32 %v1599_v35 }
 0x6e4   : > { %3724 = vrcp.f32 %v1601_v34  ;;  %v1609_v46 = vpop.xlane.xlu1 %1608  ;;  %v6570_v34 = vld [vmem:[#allocation69_spill] sm:$0xff] }
 0x6e5   : > { %3726 = vrcp.f32 %v1603_v6  ;;  %v1611_v27 = vpop.xlane.xlu0 %1610 }
 0x6e6   : > { %2711 = vrot.lane.b32.xlu1 %v1772_v12, %s3937_s11  ;;  %3728 = vrcp.f32 %v1605_v22 }
 0x6e7   : > { %3730 = vrcp.f32 %v1607_v28 }
 0x6e8   : > { %v1613_v54 = vpop.xlane.xlu1 %1612  ;;  %3732 = vrcp.f32 %v1609_v46 }
 0x6e9   : > { %3734 = vrcp.f32 %v1611_v27  ;;  %v1615_v50 = vpop.xlane.xlu0 %1614 }
 0x6ea   : > { %2713 = vrot.lane.b32.xlu1 %v1773_v16, %s3937_s11  ;;  %3736 = vrcp.f32 %v1613_v54 }
 0x6eb   : > { %3738 = vrcp.f32 %v1615_v50 }
 0x6ec   : > { %v3721_v3 = vpop.eup %3720  ;;  %v1617_v1 = vpop.xlane.xlu1 %1616 }
 0x6ed   : > { %v3723_v21 = vpop.eup %3722  ;;  %v1775_v23 = vmul.f32 %v3721_v3, %v6561_v52  ;;  %3740 = vrcp.f32 %v1617_v1  ;;  %v2048_v16 = vpop.xlane.xlu0 %2047  ;;  %v6574_v3 = vld [vmem:[#allocation32_spill] sm:$0xff] }
 0x6ee   : > { %2715 = vrot.lane.b32.xlu1 %v1774_v33, %s3937_s11  ;;  %v3725_v8 = vpop.eup %3724  ;;  %v1777_v63 = vmul.f32 %v3723_v21, %v6563_v61  ;;  %3742 = vrcp.f32 %v6571_v39 }
 0x6ef   : > { %2709 = vrot.lane.b32.xlu0 %v1771_v15, %s3937_s11  ;;  %v3727_v57 = vpop.eup %3726  ;;  %v1778_v43 = vmul.f32 %v3725_v8, %v6562_v4  ;;  %3744 = vrcp.f32 %v6572_v60 }
 0x6f0   : > { %v3729_v7 = vpop.eup %3728  ;;  %v1779_v10 = vmul.f32 %v3727_v57, %v6565_v32  ;;  %v2050_v0 = vpop.xlane.xlu1 %2049  ;;  %3746 = vrcp.f32 %v2048_v16 }
 0x6f1   : > { %v3731_v44 = vpop.eup %3730  ;;  %v1780_v14 = vmul.f32 %v3729_v7, %v6564_v42  ;;  %v2052_v15 = vpop.xlane.xlu0 %2051  ;;  %3748 = vrcp.f32 %v2050_v0 }
 0x6f2   : > { %2719 = vrot.lane.b32.xlu1 %v1776_v45, %s3937_s11  ;;  %v3733_v49 = vpop.eup %3732  ;;  %v1781_v26 = vmul.f32 %v3731_v44, %v6567_v25  ;;  %3750 = vrcp.f32 %v2052_v15 }
 0x6f3   : > { %2717 = vrot.lane.b32.xlu0 %v1775_v23, %s3937_s11  ;;  %v3735_v13 = vpop.eup %3734  ;;  %v1782_v62 = vmul.f32 %v3733_v49, %v6566_v20 }
 0x6f4   : > { %v3737_v29 = vpop.eup %3736  ;;  %v1783_v38 = vmul.f32 %v3735_v13, %v6568_v9  ;;  %v2054_v6 = vpop.xlane.xlu1 %2053 }
 0x6f5   : > { %v3739_v51 = vpop.eup %3738  ;;  %v1784_v19 = vmul.f32 %v3737_v29, %v5535_v36  ;;  %v2056_v30 = vpop.xlane.xlu0 %2055  ;;  %3752 = vrcp.f32 %v2054_v6 }
 0x6f6   : > { %2723 = vrot.lane.b32.xlu1 %v1778_v43, %s3937_s11  ;;  %v1785_v5 = vmul.f32 %v3739_v51, %v6570_v34  ;;  %3754 = vrcp.f32 %v2056_v30 }
 0x6f7   : > { %2721 = vrot.lane.b32.xlu0 %v1777_v63, %s3937_s11  ;;  %v3741_v35 = vpop.eup %3740 }
 0x6f8   : > { %v1786_v40 = vmul.f32 %v3741_v35, %v6569_v41  ;;  %v2058_v59 = vpop.xlane.xlu1 %2057  ;;  %v3743_v46 = vpop.eup %3742 }
 0x6f9   : > { %v1311_v17 = vmul.f32 %v3743_v46, %v6573_v37  ;;  %v3745_v58 = vpop.eup %3744  ;;  %v2060_v45 = vpop.xlane.xlu0 %2059  ;;  %3756 = vrcp.f32 %v2058_v59 }
 0x6fa   : > { %2727 = vrot.lane.b32.xlu1 %v1780_v14, %s3937_s11  ;;  %v1312_v27 = vmul.f32 %v3745_v58, %v6574_v3  ;;  %v3747_v57 = vpop.eup %3746  ;;  %3758 = vrcp.f32 %v2060_v45 }
 0x6fb   : > { %2725 = vrot.lane.b32.xlu0 %v1779_v10, %s3937_s11  ;;  %v3749_v63 = vpop.eup %3748 }
 0x6fc   : > { %v2062_v48 = vpop.xlane.xlu1 %2061  ;;  %v3751_v14 = vpop.eup %3750 }
 0x6fd   : > { %v2064_v52 = vpop.xlane.xlu0 %2063  ;;  %3760 = vrcp.f32 %v2062_v48 }
 0x6fe   : > { %2731 = vrot.lane.b32.xlu1 %v1782_v62, %s3937_s11  ;;  %3762 = vrcp.f32 %v2064_v52 }
 0x6ff   : > { %2729 = vrot.lane.b32.xlu0 %v1781_v26, %s3937_s11  ;;  %v3753_v13 = vpop.eup %3752 }
 0x700   : > { %v2066_v36 = vpop.xlane.xlu1 %2065  ;;  %v3755_v29 = vpop.eup %3754 }
 0x701   : > { %v2068_v23 = vpop.xlane.xlu0 %2067  ;;  %3764 = vrcp.f32 %v2066_v36 }
 0x702   : > { %2735 = vrot.lane.b32.xlu1 %v1784_v19, %s3937_s11  ;;  %3766 = vrcp.f32 %v2068_v23 }
 0x703   : > { %2733 = vrot.lane.b32.xlu0 %v1783_v38, %s3937_s11  ;;  %v3757_v38 = vpop.eup %3756 }
 0x704   : > { %v5809_v11 = vpop.xlane.xlu1 %2069  ;;  %v3759_v34 = vpop.eup %3758 }
 0x705   : > { %3768 = vrcp.f32 %v5809_v11 }
 0x706   : > { %2739 = vrot.lane.b32.xlu1 %v1786_v40, %s3937_s11 }
 0x707   : > { %2737 = vrot.lane.b32.xlu0 %v1785_v5, %s3937_s11  ;;  %v3761_v48 = vpop.eup %3760 }
 0x708   : > { %v3763_v16 = vpop.eup %3762 }
 0x70d   : > { %v2072_v8 = vpop.xlane.xlu0 %2071 }
 0x70e   : > { %3770 = vrcp.f32 %v2072_v8 }
 0x725   : > { %v5811_v22 = vpop.xlane.xlu1 %2073 }
 0x726   : > { %3772 = vrcp.f32 %v5811_v22 }
 0x729   : > { %v2076_v4 = vpop.xlane.xlu0 %2075 }
 0x72a   : > { %3774 = vrcp.f32 %v2076_v4 }
 0x72d   : > { %v2501_v62 = vpop.xlane.xlu0 %2500 }
 0x731   : > { %v2505_v0 = vpop.xlane.xlu0 %2504 }
 0x735   : > { %v2509_v15 = vpop.xlane.xlu0 %2508 }
 0x742   : > { %v5813_v18 = vpop.xlane.xlu1 %2077 }
 0x743   : > { %3776 = vrcp.f32 %v5813_v18  ;;  %v2513_v18 = vpop.xlane.xlu0 %2512 }
 0x744   : > { %3778 = vrcp.f32 %v2501_v62 }
 0x746   : > { %v5815_v24 = vpop.xlane.xlu1 %2502 }
 0x747   : > { %3780 = vrcp.f32 %v5815_v24  ;;  %v2517_v24 = vpop.xlane.xlu0 %2516 }
 0x748   : > { %3782 = vrcp.f32 %v2505_v0 }
 0x74a   : > { %v5817_v31 = vpop.xlane.xlu1 %2506 }
 0x74b   : > { %3784 = vrcp.f32 %v5817_v31 }
 0x74c   : > { %3786 = vrcp.f32 %v2509_v15 }
 0x74e   : > { %v5819_v56 = vpop.xlane.xlu1 %2510 }
 0x74f   : > { %3788 = vrcp.f32 %v5819_v56 }
 0x750   : > { %3790 = vrcp.f32 %v2513_v18 }
 0x752   : > { %v5821_v28 = vpop.xlane.xlu1 %2514 }
 0x753   : > { %3792 = vrcp.f32 %v5821_v28 }
 0x754   : > { %3794 = vrcp.f32 %v2517_v24 }
 0x756   : > { %v5823_v53 = vpop.xlane.xlu1 %2518 }
 0x75a   : > { %v5826_v12 = vpop.xlane.xlu1 %2522 }
 0x75e   : > { %v5829_v2 = vpop.xlane.xlu1 %2526 }
 0x762   : > { %v5831_v47 = vpop.xlane.xlu1 %2530 }
 0x766   : > { %v2712_v55 = vpop.permute.xlu1 %2711 }
 0x767   : > { %v5835_v33 = vsel %vm2885_vm12, %v1311_v17, %v2712_v55  ;;  %v3765_v17 = vpop.eup %3764  ;;  %3796 = vrcp.f32 %v5823_v53 }
 0x76a   : > { %v2714_v54 = vpop.permute.xlu1 %2713 }
 0x76b   : > { %v5839_v21 = vsel %vm2885_vm12, %v1312_v27, %v2714_v54  ;;  %v3767_v27 = vpop.eup %3766 }
 0x76c   : > { %v3769_v45 = vpop.eup %3768 }
 0x784   : > { %v3476_v50 = vpop.f32.mrb[16].mxu1 }
 0x785   : > { %v2145_v1 = vpop.f32.mrb[17].mxu1  ;;  %v2226_v10 = vmul.f32 %v3751_v14, %v3476_v50  ;;  %v3771_v50 = vpop.eup %3770 }
 0x786   : > { %v2224_v43 = vmul.f32 %v3747_v57, %v2145_v1  ;;  %v3477_v61 = vpop.f32.mrb[18].mxu1 }
 0x787   : > { %v2148_v7 = vpop.f32.mrb[19].mxu1  ;;  %v2227_v25 = vmul.f32 %v3753_v13, %v3477_v61 }
 0x788   : > { %v2225_v44 = vmul.f32 %v3749_v63, %v2148_v7  ;;  %v5841_v42 = vpop.f32.mrb[32].mxu0  ;;  %2773 = vrot.lane.b32.xlu0 %v2224_v43, %s3938_s12  ;;  %v3773_v43 = vpop.eup %3772 }
 0x789   : > { %v5844_v32 = vpop.f32.mrb[33].mxu0  ;;  %v3775_v7 = vpop.eup %3774 }
 0x78a   : > { %v5846_v49 = vpop.f32.mrb[34].mxu0  ;;  %2775 = vrot.lane.b32.xlu1 %v2225_v44, %s3938_s12  ;;  %v3777_v14 = vpop.eup %3776 }
 0x78b   : > { %v5849_v20 = vpop.f32.mrb[35].mxu0  ;;  %v3779_v13 = vpop.eup %3778 }
 0x78c   : > { %2777 = vrot.lane.b32.xlu0 %v2226_v10, %s3938_s12  ;;  %v3480_v26 = vpop.f32.mrb[20].mxu1  ;;  %v2677_v62 = vmul.f32 %v3779_v13, %v5844_v32 }
 0x78d   : > { %v2161_v51 = vpop.f32.mrb[21].mxu1  ;;  %v2230_v6 = vmul.f32 %v3759_v34, %v3480_v26 }
 0x78e   : > { %v2228_v19 = vmul.f32 %v3755_v29, %v2161_v51  ;;  %2779 = vrot.lane.b32.xlu1 %v2227_v25, %s3938_s12  ;;  %v3481_v9 = vpop.f32.mrb[22].mxu1  ;;  %v3781_v25 = vpop.eup %3780 }
 0x78f   : > { %v2164_v35 = vpop.f32.mrb[23].mxu1  ;;  %v2231_v39 = vmul.f32 %v3761_v48, %v3481_v9  ;;  %v2678_v31 = vmul.f32 %v3781_v25, %v5849_v20  ;;  %v3783_v26 = vpop.eup %3782 }
 0x790   : > { %v2229_v41 = vmul.f32 %v3757_v38, %v2164_v35  ;;  %v5853_v40 = vpop.f32.mrb[36].mxu0  ;;  %2781 = vrot.lane.b32.xlu0 %v2228_v19, %s3938_s12  ;;  %v2521_v29 = vpop.xlane.xlu0 %2520  ;;  %v2679_v51 = vmul.f32 %v3783_v26, %v5841_v42 }
 0x791   : > { %v5857_v5 = vpop.f32.mrb[37].mxu0  ;;  %v3785_v56 = vpop.eup %3784  ;;  %3798 = vrcp.f32 %v2521_v29  ;;  %v6577_v29 = vld [vmem:[#allocation49_spill] sm:$0xff] }
 0x792   : > { %v5859_v59 = vpop.f32.mrb[38].mxu0  ;;  %2783 = vrot.lane.b32.xlu1 %v2229_v41, %s3938_s12  ;;  %v2680_v32 = vmul.f32 %v3785_v56, %v5846_v49  ;;  %v3787_v9 = vpop.eup %3786  ;;  %3800 = vrcp.f32 %v5826_v12 }
 0x793   : > { %v5862_v36 = vpop.f32.mrb[39].mxu0  ;;  %v2681_v38 = vmul.f32 %v3787_v9, %v5857_v5  ;;  %v3789_v35 = vpop.eup %3788  ;;  %v6580_v9 = vld [vmem:[#allocation5_spill] sm:$0xff] }
 0x794   : > { %2785 = vrot.lane.b32.xlu0 %v2230_v6, %s3938_s12  ;;  %v3484_v60 = vpop.f32.mrb[24].mxu1  ;;  %v2525_v41 = vpop.xlane.xlu0 %2524  ;;  %v2682_v34 = vmul.f32 %v3789_v35, %v5862_v36 }
 0x795   : > { %v2177_v11 = vpop.f32.mrb[25].mxu1  ;;  %v2234_v22 = vmul.f32 %v3767_v27, %v3484_v60  ;;  %v3791_v49 = vpop.eup %3790  ;;  %3802 = vrcp.f32 %v2525_v41  ;;  %v6584_v41 = vld [vmem:[#allocation33_spill] sm:$0xff] }
 0x796   : > { %v2232_v46 = vmul.f32 %v3763_v16, %v2177_v11  ;;  %2787 = vrot.lane.b32.xlu1 %v2231_v39, %s3938_s12  ;;  %v3485_v37 = vpop.f32.mrb[26].mxu1  ;;  %v2683_v0 = vmul.f32 %v3791_v49, %v5853_v40  ;;  %v3793_v53 = vpop.eup %3792  ;;  %3804 = vrcp.f32 %v5829_v2  ;;  %v6585_v49 = vld [vmem:[#allocation56_spill] sm:$0xff] }
 0x797   : > { %v2180_v58 = vpop.f32.mrb[27].mxu1  ;;  %v2235_v23 = vmul.f32 %v3769_v45, %v3485_v37  ;;  %v2684_v6 = vmul.f32 %v3793_v53, %v5859_v59  ;;  %v3795_v48 = vpop.eup %3794  ;;  %v6586_v53 = vld [vmem:[#allocation57_spill] sm:$0xff] }
 0x798   : > { %v2233_v55 = vmul.f32 %v3765_v17, %v2180_v58  ;;  %v5867_v3 = vpop.f32.mrb[40].mxu0  ;;  %2789 = vrot.lane.b32.xlu0 %v2232_v46, %s3938_s12  ;;  %v2529_v5 = vpop.xlane.xlu0 %2528 }
 0x799   : > { %v5871_v54 = vpop.f32.mrb[41].mxu0  ;;  %v3797_v39 = vpop.eup %3796  ;;  %3806 = vrcp.f32 %v2529_v5 }
 0x79a   : > { %v5873_v30 = vpop.f32.mrb[42].mxu0  ;;  %2791 = vrot.lane.b32.xlu1 %v2233_v55, %s3938_s12  ;;  %v2685_v36 = vmul.f32 %v3795_v48, %v5871_v54  ;;  %3808 = vrcp.f32 %v5831_v47  ;;  %v6587_v48 = vld [vmem:[#allocation58_spill] sm:$0xff] }
 0x79b   : > { %v5876_v52 = vpop.f32.mrb[43].mxu0  ;;  %v3799_v40 = vpop.eup %3798 }
 0x79c   : > { %2793 = vrot.lane.b32.xlu0 %v2234_v22, %s3938_s12  ;;  %v3488_v8 = vpop.f32.mrb[28].mxu1  ;;  %v2686_v12 = vmul.f32 %v3797_v39, %v5876_v52  ;;  %v2687_v59 = vmul.f32 %v3799_v40, %v5867_v3  ;;  %v3801_v60 = vpop.eup %3800  ;;  %v6588_v40 = vld [vmem:[#allocation59_spill] sm:$0xff] }
 0x79d   : > { %v2193_v57 = vpop.f32.mrb[29].mxu1  ;;  %v2238_v44 = vmul.f32 %v3775_v7, %v3488_v8  ;;  %v2688_v2 = vmul.f32 %v3801_v60, %v5873_v30  ;;  %v2710_v55 = vpop.permute.xlu0 %2709 }
 0x79e   : > { %v2236_v1 = vmul.f32 %v3771_v50, %v2193_v57  ;;  %2795 = vrot.lane.b32.xlu1 %v2235_v23, %s3938_s12  ;;  %v3489_v4 = vpop.f32.mrb[30].mxu1  ;;  %v5920_v3 = vpop.permute.xlu1 %2715 }
 0x79f   : > { %v2196_v61 = vpop.f32.mrb[31].mxu1  ;;  %v2239_v10 = vmul.f32 %v3777_v14, %v3489_v4  ;;  %v3803_v16 = vpop.eup %3802 }
 0x7a0   : > { %v2237_v63 = vmul.f32 %v3773_v43, %v2196_v61  ;;  %2797 = vrot.lane.b32.xlu0 %v2236_v1, %s3938_s12  ;;  %v3805_v46 = vpop.eup %3804 }
 0x7a1   : > { %v5922_v27 = vpop.permute.xlu0 %2717 }
 0x7a2   : > { %2799 = vrot.lane.b32.xlu1 %v2237_v63, %s3938_s12  ;;  %v5924_v54 = vpop.permute.xlu1 %2719 }
 0x7a3   : > { %v3807_v17 = vpop.eup %3806 }
 0x7a4   : > { %2801 = vrot.lane.b32.xlu0 %v2238_v44, %s3938_s12  ;;  %v3809_v47 = vpop.eup %3808 }
 0x7a5   : > { %v5926_v22 = vpop.permute.xlu0 %2721 }
 0x7a6   : > { %2803 = vrot.lane.b32.xlu1 %v2239_v10, %s3938_s12  ;;  %v5928_v30 = vpop.permute.xlu1 %2723  ;;  %v6575_v10 = vld [vmem:[#allocation4_spill] sm:$0xff] }
 0x7a7   : > { %3810 = vrcp.f32 %v6575_v10 }
 0x7a8   : > { %2837 = vrot.lane.b32.xlu0 %v2677_v62, %s3939_s16 }
 0x7a9   : > { %v5930_v45 = vpop.permute.xlu0 %2725 }
 0x7aa   : > { %2839 = vrot.lane.b32.xlu1 %v2678_v31, %s3939_s16  ;;  %v5932_v52 = vpop.permute.xlu1 %2727  ;;  %v6576_v31 = vld [vmem:[#allocation50_spill] sm:$0xff] }
 0x7ab   : > { %3812 = vrcp.f32 %v6576_v31 }
 0x7ac   : > { %2841 = vrot.lane.b32.xlu0 %v2679_v51, %s3939_s16  ;;  %3814 = vrcp.f32 %v6577_v29  ;;  %v6578_v51 = vld [vmem:[#allocation51_spill] sm:$0xff]  ;;  %v6591_v29 = vld [vmem:[#allocation37_spill] sm:$0xff] }
 0x7ad   : > { %v3520_v19 = vpop.f32.mrb[44].mxu0  ;;  %v5934_v23 = vpop.permute.xlu0 %2729  ;;  %3816 = vrcp.f32 %v6578_v51 }
 0x7ae   : > { %v2646_v20 = vpop.f32.mrb[45].mxu0  ;;  %2843 = vrot.lane.b32.xlu1 %v2680_v32, %s3939_s16  ;;  %v2691_v58 = vmul.f32 %v3807_v17, %v3520_v19  ;;  %v5936_v8 = vpop.permute.xlu1 %2731  ;;  %v6579_v32 = vld [vmem:[#allocation52_spill] sm:$0xff]  ;;  %v6590_v17 = vld [vmem:[#allocation34_spill] sm:$0xff] }
 0x7af   : > { %v3521_v28 = vpop.f32.mrb[46].mxu0  ;;  %v2689_v11 = vmul.f32 %v3803_v16, %v2646_v20  ;;  %3818 = vrcp.f32 %v6579_v32 }
 0x7b0   : > { %v2649_v42 = vpop.f32.mrb[47].mxu0  ;;  %2845 = vrot.lane.b32.xlu0 %v2681_v38, %s3939_s16  ;;  %v2692_v15 = vmul.f32 %v3809_v47, %v3521_v28  ;;  %3820 = vrcp.f32 %v6580_v9  ;;  %v6581_v38 = vld [vmem:[#allocation53_spill] sm:$0xff]  ;;  %v6582_v28 = vld [vmem:[#allocation54_spill] sm:$0xff] }
 0x7b1   : > { %v2690_v37 = vmul.f32 %v3805_v46, %v2649_v42  ;;  %v5938_v50 = vpop.permute.xlu0 %2733  ;;  %v3811_v19 = vpop.eup %3810  ;;  %3822 = vrcp.f32 %v6581_v38  ;;  %v6583_v42 = vld [vmem:[#allocation55_spill] sm:$0xff] }
 0x7b2   : > { %2847 = vrot.lane.b32.xlu1 %v2682_v34, %s3939_s16  ;;  %v5940_v57 = vpop.permute.xlu1 %2735  ;;  %3824 = vrcp.f32 %v6582_v28  ;;  %v1310_v34 = vmul.f32 %v3811_v19, %v6584_v41  ;;  %v6592_v28 = vld [vmem:[#allocation39_spill] sm:$0xff] }
 0x7b3   : > { %3826 = vrcp.f32 %v6583_v42 }
 0x7b4   : > { %2849 = vrot.lane.b32.xlu0 %v2683_v0, %s3939_s16  ;;  %3828 = vrcp.f32 %v6585_v49  ;;  %v2886_v5 = vsel %vm2885_vm12, %v1310_v34, %v2710_v55 }
 0x7b5   : > { %v5942_v18 = vpop.permute.xlu0 %2737  ;;  %3830 = vrcp.f32 %v6586_v53 }
 0x7b6   : > { %2851 = vrot.lane.b32.xlu1 %v2684_v6, %s3939_s16  ;;  %v5944_v1 = vpop.permute.xlu1 %2739  ;;  %v3813_v6 = vpop.eup %3812  ;;  %3832 = vrcp.f32 %v6587_v48 }
 0x7b7   : > { %3834 = vrcp.f32 %v6588_v40  ;;  %v6595_v40 = vld [vmem:[#allocation38_spill] sm:$0xff] }
 0x7b8   : > { %2853 = vrot.lane.b32.xlu0 %v2685_v36, %s3939_s16 }
 0x7ba   : > { %2855 = vrot.lane.b32.xlu1 %v2686_v12, %s3939_s16  ;;  %v3815_v12 = vpop.eup %3814 }
 0x7bb   : > { %v3817_v60 = vpop.eup %3816 }
 0x7bc   : > { %2857 = vrot.lane.b32.xlu0 %v2687_v59, %s3939_s16 }
 0x7be   : > { %2859 = vrot.lane.b32.xlu1 %v2688_v2, %s3939_s16  ;;  %v6589_v2 = vld [vmem:[#allocation61_spill] sm:$0xff] }
 0x7bf   : > { %3836 = vrcp.f32 %v6589_v2 }
 0x7c0   : > { %2861 = vrot.lane.b32.xlu0 %v2689_v11, %s3939_s16 }
 0x7c2   : > { %2863 = vrot.lane.b32.xlu1 %v2690_v37, %s3939_s16  ;;  %v3819_v37 = vpop.eup %3818 }
 0x7c3   : > { %v1315_v42 = vmul.f32 %v3819_v37, %v6592_v28 }
 0x7c4   : > { %2865 = vrot.lane.b32.xlu0 %v2691_v58, %s3939_s16  ;;  %v1313_v58 = vmul.f32 %v3813_v6, %v6590_v17  ;;  %v6597_v17 = vld [vmem:[#allocation43_spill] sm:$0xff] }
 0x7c5   : > { %v2891_v48 = vsel %vm2885_vm12, %v1315_v42, %v5924_v54  ;;  %v6596_v54 = vld [vmem:[#allocation40_spill] sm:$0xff] }
 0x7c6   : > { %2867 = vrot.lane.b32.xlu1 %v2692_v15, %s3939_s16  ;;  %v3821_v15 = vpop.eup %3820 }
 0x7c7   : > { %v3823_v31 = vpop.eup %3822 }
 0x7c8   : > { %v3825_v32 = vpop.eup %3824  ;;  %v1317_v2 = vmul.f32 %v3823_v31, %v6595_v40 }
 0x7c9   : > { %v1320_v37 = vmul.f32 %v3825_v32, %v6596_v54  ;;  %v6600_v32 = vld [vmem:[#allocation42_spill] sm:$0xff] }
 0x7fa   : > { %v2774_v4 = vpop.permute.xlu0 %2773 }
 0x7fb   : > { %v2903_v36 = vsel %vm2902_vm5, %v2886_v5, %v2774_v4  ;;  %v6593_v5 = vld [vmem:[#allocation36_spill] sm:$0xff] }
 0x7fc   : > { %v2776_v43 = vpop.permute.xlu1 %2775  ;;  %v1316_v6 = vmul.f32 %v3817_v60, %v6593_v5 }
 0x7fd   : > { %v2904_v16 = vsel %vm2902_vm5, %v5835_v33, %v2776_v43  ;;  %v1314_v33 = vmul.f32 %v3815_v12, %v6591_v29  ;;  %v2889_v43 = vsel %vm2885_vm12, %v1313_v58, %v5920_v3 }
 0x7fe   : > { %v2778_v61 = vpop.permute.xlu0 %2777  ;;  %v2892_v60 = vsel %vm2885_vm12, %v1316_v6, %v5926_v22 }
 0x7ff   : > { %v2905_v55 = vsel %vm2902_vm5, %v5839_v21, %v2778_v61  ;;  %v3827_v61 = vpop.eup %3826  ;;  %v2890_v38 = vsel %vm2885_vm12, %v1314_v33, %v5922_v27  ;;  %v6594_v27 = vld [vmem:[#allocation41_spill] sm:$0xff]  ;;  %v6599_v33 = vld [vmem:[#allocation44_spill] sm:$0xff] }
 0x800   : > { %v2780_v63 = vpop.permute.xlu1 %2779  ;;  %v3829_v3 = vpop.eup %3828  ;;  %v1319_v58 = vmul.f32 %v3827_v61, %v6597_v17  ;;  %v6601_v61 = vld [vmem:[#allocation47_spill] sm:$0xff] }
 0x801   : > { %v2906_v19 = vsel %vm2902_vm5, %v2889_v43, %v2780_v63  ;;  %v3831_v53 = vpop.eup %3830  ;;  %v2893_v43 = vsel %vm2885_vm12, %v1317_v2, %v5928_v30  ;;  %v6602_v30 = vld [vmem:[#allocation46_spill] sm:$0xff] }
 0x802   : > { %v5946_v7 = vpop.permute.xlu0 %2781  ;;  %v3833_v12 = vpop.eup %3832 }
 0x803   : > { %v2907_v34 = vsel %vm2902_vm5, %v2890_v38, %v5946_v7  ;;  %v6040_v22 = vmul.f32 %v3833_v12, %v6599_v33 }
 0x804   : > { %v5948_v44 = vpop.permute.xlu1 %2783 }
 0x805   : > { %v2908_v7 = vsel %vm2902_vm5, %v2891_v48, %v5948_v44  ;;  %v2895_v48 = vsel %vm2885_vm12, %v1319_v58, %v5932_v52  ;;  %v2896_v52 = vsel %vm2885_vm12, %v1320_v37, %v5934_v23 }
 0x806   : > { %v5950_v14 = vpop.permute.xlu0 %2785 }
 0x807   : > { %v2909_v44 = vsel %vm2902_vm5, %v2892_v60, %v5950_v14 }
 0x808   : > { %v5952_v24 = vpop.permute.xlu1 %2787 }
 0x809   : > { %v2910_v14 = vsel %vm2902_vm5, %v2893_v43, %v5952_v24 }
 0x80a   : > { %v5955_v13 = vpop.permute.xlu0 %2789 }
 0x80c   : > { %v5957_v62 = vpop.permute.xlu1 %2791 }
 0x80e   : > { %v5959_v25 = vpop.permute.xlu0 %2793 }
 0x810   : > { %v5962_v26 = vpop.permute.xlu1 %2795 }
 0x812   : > { %v5966_v56 = vpop.permute.xlu0 %2797 }
 0x814   : > { %v5970_v20 = vpop.permute.xlu1 %2799 }
 0x816   : > { %v5974_v35 = vpop.permute.xlu0 %2801 }
 0x818   : > { %v5979_v0 = vpop.permute.xlu1 %2803 }
 0x81a   : > { %v2838_v39 = vpop.permute.xlu0 %2837 }
 0x81b   : > { %v5987_v59 = vsel %vm2919_vm11, %v2903_v36, %v2838_v39  ;;  %v1318_v36 = vmul.f32 %v3821_v15, %v6594_v27 }
 0x81c   : > { %v2952_v11 = vmul.f32 1.442695, %v5987_v59  ;;  %v2840_v46 = vpop.permute.xlu1 %2839  ;;  %vm2936_vm10 = vcmp.gt.f32.partialorder %v5987_v59, 0.0 }
 0x81d   : > { %v5995_v47 = vsel %vm2919_vm11, %v2904_v16, %v2840_v46  ;;  %v3835_v46 = vpop.eup %3834 }
 0x81e   : > { %3838 = vpow2.f32 %v2952_v11  ;;  %v2954_v4 = vmul.f32 1.442695, %v5995_v47  ;;  %v2842_v10 = vpop.permute.xlu0 %2841  ;;  %v1323_v38 = vmul.f32 %v3835_v46, %v6601_v61  ;;  %vm2937_vm3 = vcmp.gt.f32.partialorder %v5995_v47, 0.0 }
 0x81f   : > { %v6004_v51 = vsel %vm2919_vm11, %v2905_v55, %v2842_v10  ;;  %v3837_v55 = vpop.eup %3836 }
 0x820   : > { %3840 = vpow2.f32 %v2954_v4  ;;  %v2956_v9 = vmul.f32 1.442695, %v6004_v51  ;;  %v2844_v21 = vpop.permute.xlu1 %2843  ;;  %v6598_v4 = vld [vmem:[#allocation45_spill] sm:$0xff]  ;;  %vm2938_vm9 = vcmp.gt.f32.partialorder %v6004_v51, 0.0 }
 0x821   : > { %v6012_v41 = vsel %vm2919_vm11, %v2906_v19, %v2844_v21  ;;  %v1322_v10 = vmul.f32 %v3829_v3, %v6598_v4  ;;  %v1321_v19 = vmul.f32 %v3831_v53, %v6600_v32  ;;  %v6059_v3 = vmul.f32 %v3837_v55, %v6602_v30 }
 0x822   : > { %3842 = vpow2.f32 %v2956_v9  ;;  %v2958_v63 = vmul.f32 1.442695, %v6012_v41  ;;  %v2846_v49 = vpop.permute.xlu0 %2845  ;;  %vm2939_vm8 = vcmp.gt.f32.partialorder %v6012_v41, 0.0 }
 0x823   : > { %v6022_v39 = vsel %vm2919_vm11, %v2907_v34, %v2846_v49  ;;  %v2894_v34 = vsel %vm2885_vm12, %v1318_v36, %v5930_v45  ;;  %v2897_v23 = vsel %vm2885_vm12, %v1321_v19, %v5936_v8  ;;  %v2898_v8 = vsel %vm2885_vm12, %v1322_v10, %v5938_v50 }
 0x824   : > { %3844 = vpow2.f32 %v2958_v63  ;;  %v2960_v16 = vmul.f32 1.442695, %v6022_v39  ;;  %v2848_v11 = vpop.permute.xlu1 %2847  ;;  %v2911_v53 = vsel %vm2902_vm5, %v2894_v34, %v5955_v13  ;;  %v2912_v13 = vsel %vm2902_vm5, %v2895_v48, %v5957_v62 }
 0x825   : > { %v6033_v15 = vsel %vm2919_vm11, %v2908_v7, %v2848_v11  ;;  %v2913_v62 = vsel %vm2902_vm5, %v2896_v52, %v5959_v25  ;;  %v2914_v25 = vsel %vm2902_vm5, %v2897_v23, %v5962_v26  ;;  %v2915_v26 = vsel %vm2902_vm5, %v2898_v8, %v5966_v56 }
 0x826   : > { %3846 = vpow2.f32 %v2960_v16  ;;  %v2962_v31 = vmul.f32 1.442695, %v6033_v15  ;;  %v2850_v29 = vpop.permute.xlu0 %2849  ;;  %vm2940_vm7 = vcmp.gt.f32.partialorder %v6022_v39, 0.0  ;;  %v2899_v50 = vsel %vm2885_vm12, %v1323_v38, %v5940_v57 }
 0x827   : > { %v6046_v9 = vsel %vm2919_vm11, %v2909_v44, %v2850_v29  ;;  %v2916_v56 = vsel %vm2902_vm5, %v2899_v50, %v5970_v20  ;;  %vm2941_vm4 = vcmp.gt.f32.partialorder %v6033_v15, 0.0  ;;  %v2900_v57 = vsel %vm2885_vm12, %v6040_v22, %v5942_v18 }
 0x828   : > { %v3839_v21 = vpop.eup %3838  ;;  %3848 = vpow2.f32 %v2962_v31  ;;  %v2964_v28 = vmul.f32 1.442695, %v6046_v9  ;;  %v2852_v42 = vpop.permute.xlu1 %2851  ;;  %v2917_v20 = vsel %vm2902_vm5, %v2900_v57, %v5974_v35  ;;  %vm2942_vm14 = vcmp.gt.f32.partialorder %v6046_v9, 0.0 }
 0x829   : > { %v3257_v63 = vadd.f32 -1.0, %v3839_v21  ;;  %v6064_v49 = vsel %vm2919_vm11, %v2910_v14, %v2852_v42  ;;  %v2901_v18 = vsel %vm2885_vm12, %v6059_v3, %v5944_v1  ;;  %vm6610_vm12 = vmmov %vm6606_vm1 }
 0x82a   : > { %v3841_v24 = vpop.eup %3840  ;;  %3850 = vpow2.f32 %v2964_v28  ;;  %v2966_v5 = vmul.f32 1.442695, %v6064_v49  ;;  %v2854_v6 = vpop.permute.xlu0 %2853  ;;  %v2918_v35 = vsel %vm2902_vm5, %v2901_v18, %v5979_v0  ;;  %vm6611_vm5 = vmmov %vm6606_vm1 }
 0x82b   : > { %v3000_v27 = vsel %vm2936_vm10, %v5987_v59, %v3257_v63  ;;  %v3258_v45 = vadd.f32 -1.0, %v3841_v24  ;;  %v6074_v36 = vsel %vm2919_vm11, %v2911_v53, %v2854_v6  ;;  %vm6609_vm10 = vmmov %vm6603_vm0 }
 0x82c   : > { %v3843_v12 = vpop.eup %3842  ;;  %3017 = vst.msk [vmem:[%s6056_s19] sm:$0xff] %vm6603_vm0, %v3000_v27  ;;  %3852 = vpow2.f32 %v2966_v5  ;;  %v2968_v40 = vmul.f32 1.442695, %v6074_v36  ;;  %v2856_v2 = vpop.permute.xlu1 %2855  ;;  %vm2943_vm0 = vcmp.gt.f32.partialorder %v6064_v49, 0.0 }
 0x82d   : > { %v3001_v59 = vsel %vm2937_vm3, %v5995_v47, %v3258_v45  ;;  %v3259_v7 = vadd.f32 -1.0, %v3843_v12  ;;  %v6086_v16 = vsel %vm2919_vm11, %v2912_v13, %v2856_v2  ;;  %vm2944_vm3 = vcmp.gt.f32.partialorder %v6074_v36, 0.0 }
 0x82e   : > { %v3845_v11 = vpop.eup %3844  ;;  %3018 = vst.msk [vmem:[%s6056_s19 + $0x8] sm:$0xff] %vm6604_vm2, %v3001_v59  ;;  %3854 = vpow2.f32 %v2968_v40  ;;  %v2970_v46 = vmul.f32 1.442695, %v6086_v16  ;;  %v2858_v60 = vpop.permute.xlu0 %2857  ;;  %vm2945_vm2 = vcmp.gt.f32.partialorder %v6086_v16, 0.0 }
 0x82f   : > { %v3002_v47 = vsel %vm2938_vm9, %v6004_v51, %v3259_v7  ;;  %v3260_v54 = vadd.f32 -1.0, %v3845_v11  ;;  %v6098_v37 = vsel %vm2919_vm11, %v2913_v62, %v2858_v60 }
 0x830   : > { %v3847_v17 = vpop.eup %3846  ;;  %3019 = vst.msk [vmem:[%s6056_s19 + $0x10] sm:$0xff] %vm6605_vm6, %v3002_v47  ;;  %3856 = vpow2.f32 %v2970_v46  ;;  %v2972_v58 = vmul.f32 1.442695, %v6098_v37  ;;  %v2860_v55 = vpop.permute.xlu1 %2859  ;;  %vm2946_vm9 = vcmp.gt.f32.partialorder %v6098_v37, 0.0  ;;  %vm6613_vm6 = vmmov %vm6606_vm1 }
 0x831   : > { %v3003_v51 = vsel %vm2939_vm8, %v6012_v41, %v3260_v54  ;;  %v3261_v4 = vadd.f32 -1.0, %v3847_v17  ;;  %v6110_v44 = vsel %vm2919_vm11, %v2914_v25, %v2860_v55 }
 0x832   : > { %v3849_v31 = vpop.eup %3848  ;;  %3020 = vst.msk [vmem:[%s6056_s19 + $0x18] sm:$0xff] %vm6606_vm1, %v3003_v51  ;;  %3858 = vpow2.f32 %v2972_v58  ;;  %v2974_v29 = vmul.f32 1.442695, %v6110_v44  ;;  %v2862_v33 = vpop.permute.xlu0 %2861  ;;  %vm2947_vm8 = vcmp.gt.f32.partialorder %v6110_v44, 0.0 }
 0x833   : > { %v3004_v41 = vsel %vm2940_vm7, %v6022_v39, %v3261_v4  ;;  %v3262_v10 = vadd.f32 -1.0, %v3849_v31  ;;  %v2932_v43 = vsel %vm2919_vm11, %v2915_v26, %v2862_v33 }
 0x834   : > { %v3851_v32 = vpop.eup %3850  ;;  %3021 = vst.msk [vmem:[%s6056_s19 + $0x20] sm:$0xff] %vm6607_vm15, %v3004_v41  ;;  %3860 = vpow2.f32 %v2974_v29  ;;  %v2976_v19 = vmul.f32 1.442695, %v2932_v43  ;;  %v2864_v21 = vpop.permute.xlu1 %2863  ;;  %vm2948_vm7 = vcmp.gt.f32.partialorder %v2932_v43, 0.0  ;;  %vm6614_vm15 = vmmov %vm6606_vm1 }
 0x835   : > { %v3005_v39 = vsel %vm2941_vm4, %v6033_v15, %v3262_v10  ;;  %v3263_v61 = vadd.f32 -1.0, %v3851_v32  ;;  %v2933_v38 = vsel %vm2919_vm11, %v2916_v56, %v2864_v21 }
 0x836   : > { %v3853_v14 = vpop.eup %3852  ;;  %3022 = vst.msk [vmem:[%s6056_s19 + $0x28] sm:$0xff] %vm6608_vm13, %v3005_v39  ;;  %3862 = vpow2.f32 %v2976_v19  ;;  %v2978_v28 = vmul.f32 1.442695, %v2933_v38  ;;  %v2866_v42 = vpop.permute.xlu0 %2865  ;;  %vm2949_vm4 = vcmp.gt.f32.partialorder %v2933_v38, 0.0  ;;  %vm6615_vm13 = vmmov %vm6606_vm1 }
 0x837   : > { %v3006_v15 = vsel %vm2942_vm14, %v6046_v9, %v3263_v61  ;;  %v3264_v22 = vadd.f32 -1.0, %v3853_v14  ;;  %v2934_v30 = vsel %vm2919_vm11, %v2917_v20, %v2866_v42 }
 0x838   : > { %v3855_v34 = vpop.eup %3854  ;;  %3023 = vst.msk [vmem:[%s6056_s19 + $0x30] sm:$0xff] %vm6609_vm10, %v3006_v15  ;;  %3864 = vpow2.f32 %v2978_v28  ;;  %v2980_v63 = vmul.f32 1.442695, %v2934_v30  ;;  %v2868_v24 = vpop.permute.xlu1 %2867  ;;  %vm2950_vm14 = vcmp.gt.f32.partialorder %v2934_v30, 0.0  ;;  %vm6616_vm10 = vmmov %vm6606_vm1 }
 0x839   : > { %v3007_v53 = vsel %vm2943_vm0, %v6064_v49, %v3264_v22  ;;  %v3265_v1 = vadd.f32 -1.0, %v3855_v34  ;;  %v2935_v9 = vsel %vm2919_vm11, %v2918_v35, %v2868_v24  ;;  %vm6612_vm11 = vmmov %vm6606_vm1 }
 0x83a   : > { %v3857_v3 = vpop.eup %3856  ;;  %3024 = vst.msk [vmem:[%s6056_s19 + $0x38] sm:$0xff] %vm6610_vm12, %v3007_v53  ;;  %3866 = vpow2.f32 %v2980_v63  ;;  %v2982_v0 = vmul.f32 1.442695, %v2935_v9  ;;  %vm2951_vm0 = vcmp.gt.f32.partialorder %v2935_v9, 0.0  ;;  %vm6617_vm12 = vmmov %vm6606_vm1 }
 0x83b   : > { %v3008_v5 = vsel %vm2944_vm3, %v6074_v36, %v3265_v1  ;;  %v3266_v6 = vadd.f32 -1.0, %v3857_v3 }
 0x83c   : > { %v3859_v48 = vpop.eup %3858  ;;  %3025 = vst.msk [vmem:[%s6056_s19 + $0x40] sm:$0xff] %vm6611_vm5, %v3008_v5  ;;  %3868 = vpow2.f32 %v2982_v0 }
 0x83d   : > { %v3009_v49 = vsel %vm2945_vm2, %v6086_v16, %v3266_v6  ;;  %v3267_v27 = vadd.f32 -1.0, %v3859_v48 }
 0x83e   : > { %v3861_v45 = vpop.eup %3860  ;;  %3026 = vst.msk [vmem:[%s6056_s19 + $0x48] sm:$0xff] %vm6612_vm11, %v3009_v49 }
 0x83f   : > { %v3010_v12 = vsel %vm2946_vm9, %v6098_v37, %v3267_v27  ;;  %v3268_v36 = vadd.f32 -1.0, %v3861_v45 }
 0x840   : > { %v3863_v13 = vpop.eup %3862  ;;  %3027 = vst.msk [vmem:[%s6056_s19 + $0x50] sm:$0xff] %vm6613_vm6, %v3010_v12 }
 0x841   : > { %v3011_v40 = vsel %vm2947_vm8, %v6110_v44, %v3268_v36  ;;  %v3269_v2 = vadd.f32 -1.0, %v3863_v13 }
 0x842   : > { %v3865_v52 = vpop.eup %3864  ;;  %3028 = vst.msk [vmem:[%s6056_s19 + $0x58] sm:$0xff] %vm6606_vm1, %v3011_v40 }
 0x843   : > { %v3012_v59 = vsel %vm2948_vm7, %v2932_v43, %v3269_v2  ;;  %v3270_v7 = vadd.f32 -1.0, %v3865_v52 }
 0x844   : > { %v3867_v16 = vpop.eup %3866  ;;  %3029 = vst.msk [vmem:[%s6056_s19 + $0x60] sm:$0xff] %vm6614_vm15, %v3012_v59 }
 0x845   : > { %v3013_v11 = vsel %vm2949_vm4, %v2933_v38, %v3270_v7  ;;  %v3271_v62 = vadd.f32 -1.0, %v3867_v16 }
 0x846   : > { %v3869_v46 = vpop.eup %3868  ;;  %3030 = vst.msk [vmem:[%s6056_s19 + $0x68] sm:$0xff] %vm6615_vm13, %v3013_v11 }
 0x847   : > { %v3014_v60 = vsel %vm2950_vm14, %v2934_v30, %v3271_v62  ;;  %v3272_v23 = vadd.f32 -1.0, %v3869_v46 }
 0x848   : > { %3031 = vst.msk [vmem:[%s6056_s19 + $0x70] sm:$0xff] %vm6616_vm10, %v3014_v60 }
 0x849   : > { %v3015_v47 = vsel %vm2951_vm0, %v2935_v9, %v3272_v23 }
 0x84a   : > { %3032 = vst.msk [vmem:[%s6056_s19 + $0x78] sm:$0xff] %vm6617_vm12, %v3015_v47 }
 0x84b PF: > { %s13_s14 = sadd.s32 1, %s3924_s14   ;;  %s6618_s12 = smov %s3920_s13 }
 0x84c   : > { %p10_p5 = scmp.ge.s32.totalorder %s13_s14, 5   ;;  %s6619_s13 = smov %s6621_s15 }
 0x84e   :  { %12 = sbr.rel (!%p10_p5) target bundleno = 2 (0x2), region = 70 }

</bundles_post_ra>
